<compile_context>
chip_gen: v5e
topology: v5e:2x2
jax: 0.10.0
libtpu: 0.0.40
codegen_flags: <defaults>
</compile_context>

<pallas_src>
import functools

import jax
import jax.numpy as jnp
from jax import lax
from jax.experimental import pallas as pl
from jax.experimental.pallas import tpu as pltpu


# ----------------------------------------------------------------------------
# Small helpers
# ----------------------------------------------------------------------------

def _round_up(v, m):
    return (v + m - 1) // m * m


def _num_rows(x):
    n = 1
    for s in x.shape[:-1]:
        n *= int(s)
    return n


def _pick_divisor(L, target):
    """Largest multiple of 8 <= target dividing L (or L itself if small)."""
    if L <= target:
        return L
    c = (target // 8) * 8
    while c >= 8:
        if L % c == 0:
            return c
        c -= 8
    return L


def _row_block(M, C, itemsize=2):
    """(rows, padded_M) for elementwise kernels; rows is a multiple of 8."""
    target = max(256, min(4096, (2 << 20) // max(C * itemsize, 1)))
    target -= target % 8
    if M <= target:
        rows = _round_up(M, 8)
        return rows, rows
    c = target
    while c >= 256:
        if M % c == 0:
            return c, M
        c -= 8
    return target, _round_up(M, target)


def _fold_lanes(M, C):
    """Fold factor so the lane (last) dim is >= 128 (lane-dense stores)."""
    if C < 128 and 128 % C == 0 and M % (128 // C) == 0:
        return 128 // C
    return 1


_TILE_CFG = None


def _mxu_tile_config():
    """Per-generation (tm_max, tn_max) for the matmul kernel."""
    global _TILE_CFG
    if _TILE_CFG is None:
        try:
            kind = jax.devices()[0].device_kind.lower()
        except Exception:
            kind = ""
        if "v7" in kind:
            _TILE_CFG = (256, 256)   # 64 MiB VMEM: keep tiles modest
        elif "v6" in kind:
            _TILE_CFG = (512, 512)   # 128 MiB VMEM: wide N cuts A re-reads
        else:
            _TILE_CFG = (256, 256)   # v5e: tn=256 halves A-tile re-reads
    return _TILE_CFG


# ----------------------------------------------------------------------------
# Tiled matmul (bf16 MXU inputs, f32 accumulation, fused bias epilogue,
# optional fused BN-statistics epilogue)
# ----------------------------------------------------------------------------

def _make_matmul_kernel(has_bias, compute_stats):
    def kernel(*refs):
        a_ref, b_ref = refs[0], refs[1]
        idx = 2
        bias_ref = None
        if has_bias:
            bias_ref = refs[idx]
            idx += 1
        o_ref = refs[idx]
        idx += 1
        if compute_stats:
            s_ref, ss_ref = refs[idx], refs[idx + 1]
            idx += 2
        acc_ref = refs[idx]

        k = pl.program_id(2)

        @pl.when(k == 0)
        def _():
            acc_ref[...] = jnp.zeros_like(acc_ref)

        acc_ref[...] += jnp.dot(a_ref[...], b_ref[...],
                                preferred_element_type=jnp.float32)

        if compute_stats:
            # Grid order is (j, i, k): the (0, j) stats block stays resident
            # across the full i/k sweep for this j, so accumulation is safe.
            @pl.when((pl.program_id(1) == 0) & (k == 0))
            def _():
                s_ref[...] = jnp.zeros_like(s_ref)
                ss_ref[...] = jnp.zeros_like(ss_ref)

        @pl.when(k == pl.num_programs(2) - 1)
        def _():
            tile = acc_ref[...]
            if has_bias:
                tile = tile + bias_ref[...]
            o_ref[...] = tile.astype(o_ref.dtype)
            if compute_stats:
                s_ref[...] += jnp.sum(tile, axis=0, keepdims=True)
                ss_ref[...] += jnp.sum(tile * tile, axis=0, keepdims=True)

    return kernel


def matmul_pallas(a, b, bias=None, out_dtype=jnp.bfloat16, compute_stats=False):
    """(M, K) @ (K, N) [+ bias] with bf16 MXU operands and f32 accumulation.

    With compute_stats=True also returns per-column sum and sum-of-squares of
    the (bias-included) output over the real M rows, so the BatchNorm stats
    pass never re-reads the activation from HBM.
    """
    M, K = a.shape
    K2, N = b.shape
    assert K == K2
    tm_max, tn_max = _mxu_tile_config()

    Kp = _round_up(K, 128)
    tk = next(c for c in (512, 384, 256, 128) if Kp % c == 0)
    Np = _round_up(N, 128)
    tn = next(c for c in (512, 384, 256, 128) if c <= tn_max and Np % c == 0)
    if M <= tm_max:
        Mp = _round_up(M, 8)
        tm = Mp
    else:
        Mp = _round_up(M, 128)
        tm = next(c for c in (tm_max, 384, 256, 128)
                  if c <= tm_max and Mp % c == 0)

    a = a.astype(jnp.bfloat16)
    b = b.astype(jnp.bfloat16)
    if (Mp, Kp) != (M, K):
        a = jnp.pad(a, ((0, Mp - M), (0, Kp - K)))
    if (Kp, Np) != (K, N):
        b = jnp.pad(b, ((0, Kp - K), (0, Np - N)))

    has_bias = bias is not None
    inputs = [a, b]
    if has_bias:
        bias_p = bias.reshape(1, N).astype(jnp.float32)
        if Np != N:
            bias_p = jnp.pad(bias_p, ((0, 0), (0, Np - N)))
        inputs.append(bias_p)

    if compute_stats:
        grid = (Np // tn, Mp // tm, Kp // tk)
        a_spec = pl.BlockSpec((tm, tk), lambda j, i, k: (i, k))
        b_spec = pl.BlockSpec((tk, tn), lambda j, i, k: (k, j))
        bias_spec = pl.BlockSpec((1, tn), lambda j, i, k: (0, j))
        o_spec = pl.BlockSpec((tm, tn), lambda j, i, k: (i, j))
        stat_spec = pl.BlockSpec((1, tn), lambda j, i, k: (0, j))
        semantics = ("parallel", "arbitrary", "arbitrary")
    else:
        grid = (Mp // tm, Np // tn, Kp // tk)
        a_spec = pl.BlockSpec((tm, tk), lambda i, j, k: (i, k))
        b_spec = pl.BlockSpec((tk, tn), lambda i, j, k: (k, j))
        bias_spec = pl.BlockSpec((1, tn), lambda i, j, k: (0, j))
        o_spec = pl.BlockSpec((tm, tn), lambda i, j, k: (i, j))
        stat_spec = None
        semantics = ("parallel", "parallel", "arbitrary")

    in_specs = [a_spec, b_spec] + ([bias_spec] if has_bias else [])
    out_shapes = [jax.ShapeDtypeStruct((Mp, Np), out_dtype)]
    out_specs = [o_spec]
    if compute_stats:
        out_shapes += [jax.ShapeDtypeStruct((1, Np), jnp.float32)] * 2
        out_specs += [stat_spec, stat_spec]

    out_bytes = Mp * Np * jnp.dtype(out_dtype).itemsize
    cost = pl.CostEstimate(flops=2 * Mp * Np * Kp, transcendentals=0,
                           bytes_accessed=(Mp * Kp + Kp * Np) * 2 + out_bytes)

    result = pl.pallas_call(
        _make_matmul_kernel(has_bias, compute_stats),
        out_shape=tuple(out_shapes) if compute_stats else out_shapes[0],
        grid_spec=pltpu.PrefetchScalarGridSpec(
            num_scalar_prefetch=0,
            grid=grid,
            in_specs=in_specs,
            out_specs=tuple(out_specs) if compute_stats else out_specs[0],
            scratch_shapes=[pltpu.VMEM((tm, tn), jnp.float32)]),
        compiler_params=pltpu.CompilerParams(dimension_semantics=semantics),
        cost_estimate=cost,
    )(*inputs)

    if compute_stats:
        out, sums, sumsqs = result
    else:
        out = result
    if (Mp, Np) != (M, N):
        out = out[:M, :N]
    if not compute_stats:
        return out
    sums = sums[0, :N]
    sumsqs = sumsqs[0, :N]
    ghost = Mp - M
    if has_bias and ghost > 0:
        # Ghost (zero-padded) rows produce exactly `bias`; undo their
        # contribution to the fused statistics.
        bvec = bias.reshape(-1).astype(jnp.float32)
        sums = sums - bvec * ghost
        sumsqs = sumsqs - bvec * bvec * ghost
    return out, sums, sumsqs


# ----------------------------------------------------------------------------
# BatchNorm (train mode): scale/shift from fused matmul stats, applied by a
# tiled affine kernel that also fuses residual add and ReLU.
# ----------------------------------------------------------------------------

def bn_scale_shift(sums, sumsqs, count, gamma, beta, eps=1e-5):
    mean = sums / count
    var = jnp.maximum(sumsqs / count - mean * mean, 0.0)
    scale = gamma.astype(jnp.float32) * lax.rsqrt(var + eps)
    shift = beta.astype(jnp.float32) - mean * scale
    return scale, shift


def _make_affine_kernel(relu, has_res):
    def kernel(*refs):
        if has_res:
            x_ref, r_ref, sc_ref, sh_ref, o_ref = refs
        else:
            x_ref, sc_ref, sh_ref, o_ref = refs
            r_ref = None
        y = x_ref[...].astype(jnp.float32) * sc_ref[...] + sh_ref[...]
        if has_res:
            y = y + r_ref[...].astype(jnp.float32)
        if relu:
            y = jnp.maximum(y, 0.0)
        o_ref[...] = y.astype(o_ref.dtype)
    return kernel


def affine_cl(x, scale, shift, relu=False, residual=None):
    """y = x*scale + shift (+residual) (ReLU) on a channels-last activation."""
    shape = x.shape
    C = shape[-1]
    M = _num_rows(x)
    x2 = x.reshape(M, C)
    r2 = None if residual is None else residual.reshape(M, C)

    fold = _fold_lanes(M, C)
    Ceff, Me = C * fold, M // fold
    if fold > 1:
        x2 = x2.reshape(Me, Ceff)
        if r2 is not None:
            r2 = r2.reshape(Me, Ceff)
        scale = jnp.tile(scale, fold)
        shift = jnp.tile(shift, fold)

    rows, Mp = _row_block(Me, Ceff)
    if Mp != Me:
        x2 = jnp.pad(x2, ((0, Mp - Me), (0, 0)))
        if r2 is not None:
            r2 = jnp.pad(r2, ((0, Mp - Me), (0, 0)))

    row_spec = pl.BlockSpec((rows, Ceff), lambda i: (i, 0))
    vec_spec = pl.BlockSpec((1, Ceff), lambda i: (0, 0))
    inputs = [x2]
    in_specs = [row_spec]
    if r2 is not None:
        inputs.append(r2)
        in_specs.append(row_spec)
    inputs += [scale.reshape(1, Ceff).astype(jnp.float32),
               shift.reshape(1, Ceff).astype(jnp.float32)]
    in_specs += [vec_spec, vec_spec]

    out = pl.pallas_call(
        _make_affine_kernel(relu, r2 is not None),
        out_shape=jax.ShapeDtypeStruct((Mp, Ceff), jnp.bfloat16),
        grid_spec=pltpu.PrefetchScalarGridSpec(
            num_scalar_prefetch=0, grid=(Mp // rows,),
            in_specs=in_specs, out_specs=row_spec),
        compiler_params=pltpu.CompilerParams(
            dimension_semantics=("parallel",)),
    )(*inputs)
    if Mp != Me:
        out = out[:Me]
    return out.reshape(shape)


# ----------------------------------------------------------------------------
# Separable MaxPool3d(kernel=3, stride=2, padding=1)
# ----------------------------------------------------------------------------

def _max3_kernel(a_ref, b_ref, c_ref, o_ref):
    o_ref[...] = jnp.maximum(jnp.maximum(a_ref[...], b_ref[...]), c_ref[...])


def _max3_pallas_2d(a, b, c):
    M, C = a.shape
    rows, Mp = _row_block(M, C)
    if Mp != M:
        pad = ((0, Mp - M), (0, 0))
        a = jnp.pad(a, pad)
        b = jnp.pad(b, pad)
        c = jnp.pad(c, pad)
    spec = pl.BlockSpec((rows, C), lambda i: (i, 0))
    out = pl.pallas_call(
        _max3_kernel,
        out_shape=jax.ShapeDtypeStruct((Mp, C), jnp.bfloat16),
        grid_spec=pltpu.PrefetchScalarGridSpec(
            num_scalar_prefetch=0, grid=(Mp // rows,),
            in_specs=[spec, spec, spec], out_specs=spec),
        compiler_params=pltpu.CompilerParams(
            dimension_semantics=("parallel",)),
    )(a, b, c)
    return out[:M] if Mp != M else out


def _maxpool1d_cl(x, axis):
    L = x.shape[axis]
    Lo = (L + 2 - 3) // 2 + 1
    pads = [(0, 0)] * 5
    pads[axis] = (1, 1)
    xp = jnp.pad(x, pads, constant_values=-jnp.inf)

    def tap(i):
        idx = [slice(None)] * 5
        idx[axis] = slice(i, i + (Lo - 1) * 2 + 1, 2)
        return xp[tuple(idx)]

    a, b, c = tap(0), tap(1), tap(2)
    out_shape = a.shape
    C = out_shape[-1]
    M = _num_rows(a)
    fold = _fold_lanes(M, C)
    Ceff, Me = C * fold, M // fold
    out = _max3_pallas_2d(a.reshape(Me, Ceff), b.reshape(Me, Ceff),
                          c.reshape(Me, Ceff))
    return out.reshape(out_shape)


def maxpool3d_cl(x):
    # max over a 3x3x3 window == nested per-axis 3-tap max (separable).
    # TODO(synk): taps are pre-sliced in XLA; an in-kernel strided tap load
    # would avoid the 3 output-sized tap copies per axis.
    for axis in (1, 2, 3):
        x = _maxpool1d_cl(x, axis)
    return x


# ----------------------------------------------------------------------------
# Non-local attention (embedded Gaussian): flash-style online softmax
# ----------------------------------------------------------------------------

def _nl_flash_kernel(q_ref, k_ref, v_ref, o_ref, m_sc, l_sc, acc_sc):
    kv = pl.program_id(2)

    @pl.when(kv == 0)
    def _():
        m_sc[...] = jnp.full_like(m_sc, -jnp.inf)
        l_sc[...] = jnp.zeros_like(l_sc)
        acc_sc[...] = jnp.zeros_like(acc_sc)

    s = lax.dot_general(q_ref[0], k_ref[0], (((1,), (1,)), ((), ())),
                        preferred_element_type=jnp.float32)      # (tq, tkv)
    m_new = jnp.maximum(m_sc[...], jnp.max(s, axis=-1, keepdims=True))
    alpha = jnp.exp(m_sc[...] - m_new)
    p = jnp.exp(s - m_new)
    l_sc[...] = alpha * l_sc[...] + jnp.sum(p, axis=-1, keepdims=True)
    acc_sc[...] = alpha * acc_sc[...] + jnp.dot(
        p.astype(jnp.bfloat16), v_ref[0], preferred_element_type=jnp.float32)
    m_sc[...] = m_new

    @pl.when(kv == pl.num_programs(2) - 1)
    def _():
        o_ref[0] = (acc_sc[...] *
                    pl.reciprocal(l_sc[...], approx=True)).astype(o_ref.dtype)


def nl_attention_pallas(theta, phi, g):
    """theta, phi, g: (N, S, E) -> softmax(theta@phi^T) @ g, per batch."""
    N, S, E = theta.shape
    theta = theta.astype(jnp.bfloat16)
    phi = phi.astype(jnp.bfloat16)
    g = g.astype(jnp.bfloat16)
    tq = _pick_divisor(S, 256)
    tkv = _pick_divisor(S, 512)
    grid = (N, S // tq, S // tkv)
    q_spec = pl.BlockSpec((1, tq, E), lambda b, qi, ki: (b, qi, 0))
    kv_spec = pl.BlockSpec((1, tkv, E), lambda b, qi, ki: (b, ki, 0))
    return pl.pallas_call(
        _nl_flash_kernel,
        out_shape=jax.ShapeDtypeStruct((N, S, E), jnp.bfloat16),
        grid_spec=pltpu.PrefetchScalarGridSpec(
            num_scalar_prefetch=0, grid=grid,
            in_specs=[q_spec, kv_spec, kv_spec],
            out_specs=q_spec,
            scratch_shapes=[pltpu.VMEM((tq, 1), jnp.float32),
                            pltpu.VMEM((tq, 1), jnp.float32),
                            pltpu.VMEM((tq, E), jnp.float32)]),
        compiler_params=pltpu.CompilerParams(
            dimension_semantics=("parallel", "parallel", "arbitrary")),
    )(theta, phi, g)


# ----------------------------------------------------------------------------
# Global average pool (lane-dense (1, C) output per batch)
# ----------------------------------------------------------------------------

def _avgpool_kernel(x_ref, o_ref):
    o_ref[0] = jnp.sum(x_ref[0].astype(jnp.float32), axis=0, keepdims=True)


def global_avgpool_cl(x):
    N = x.shape[0]
    C = x.shape[-1]
    S = x.shape[1] * x.shape[2] * x.shape[3]
    x3 = x.reshape(N, S, C)
    out = pl.pallas_call(
        _avgpool_kernel,
        out_shape=jax.ShapeDtypeStruct((N, 1, C), jnp.float32),
        grid_spec=pltpu.PrefetchScalarGridSpec(
            num_scalar_prefetch=0, grid=(N,),
            in_specs=[pl.BlockSpec((1, S, C), lambda b: (b, 0, 0))],
            out_specs=pl.BlockSpec((1, 1, C), lambda b: (b, 0, 0))),
        compiler_params=pltpu.CompilerParams(
            dimension_semantics=("parallel",)),
    )(x3)
    return out.reshape(N, C) / float(S)


# ----------------------------------------------------------------------------
# Conv3d (channels-last) via im2col + matmul (1x1x1 convs bypass im2col)
# ----------------------------------------------------------------------------

def conv3d_cl(x, w, stride, padding, bias=None, compute_stats=False):
    """x: (N, D, H, W, Cin) channels-last; w: PyTorch (Cout, Cin, kd, kh, kw)."""
    N, D, H, W, Cin = x.shape
    Cout, _, kd, kh, kw = w.shape
    sd, sh, sw = stride
    pd, ph, pw = padding
    w = w.astype(jnp.bfloat16)

    if (kd, kh, kw) == (1, 1, 1):
        if (sd, sh, sw) != (1, 1, 1):
            x = x[:, ::sd, ::sh, ::sw, :]
        res = matmul_pallas(x.reshape(-1, Cin), w.reshape(Cout, Cin).T,
                            bias=bias, compute_stats=compute_stats)
        out_shape5 = x.shape[:-1] + (Cout,)
    else:
        xp = jnp.pad(x, ((0, 0), (pd, pd), (ph, ph), (pw, pw), (0, 0)))
        Do = (D + 2 * pd - kd) // sd + 1
        Ho = (H + 2 * ph - kh) // sh + 1
        Wo = (W + 2 * pw - kw) // sw + 1
        cols = []
        for i in range(kd):
            for j in range(kh):
                for k in range(kw):
                    cols.append(xp[:, i:i + (Do - 1) * sd + 1:sd,
                                   j:j + (Ho - 1) * sh + 1:sh,
                                   k:k + (Wo - 1) * sw + 1:sw, :])
        patches = jnp.concatenate(cols, axis=-1).reshape(
            N * Do * Ho * Wo, kd * kh * kw * Cin)
        wmat = jnp.transpose(w, (2, 3, 4, 1, 0)).reshape(
            kd * kh * kw * Cin, Cout)
        # TODO(synk): the kd*kh*kw taps are still assembled via im2col in HBM
        # (now bf16); folding them into the matmul K grid via shifted-window
        # DMAs would remove the remaining 27x patch blow-up.
        res = matmul_pallas(patches, wmat, bias=bias,
                            compute_stats=compute_stats)
        out_shape5 = (N, Do, Ho, Wo, Cout)

    if compute_stats:
        out2d, sums, sumsqs = res
        return out2d.reshape(out_shape5), sums, sumsqs
    return res.reshape(out_shape5)


# ----------------------------------------------------------------------------
# Blocks (channels-last)
# ----------------------------------------------------------------------------

def downsample_cl(x, planes, stride):
    # F.avg_pool3d(kernel_size=1, stride=stride) == strided subsampling,
    # then zero-pad new channels at the end (shortcut type 'A').
    out = x[:, ::stride, ::stride, ::stride, :]
    C = out.shape[-1]
    return jnp.pad(out, ((0, 0),) * 4 + ((0, planes - C),))


def nonlocal_block_cl(x, p):
    """Embedded-Gaussian non-local block (sub_sample=False, bn_layer=True)."""
    N = x.shape[0]
    inter = p['g_w'].shape[0]
    S = x.shape[1] * x.shape[2] * x.shape[3]
    g_x = conv3d_cl(x, p['g_w'], (1, 1, 1), (0, 0, 0), bias=p['g_b'])
    theta_x = conv3d_cl(x, p['theta_w'], (1, 1, 1), (0, 0, 0), bias=p['theta_b'])
    phi_x = conv3d_cl(x, p['phi_w'], (1, 1, 1), (0, 0, 0), bias=p['phi_b'])
    y = nl_attention_pallas(theta_x.reshape(N, S, inter),
                            phi_x.reshape(N, S, inter),
                            g_x.reshape(N, S, inter))
    y5 = y.reshape(x.shape[:-1] + (inter,))
    W_y, sw, ssw = conv3d_cl(y5, p['W_w'], (1, 1, 1), (0, 0, 0),
                             bias=p['W_b'], compute_stats=True)
    scale, shift = bn_scale_shift(sw, ssw, _num_rows(W_y),
                                  p['W_bn_g'], p['W_bn_b'])
    # BN(W_y) + x fused in one affine pass (no ReLU).
    return affine_cl(W_y, scale, shift, relu=False, residual=x)


def basic_block_cl(x, p, cfg):
    s = cfg['stride']
    out, s1, ss1 = conv3d_cl(x, p['conv1_w'], (s, s, s), (1, 1, 1),
                             compute_stats=True)
    scale, shift = bn_scale_shift(s1, ss1, _num_rows(out),
                                  p['bn1_g'], p['bn1_b'])
    out = affine_cl(out, scale, shift, relu=True)

    out, s2, ss2 = conv3d_cl(out, p['conv2_w'], (1, 1, 1), (1, 1, 1),
                             compute_stats=True)
    if cfg['downsample'] is not None:
        _, planes, ds_stride = cfg['downsample']
        residual = downsample_cl(x, planes, ds_stride)
    else:
        residual = x
    scale, shift = bn_scale_shift(s2, ss2, _num_rows(out),
                                  p['bn2_g'], p['bn2_b'])
    # bn2 + residual add + ReLU fused in one affine pass.
    out = affine_cl(out, scale, shift, relu=True, residual=residual)
    if cfg['nonlocal']:
        out = nonlocal_block_cl(out, p['nl'])
    return out


def forward(params, x, config):
    # NCDHW -> channels-last NDHWC once; everything downstream stays NDHWC
    # and bf16 (matmuls accumulate in f32, BN stats / logits stay f32).
    x = jnp.transpose(x, (0, 2, 3, 4, 1)).astype(jnp.bfloat16)
    x, s1, ss1 = conv3d_cl(x, params['conv1_w'], (1, 2, 2), (3, 3, 3),
                           compute_stats=True)
    scale, shift = bn_scale_shift(s1, ss1, _num_rows(x),
                                  params['bn1_g'], params['bn1_b'])
    x = affine_cl(x, scale, shift, relu=True)
    x = maxpool3d_cl(x)
    for lp, lc in zip(params['layers'], config):
        for bp, bc in zip(lp, lc):
            x = basic_block_cl(x, bp, bc)
    feats = global_avgpool_cl(x)                               # (N, 512) f32
    logits = matmul_pallas(feats, params['fc_w'].T, bias=params['fc_b'],
                           out_dtype=jnp.float32)
    return logits


# ----------------------------------------------------------------------------
# Deterministic parameter construction (mirrors __init__ / init_weights)
# ----------------------------------------------------------------------------

def init_params(key, layers=(1, 1, 1, 1), nonlocal_layers=(1, 1, 0, 0),
                num_classes=16):
    keys = iter(jax.random.split(key, 128))

    def nk():
        return next(keys)

    def conv_w(shape):
        fan_out = shape[0] * shape[2] * shape[3] * shape[4]
        std = (2.0 / fan_out) ** 0.5          # kaiming_normal_, mode='fan_out'
        return std * jax.random.normal(nk(), shape, jnp.float32)

    expansion = 1                              # BasicBlock
    params = {
        'conv1_w': conv_w((64, 3, 7, 7, 7)),
        'bn1_g': jnp.ones((64,), jnp.float32),
        'bn1_b': jnp.zeros((64,), jnp.float32),
    }
    inplanes = 64
    plane_list = (64, 128, 256, 512)
    layer_strides = (1, 2, 2, 2)
    layer_params, layer_cfg = [], []
    for li in range(4):
        planes, blocks, nl_blocks = plane_list[li], layers[li], nonlocal_layers[li]
        stride = layer_strides[li]
        nl_freq = blocks // nl_blocks if nl_blocks != 0 else -1
        blk_params, blk_cfg = [], []
        for i in range(blocks):
            use_nl = (nl_freq > 0) and (i % nl_freq == 0)
            ds = None
            if stride != 1 or inplanes != planes * expansion:
                ds = ('A', planes * expansion, stride)   # shortcut_type='A'
            bp = {
                'conv1_w': conv_w((planes, inplanes, 3, 3, 3)),
                'bn1_g': jnp.ones((planes,), jnp.float32),
                'bn1_b': jnp.zeros((planes,), jnp.float32),
                'conv2_w': conv_w((planes, planes, 3, 3, 3)),
                'bn2_g': jnp.ones((planes,), jnp.float32),
                'bn2_b': jnp.zeros((planes,), jnp.float32),
            }
            if use_nl:
                inter = max(planes // 2, 1)
                bp['nl'] = {
                    'g_w': conv_w((inter, planes, 1, 1, 1)),
                    'g_b': jnp.zeros((inter,), jnp.float32),
                    'theta_w': conv_w((inter, planes, 1, 1, 1)),
                    'theta_b': jnp.zeros((inter,), jnp.float32),
                    'phi_w': conv_w((inter, planes, 1, 1, 1)),
                    'phi_b': jnp.zeros((inter,), jnp.float32),
                    'W_w': conv_w((planes, inter, 1, 1, 1)),
                    'W_b': jnp.zeros((planes,), jnp.float32),
                    # init_weights() overrides the usual zero-init of this BN.
                    'W_bn_g': jnp.ones((planes,), jnp.float32),
                    'W_bn_b': jnp.zeros((planes,), jnp.float32),
                }
            blk_params.append(bp)
            blk_cfg.append({'stride': stride, 'downsample': ds,
                            'nonlocal': use_nl})
            if i == 0:
                stride = 1
                inplanes = planes * expansion
        layer_params.append(blk_params)
        layer_cfg.append(blk_cfg)
    params['layers'] = layer_params

    fan_in = 512 * expansion
    bound = 1.0 / fan_in ** 0.5                # PyTorch default Linear init
    params['fc_w'] = jax.random.uniform(nk(), (num_classes, fan_in),
                                        jnp.float32, -bound, bound)
    params['fc_b'] = jax.random.uniform(nk(), (num_classes,),
                                        jnp.float32, -bound, bound)
    return params, layer_cfg


# ----------------------------------------------------------------------------
# Driver
# ----------------------------------------------------------------------------

if __name__ == "__main__":
    key = jax.random.PRNGKey(0)
    pkey, xkey = jax.random.split(key)
    params, config = init_params(pkey, layers=(1, 1, 1, 1),
                                 nonlocal_layers=(1, 1, 0, 0), num_classes=16)
    # input: (N=2, C=3, T=4, H=16, W=16), NCDHW like PyTorch Conv3d
    x = jax.random.normal(xkey, (2, 3, 4, 16, 16), jnp.float32)

    fwd = jax.jit(functools.partial(forward, config=config))
    logits = fwd(params, x)
    jax.block_until_ready(logits)
    assert logits.shape == (2, 16), logits.shape
    assert bool(jnp.all(jnp.isfinite(logits)))
    print("KERNEL_OK")
</pallas_src>

<mosaic_0001>
module attributes {stable_mosaic.version = 11 : i64} {
  func.func @kernel(%arg0: i32, %arg1: i32, %arg2: i32, %arg3: memref<256x384xbf16, #tpu.memory_space<vmem>>, %arg4: memref<384x128xbf16, #tpu.memory_space<vmem>>, %arg5: memref<256x128xbf16, #tpu.memory_space<vmem>>, %arg6: memref<1x128xf32, #tpu.memory_space<vmem>>, %arg7: memref<1x128xf32, #tpu.memory_space<vmem>>, %arg8: memref<256x128xf32, #tpu.memory_space<vmem>>) attributes {dimension_semantics = [#tpu.dimension_semantics<parallel>, #tpu.dimension_semantics<arbitrary>, #tpu.dimension_semantics<arbitrary>], iteration_bounds = array<i64: 1, 2, 3>, scalar_prefetch = 0 : i64, scratch_operands = 1 : i64, tpu.core_type = #tpu.core_type<tc>, window_params = [{transform_indices = @transform_0, window_bounds = array<i64: 256, 384>}, {transform_indices = @transform_1, window_bounds = array<i64: 384, 128>}, {transform_indices = @transform_2, window_bounds = array<i64: 256, 128>}, {transform_indices = @transform_3, window_bounds = array<i64: 1, 128>}, {transform_indices = @transform_4, window_bounds = array<i64: 1, 128>}]} {
    %c0_i32 = arith.constant 0 : i32
    %0 = arith.cmpi eq, %arg2, %c0_i32 : i32
    %1 = arith.extui %0 : i1 to i32
    %c0_i32_0 = arith.constant 0 : i32
    %2 = arith.cmpi ne, %1, %c0_i32_0 : i32
    scf.if %2 {
      %cst_12 = arith.constant 0.000000e+00 : f32
      %17 = vector.broadcast %cst_12 : f32 to vector<256x128xf32>
      %c0_13 = arith.constant 0 : index
      %c0_14 = arith.constant 0 : index
      %18 = vector.load %arg8[%c0_13, %c0_14] : memref<256x128xf32, #tpu.memory_space<vmem>>, vector<256x128xf32>
      tpu.vector_store %arg8[%c0_13, %c0_14], %17 {strides = array<i32>} : memref<256x128xf32, #tpu.memory_space<vmem>>, vector<256x128xf32>,
    } else {
    }
    %c0 = arith.constant 0 : index
    %c0_1 = arith.constant 0 : index
    %3 = vector.load %arg8[%c0, %c0_1] : memref<256x128xf32, #tpu.memory_space<vmem>>, vector<256x128xf32>
    %c0_2 = arith.constant 0 : index
    %c0_3 = arith.constant 0 : index
    %4 = vector.load %arg3[%c0_2, %c0_3] : memref<256x384xbf16, #tpu.memory_space<vmem>>, vector<256x384xbf16>
    %c0_4 = arith.constant 0 : index
    %c0_5 = arith.constant 0 : index
    %5 = vector.load %arg4[%c0_4, %c0_5] : memref<384x128xbf16, #tpu.memory_space<vmem>>, vector<384x128xbf16>
    %cst = arith.constant dense<0.000000e+00> : vector<256x128xf32>
    %6 = tpu.matmul %4, %5, %cst {dimension_numbers = #tpu.dot_dimension_numbers<[1], [0], [0], [1], [0, 0, 1, 1], [], []>} : vector<256x384xbf16>, vector<384x128xbf16>, vector<256x128xf32> -> vector<256x128xf32>
    %7 = arith.addf %3, %6 : vector<256x128xf32>
    %c0_6 = arith.constant 0 : index
    %c0_7 = arith.constant 0 : index
    %8 = vector.load %arg8[%c0_6, %c0_7] : memref<256x128xf32, #tpu.memory_space<vmem>>, vector<256x128xf32>
    tpu.vector_store %arg8[%c0_6, %c0_7], %7 {strides = array<i32>} : memref<256x128xf32, #tpu.memory_space<vmem>>, vector<256x128xf32>,
    %c0_i32_8 = arith.constant 0 : i32
    %9 = arith.cmpi eq, %arg1, %c0_i32_8 : i32
    %c0_i32_9 = arith.constant 0 : i32
    %10 = arith.cmpi eq, %arg2, %c0_i32_9 : i32
    %11 = arith.andi %9, %10 : i1
    %12 = arith.extui %11 : i1 to i32
    %c0_i32_10 = arith.constant 0 : i32
    %13 = arith.cmpi ne, %12, %c0_i32_10 : i32
    scf.if %13 {
      %cst_12 = arith.constant 0.000000e+00 : f32
      %17 = vector.broadcast %cst_12 : f32 to vector<1x128xf32>
      %c0_13 = arith.constant 0 : index
      %c0_14 = arith.constant 0 : index
      %18 = vector.load %arg6[%c0_13, %c0_14] : memref<1x128xf32, #tpu.memory_space<vmem>>, vector<1x128xf32>
      tpu.vector_store %arg6[%c0_13, %c0_14], %17 {strides = array<i32>} : memref<1x128xf32, #tpu.memory_space<vmem>>, vector<1x128xf32>,
      %cst_15 = arith.constant 0.000000e+00 : f32
      %19 = vector.broadcast %cst_15 : f32 to vector<1x128xf32>
      %c0_16 = arith.constant 0 : index
      %c0_17 = arith.constant 0 : index
      %20 = vector.load %arg7[%c0_16, %c0_17] : memref<1x128xf32, #tpu.memory_space<vmem>>, vector<1x128xf32>
      tpu.vector_store %arg7[%c0_16, %c0_17], %19 {strides = array<i32>} : memref<1x128xf32, #tpu.memory_space<vmem>>, vector<1x128xf32>,
    } else {
    }
    %c2_i32 = arith.constant 2 : i32
    %14 = arith.cmpi eq, %arg2, %c2_i32 : i32
    %15 = arith.extui %14 : i1 to i32
    %c0_i32_11 = arith.constant 0 : i32
    %16 = arith.cmpi ne, %15, %c0_i32_11 : i32
    scf.if %16 {
      %c0_12 = arith.constant 0 : index
      %c0_13 = arith.constant 0 : index
      %17 = vector.load %arg8[%c0_12, %c0_13] : memref<256x128xf32, #tpu.memory_space<vmem>>, vector<256x128xf32>
      %18 = arith.truncf %17 : vector<256x128xf32> to vector<256x128xbf16>
      %c0_14 = arith.constant 0 : index
      %c0_15 = arith.constant 0 : index
      %19 = vector.load %arg5[%c0_14, %c0_15] : memref<256x128xbf16, #tpu.memory_space<vmem>>, vector<256x128xbf16>
      tpu.vector_store %arg5[%c0_14, %c0_15], %18 {strides = array<i32>} : memref<256x128xbf16, #tpu.memory_space<vmem>>, vector<256x128xbf16>,
      %c0_16 = arith.constant 0 : index
      %c0_17 = arith.constant 0 : index
      %20 = vector.load %arg6[%c0_16, %c0_17] : memref<1x128xf32, #tpu.memory_space<vmem>>, vector<1x128xf32>
      %cst_18 = arith.constant dense<0.000000e+00> : vector<128xf32>
      %21 = vector.multi_reduction <add>, %17, %cst_18 [0] : vector<256x128xf32> to vector<128xf32>
      %22 = vector.shape_cast %21 : vector<128xf32> to vector<1x128xf32>
      %23 = arith.addf %20, %22 : vector<1x128xf32>
      %c0_19 = arith.constant 0 : index
      %c0_20 = arith.constant 0 : index
      %24 = vector.load %arg6[%c0_19, %c0_20] : memref<1x128xf32, #tpu.memory_space<vmem>>, vector<1x128xf32>
      tpu.vector_store %arg6[%c0_19, %c0_20], %23 {strides = array<i32>} : memref<1x128xf32, #tpu.memory_space<vmem>>, vector<1x128xf32>,
      %c0_21 = arith.constant 0 : index
      %c0_22 = arith.constant 0 : index
      %25 = vector.load %arg7[%c0_21, %c0_22] : memref<1x128xf32, #tpu.memory_space<vmem>>, vector<1x128xf32>
      %26 = arith.mulf %17, %17 : vector<256x128xf32>
      %cst_23 = arith.constant dense<0.000000e+00> : vector<128xf32>
      %27 = vector.multi_reduction <add>, %26, %cst_23 [0] : vector<256x128xf32> to vector<128xf32>
      %28 = vector.shape_cast %27 : vector<128xf32> to vector<1x128xf32>
      %29 = arith.addf %25, %28 : vector<1x128xf32>
      %c0_24 = arith.constant 0 : index
      %c0_25 = arith.constant 0 : index
      %30 = vector.load %arg7[%c0_24, %c0_25] : memref<1x128xf32, #tpu.memory_space<vmem>>, vector<1x128xf32>
      tpu.vector_store %arg7[%c0_24, %c0_25], %29 {strides = array<i32>} : memref<1x128xf32, #tpu.memory_space<vmem>>, vector<1x128xf32>,
    } else {
    }
    return
  }
  func.func @transform_0(%arg0: i32, %arg1: i32, %arg2: i32) -> (i32, i32) {
    %c0_i32 = arith.constant 0 : i32
    return %arg1, %arg2 : i32, i32
  }
  func.func @transform_1(%arg0: i32, %arg1: i32, %arg2: i32) -> (i32, i32) {
    %c0_i32 = arith.constant 0 : i32
    return %arg2, %arg0 : i32, i32
  }
  func.func @transform_2(%arg0: i32, %arg1: i32, %arg2: i32) -> (i32, i32) {
    %c0_i32 = arith.constant 0 : i32
    return %arg1, %arg0 : i32, i32
  }
  func.func @transform_3(%arg0: i32, %arg1: i32, %arg2: i32) -> (i32, i32) {
    %c0_i32 = arith.constant 0 : i32
    %c0_i32_0 = arith.constant 0 : i32
    return %c0_i32, %arg0 : i32, i32
  }
  func.func @transform_4(%arg0: i32, %arg1: i32, %arg2: i32) -> (i32, i32) {
    %c0_i32 = arith.constant 0 : i32
    %c0_i32_0 = arith.constant 0 : i32
    return %c0_i32, %arg0 : i32, i32
  }
}

module attributes {stable_mosaic.version = 11 : i64} {
  func.func @kernel(%arg0: i32, %arg1: memref<256x128xbf16, #tpu.memory_space<vmem>>, %arg2: memref<1x128xf32, #tpu.memory_space<vmem>>, %arg3: memref<1x128xf32, #tpu.memory_space<vmem>>, %arg4: memref<256x128xbf16, #tpu.memory_space<vmem>>) attributes {dimension_semantics = [#tpu.dimension_semantics<parallel>], iteration_bounds = array<i64: 1>, scalar_prefetch = 0 : i64, scratch_operands = 0 : i64, tpu.core_type = #tpu.core_type<tc>, window_params = [{transform_indices = @transform_0, window_bounds = array<i64: 256, 128>}, {pipeline_mode = #tpu.pipeline_mode<synchronous>, transform_indices = @transform_1, window_bounds = array<i64: 1, 128>}, {pipeline_mode = #tpu.pipeline_mode<synchronous>, transform_indices = @transform_2, window_bounds = array<i64: 1, 128>}, {transform_indices = @transform_3, window_bounds = array<i64: 256, 128>}]} {
    %c0 = arith.constant 0 : index
    %c0_0 = arith.constant 0 : index
    %0 = vector.load %arg1[%c0, %c0_0] : memref<256x128xbf16, #tpu.memory_space<vmem>>, vector<256x128xbf16>
    %1 = arith.extf %0 : vector<256x128xbf16> to vector<256x128xf32>
    %c0_1 = arith.constant 0 : index
    %c0_2 = arith.constant 0 : index
    %2 = vector.load %arg2[%c0_1, %c0_2] : memref<1x128xf32, #tpu.memory_space<vmem>>, vector<1x128xf32>
    %3 = vector.broadcast %2 : vector<1x128xf32> to vector<256x128xf32>
    %4 = arith.mulf %1, %3 : vector<256x128xf32>
    %c0_3 = arith.constant 0 : index
    %c0_4 = arith.constant 0 : index
    %5 = vector.load %arg3[%c0_3, %c0_4] : memref<1x128xf32, #tpu.memory_space<vmem>>, vector<1x128xf32>
    %6 = vector.broadcast %5 : vector<1x128xf32> to vector<256x128xf32>
    %7 = arith.addf %4, %6 : vector<256x128xf32>
    %cst = arith.constant 0.000000e+00 : f32
    %8 = vector.broadcast %cst : f32 to vector<256x128xf32>
    %9 = arith.maximumf %7, %8 : vector<256x128xf32>
    %10 = arith.truncf %9 : vector<256x128xf32> to vector<256x128xbf16>
    %c0_5 = arith.constant 0 : index
    %c0_6 = arith.constant 0 : index
    %11 = vector.load %arg4[%c0_5, %c0_6] : memref<256x128xbf16, #tpu.memory_space<vmem>>, vector<256x128xbf16>
    tpu.vector_store %arg4[%c0_5, %c0_6], %10 {strides = array<i32>} : memref<256x128xbf16, #tpu.memory_space<vmem>>, vector<256x128xbf16>,
    return
  }
  func.func @transform_0(%arg0: i32) -> (i32, i32) {
    %c0_i32 = arith.constant 0 : i32
    %c0_i32_0 = arith.constant 0 : i32
    return %arg0, %c0_i32 : i32, i32
  }
  func.func @transform_1(%arg0: i32) -> (i32, i32) {
    %c0_i32 = arith.constant 0 : i32
    %c0_i32_0 = arith.constant 0 : i32
    %c0_i32_1 = arith.constant 0 : i32
    return %c0_i32, %c0_i32_0 : i32, i32
  }
  func.func @transform_2(%arg0: i32) -> (i32, i32) {
    %c0_i32 = arith.constant 0 : i32
    %c0_i32_0 = arith.constant 0 : i32
    %c0_i32_1 = arith.constant 0 : i32
    return %c0_i32, %c0_i32_0 : i32, i32
  }
  func.func @transform_3(%arg0: i32) -> (i32, i32) {
    %c0_i32 = arith.constant 0 : i32
    %c0_i32_0 = arith.constant 0 : i32
    return %arg0, %c0_i32 : i32, i32
  }
}

module attributes {stable_mosaic.version = 11 : i64} {
  func.func @_max3_kernel(%arg0: i32, %arg1: memref<128x128xbf16, #tpu.memory_space<vmem>>, %arg2: memref<128x128xbf16, #tpu.memory_space<vmem>>, %arg3: memref<128x128xbf16, #tpu.memory_space<vmem>>, %arg4: memref<128x128xbf16, #tpu.memory_space<vmem>>) attributes {dimension_semantics = [#tpu.dimension_semantics<parallel>], iteration_bounds = array<i64: 1>, scalar_prefetch = 0 : i64, scratch_operands = 0 : i64, tpu.core_type = #tpu.core_type<tc>, window_params = [{transform_indices = @transform_0, window_bounds = array<i64: 128, 128>}, {transform_indices = @transform_1, window_bounds = array<i64: 128, 128>}, {transform_indices = @transform_2, window_bounds = array<i64: 128, 128>}, {transform_indices = @transform_3, window_bounds = array<i64: 128, 128>}]} {
    %c0 = arith.constant 0 : index
    %c0_0 = arith.constant 0 : index
    %0 = vector.load %arg1[%c0, %c0_0] : memref<128x128xbf16, #tpu.memory_space<vmem>>, vector<128x128xbf16>
    %c0_1 = arith.constant 0 : index
    %c0_2 = arith.constant 0 : index
    %1 = vector.load %arg2[%c0_1, %c0_2] : memref<128x128xbf16, #tpu.memory_space<vmem>>, vector<128x128xbf16>
    %2 = arith.maximumf %0, %1 : vector<128x128xbf16>
    %c0_3 = arith.constant 0 : index
    %c0_4 = arith.constant 0 : index
    %3 = vector.load %arg3[%c0_3, %c0_4] : memref<128x128xbf16, #tpu.memory_space<vmem>>, vector<128x128xbf16>
    %4 = arith.maximumf %2, %3 : vector<128x128xbf16>
    %c0_5 = arith.constant 0 : index
    %c0_6 = arith.constant 0 : index
    %5 = vector.load %arg4[%c0_5, %c0_6] : memref<128x128xbf16, #tpu.memory_space<vmem>>, vector<128x128xbf16>
    tpu.vector_store %arg4[%c0_5, %c0_6], %4 {strides = array<i32>} : memref<128x128xbf16, #tpu.memory_space<vmem>>, vector<128x128xbf16>,
    return
  }
  func.func @transform_0(%arg0: i32) -> (i32, i32) {
    %c0_i32 = arith.constant 0 : i32
    %c0_i32_0 = arith.constant 0 : i32
    return %arg0, %c0_i32 : i32, i32
  }
  func.func @transform_1(%arg0: i32) -> (i32, i32) {
    %c0_i32 = arith.constant 0 : i32
    %c0_i32_0 = arith.constant 0 : i32
    return %arg0, %c0_i32 : i32, i32
  }
  func.func @transform_2(%arg0: i32) -> (i32, i32) {
    %c0_i32 = arith.constant 0 : i32
    %c0_i32_0 = arith.constant 0 : i32
    return %arg0, %c0_i32 : i32, i32
  }
  func.func @transform_3(%arg0: i32) -> (i32, i32) {
    %c0_i32 = arith.constant 0 : i32
    %c0_i32_0 = arith.constant 0 : i32
    return %arg0, %c0_i32 : i32, i32
  }
}

module attributes {stable_mosaic.version = 11 : i64} {
  func.func @_max3_kernel(%arg0: i32, %arg1: memref<64x128xbf16, #tpu.memory_space<vmem>>, %arg2: memref<64x128xbf16, #tpu.memory_space<vmem>>, %arg3: memref<64x128xbf16, #tpu.memory_space<vmem>>, %arg4: memref<64x128xbf16, #tpu.memory_space<vmem>>) attributes {dimension_semantics = [#tpu.dimension_semantics<parallel>], iteration_bounds = array<i64: 1>, scalar_prefetch = 0 : i64, scratch_operands = 0 : i64, tpu.core_type = #tpu.core_type<tc>, window_params = [{transform_indices = @transform_0, window_bounds = array<i64: 64, 128>}, {transform_indices = @transform_1, window_bounds = array<i64: 64, 128>}, {transform_indices = @transform_2, window_bounds = array<i64: 64, 128>}, {transform_indices = @transform_3, window_bounds = array<i64: 64, 128>}]} {
    %c0 = arith.constant 0 : index
    %c0_0 = arith.constant 0 : index
    %0 = vector.load %arg1[%c0, %c0_0] : memref<64x128xbf16, #tpu.memory_space<vmem>>, vector<64x128xbf16>
    %c0_1 = arith.constant 0 : index
    %c0_2 = arith.constant 0 : index
    %1 = vector.load %arg2[%c0_1, %c0_2] : memref<64x128xbf16, #tpu.memory_space<vmem>>, vector<64x128xbf16>
    %2 = arith.maximumf %0, %1 : vector<64x128xbf16>
    %c0_3 = arith.constant 0 : index
    %c0_4 = arith.constant 0 : index
    %3 = vector.load %arg3[%c0_3, %c0_4] : memref<64x128xbf16, #tpu.memory_space<vmem>>, vector<64x128xbf16>
    %4 = arith.maximumf %2, %3 : vector<64x128xbf16>
    %c0_5 = arith.constant 0 : index
    %c0_6 = arith.constant 0 : index
    %5 = vector.load %arg4[%c0_5, %c0_6] : memref<64x128xbf16, #tpu.memory_space<vmem>>, vector<64x128xbf16>
    tpu.vector_store %arg4[%c0_5, %c0_6], %4 {strides = array<i32>} : memref<64x128xbf16, #tpu.memory_space<vmem>>, vector<64x128xbf16>,
    return
  }
  func.func @transform_0(%arg0: i32) -> (i32, i32) {
    %c0_i32 = arith.constant 0 : i32
    %c0_i32_0 = arith.constant 0 : i32
    return %arg0, %c0_i32 : i32, i32
  }
  func.func @transform_1(%arg0: i32) -> (i32, i32) {
    %c0_i32 = arith.constant 0 : i32
    %c0_i32_0 = arith.constant 0 : i32
    return %arg0, %c0_i32 : i32, i32
  }
  func.func @transform_2(%arg0: i32) -> (i32, i32) {
    %c0_i32 = arith.constant 0 : i32
    %c0_i32_0 = arith.constant 0 : i32
    return %arg0, %c0_i32 : i32, i32
  }
  func.func @transform_3(%arg0: i32) -> (i32, i32) {
    %c0_i32 = arith.constant 0 : i32
    %c0_i32_0 = arith.constant 0 : i32
    return %arg0, %c0_i32 : i32, i32
  }
}

module attributes {stable_mosaic.version = 11 : i64} {
  func.func @_max3_kernel(%arg0: i32, %arg1: memref<32x128xbf16, #tpu.memory_space<vmem>>, %arg2: memref<32x128xbf16, #tpu.memory_space<vmem>>, %arg3: memref<32x128xbf16, #tpu.memory_space<vmem>>, %arg4: memref<32x128xbf16, #tpu.memory_space<vmem>>) attributes {dimension_semantics = [#tpu.dimension_semantics<parallel>], iteration_bounds = array<i64: 1>, scalar_prefetch = 0 : i64, scratch_operands = 0 : i64, tpu.core_type = #tpu.core_type<tc>, window_params = [{transform_indices = @transform_0, window_bounds = array<i64: 32, 128>}, {transform_indices = @transform_1, window_bounds = array<i64: 32, 128>}, {transform_indices = @transform_2, window_bounds = array<i64: 32, 128>}, {transform_indices = @transform_3, window_bounds = array<i64: 32, 128>}]} {
    %c0 = arith.constant 0 : index
    %c0_0 = arith.constant 0 : index
    %0 = vector.load %arg1[%c0, %c0_0] : memref<32x128xbf16, #tpu.memory_space<vmem>>, vector<32x128xbf16>
    %c0_1 = arith.constant 0 : index
    %c0_2 = arith.constant 0 : index
    %1 = vector.load %arg2[%c0_1, %c0_2] : memref<32x128xbf16, #tpu.memory_space<vmem>>, vector<32x128xbf16>
    %2 = arith.maximumf %0, %1 : vector<32x128xbf16>
    %c0_3 = arith.constant 0 : index
    %c0_4 = arith.constant 0 : index
    %3 = vector.load %arg3[%c0_3, %c0_4] : memref<32x128xbf16, #tpu.memory_space<vmem>>, vector<32x128xbf16>
    %4 = arith.maximumf %2, %3 : vector<32x128xbf16>
    %c0_5 = arith.constant 0 : index
    %c0_6 = arith.constant 0 : index
    %5 = vector.load %arg4[%c0_5, %c0_6] : memref<32x128xbf16, #tpu.memory_space<vmem>>, vector<32x128xbf16>
    tpu.vector_store %arg4[%c0_5, %c0_6], %4 {strides = array<i32>} : memref<32x128xbf16, #tpu.memory_space<vmem>>, vector<32x128xbf16>,
    return
  }
  func.func @transform_0(%arg0: i32) -> (i32, i32) {
    %c0_i32 = arith.constant 0 : i32
    %c0_i32_0 = arith.constant 0 : i32
    return %arg0, %c0_i32 : i32, i32
  }
  func.func @transform_1(%arg0: i32) -> (i32, i32) {
    %c0_i32 = arith.constant 0 : i32
    %c0_i32_0 = arith.constant 0 : i32
    return %arg0, %c0_i32 : i32, i32
  }
  func.func @transform_2(%arg0: i32) -> (i32, i32) {
    %c0_i32 = arith.constant 0 : i32
    %c0_i32_0 = arith.constant 0 : i32
    return %arg0, %c0_i32 : i32, i32
  }
  func.func @transform_3(%arg0: i32) -> (i32, i32) {
    %c0_i32 = arith.constant 0 : i32
    %c0_i32_0 = arith.constant 0 : i32
    return %arg0, %c0_i32 : i32, i32
  }
}

module attributes {stable_mosaic.version = 11 : i64} {
  func.func @kernel(%arg0: i32, %arg1: i32, %arg2: i32, %arg3: memref<64x256xbf16, #tpu.memory_space<vmem>>, %arg4: memref<256x128xbf16, #tpu.memory_space<vmem>>, %arg5: memref<64x128xbf16, #tpu.memory_space<vmem>>, %arg6: memref<1x128xf32, #tpu.memory_space<vmem>>, %arg7: memref<1x128xf32, #tpu.memory_space<vmem>>, %arg8: memref<64x128xf32, #tpu.memory_space<vmem>>) attributes {dimension_semantics = [#tpu.dimension_semantics<parallel>, #tpu.dimension_semantics<arbitrary>, #tpu.dimension_semantics<arbitrary>], iteration_bounds = array<i64: 1, 1, 7>, scalar_prefetch = 0 : i64, scratch_operands = 1 : i64, tpu.core_type = #tpu.core_type<tc>, window_params = [{transform_indices = @transform_0, window_bounds = array<i64: 64, 256>}, {transform_indices = @transform_1, window_bounds = array<i64: 256, 128>}, {transform_indices = @transform_2, window_bounds = array<i64: 64, 128>}, {transform_indices = @transform_3, window_bounds = array<i64: 1, 128>}, {transform_indices = @transform_4, window_bounds = array<i64: 1, 128>}]} {
    %c0_i32 = arith.constant 0 : i32
    %0 = arith.cmpi eq, %arg2, %c0_i32 : i32
    %1 = arith.extui %0 : i1 to i32
    %c0_i32_0 = arith.constant 0 : i32
    %2 = arith.cmpi ne, %1, %c0_i32_0 : i32
    scf.if %2 {
      %cst_12 = arith.constant 0.000000e+00 : f32
      %17 = vector.broadcast %cst_12 : f32 to vector<64x128xf32>
      %c0_13 = arith.constant 0 : index
      %c0_14 = arith.constant 0 : index
      %18 = vector.load %arg8[%c0_13, %c0_14] : memref<64x128xf32, #tpu.memory_space<vmem>>, vector<64x128xf32>
      tpu.vector_store %arg8[%c0_13, %c0_14], %17 {strides = array<i32>} : memref<64x128xf32, #tpu.memory_space<vmem>>, vector<64x128xf32>,
    } else {
    }
    %c0 = arith.constant 0 : index
    %c0_1 = arith.constant 0 : index
    %3 = vector.load %arg8[%c0, %c0_1] : memref<64x128xf32, #tpu.memory_space<vmem>>, vector<64x128xf32>
    %c0_2 = arith.constant 0 : index
    %c0_3 = arith.constant 0 : index
    %4 = vector.load %arg3[%c0_2, %c0_3] : memref<64x256xbf16, #tpu.memory_space<vmem>>, vector<64x256xbf16>
    %c0_4 = arith.constant 0 : index
    %c0_5 = arith.constant 0 : index
    %5 = vector.load %arg4[%c0_4, %c0_5] : memref<256x128xbf16, #tpu.memory_space<vmem>>, vector<256x128xbf16>
    %cst = arith.constant dense<0.000000e+00> : vector<64x128xf32>
    %6 = tpu.matmul %4, %5, %cst {dimension_numbers = #tpu.dot_dimension_numbers<[1], [0], [0], [1], [0, 0, 1, 1], [], []>} : vector<64x256xbf16>, vector<256x128xbf16>, vector<64x128xf32> -> vector<64x128xf32>
    %7 = arith.addf %3, %6 : vector<64x128xf32>
    %c0_6 = arith.constant 0 : index
    %c0_7 = arith.constant 0 : index
    %8 = vector.load %arg8[%c0_6, %c0_7] : memref<64x128xf32, #tpu.memory_space<vmem>>, vector<64x128xf32>
    tpu.vector_store %arg8[%c0_6, %c0_7], %7 {strides = array<i32>} : memref<64x128xf32, #tpu.memory_space<vmem>>, vector<64x128xf32>,
    %c0_i32_8 = arith.constant 0 : i32
    %9 = arith.cmpi eq, %arg1, %c0_i32_8 : i32
    %c0_i32_9 = arith.constant 0 : i32
    %10 = arith.cmpi eq, %arg2, %c0_i32_9 : i32
    %11 = arith.andi %9, %10 : i1
    %12 = arith.extui %11 : i1 to i32
    %c0_i32_10 = arith.constant 0 : i32
    %13 = arith.cmpi ne, %12, %c0_i32_10 : i32
    scf.if %13 {
      %cst_12 = arith.constant 0.000000e+00 : f32
      %17 = vector.broadcast %cst_12 : f32 to vector<1x128xf32>
      %c0_13 = arith.constant 0 : index
      %c0_14 = arith.constant 0 : index
      %18 = vector.load %arg6[%c0_13, %c0_14] : memref<1x128xf32, #tpu.memory_space<vmem>>, vector<1x128xf32>
      tpu.vector_store %arg6[%c0_13, %c0_14], %17 {strides = array<i32>} : memref<1x128xf32, #tpu.memory_space<vmem>>, vector<1x128xf32>,
      %cst_15 = arith.constant 0.000000e+00 : f32
      %19 = vector.broadcast %cst_15 : f32 to vector<1x128xf32>
      %c0_16 = arith.constant 0 : index
      %c0_17 = arith.constant 0 : index
      %20 = vector.load %arg7[%c0_16, %c0_17] : memref<1x128xf32, #tpu.memory_space<vmem>>, vector<1x128xf32>
      tpu.vector_store %arg7[%c0_16, %c0_17], %19 {strides = array<i32>} : memref<1x128xf32, #tpu.memory_space<vmem>>, vector<1x128xf32>,
    } else {
    }
    %c6_i32 = arith.constant 6 : i32
    %14 = arith.cmpi eq, %arg2, %c6_i32 : i32
    %15 = arith.extui %14 : i1 to i32
    %c0_i32_11 = arith.constant 0 : i32
    %16 = arith.cmpi ne, %15, %c0_i32_11 : i32
    scf.if %16 {
      %c0_12 = arith.constant 0 : index
      %c0_13 = arith.constant 0 : index
      %17 = vector.load %arg8[%c0_12, %c0_13] : memref<64x128xf32, #tpu.memory_space<vmem>>, vector<64x128xf32>
      %18 = arith.truncf %17 : vector<64x128xf32> to vector<64x128xbf16>
      %c0_14 = arith.constant 0 : index
      %c0_15 = arith.constant 0 : index
      %19 = vector.load %arg5[%c0_14, %c0_15] : memref<64x128xbf16, #tpu.memory_space<vmem>>, vector<64x128xbf16>
      tpu.vector_store %arg5[%c0_14, %c0_15], %18 {strides = array<i32>} : memref<64x128xbf16, #tpu.memory_space<vmem>>, vector<64x128xbf16>,
      %c0_16 = arith.constant 0 : index
      %c0_17 = arith.constant 0 : index
      %20 = vector.load %arg6[%c0_16, %c0_17] : memref<1x128xf32, #tpu.memory_space<vmem>>, vector<1x128xf32>
      %cst_18 = arith.constant dense<0.000000e+00> : vector<128xf32>
      %21 = vector.multi_reduction <add>, %17, %cst_18 [0] : vector<64x128xf32> to vector<128xf32>
      %22 = vector.shape_cast %21 : vector<128xf32> to vector<1x128xf32>
      %23 = arith.addf %20, %22 : vector<1x128xf32>
      %c0_19 = arith.constant 0 : index
      %c0_20 = arith.constant 0 : index
      %24 = vector.load %arg6[%c0_19, %c0_20] : memref<1x128xf32, #tpu.memory_space<vmem>>, vector<1x128xf32>
      tpu.vector_store %arg6[%c0_19, %c0_20], %23 {strides = array<i32>} : memref<1x128xf32, #tpu.memory_space<vmem>>, vector<1x128xf32>,
      %c0_21 = arith.constant 0 : index
      %c0_22 = arith.constant 0 : index
      %25 = vector.load %arg7[%c0_21, %c0_22] : memref<1x128xf32, #tpu.memory_space<vmem>>, vector<1x128xf32>
      %26 = arith.mulf %17, %17 : vector<64x128xf32>
      %cst_23 = arith.constant dense<0.000000e+00> : vector<128xf32>
      %27 = vector.multi_reduction <add>, %26, %cst_23 [0] : vector<64x128xf32> to vector<128xf32>
      %28 = vector.shape_cast %27 : vector<128xf32> to vector<1x128xf32>
      %29 = arith.addf %25, %28 : vector<1x128xf32>
      %c0_24 = arith.constant 0 : index
      %c0_25 = arith.constant 0 : index
      %30 = vector.load %arg7[%c0_24, %c0_25] : memref<1x128xf32, #tpu.memory_space<vmem>>, vector<1x128xf32>
      tpu.vector_store %arg7[%c0_24, %c0_25], %29 {strides = array<i32>} : memref<1x128xf32, #tpu.memory_space<vmem>>, vector<1x128xf32>,
    } else {
    }
    return
  }
  func.func @transform_0(%arg0: i32, %arg1: i32, %arg2: i32) -> (i32, i32) {
    %c0_i32 = arith.constant 0 : i32
    return %arg1, %arg2 : i32, i32
  }
  func.func @transform_1(%arg0: i32, %arg1: i32, %arg2: i32) -> (i32, i32) {
    %c0_i32 = arith.constant 0 : i32
    return %arg2, %arg0 : i32, i32
  }
  func.func @transform_2(%arg0: i32, %arg1: i32, %arg2: i32) -> (i32, i32) {
    %c0_i32 = arith.constant 0 : i32
    return %arg1, %arg0 : i32, i32
  }
  func.func @transform_3(%arg0: i32, %arg1: i32, %arg2: i32) -> (i32, i32) {
    %c0_i32 = arith.constant 0 : i32
    %c0_i32_0 = arith.constant 0 : i32
    return %c0_i32, %arg0 : i32, i32
  }
  func.func @transform_4(%arg0: i32, %arg1: i32, %arg2: i32) -> (i32, i32) {
    %c0_i32 = arith.constant 0 : i32
    %c0_i32_0 = arith.constant 0 : i32
    return %c0_i32, %arg0 : i32, i32
  }
}

module attributes {stable_mosaic.version = 11 : i64} {
  func.func @kernel(%arg0: i32, %arg1: memref<32x128xbf16, #tpu.memory_space<vmem>>, %arg2: memref<1x128xf32, #tpu.memory_space<vmem>>, %arg3: memref<1x128xf32, #tpu.memory_space<vmem>>, %arg4: memref<32x128xbf16, #tpu.memory_space<vmem>>) attributes {dimension_semantics = [#tpu.dimension_semantics<parallel>], iteration_bounds = array<i64: 1>, scalar_prefetch = 0 : i64, scratch_operands = 0 : i64, tpu.core_type = #tpu.core_type<tc>, window_params = [{transform_indices = @transform_0, window_bounds = array<i64: 32, 128>}, {pipeline_mode = #tpu.pipeline_mode<synchronous>, transform_indices = @transform_1, window_bounds = array<i64: 1, 128>}, {pipeline_mode = #tpu.pipeline_mode<synchronous>, transform_indices = @transform_2, window_bounds = array<i64: 1, 128>}, {transform_indices = @transform_3, window_bounds = array<i64: 32, 128>}]} {
    %c0 = arith.constant 0 : index
    %c0_0 = arith.constant 0 : index
    %0 = vector.load %arg1[%c0, %c0_0] : memref<32x128xbf16, #tpu.memory_space<vmem>>, vector<32x128xbf16>
    %1 = arith.extf %0 : vector<32x128xbf16> to vector<32x128xf32>
    %c0_1 = arith.constant 0 : index
    %c0_2 = arith.constant 0 : index
    %2 = vector.load %arg2[%c0_1, %c0_2] : memref<1x128xf32, #tpu.memory_space<vmem>>, vector<1x128xf32>
    %3 = vector.broadcast %2 : vector<1x128xf32> to vector<32x128xf32>
    %4 = arith.mulf %1, %3 : vector<32x128xf32>
    %c0_3 = arith.constant 0 : index
    %c0_4 = arith.constant 0 : index
    %5 = vector.load %arg3[%c0_3, %c0_4] : memref<1x128xf32, #tpu.memory_space<vmem>>, vector<1x128xf32>
    %6 = vector.broadcast %5 : vector<1x128xf32> to vector<32x128xf32>
    %7 = arith.addf %4, %6 : vector<32x128xf32>
    %cst = arith.constant 0.000000e+00 : f32
    %8 = vector.broadcast %cst : f32 to vector<32x128xf32>
    %9 = arith.maximumf %7, %8 : vector<32x128xf32>
    %10 = arith.truncf %9 : vector<32x128xf32> to vector<32x128xbf16>
    %c0_5 = arith.constant 0 : index
    %c0_6 = arith.constant 0 : index
    %11 = vector.load %arg4[%c0_5, %c0_6] : memref<32x128xbf16, #tpu.memory_space<vmem>>, vector<32x128xbf16>
    tpu.vector_store %arg4[%c0_5, %c0_6], %10 {strides = array<i32>} : memref<32x128xbf16, #tpu.memory_space<vmem>>, vector<32x128xbf16>,
    return
  }
  func.func @transform_0(%arg0: i32) -> (i32, i32) {
    %c0_i32 = arith.constant 0 : i32
    %c0_i32_0 = arith.constant 0 : i32
    return %arg0, %c0_i32 : i32, i32
  }
  func.func @transform_1(%arg0: i32) -> (i32, i32) {
    %c0_i32 = arith.constant 0 : i32
    %c0_i32_0 = arith.constant 0 : i32
    %c0_i32_1 = arith.constant 0 : i32
    return %c0_i32, %c0_i32_0 : i32, i32
  }
  func.func @transform_2(%arg0: i32) -> (i32, i32) {
    %c0_i32 = arith.constant 0 : i32
    %c0_i32_0 = arith.constant 0 : i32
    %c0_i32_1 = arith.constant 0 : i32
    return %c0_i32, %c0_i32_0 : i32, i32
  }
  func.func @transform_3(%arg0: i32) -> (i32, i32) {
    %c0_i32 = arith.constant 0 : i32
    %c0_i32_0 = arith.constant 0 : i32
    return %arg0, %c0_i32 : i32, i32
  }
}

module attributes {stable_mosaic.version = 11 : i64} {
  func.func @kernel(%arg0: i32, %arg1: memref<32x128xbf16, #tpu.memory_space<vmem>>, %arg2: memref<32x128xbf16, #tpu.memory_space<vmem>>, %arg3: memref<1x128xf32, #tpu.memory_space<vmem>>, %arg4: memref<1x128xf32, #tpu.memory_space<vmem>>, %arg5: memref<32x128xbf16, #tpu.memory_space<vmem>>) attributes {dimension_semantics = [#tpu.dimension_semantics<parallel>], iteration_bounds = array<i64: 1>, scalar_prefetch = 0 : i64, scratch_operands = 0 : i64, tpu.core_type = #tpu.core_type<tc>, window_params = [{transform_indices = @transform_0, window_bounds = array<i64: 32, 128>}, {transform_indices = @transform_1, window_bounds = array<i64: 32, 128>}, {pipeline_mode = #tpu.pipeline_mode<synchronous>, transform_indices = @transform_2, window_bounds = array<i64: 1, 128>}, {pipeline_mode = #tpu.pipeline_mode<synchronous>, transform_indices = @transform_3, window_bounds = array<i64: 1, 128>}, {transform_indices = @transform_4, window_bounds = array<i64: 32, 128>}]} {
    %c0 = arith.constant 0 : index
    %c0_0 = arith.constant 0 : index
    %0 = vector.load %arg1[%c0, %c0_0] : memref<32x128xbf16, #tpu.memory_space<vmem>>, vector<32x128xbf16>
    %1 = arith.extf %0 : vector<32x128xbf16> to vector<32x128xf32>
    %c0_1 = arith.constant 0 : index
    %c0_2 = arith.constant 0 : index
    %2 = vector.load %arg3[%c0_1, %c0_2] : memref<1x128xf32, #tpu.memory_space<vmem>>, vector<1x128xf32>
    %3 = vector.broadcast %2 : vector<1x128xf32> to vector<32x128xf32>
    %4 = arith.mulf %1, %3 : vector<32x128xf32>
    %c0_3 = arith.constant 0 : index
    %c0_4 = arith.constant 0 : index
    %5 = vector.load %arg4[%c0_3, %c0_4] : memref<1x128xf32, #tpu.memory_space<vmem>>, vector<1x128xf32>
    %6 = vector.broadcast %5 : vector<1x128xf32> to vector<32x128xf32>
    %7 = arith.addf %4, %6 : vector<32x128xf32>
    %c0_5 = arith.constant 0 : index
    %c0_6 = arith.constant 0 : index
    %8 = vector.load %arg2[%c0_5, %c0_6] : memref<32x128xbf16, #tpu.memory_space<vmem>>, vector<32x128xbf16>
    %9 = arith.extf %8 : vector<32x128xbf16> to vector<32x128xf32>
    %10 = arith.addf %7, %9 : vector<32x128xf32>
    %cst = arith.constant 0.000000e+00 : f32
    %11 = vector.broadcast %cst : f32 to vector<32x128xf32>
    %12 = arith.maximumf %10, %11 : vector<32x128xf32>
    %13 = arith.truncf %12 : vector<32x128xf32> to vector<32x128xbf16>
    %c0_7 = arith.constant 0 : index
    %c0_8 = arith.constant 0 : index
    %14 = vector.load %arg5[%c0_7, %c0_8] : memref<32x128xbf16, #tpu.memory_space<vmem>>, vector<32x128xbf16>
    tpu.vector_store %arg5[%c0_7, %c0_8], %13 {strides = array<i32>} : memref<32x128xbf16, #tpu.memory_space<vmem>>, vector<32x128xbf16>,
    return
  }
  func.func @transform_0(%arg0: i32) -> (i32, i32) {
    %c0_i32 = arith.constant 0 : i32
    %c0_i32_0 = arith.constant 0 : i32
    return %arg0, %c0_i32 : i32, i32
  }
  func.func @transform_1(%arg0: i32) -> (i32, i32) {
    %c0_i32 = arith.constant 0 : i32
    %c0_i32_0 = arith.constant 0 : i32
    return %arg0, %c0_i32 : i32, i32
  }
  func.func @transform_2(%arg0: i32) -> (i32, i32) {
    %c0_i32 = arith.constant 0 : i32
    %c0_i32_0 = arith.constant 0 : i32
    %c0_i32_1 = arith.constant 0 : i32
    return %c0_i32, %c0_i32_0 : i32, i32
  }
  func.func @transform_3(%arg0: i32) -> (i32, i32) {
    %c0_i32 = arith.constant 0 : i32
    %c0_i32_0 = arith.constant 0 : i32
    %c0_i32_1 = arith.constant 0 : i32
    return %c0_i32, %c0_i32_0 : i32, i32
  }
  func.func @transform_4(%arg0: i32) -> (i32, i32) {
    %c0_i32 = arith.constant 0 : i32
    %c0_i32_0 = arith.constant 0 : i32
    return %arg0, %c0_i32 : i32, i32
  }
}

module attributes {stable_mosaic.version = 11 : i64} {
  func.func @kernel(%arg0: i32, %arg1: i32, %arg2: i32, %arg3: memref<64x128xbf16, #tpu.memory_space<vmem>>, %arg4: memref<128x128xbf16, #tpu.memory_space<vmem>>, %arg5: memref<1x128xf32, #tpu.memory_space<vmem>>, %arg6: memref<64x128xbf16, #tpu.memory_space<vmem>>, %arg7: memref<64x128xf32, #tpu.memory_space<vmem>>) attributes {dimension_semantics = [#tpu.dimension_semantics<parallel>, #tpu.dimension_semantics<parallel>, #tpu.dimension_semantics<arbitrary>], iteration_bounds = array<i64: 1, 1, 1>, scalar_prefetch = 0 : i64, scratch_operands = 1 : i64, tpu.core_type = #tpu.core_type<tc>, window_params = [{transform_indices = @transform_0, window_bounds = array<i64: 64, 128>}, {transform_indices = @transform_1, window_bounds = array<i64: 128, 128>}, {transform_indices = @transform_2, window_bounds = array<i64: 1, 128>}, {transform_indices = @transform_3, window_bounds = array<i64: 64, 128>}]} {
    %c0_i32 = arith.constant 0 : i32
    %0 = arith.cmpi eq, %arg2, %c0_i32 : i32
    %1 = arith.extui %0 : i1 to i32
    %c0_i32_0 = arith.constant 0 : i32
    %2 = arith.cmpi ne, %1, %c0_i32_0 : i32
    scf.if %2 {
      %cst_10 = arith.constant 0.000000e+00 : f32
      %12 = vector.broadcast %cst_10 : f32 to vector<64x128xf32>
      %c0_11 = arith.constant 0 : index
      %c0_12 = arith.constant 0 : index
      %13 = vector.load %arg7[%c0_11, %c0_12] : memref<64x128xf32, #tpu.memory_space<vmem>>, vector<64x128xf32>
      tpu.vector_store %arg7[%c0_11, %c0_12], %12 {strides = array<i32>} : memref<64x128xf32, #tpu.memory_space<vmem>>, vector<64x128xf32>,
    } else {
    }
    %c0 = arith.constant 0 : index
    %c0_1 = arith.constant 0 : index
    %3 = vector.load %arg7[%c0, %c0_1] : memref<64x128xf32, #tpu.memory_space<vmem>>, vector<64x128xf32>
    %c0_2 = arith.constant 0 : index
    %c0_3 = arith.constant 0 : index
    %4 = vector.load %arg3[%c0_2, %c0_3] : memref<64x128xbf16, #tpu.memory_space<vmem>>, vector<64x128xbf16>
    %c0_4 = arith.constant 0 : index
    %c0_5 = arith.constant 0 : index
    %5 = vector.load %arg4[%c0_4, %c0_5] : memref<128x128xbf16, #tpu.memory_space<vmem>>, vector<128x128xbf16>
    %cst = arith.constant dense<0.000000e+00> : vector<64x128xf32>
    %6 = tpu.matmul %4, %5, %cst {dimension_numbers = #tpu.dot_dimension_numbers<[1], [0], [0], [1], [0, 0, 1, 1], [], []>} : vector<64x128xbf16>, vector<128x128xbf16>, vector<64x128xf32> -> vector<64x128xf32>
    %7 = arith.addf %3, %6 : vector<64x128xf32>
    %c0_6 = arith.constant 0 : index
    %c0_7 = arith.constant 0 : index
    %8 = vector.load %arg7[%c0_6, %c0_7] : memref<64x128xf32, #tpu.memory_space<vmem>>, vector<64x128xf32>
    tpu.vector_store %arg7[%c0_6, %c0_7], %7 {strides = array<i32>} : memref<64x128xf32, #tpu.memory_space<vmem>>, vector<64x128xf32>,
    %c0_i32_8 = arith.constant 0 : i32
    %9 = arith.cmpi eq, %arg2, %c0_i32_8 : i32
    %10 = arith.extui %9 : i1 to i32
    %c0_i32_9 = arith.constant 0 : i32
    %11 = arith.cmpi ne, %10, %c0_i32_9 : i32
    scf.if %11 {
      %c0_10 = arith.constant 0 : index
      %c0_11 = arith.constant 0 : index
      %12 = vector.load %arg7[%c0_10, %c0_11] : memref<64x128xf32, #tpu.memory_space<vmem>>, vector<64x128xf32>
      %c0_12 = arith.constant 0 : index
      %c0_13 = arith.constant 0 : index
      %13 = vector.load %arg5[%c0_12, %c0_13] : memref<1x128xf32, #tpu.memory_space<vmem>>, vector<1x128xf32>
      %14 = vector.broadcast %13 : vector<1x128xf32> to vector<64x128xf32>
      %15 = arith.addf %12, %14 : vector<64x128xf32>
      %16 = arith.truncf %15 : vector<64x128xf32> to vector<64x128xbf16>
      %c0_14 = arith.constant 0 : index
      %c0_15 = arith.constant 0 : index
      %17 = vector.load %arg6[%c0_14, %c0_15] : memref<64x128xbf16, #tpu.memory_space<vmem>>, vector<64x128xbf16>
      tpu.vector_store %arg6[%c0_14, %c0_15], %16 {strides = array<i32>} : memref<64x128xbf16, #tpu.memory_space<vmem>>, vector<64x128xbf16>,
    } else {
    }
    return
  }
  func.func @transform_0(%arg0: i32, %arg1: i32, %arg2: i32) -> (i32, i32) {
    %c0_i32 = arith.constant 0 : i32
    return %arg0, %arg2 : i32, i32
  }
  func.func @transform_1(%arg0: i32, %arg1: i32, %arg2: i32) -> (i32, i32) {
    %c0_i32 = arith.constant 0 : i32
    return %arg2, %arg1 : i32, i32
  }
  func.func @transform_2(%arg0: i32, %arg1: i32, %arg2: i32) -> (i32, i32) {
    %c0_i32 = arith.constant 0 : i32
    %c0_i32_0 = arith.constant 0 : i32
    return %c0_i32, %arg1 : i32, i32
  }
  func.func @transform_3(%arg0: i32, %arg1: i32, %arg2: i32) -> (i32, i32) {
    %c0_i32 = arith.constant 0 : i32
    return %arg0, %arg1 : i32, i32
  }
}

module attributes {stable_mosaic.version = 11 : i64} {
  func.func @_nl_flash_kernel(%arg0: i32, %arg1: i32, %arg2: i32, %arg3: memref<1x32x32xbf16, #tpu.memory_space<vmem>>, %arg4: memref<1x32x32xbf16, #tpu.memory_space<vmem>>, %arg5: memref<1x32x32xbf16, #tpu.memory_space<vmem>>, %arg6: memref<1x32x32xbf16, #tpu.memory_space<vmem>>, %arg7: memref<32x1xf32, #tpu.memory_space<vmem>>, %arg8: memref<32x1xf32, #tpu.memory_space<vmem>>, %arg9: memref<32x32xf32, #tpu.memory_space<vmem>>) attributes {dimension_semantics = [#tpu.dimension_semantics<parallel>, #tpu.dimension_semantics<parallel>, #tpu.dimension_semantics<arbitrary>], iteration_bounds = array<i64: 2, 1, 1>, scalar_prefetch = 0 : i64, scratch_operands = 3 : i64, tpu.core_type = #tpu.core_type<tc>, window_params = [{transform_indices = @transform_0, window_bounds = array<i64: 1, 32, 32>}, {transform_indices = @transform_1, window_bounds = array<i64: 1, 32, 32>}, {transform_indices = @transform_2, window_bounds = array<i64: 1, 32, 32>}, {transform_indices = @transform_3, window_bounds = array<i64: 1, 32, 32>}]} {
    %c0_i32 = arith.constant 0 : i32
    %0 = arith.cmpi eq, %arg2, %c0_i32 : i32
    %1 = arith.extui %0 : i1 to i32
    %c0_i32_0 = arith.constant 0 : i32
    %2 = arith.cmpi ne, %1, %c0_i32_0 : i32
    scf.if %2 {
      %cst_28 = arith.constant 0xFF800000 : f32
      %37 = vector.broadcast %cst_28 : f32 to vector<32x1xf32>
      %c0_29 = arith.constant 0 : index
      %c0_30 = arith.constant 0 : index
      %38 = vector.load %arg7[%c0_29, %c0_30] : memref<32x1xf32, #tpu.memory_space<vmem>>, vector<32x1xf32>
      tpu.vector_store %arg7[%c0_29, %c0_30], %37 {strides = array<i32>} : memref<32x1xf32, #tpu.memory_space<vmem>>, vector<32x1xf32>,
      %cst_31 = arith.constant 0.000000e+00 : f32
      %39 = vector.broadcast %cst_31 : f32 to vector<32x1xf32>
      %c0_32 = arith.constant 0 : index
      %c0_33 = arith.constant 0 : index
      %40 = vector.load %arg8[%c0_32, %c0_33] : memref<32x1xf32, #tpu.memory_space<vmem>>, vector<32x1xf32>
      tpu.vector_store %arg8[%c0_32, %c0_33], %39 {strides = array<i32>} : memref<32x1xf32, #tpu.memory_space<vmem>>, vector<32x1xf32>,
      %cst_34 = arith.constant 0.000000e+00 : f32
      %41 = vector.broadcast %cst_34 : f32 to vector<32x32xf32>
      %c0_35 = arith.constant 0 : index
      %c0_36 = arith.constant 0 : index
      %42 = vector.load %arg9[%c0_35, %c0_36] : memref<32x32xf32, #tpu.memory_space<vmem>>, vector<32x32xf32>
      tpu.vector_store %arg9[%c0_35, %c0_36], %41 {strides = array<i32>} : memref<32x32xf32, #tpu.memory_space<vmem>>, vector<32x32xf32>,
    } else {
    }
    %c0 = arith.constant 0 : index
    %c0_1 = arith.constant 0 : index
    %c0_2 = arith.constant 0 : index
    %3 = vector.load %arg3[%c0, %c0_1, %c0_2] : memref<1x32x32xbf16, #tpu.memory_space<vmem>>, vector<1x32x32xbf16>
    %4 = vector.shape_cast %3 : vector<1x32x32xbf16> to vector<32x32xbf16>
    %c0_3 = arith.constant 0 : index
    %c0_4 = arith.constant 0 : index
    %c0_5 = arith.constant 0 : index
    %5 = vector.load %arg4[%c0_3, %c0_4, %c0_5] : memref<1x32x32xbf16, #tpu.memory_space<vmem>>, vector<1x32x32xbf16>
    %6 = vector.shape_cast %5 : vector<1x32x32xbf16> to vector<32x32xbf16>
    %cst = arith.constant dense<0.000000e+00> : vector<32x32xf32>
    %7 = tpu.matmul %4, %6, %cst {dimension_numbers = #tpu.dot_dimension_numbers<[1], [1], [0], [0], [0, 0, 1, 0], [], []>} : vector<32x32xbf16>, vector<32x32xbf16>, vector<32x32xf32> -> vector<32x32xf32>
    %c0_6 = arith.constant 0 : index
    %c0_7 = arith.constant 0 : index
    %8 = vector.load %arg7[%c0_6, %c0_7] : memref<32x1xf32, #tpu.memory_space<vmem>>, vector<32x1xf32>
    %cst_8 = arith.constant dense<0xFF800000> : vector<32xf32>
    %9 = vector.multi_reduction <maximumf>, %7, %cst_8 [1] : vector<32x32xf32> to vector<32xf32>
    %10 = vector.shape_cast %9 : vector<32xf32> to vector<32x1xf32>
    %11 = arith.maximumf %8, %10 : vector<32x1xf32>
    %c0_9 = arith.constant 0 : index
    %c0_10 = arith.constant 0 : index
    %12 = vector.load %arg7[%c0_9, %c0_10] : memref<32x1xf32, #tpu.memory_space<vmem>>, vector<32x1xf32>
    %13 = arith.subf %12, %11 : vector<32x1xf32>
    %14 = math.exp %13 : vector<32x1xf32>
    %15 = vector.broadcast %11 : vector<32x1xf32> to vector<32x32xf32>
    %16 = arith.subf %7, %15 : vector<32x32xf32>
    %17 = math.exp %16 : vector<32x32xf32>
    %c0_11 = arith.constant 0 : index
    %c0_12 = arith.constant 0 : index
    %18 = vector.load %arg8[%c0_11, %c0_12] : memref<32x1xf32, #tpu.memory_space<vmem>>, vector<32x1xf32>
    %19 = arith.mulf %14, %18 : vector<32x1xf32>
    %cst_13 = arith.constant dense<0.000000e+00> : vector<32xf32>
    %20 = vector.multi_reduction <add>, %17, %cst_13 [1] : vector<32x32xf32> to vector<32xf32>
    %21 = vector.shape_cast %20 : vector<32xf32> to vector<32x1xf32>
    %22 = arith.addf %19, %21 : vector<32x1xf32>
    %c0_14 = arith.constant 0 : index
    %c0_15 = arith.constant 0 : index
    %23 = vector.load %arg8[%c0_14, %c0_15] : memref<32x1xf32, #tpu.memory_space<vmem>>, vector<32x1xf32>
    tpu.vector_store %arg8[%c0_14, %c0_15], %22 {strides = array<i32>} : memref<32x1xf32, #tpu.memory_space<vmem>>, vector<32x1xf32>,
    %c0_16 = arith.constant 0 : index
    %c0_17 = arith.constant 0 : index
    %24 = vector.load %arg9[%c0_16, %c0_17] : memref<32x32xf32, #tpu.memory_space<vmem>>, vector<32x32xf32>
    %25 = vector.broadcast %14 : vector<32x1xf32> to vector<32x32xf32>
    %26 = arith.mulf %25, %24 : vector<32x32xf32>
    %27 = arith.truncf %17 : vector<32x32xf32> to vector<32x32xbf16>
    %c0_18 = arith.constant 0 : index
    %c0_19 = arith.constant 0 : index
    %c0_20 = arith.constant 0 : index
    %28 = vector.load %arg5[%c0_18, %c0_19, %c0_20] : memref<1x32x32xbf16, #tpu.memory_space<vmem>>, vector<1x32x32xbf16>
    %29 = vector.shape_cast %28 : vector<1x32x32xbf16> to vector<32x32xbf16>
    %cst_21 = arith.constant dense<0.000000e+00> : vector<32x32xf32>
    %30 = tpu.matmul %27, %29, %cst_21 {dimension_numbers = #tpu.dot_dimension_numbers<[1], [0], [0], [1], [0, 0, 1, 1], [], []>} : vector<32x32xbf16>, vector<32x32xbf16>, vector<32x32xf32> -> vector<32x32xf32>
    %31 = arith.addf %26, %30 : vector<32x32xf32>
    %c0_22 = arith.constant 0 : index
    %c0_23 = arith.constant 0 : index
    %32 = vector.load %arg9[%c0_22, %c0_23] : memref<32x32xf32, #tpu.memory_space<vmem>>, vector<32x32xf32>
    tpu.vector_store %arg9[%c0_22, %c0_23], %31 {strides = array<i32>} : memref<32x32xf32, #tpu.memory_space<vmem>>, vector<32x32xf32>,
    %c0_24 = arith.constant 0 : index
    %c0_25 = arith.constant 0 : index
    %33 = vector.load %arg7[%c0_24, %c0_25] : memref<32x1xf32, #tpu.memory_space<vmem>>, vector<32x1xf32>
    tpu.vector_store %arg7[%c0_24, %c0_25], %11 {strides = array<i32>} : memref<32x1xf32, #tpu.memory_space<vmem>>, vector<32x1xf32>,
    %c0_i32_26 = arith.constant 0 : i32
    %34 = arith.cmpi eq, %arg2, %c0_i32_26 : i32
    %35 = arith.extui %34 : i1 to i32
    %c0_i32_27 = arith.constant 0 : i32
    %36 = arith.cmpi ne, %35, %c0_i32_27 : i32
    scf.if %36 {
      %c0_28 = arith.constant 0 : index
      %c0_29 = arith.constant 0 : index
      %37 = vector.load %arg9[%c0_28, %c0_29] : memref<32x32xf32, #tpu.memory_space<vmem>>, vector<32x32xf32>
      %c0_30 = arith.constant 0 : index
      %c0_31 = arith.constant 0 : index
      %38 = vector.load %arg8[%c0_30, %c0_31] : memref<32x1xf32, #tpu.memory_space<vmem>>, vector<32x1xf32>
      %39 = tpu.reciprocal %38 {approx = true} : vector<32x1xf32> -> vector<32x1xf32>
      %40 = vector.broadcast %39 : vector<32x1xf32> to vector<32x32xf32>
      %41 = arith.mulf %37, %40 : vector<32x32xf32>
      %42 = arith.truncf %41 : vector<32x32xf32> to vector<32x32xbf16>
      %c0_32 = arith.constant 0 : index
      %c0_33 = arith.constant 0 : index
      %c0_34 = arith.constant 0 : index
      %43 = vector.load %arg6[%c0_32, %c0_33, %c0_34] : memref<1x32x32xbf16, #tpu.memory_space<vmem>>, vector<1x32x32xbf16>
      %44 = vector.shape_cast %43 : vector<1x32x32xbf16> to vector<32x32xbf16>
      %45 = vector.shape_cast %42 : vector<32x32xbf16> to vector<1x32x32xbf16>
      tpu.vector_store %arg6[%c0_32, %c0_33, %c0_34], %45 {strides = array<i32>} : memref<1x32x32xbf16, #tpu.memory_space<vmem>>, vector<1x32x32xbf16>,
    } else {
    }
    return
  }
  func.func @transform_0(%arg0: i32, %arg1: i32, %arg2: i32) -> (i32, i32, i32) {
    %c0_i32 = arith.constant 0 : i32
    %c0_i32_0 = arith.constant 0 : i32
    return %arg0, %arg1, %c0_i32 : i32, i32, i32
  }
  func.func @transform_1(%arg0: i32, %arg1: i32, %arg2: i32) -> (i32, i32, i32) {
    %c0_i32 = arith.constant 0 : i32
    %c0_i32_0 = arith.constant 0 : i32
    return %arg0, %arg2, %c0_i32 : i32, i32, i32
  }
  func.func @transform_2(%arg0: i32, %arg1: i32, %arg2: i32) -> (i32, i32, i32) {
    %c0_i32 = arith.constant 0 : i32
    %c0_i32_0 = arith.constant 0 : i32
    return %arg0, %arg2, %c0_i32 : i32, i32, i32
  }
  func.func @transform_3(%arg0: i32, %arg1: i32, %arg2: i32) -> (i32, i32, i32) {
    %c0_i32 = arith.constant 0 : i32
    %c0_i32_0 = arith.constant 0 : i32
    return %arg0, %arg1, %c0_i32 : i32, i32, i32
  }
}

module attributes {stable_mosaic.version = 11 : i64} {
  func.func @kernel(%arg0: i32, %arg1: memref<32x128xbf16, #tpu.memory_space<vmem>>, %arg2: memref<32x128xbf16, #tpu.memory_space<vmem>>, %arg3: memref<1x128xf32, #tpu.memory_space<vmem>>, %arg4: memref<1x128xf32, #tpu.memory_space<vmem>>, %arg5: memref<32x128xbf16, #tpu.memory_space<vmem>>) attributes {dimension_semantics = [#tpu.dimension_semantics<parallel>], iteration_bounds = array<i64: 1>, scalar_prefetch = 0 : i64, scratch_operands = 0 : i64, tpu.core_type = #tpu.core_type<tc>, window_params = [{transform_indices = @transform_0, window_bounds = array<i64: 32, 128>}, {transform_indices = @transform_1, window_bounds = array<i64: 32, 128>}, {pipeline_mode = #tpu.pipeline_mode<synchronous>, transform_indices = @transform_2, window_bounds = array<i64: 1, 128>}, {pipeline_mode = #tpu.pipeline_mode<synchronous>, transform_indices = @transform_3, window_bounds = array<i64: 1, 128>}, {transform_indices = @transform_4, window_bounds = array<i64: 32, 128>}]} {
    %c0 = arith.constant 0 : index
    %c0_0 = arith.constant 0 : index
    %0 = vector.load %arg1[%c0, %c0_0] : memref<32x128xbf16, #tpu.memory_space<vmem>>, vector<32x128xbf16>
    %1 = arith.extf %0 : vector<32x128xbf16> to vector<32x128xf32>
    %c0_1 = arith.constant 0 : index
    %c0_2 = arith.constant 0 : index
    %2 = vector.load %arg3[%c0_1, %c0_2] : memref<1x128xf32, #tpu.memory_space<vmem>>, vector<1x128xf32>
    %3 = vector.broadcast %2 : vector<1x128xf32> to vector<32x128xf32>
    %4 = arith.mulf %1, %3 : vector<32x128xf32>
    %c0_3 = arith.constant 0 : index
    %c0_4 = arith.constant 0 : index
    %5 = vector.load %arg4[%c0_3, %c0_4] : memref<1x128xf32, #tpu.memory_space<vmem>>, vector<1x128xf32>
    %6 = vector.broadcast %5 : vector<1x128xf32> to vector<32x128xf32>
    %7 = arith.addf %4, %6 : vector<32x128xf32>
    %c0_5 = arith.constant 0 : index
    %c0_6 = arith.constant 0 : index
    %8 = vector.load %arg2[%c0_5, %c0_6] : memref<32x128xbf16, #tpu.memory_space<vmem>>, vector<32x128xbf16>
    %9 = arith.extf %8 : vector<32x128xbf16> to vector<32x128xf32>
    %10 = arith.addf %7, %9 : vector<32x128xf32>
    %11 = arith.truncf %10 : vector<32x128xf32> to vector<32x128xbf16>
    %c0_7 = arith.constant 0 : index
    %c0_8 = arith.constant 0 : index
    %12 = vector.load %arg5[%c0_7, %c0_8] : memref<32x128xbf16, #tpu.memory_space<vmem>>, vector<32x128xbf16>
    tpu.vector_store %arg5[%c0_7, %c0_8], %11 {strides = array<i32>} : memref<32x128xbf16, #tpu.memory_space<vmem>>, vector<32x128xbf16>,
    return
  }
  func.func @transform_0(%arg0: i32) -> (i32, i32) {
    %c0_i32 = arith.constant 0 : i32
    %c0_i32_0 = arith.constant 0 : i32
    return %arg0, %c0_i32 : i32, i32
  }
  func.func @transform_1(%arg0: i32) -> (i32, i32) {
    %c0_i32 = arith.constant 0 : i32
    %c0_i32_0 = arith.constant 0 : i32
    return %arg0, %c0_i32 : i32, i32
  }
  func.func @transform_2(%arg0: i32) -> (i32, i32) {
    %c0_i32 = arith.constant 0 : i32
    %c0_i32_0 = arith.constant 0 : i32
    %c0_i32_1 = arith.constant 0 : i32
    return %c0_i32, %c0_i32_0 : i32, i32
  }
  func.func @transform_3(%arg0: i32) -> (i32, i32) {
    %c0_i32 = arith.constant 0 : i32
    %c0_i32_0 = arith.constant 0 : i32
    %c0_i32_1 = arith.constant 0 : i32
    return %c0_i32, %c0_i32_0 : i32, i32
  }
  func.func @transform_4(%arg0: i32) -> (i32, i32) {
    %c0_i32 = arith.constant 0 : i32
    %c0_i32_0 = arith.constant 0 : i32
    return %arg0, %c0_i32 : i32, i32
  }
}

module attributes {stable_mosaic.version = 11 : i64} {
  func.func @kernel(%arg0: i32, %arg1: i32, %arg2: i32, %arg3: memref<64x128xbf16, #tpu.memory_space<vmem>>, %arg4: memref<128x128xbf16, #tpu.memory_space<vmem>>, %arg5: memref<1x128xf32, #tpu.memory_space<vmem>>, %arg6: memref<64x128xbf16, #tpu.memory_space<vmem>>, %arg7: memref<1x128xf32, #tpu.memory_space<vmem>>, %arg8: memref<1x128xf32, #tpu.memory_space<vmem>>, %arg9: memref<64x128xf32, #tpu.memory_space<vmem>>) attributes {dimension_semantics = [#tpu.dimension_semantics<parallel>, #tpu.dimension_semantics<arbitrary>, #tpu.dimension_semantics<arbitrary>], iteration_bounds = array<i64: 1, 1, 1>, scalar_prefetch = 0 : i64, scratch_operands = 1 : i64, tpu.core_type = #tpu.core_type<tc>, window_params = [{transform_indices = @transform_0, window_bounds = array<i64: 64, 128>}, {transform_indices = @transform_1, window_bounds = array<i64: 128, 128>}, {transform_indices = @transform_2, window_bounds = array<i64: 1, 128>}, {transform_indices = @transform_3, window_bounds = array<i64: 64, 128>}, {transform_indices = @transform_4, window_bounds = array<i64: 1, 128>}, {transform_indices = @transform_5, window_bounds = array<i64: 1, 128>}]} {
    %c0_i32 = arith.constant 0 : i32
    %0 = arith.cmpi eq, %arg2, %c0_i32 : i32
    %1 = arith.extui %0 : i1 to i32
    %c0_i32_0 = arith.constant 0 : i32
    %2 = arith.cmpi ne, %1, %c0_i32_0 : i32
    scf.if %2 {
      %cst_13 = arith.constant 0.000000e+00 : f32
      %17 = vector.broadcast %cst_13 : f32 to vector<64x128xf32>
      %c0_14 = arith.constant 0 : index
      %c0_15 = arith.constant 0 : index
      %18 = vector.load %arg9[%c0_14, %c0_15] : memref<64x128xf32, #tpu.memory_space<vmem>>, vector<64x128xf32>
      tpu.vector_store %arg9[%c0_14, %c0_15], %17 {strides = array<i32>} : memref<64x128xf32, #tpu.memory_space<vmem>>, vector<64x128xf32>,
    } else {
    }
    %c0 = arith.constant 0 : index
    %c0_1 = arith.constant 0 : index
    %3 = vector.load %arg9[%c0, %c0_1] : memref<64x128xf32, #tpu.memory_space<vmem>>, vector<64x128xf32>
    %c0_2 = arith.constant 0 : index
    %c0_3 = arith.constant 0 : index
    %4 = vector.load %arg3[%c0_2, %c0_3] : memref<64x128xbf16, #tpu.memory_space<vmem>>, vector<64x128xbf16>
    %c0_4 = arith.constant 0 : index
    %c0_5 = arith.constant 0 : index
    %5 = vector.load %arg4[%c0_4, %c0_5] : memref<128x128xbf16, #tpu.memory_space<vmem>>, vector<128x128xbf16>
    %cst = arith.constant dense<0.000000e+00> : vector<64x128xf32>
    %6 = tpu.matmul %4, %5, %cst {dimension_numbers = #tpu.dot_dimension_numbers<[1], [0], [0], [1], [0, 0, 1, 1], [], []>} : vector<64x128xbf16>, vector<128x128xbf16>, vector<64x128xf32> -> vector<64x128xf32>
    %7 = arith.addf %3, %6 : vector<64x128xf32>
    %c0_6 = arith.constant 0 : index
    %c0_7 = arith.constant 0 : index
    %8 = vector.load %arg9[%c0_6, %c0_7] : memref<64x128xf32, #tpu.memory_space<vmem>>, vector<64x128xf32>
    tpu.vector_store %arg9[%c0_6, %c0_7], %7 {strides = array<i32>} : memref<64x128xf32, #tpu.memory_space<vmem>>, vector<64x128xf32>,
    %c0_i32_8 = arith.constant 0 : i32
    %9 = arith.cmpi eq, %arg1, %c0_i32_8 : i32
    %c0_i32_9 = arith.constant 0 : i32
    %10 = arith.cmpi eq, %arg2, %c0_i32_9 : i32
    %11 = arith.andi %9, %10 : i1
    %12 = arith.extui %11 : i1 to i32
    %c0_i32_10 = arith.constant 0 : i32
    %13 = arith.cmpi ne, %12, %c0_i32_10 : i32
    scf.if %13 {
      %cst_13 = arith.constant 0.000000e+00 : f32
      %17 = vector.broadcast %cst_13 : f32 to vector<1x128xf32>
      %c0_14 = arith.constant 0 : index
      %c0_15 = arith.constant 0 : index
      %18 = vector.load %arg7[%c0_14, %c0_15] : memref<1x128xf32, #tpu.memory_space<vmem>>, vector<1x128xf32>
      tpu.vector_store %arg7[%c0_14, %c0_15], %17 {strides = array<i32>} : memref<1x128xf32, #tpu.memory_space<vmem>>, vector<1x128xf32>,
      %cst_16 = arith.constant 0.000000e+00 : f32
      %19 = vector.broadcast %cst_16 : f32 to vector<1x128xf32>
      %c0_17 = arith.constant 0 : index
      %c0_18 = arith.constant 0 : index
      %20 = vector.load %arg8[%c0_17, %c0_18] : memref<1x128xf32, #tpu.memory_space<vmem>>, vector<1x128xf32>
      tpu.vector_store %arg8[%c0_17, %c0_18], %19 {strides = array<i32>} : memref<1x128xf32, #tpu.memory_space<vmem>>, vector<1x128xf32>,
    } else {
    }
    %c0_i32_11 = arith.constant 0 : i32
    %14 = arith.cmpi eq, %arg2, %c0_i32_11 : i32
    %15 = arith.extui %14 : i1 to i32
    %c0_i32_12 = arith.constant 0 : i32
    %16 = arith.cmpi ne, %15, %c0_i32_12 : i32
    scf.if %16 {
      %c0_13 = arith.constant 0 : index
      %c0_14 = arith.constant 0 : index
      %17 = vector.load %arg9[%c0_13, %c0_14] : memref<64x128xf32, #tpu.memory_space<vmem>>, vector<64x128xf32>
      %c0_15 = arith.constant 0 : index
      %c0_16 = arith.constant 0 : index
      %18 = vector.load %arg5[%c0_15, %c0_16] : memref<1x128xf32, #tpu.memory_space<vmem>>, vector<1x128xf32>
      %19 = vector.broadcast %18 : vector<1x128xf32> to vector<64x128xf32>
      %20 = arith.addf %17, %19 : vector<64x128xf32>
      %21 = arith.truncf %20 : vector<64x128xf32> to vector<64x128xbf16>
      %c0_17 = arith.constant 0 : index
      %c0_18 = arith.constant 0 : index
      %22 = vector.load %arg6[%c0_17, %c0_18] : memref<64x128xbf16, #tpu.memory_space<vmem>>, vector<64x128xbf16>
      tpu.vector_store %arg6[%c0_17, %c0_18], %21 {strides = array<i32>} : memref<64x128xbf16, #tpu.memory_space<vmem>>, vector<64x128xbf16>,
      %c0_19 = arith.constant 0 : index
      %c0_20 = arith.constant 0 : index
      %23 = vector.load %arg7[%c0_19, %c0_20] : memref<1x128xf32, #tpu.memory_space<vmem>>, vector<1x128xf32>
      %cst_21 = arith.constant dense<0.000000e+00> : vector<128xf32>
      %24 = vector.multi_reduction <add>, %20, %cst_21 [0] : vector<64x128xf32> to vector<128xf32>
      %25 = vector.shape_cast %24 : vector<128xf32> to vector<1x128xf32>
      %26 = arith.addf %23, %25 : vector<1x128xf32>
      %c0_22 = arith.constant 0 : index
      %c0_23 = arith.constant 0 : index
      %27 = vector.load %arg7[%c0_22, %c0_23] : memref<1x128xf32, #tpu.memory_space<vmem>>, vector<1x128xf32>
      tpu.vector_store %arg7[%c0_22, %c0_23], %26 {strides = array<i32>} : memref<1x128xf32, #tpu.memory_space<vmem>>, vector<1x128xf32>,
      %c0_24 = arith.constant 0 : index
      %c0_25 = arith.constant 0 : index
      %28 = vector.load %arg8[%c0_24, %c0_25] : memref<1x128xf32, #tpu.memory_space<vmem>>, vector<1x128xf32>
      %29 = arith.mulf %20, %20 : vector<64x128xf32>
      %cst_26 = arith.constant dense<0.000000e+00> : vector<128xf32>
      %30 = vector.multi_reduction <add>, %29, %cst_26 [0] : vector<64x128xf32> to vector<128xf32>
      %31 = vector.shape_cast %30 : vector<128xf32> to vector<1x128xf32>
      %32 = arith.addf %28, %31 : vector<1x128xf32>
      %c0_27 = arith.constant 0 : index
      %c0_28 = arith.constant 0 : index
      %33 = vector.load %arg8[%c0_27, %c0_28] : memref<1x128xf32, #tpu.memory_space<vmem>>, vector<1x128xf32>
      tpu.vector_store %arg8[%c0_27, %c0_28], %32 {strides = array<i32>} : memref<1x128xf32, #tpu.memory_space<vmem>>, vector<1x128xf32>,
    } else {
    }
    return
  }
  func.func @transform_0(%arg0: i32, %arg1: i32, %arg2: i32) -> (i32, i32) {
    %c0_i32 = arith.constant 0 : i32
    return %arg1, %arg2 : i32, i32
  }
  func.func @transform_1(%arg0: i32, %arg1: i32, %arg2: i32) -> (i32, i32) {
    %c0_i32 = arith.constant 0 : i32
    return %arg2, %arg0 : i32, i32
  }
  func.func @transform_2(%arg0: i32, %arg1: i32, %arg2: i32) -> (i32, i32) {
    %c0_i32 = arith.constant 0 : i32
    %c0_i32_0 = arith.constant 0 : i32
    return %c0_i32, %arg0 : i32, i32
  }
  func.func @transform_3(%arg0: i32, %arg1: i32, %arg2: i32) -> (i32, i32) {
    %c0_i32 = arith.constant 0 : i32
    return %arg1, %arg0 : i32, i32
  }
  func.func @transform_4(%arg0: i32, %arg1: i32, %arg2: i32) -> (i32, i32) {
    %c0_i32 = arith.constant 0 : i32
    %c0_i32_0 = arith.constant 0 : i32
    return %c0_i32, %arg0 : i32, i32
  }
  func.func @transform_5(%arg0: i32, %arg1: i32, %arg2: i32) -> (i32, i32) {
    %c0_i32 = arith.constant 0 : i32
    %c0_i32_0 = arith.constant 0 : i32
    return %c0_i32, %arg0 : i32, i32
  }
}

module attributes {stable_mosaic.version = 11 : i64} {
  func.func @kernel(%arg0: i32, %arg1: i32, %arg2: i32, %arg3: memref<8x256xbf16, #tpu.memory_space<vmem>>, %arg4: memref<256x128xbf16, #tpu.memory_space<vmem>>, %arg5: memref<8x128xbf16, #tpu.memory_space<vmem>>, %arg6: memref<1x128xf32, #tpu.memory_space<vmem>>, %arg7: memref<1x128xf32, #tpu.memory_space<vmem>>, %arg8: memref<8x128xf32, #tpu.memory_space<vmem>>) attributes {dimension_semantics = [#tpu.dimension_semantics<parallel>, #tpu.dimension_semantics<arbitrary>, #tpu.dimension_semantics<arbitrary>], iteration_bounds = array<i64: 1, 1, 7>, scalar_prefetch = 0 : i64, scratch_operands = 1 : i64, tpu.core_type = #tpu.core_type<tc>, window_params = [{transform_indices = @transform_0, window_bounds = array<i64: 8, 256>}, {transform_indices = @transform_1, window_bounds = array<i64: 256, 128>}, {transform_indices = @transform_2, window_bounds = array<i64: 8, 128>}, {transform_indices = @transform_3, window_bounds = array<i64: 1, 128>}, {transform_indices = @transform_4, window_bounds = array<i64: 1, 128>}]} {
    %c0_i32 = arith.constant 0 : i32
    %0 = arith.cmpi eq, %arg2, %c0_i32 : i32
    %1 = arith.extui %0 : i1 to i32
    %c0_i32_0 = arith.constant 0 : i32
    %2 = arith.cmpi ne, %1, %c0_i32_0 : i32
    scf.if %2 {
      %cst_12 = arith.constant 0.000000e+00 : f32
      %17 = vector.broadcast %cst_12 : f32 to vector<8x128xf32>
      %c0_13 = arith.constant 0 : index
      %c0_14 = arith.constant 0 : index
      %18 = vector.load %arg8[%c0_13, %c0_14] : memref<8x128xf32, #tpu.memory_space<vmem>>, vector<8x128xf32>
      tpu.vector_store %arg8[%c0_13, %c0_14], %17 {strides = array<i32>} : memref<8x128xf32, #tpu.memory_space<vmem>>, vector<8x128xf32>,
    } else {
    }
    %c0 = arith.constant 0 : index
    %c0_1 = arith.constant 0 : index
    %3 = vector.load %arg8[%c0, %c0_1] : memref<8x128xf32, #tpu.memory_space<vmem>>, vector<8x128xf32>
    %c0_2 = arith.constant 0 : index
    %c0_3 = arith.constant 0 : index
    %4 = vector.load %arg3[%c0_2, %c0_3] : memref<8x256xbf16, #tpu.memory_space<vmem>>, vector<8x256xbf16>
    %c0_4 = arith.constant 0 : index
    %c0_5 = arith.constant 0 : index
    %5 = vector.load %arg4[%c0_4, %c0_5] : memref<256x128xbf16, #tpu.memory_space<vmem>>, vector<256x128xbf16>
    %cst = arith.constant dense<0.000000e+00> : vector<8x128xf32>
    %6 = tpu.matmul %4, %5, %cst {dimension_numbers = #tpu.dot_dimension_numbers<[1], [0], [0], [1], [0, 0, 1, 1], [], []>} : vector<8x256xbf16>, vector<256x128xbf16>, vector<8x128xf32> -> vector<8x128xf32>
    %7 = arith.addf %3, %6 : vector<8x128xf32>
    %c0_6 = arith.constant 0 : index
    %c0_7 = arith.constant 0 : index
    %8 = vector.load %arg8[%c0_6, %c0_7] : memref<8x128xf32, #tpu.memory_space<vmem>>, vector<8x128xf32>
    tpu.vector_store %arg8[%c0_6, %c0_7], %7 {strides = array<i32>} : memref<8x128xf32, #tpu.memory_space<vmem>>, vector<8x128xf32>,
    %c0_i32_8 = arith.constant 0 : i32
    %9 = arith.cmpi eq, %arg1, %c0_i32_8 : i32
    %c0_i32_9 = arith.constant 0 : i32
    %10 = arith.cmpi eq, %arg2, %c0_i32_9 : i32
    %11 = arith.andi %9, %10 : i1
    %12 = arith.extui %11 : i1 to i32
    %c0_i32_10 = arith.constant 0 : i32
    %13 = arith.cmpi ne, %12, %c0_i32_10 : i32
    scf.if %13 {
      %cst_12 = arith.constant 0.000000e+00 : f32
      %17 = vector.broadcast %cst_12 : f32 to vector<1x128xf32>
      %c0_13 = arith.constant 0 : index
      %c0_14 = arith.constant 0 : index
      %18 = vector.load %arg6[%c0_13, %c0_14] : memref<1x128xf32, #tpu.memory_space<vmem>>, vector<1x128xf32>
      tpu.vector_store %arg6[%c0_13, %c0_14], %17 {strides = array<i32>} : memref<1x128xf32, #tpu.memory_space<vmem>>, vector<1x128xf32>,
      %cst_15 = arith.constant 0.000000e+00 : f32
      %19 = vector.broadcast %cst_15 : f32 to vector<1x128xf32>
      %c0_16 = arith.constant 0 : index
      %c0_17 = arith.constant 0 : index
      %20 = vector.load %arg7[%c0_16, %c0_17] : memref<1x128xf32, #tpu.memory_space<vmem>>, vector<1x128xf32>
      tpu.vector_store %arg7[%c0_16, %c0_17], %19 {strides = array<i32>} : memref<1x128xf32, #tpu.memory_space<vmem>>, vector<1x128xf32>,
    } else {
    }
    %c6_i32 = arith.constant 6 : i32
    %14 = arith.cmpi eq, %arg2, %c6_i32 : i32
    %15 = arith.extui %14 : i1 to i32
    %c0_i32_11 = arith.constant 0 : i32
    %16 = arith.cmpi ne, %15, %c0_i32_11 : i32
    scf.if %16 {
      %c0_12 = arith.constant 0 : index
      %c0_13 = arith.constant 0 : index
      %17 = vector.load %arg8[%c0_12, %c0_13] : memref<8x128xf32, #tpu.memory_space<vmem>>, vector<8x128xf32>
      %18 = arith.truncf %17 : vector<8x128xf32> to vector<8x128xbf16>
      %c0_14 = arith.constant 0 : index
      %c0_15 = arith.constant 0 : index
      %19 = vector.load %arg5[%c0_14, %c0_15] : memref<8x128xbf16, #tpu.memory_space<vmem>>, vector<8x128xbf16>
      tpu.vector_store %arg5[%c0_14, %c0_15], %18 {strides = array<i32>} : memref<8x128xbf16, #tpu.memory_space<vmem>>, vector<8x128xbf16>,
      %c0_16 = arith.constant 0 : index
      %c0_17 = arith.constant 0 : index
      %20 = vector.load %arg6[%c0_16, %c0_17] : memref<1x128xf32, #tpu.memory_space<vmem>>, vector<1x128xf32>
      %cst_18 = arith.constant dense<0.000000e+00> : vector<128xf32>
      %21 = vector.multi_reduction <add>, %17, %cst_18 [0] : vector<8x128xf32> to vector<128xf32>
      %22 = vector.shape_cast %21 : vector<128xf32> to vector<1x128xf32>
      %23 = arith.addf %20, %22 : vector<1x128xf32>
      %c0_19 = arith.constant 0 : index
      %c0_20 = arith.constant 0 : index
      %24 = vector.load %arg6[%c0_19, %c0_20] : memref<1x128xf32, #tpu.memory_space<vmem>>, vector<1x128xf32>
      tpu.vector_store %arg6[%c0_19, %c0_20], %23 {strides = array<i32>} : memref<1x128xf32, #tpu.memory_space<vmem>>, vector<1x128xf32>,
      %c0_21 = arith.constant 0 : index
      %c0_22 = arith.constant 0 : index
      %25 = vector.load %arg7[%c0_21, %c0_22] : memref<1x128xf32, #tpu.memory_space<vmem>>, vector<1x128xf32>
      %26 = arith.mulf %17, %17 : vector<8x128xf32>
      %cst_23 = arith.constant dense<0.000000e+00> : vector<128xf32>
      %27 = vector.multi_reduction <add>, %26, %cst_23 [0] : vector<8x128xf32> to vector<128xf32>
      %28 = vector.shape_cast %27 : vector<128xf32> to vector<1x128xf32>
      %29 = arith.addf %25, %28 : vector<1x128xf32>
      %c0_24 = arith.constant 0 : index
      %c0_25 = arith.constant 0 : index
      %30 = vector.load %arg7[%c0_24, %c0_25] : memref<1x128xf32, #tpu.memory_space<vmem>>, vector<1x128xf32>
      tpu.vector_store %arg7[%c0_24, %c0_25], %29 {strides = array<i32>} : memref<1x128xf32, #tpu.memory_space<vmem>>, vector<1x128xf32>,
    } else {
    }
    return
  }
  func.func @transform_0(%arg0: i32, %arg1: i32, %arg2: i32) -> (i32, i32) {
    %c0_i32 = arith.constant 0 : i32
    return %arg1, %arg2 : i32, i32
  }
  func.func @transform_1(%arg0: i32, %arg1: i32, %arg2: i32) -> (i32, i32) {
    %c0_i32 = arith.constant 0 : i32
    return %arg2, %arg0 : i32, i32
  }
  func.func @transform_2(%arg0: i32, %arg1: i32, %arg2: i32) -> (i32, i32) {
    %c0_i32 = arith.constant 0 : i32
    return %arg1, %arg0 : i32, i32
  }
  func.func @transform_3(%arg0: i32, %arg1: i32, %arg2: i32) -> (i32, i32) {
    %c0_i32 = arith.constant 0 : i32
    %c0_i32_0 = arith.constant 0 : i32
    return %c0_i32, %arg0 : i32, i32
  }
  func.func @transform_4(%arg0: i32, %arg1: i32, %arg2: i32) -> (i32, i32) {
    %c0_i32 = arith.constant 0 : i32
    %c0_i32_0 = arith.constant 0 : i32
    return %c0_i32, %arg0 : i32, i32
  }
}

module attributes {stable_mosaic.version = 11 : i64} {
  func.func @kernel(%arg0: i32, %arg1: memref<8x128xbf16, #tpu.memory_space<vmem>>, %arg2: memref<1x128xf32, #tpu.memory_space<vmem>>, %arg3: memref<1x128xf32, #tpu.memory_space<vmem>>, %arg4: memref<8x128xbf16, #tpu.memory_space<vmem>>) attributes {dimension_semantics = [#tpu.dimension_semantics<parallel>], iteration_bounds = array<i64: 1>, scalar_prefetch = 0 : i64, scratch_operands = 0 : i64, tpu.core_type = #tpu.core_type<tc>, window_params = [{transform_indices = @transform_0, window_bounds = array<i64: 8, 128>}, {pipeline_mode = #tpu.pipeline_mode<synchronous>, transform_indices = @transform_1, window_bounds = array<i64: 1, 128>}, {pipeline_mode = #tpu.pipeline_mode<synchronous>, transform_indices = @transform_2, window_bounds = array<i64: 1, 128>}, {transform_indices = @transform_3, window_bounds = array<i64: 8, 128>}]} {
    %c0 = arith.constant 0 : index
    %c0_0 = arith.constant 0 : index
    %0 = vector.load %arg1[%c0, %c0_0] : memref<8x128xbf16, #tpu.memory_space<vmem>>, vector<8x128xbf16>
    %1 = arith.extf %0 : vector<8x128xbf16> to vector<8x128xf32>
    %c0_1 = arith.constant 0 : index
    %c0_2 = arith.constant 0 : index
    %2 = vector.load %arg2[%c0_1, %c0_2] : memref<1x128xf32, #tpu.memory_space<vmem>>, vector<1x128xf32>
    %3 = vector.broadcast %2 : vector<1x128xf32> to vector<8x128xf32>
    %4 = arith.mulf %1, %3 : vector<8x128xf32>
    %c0_3 = arith.constant 0 : index
    %c0_4 = arith.constant 0 : index
    %5 = vector.load %arg3[%c0_3, %c0_4] : memref<1x128xf32, #tpu.memory_space<vmem>>, vector<1x128xf32>
    %6 = vector.broadcast %5 : vector<1x128xf32> to vector<8x128xf32>
    %7 = arith.addf %4, %6 : vector<8x128xf32>
    %cst = arith.constant 0.000000e+00 : f32
    %8 = vector.broadcast %cst : f32 to vector<8x128xf32>
    %9 = arith.maximumf %7, %8 : vector<8x128xf32>
    %10 = arith.truncf %9 : vector<8x128xf32> to vector<8x128xbf16>
    %c0_5 = arith.constant 0 : index
    %c0_6 = arith.constant 0 : index
    %11 = vector.load %arg4[%c0_5, %c0_6] : memref<8x128xbf16, #tpu.memory_space<vmem>>, vector<8x128xbf16>
    tpu.vector_store %arg4[%c0_5, %c0_6], %10 {strides = array<i32>} : memref<8x128xbf16, #tpu.memory_space<vmem>>, vector<8x128xbf16>,
    return
  }
  func.func @transform_0(%arg0: i32) -> (i32, i32) {
    %c0_i32 = arith.constant 0 : i32
    %c0_i32_0 = arith.constant 0 : i32
    return %arg0, %c0_i32 : i32, i32
  }
  func.func @transform_1(%arg0: i32) -> (i32, i32) {
    %c0_i32 = arith.constant 0 : i32
    %c0_i32_0 = arith.constant 0 : i32
    %c0_i32_1 = arith.constant 0 : i32
    return %c0_i32, %c0_i32_0 : i32, i32
  }
  func.func @transform_2(%arg0: i32) -> (i32, i32) {
    %c0_i32 = arith.constant 0 : i32
    %c0_i32_0 = arith.constant 0 : i32
    %c0_i32_1 = arith.constant 0 : i32
    return %c0_i32, %c0_i32_0 : i32, i32
  }
  func.func @transform_3(%arg0: i32) -> (i32, i32) {
    %c0_i32 = arith.constant 0 : i32
    %c0_i32_0 = arith.constant 0 : i32
    return %arg0, %c0_i32 : i32, i32
  }
}

module attributes {stable_mosaic.version = 11 : i64} {
  func.func @kernel(%arg0: i32, %arg1: i32, %arg2: i32, %arg3: memref<8x384xbf16, #tpu.memory_space<vmem>>, %arg4: memref<384x128xbf16, #tpu.memory_space<vmem>>, %arg5: memref<8x128xbf16, #tpu.memory_space<vmem>>, %arg6: memref<1x128xf32, #tpu.memory_space<vmem>>, %arg7: memref<1x128xf32, #tpu.memory_space<vmem>>, %arg8: memref<8x128xf32, #tpu.memory_space<vmem>>) attributes {dimension_semantics = [#tpu.dimension_semantics<parallel>, #tpu.dimension_semantics<arbitrary>, #tpu.dimension_semantics<arbitrary>], iteration_bounds = array<i64: 1, 1, 9>, scalar_prefetch = 0 : i64, scratch_operands = 1 : i64, tpu.core_type = #tpu.core_type<tc>, window_params = [{transform_indices = @transform_0, window_bounds = array<i64: 8, 384>}, {transform_indices = @transform_1, window_bounds = array<i64: 384, 128>}, {transform_indices = @transform_2, window_bounds = array<i64: 8, 128>}, {transform_indices = @transform_3, window_bounds = array<i64: 1, 128>}, {transform_indices = @transform_4, window_bounds = array<i64: 1, 128>}]} {
    %c0_i32 = arith.constant 0 : i32
    %0 = arith.cmpi eq, %arg2, %c0_i32 : i32
    %1 = arith.extui %0 : i1 to i32
    %c0_i32_0 = arith.constant 0 : i32
    %2 = arith.cmpi ne, %1, %c0_i32_0 : i32
    scf.if %2 {
      %cst_12 = arith.constant 0.000000e+00 : f32
      %17 = vector.broadcast %cst_12 : f32 to vector<8x128xf32>
      %c0_13 = arith.constant 0 : index
      %c0_14 = arith.constant 0 : index
      %18 = vector.load %arg8[%c0_13, %c0_14] : memref<8x128xf32, #tpu.memory_space<vmem>>, vector<8x128xf32>
      tpu.vector_store %arg8[%c0_13, %c0_14], %17 {strides = array<i32>} : memref<8x128xf32, #tpu.memory_space<vmem>>, vector<8x128xf32>,
    } else {
    }
    %c0 = arith.constant 0 : index
    %c0_1 = arith.constant 0 : index
    %3 = vector.load %arg8[%c0, %c0_1] : memref<8x128xf32, #tpu.memory_space<vmem>>, vector<8x128xf32>
    %c0_2 = arith.constant 0 : index
    %c0_3 = arith.constant 0 : index
    %4 = vector.load %arg3[%c0_2, %c0_3] : memref<8x384xbf16, #tpu.memory_space<vmem>>, vector<8x384xbf16>
    %c0_4 = arith.constant 0 : index
    %c0_5 = arith.constant 0 : index
    %5 = vector.load %arg4[%c0_4, %c0_5] : memref<384x128xbf16, #tpu.memory_space<vmem>>, vector<384x128xbf16>
    %cst = arith.constant dense<0.000000e+00> : vector<8x128xf32>
    %6 = tpu.matmul %4, %5, %cst {dimension_numbers = #tpu.dot_dimension_numbers<[1], [0], [0], [1], [0, 0, 1, 1], [], []>} : vector<8x384xbf16>, vector<384x128xbf16>, vector<8x128xf32> -> vector<8x128xf32>
    %7 = arith.addf %3, %6 : vector<8x128xf32>
    %c0_6 = arith.constant 0 : index
    %c0_7 = arith.constant 0 : index
    %8 = vector.load %arg8[%c0_6, %c0_7] : memref<8x128xf32, #tpu.memory_space<vmem>>, vector<8x128xf32>
    tpu.vector_store %arg8[%c0_6, %c0_7], %7 {strides = array<i32>} : memref<8x128xf32, #tpu.memory_space<vmem>>, vector<8x128xf32>,
    %c0_i32_8 = arith.constant 0 : i32
    %9 = arith.cmpi eq, %arg1, %c0_i32_8 : i32
    %c0_i32_9 = arith.constant 0 : i32
    %10 = arith.cmpi eq, %arg2, %c0_i32_9 : i32
    %11 = arith.andi %9, %10 : i1
    %12 = arith.extui %11 : i1 to i32
    %c0_i32_10 = arith.constant 0 : i32
    %13 = arith.cmpi ne, %12, %c0_i32_10 : i32
    scf.if %13 {
      %cst_12 = arith.constant 0.000000e+00 : f32
      %17 = vector.broadcast %cst_12 : f32 to vector<1x128xf32>
      %c0_13 = arith.constant 0 : index
      %c0_14 = arith.constant 0 : index
      %18 = vector.load %arg6[%c0_13, %c0_14] : memref<1x128xf32, #tpu.memory_space<vmem>>, vector<1x128xf32>
      tpu.vector_store %arg6[%c0_13, %c0_14], %17 {strides = array<i32>} : memref<1x128xf32, #tpu.memory_space<vmem>>, vector<1x128xf32>,
      %cst_15 = arith.constant 0.000000e+00 : f32
      %19 = vector.broadcast %cst_15 : f32 to vector<1x128xf32>
      %c0_16 = arith.constant 0 : index
      %c0_17 = arith.constant 0 : index
      %20 = vector.load %arg7[%c0_16, %c0_17] : memref<1x128xf32, #tpu.memory_space<vmem>>, vector<1x128xf32>
      tpu.vector_store %arg7[%c0_16, %c0_17], %19 {strides = array<i32>} : memref<1x128xf32, #tpu.memory_space<vmem>>, vector<1x128xf32>,
    } else {
    }
    %c8_i32 = arith.constant 8 : i32
    %14 = arith.cmpi eq, %arg2, %c8_i32 : i32
    %15 = arith.extui %14 : i1 to i32
    %c0_i32_11 = arith.constant 0 : i32
    %16 = arith.cmpi ne, %15, %c0_i32_11 : i32
    scf.if %16 {
      %c0_12 = arith.constant 0 : index
      %c0_13 = arith.constant 0 : index
      %17 = vector.load %arg8[%c0_12, %c0_13] : memref<8x128xf32, #tpu.memory_space<vmem>>, vector<8x128xf32>
      %18 = arith.truncf %17 : vector<8x128xf32> to vector<8x128xbf16>
      %c0_14 = arith.constant 0 : index
      %c0_15 = arith.constant 0 : index
      %19 = vector.load %arg5[%c0_14, %c0_15] : memref<8x128xbf16, #tpu.memory_space<vmem>>, vector<8x128xbf16>
      tpu.vector_store %arg5[%c0_14, %c0_15], %18 {strides = array<i32>} : memref<8x128xbf16, #tpu.memory_space<vmem>>, vector<8x128xbf16>,
      %c0_16 = arith.constant 0 : index
      %c0_17 = arith.constant 0 : index
      %20 = vector.load %arg6[%c0_16, %c0_17] : memref<1x128xf32, #tpu.memory_space<vmem>>, vector<1x128xf32>
      %cst_18 = arith.constant dense<0.000000e+00> : vector<128xf32>
      %21 = vector.multi_reduction <add>, %17, %cst_18 [0] : vector<8x128xf32> to vector<128xf32>
      %22 = vector.shape_cast %21 : vector<128xf32> to vector<1x128xf32>
      %23 = arith.addf %20, %22 : vector<1x128xf32>
      %c0_19 = arith.constant 0 : index
      %c0_20 = arith.constant 0 : index
      %24 = vector.load %arg6[%c0_19, %c0_20] : memref<1x128xf32, #tpu.memory_space<vmem>>, vector<1x128xf32>
      tpu.vector_store %arg6[%c0_19, %c0_20], %23 {strides = array<i32>} : memref<1x128xf32, #tpu.memory_space<vmem>>, vector<1x128xf32>,
      %c0_21 = arith.constant 0 : index
      %c0_22 = arith.constant 0 : index
      %25 = vector.load %arg7[%c0_21, %c0_22] : memref<1x128xf32, #tpu.memory_space<vmem>>, vector<1x128xf32>
      %26 = arith.mulf %17, %17 : vector<8x128xf32>
      %cst_23 = arith.constant dense<0.000000e+00> : vector<128xf32>
      %27 = vector.multi_reduction <add>, %26, %cst_23 [0] : vector<8x128xf32> to vector<128xf32>
      %28 = vector.shape_cast %27 : vector<128xf32> to vector<1x128xf32>
      %29 = arith.addf %25, %28 : vector<1x128xf32>
      %c0_24 = arith.constant 0 : index
      %c0_25 = arith.constant 0 : index
      %30 = vector.load %arg7[%c0_24, %c0_25] : memref<1x128xf32, #tpu.memory_space<vmem>>, vector<1x128xf32>
      tpu.vector_store %arg7[%c0_24, %c0_25], %29 {strides = array<i32>} : memref<1x128xf32, #tpu.memory_space<vmem>>, vector<1x128xf32>,
    } else {
    }
    return
  }
  func.func @transform_0(%arg0: i32, %arg1: i32, %arg2: i32) -> (i32, i32) {
    %c0_i32 = arith.constant 0 : i32
    return %arg1, %arg2 : i32, i32
  }
  func.func @transform_1(%arg0: i32, %arg1: i32, %arg2: i32) -> (i32, i32) {
    %c0_i32 = arith.constant 0 : i32
    return %arg2, %arg0 : i32, i32
  }
  func.func @transform_2(%arg0: i32, %arg1: i32, %arg2: i32) -> (i32, i32) {
    %c0_i32 = arith.constant 0 : i32
    return %arg1, %arg0 : i32, i32
  }
  func.func @transform_3(%arg0: i32, %arg1: i32, %arg2: i32) -> (i32, i32) {
    %c0_i32 = arith.constant 0 : i32
    %c0_i32_0 = arith.constant 0 : i32
    return %c0_i32, %arg0 : i32, i32
  }
  func.func @transform_4(%arg0: i32, %arg1: i32, %arg2: i32) -> (i32, i32) {
    %c0_i32 = arith.constant 0 : i32
    %c0_i32_0 = arith.constant 0 : i32
    return %c0_i32, %arg0 : i32, i32
  }
}

module attributes {stable_mosaic.version = 11 : i64} {
  func.func @kernel(%arg0: i32, %arg1: memref<8x128xbf16, #tpu.memory_space<vmem>>, %arg2: memref<8x128xbf16, #tpu.memory_space<vmem>>, %arg3: memref<1x128xf32, #tpu.memory_space<vmem>>, %arg4: memref<1x128xf32, #tpu.memory_space<vmem>>, %arg5: memref<8x128xbf16, #tpu.memory_space<vmem>>) attributes {dimension_semantics = [#tpu.dimension_semantics<parallel>], iteration_bounds = array<i64: 1>, scalar_prefetch = 0 : i64, scratch_operands = 0 : i64, tpu.core_type = #tpu.core_type<tc>, window_params = [{transform_indices = @transform_0, window_bounds = array<i64: 8, 128>}, {transform_indices = @transform_1, window_bounds = array<i64: 8, 128>}, {pipeline_mode = #tpu.pipeline_mode<synchronous>, transform_indices = @transform_2, window_bounds = array<i64: 1, 128>}, {pipeline_mode = #tpu.pipeline_mode<synchronous>, transform_indices = @transform_3, window_bounds = array<i64: 1, 128>}, {transform_indices = @transform_4, window_bounds = array<i64: 8, 128>}]} {
    %c0 = arith.constant 0 : index
    %c0_0 = arith.constant 0 : index
    %0 = vector.load %arg1[%c0, %c0_0] : memref<8x128xbf16, #tpu.memory_space<vmem>>, vector<8x128xbf16>
    %1 = arith.extf %0 : vector<8x128xbf16> to vector<8x128xf32>
    %c0_1 = arith.constant 0 : index
    %c0_2 = arith.constant 0 : index
    %2 = vector.load %arg3[%c0_1, %c0_2] : memref<1x128xf32, #tpu.memory_space<vmem>>, vector<1x128xf32>
    %3 = vector.broadcast %2 : vector<1x128xf32> to vector<8x128xf32>
    %4 = arith.mulf %1, %3 : vector<8x128xf32>
    %c0_3 = arith.constant 0 : index
    %c0_4 = arith.constant 0 : index
    %5 = vector.load %arg4[%c0_3, %c0_4] : memref<1x128xf32, #tpu.memory_space<vmem>>, vector<1x128xf32>
    %6 = vector.broadcast %5 : vector<1x128xf32> to vector<8x128xf32>
    %7 = arith.addf %4, %6 : vector<8x128xf32>
    %c0_5 = arith.constant 0 : index
    %c0_6 = arith.constant 0 : index
    %8 = vector.load %arg2[%c0_5, %c0_6] : memref<8x128xbf16, #tpu.memory_space<vmem>>, vector<8x128xbf16>
    %9 = arith.extf %8 : vector<8x128xbf16> to vector<8x128xf32>
    %10 = arith.addf %7, %9 : vector<8x128xf32>
    %cst = arith.constant 0.000000e+00 : f32
    %11 = vector.broadcast %cst : f32 to vector<8x128xf32>
    %12 = arith.maximumf %10, %11 : vector<8x128xf32>
    %13 = arith.truncf %12 : vector<8x128xf32> to vector<8x128xbf16>
    %c0_7 = arith.constant 0 : index
    %c0_8 = arith.constant 0 : index
    %14 = vector.load %arg5[%c0_7, %c0_8] : memref<8x128xbf16, #tpu.memory_space<vmem>>, vector<8x128xbf16>
    tpu.vector_store %arg5[%c0_7, %c0_8], %13 {strides = array<i32>} : memref<8x128xbf16, #tpu.memory_space<vmem>>, vector<8x128xbf16>,
    return
  }
  func.func @transform_0(%arg0: i32) -> (i32, i32) {
    %c0_i32 = arith.constant 0 : i32
    %c0_i32_0 = arith.constant 0 : i32
    return %arg0, %c0_i32 : i32, i32
  }
  func.func @transform_1(%arg0: i32) -> (i32, i32) {
    %c0_i32 = arith.constant 0 : i32
    %c0_i32_0 = arith.constant 0 : i32
    return %arg0, %c0_i32 : i32, i32
  }
  func.func @transform_2(%arg0: i32) -> (i32, i32) {
    %c0_i32 = arith.constant 0 : i32
    %c0_i32_0 = arith.constant 0 : i32
    %c0_i32_1 = arith.constant 0 : i32
    return %c0_i32, %c0_i32_0 : i32, i32
  }
  func.func @transform_3(%arg0: i32) -> (i32, i32) {
    %c0_i32 = arith.constant 0 : i32
    %c0_i32_0 = arith.constant 0 : i32
    %c0_i32_1 = arith.constant 0 : i32
    return %c0_i32, %c0_i32_0 : i32, i32
  }
  func.func @transform_4(%arg0: i32) -> (i32, i32) {
    %c0_i32 = arith.constant 0 : i32
    %c0_i32_0 = arith.constant 0 : i32
    return %arg0, %c0_i32 : i32, i32
  }
}

module attributes {stable_mosaic.version = 11 : i64} {
  func.func @_nl_flash_kernel(%arg0: i32, %arg1: i32, %arg2: i32, %arg3: memref<1x4x64xbf16, #tpu.memory_space<vmem>>, %arg4: memref<1x4x64xbf16, #tpu.memory_space<vmem>>, %arg5: memref<1x4x64xbf16, #tpu.memory_space<vmem>>, %arg6: memref<1x4x64xbf16, #tpu.memory_space<vmem>>, %arg7: memref<4x1xf32, #tpu.memory_space<vmem>>, %arg8: memref<4x1xf32, #tpu.memory_space<vmem>>, %arg9: memref<4x64xf32, #tpu.memory_space<vmem>>) attributes {dimension_semantics = [#tpu.dimension_semantics<parallel>, #tpu.dimension_semantics<parallel>, #tpu.dimension_semantics<arbitrary>], iteration_bounds = array<i64: 2, 1, 1>, scalar_prefetch = 0 : i64, scratch_operands = 3 : i64, tpu.core_type = #tpu.core_type<tc>, window_params = [{transform_indices = @transform_0, window_bounds = array<i64: 1, 4, 64>}, {transform_indices = @transform_1, window_bounds = array<i64: 1, 4, 64>}, {transform_indices = @transform_2, window_bounds = array<i64: 1, 4, 64>}, {transform_indices = @transform_3, window_bounds = array<i64: 1, 4, 64>}]} {
    %c0_i32 = arith.constant 0 : i32
    %0 = arith.cmpi eq, %arg2, %c0_i32 : i32
    %1 = arith.extui %0 : i1 to i32
    %c0_i32_0 = arith.constant 0 : i32
    %2 = arith.cmpi ne, %1, %c0_i32_0 : i32
    scf.if %2 {
      %cst_28 = arith.constant 0xFF800000 : f32
      %37 = vector.broadcast %cst_28 : f32 to vector<4x1xf32>
      %c0_29 = arith.constant 0 : index
      %c0_30 = arith.constant 0 : index
      %38 = vector.load %arg7[%c0_29, %c0_30] : memref<4x1xf32, #tpu.memory_space<vmem>>, vector<4x1xf32>
      tpu.vector_store %arg7[%c0_29, %c0_30], %37 {strides = array<i32>} : memref<4x1xf32, #tpu.memory_space<vmem>>, vector<4x1xf32>,
      %cst_31 = arith.constant 0.000000e+00 : f32
      %39 = vector.broadcast %cst_31 : f32 to vector<4x1xf32>
      %c0_32 = arith.constant 0 : index
      %c0_33 = arith.constant 0 : index
      %40 = vector.load %arg8[%c0_32, %c0_33] : memref<4x1xf32, #tpu.memory_space<vmem>>, vector<4x1xf32>
      tpu.vector_store %arg8[%c0_32, %c0_33], %39 {strides = array<i32>} : memref<4x1xf32, #tpu.memory_space<vmem>>, vector<4x1xf32>,
      %cst_34 = arith.constant 0.000000e+00 : f32
      %41 = vector.broadcast %cst_34 : f32 to vector<4x64xf32>
      %c0_35 = arith.constant 0 : index
      %c0_36 = arith.constant 0 : index
      %42 = vector.load %arg9[%c0_35, %c0_36] : memref<4x64xf32, #tpu.memory_space<vmem>>, vector<4x64xf32>
      tpu.vector_store %arg9[%c0_35, %c0_36], %41 {strides = array<i32>} : memref<4x64xf32, #tpu.memory_space<vmem>>, vector<4x64xf32>,
    } else {
    }
    %c0 = arith.constant 0 : index
    %c0_1 = arith.constant 0 : index
    %c0_2 = arith.constant 0 : index
    %3 = vector.load %arg3[%c0, %c0_1, %c0_2] : memref<1x4x64xbf16, #tpu.memory_space<vmem>>, vector<1x4x64xbf16>
    %4 = vector.shape_cast %3 : vector<1x4x64xbf16> to vector<4x64xbf16>
    %c0_3 = arith.constant 0 : index
    %c0_4 = arith.constant 0 : index
    %c0_5 = arith.constant 0 : index
    %5 = vector.load %arg4[%c0_3, %c0_4, %c0_5] : memref<1x4x64xbf16, #tpu.memory_space<vmem>>, vector<1x4x64xbf16>
    %6 = vector.shape_cast %5 : vector<1x4x64xbf16> to vector<4x64xbf16>
    %cst = arith.constant dense<0.000000e+00> : vector<4x4xf32>
    %7 = tpu.matmul %4, %6, %cst {dimension_numbers = #tpu.dot_dimension_numbers<[1], [1], [0], [0], [0, 0, 1, 0], [], []>} : vector<4x64xbf16>, vector<4x64xbf16>, vector<4x4xf32> -> vector<4x4xf32>
    %c0_6 = arith.constant 0 : index
    %c0_7 = arith.constant 0 : index
    %8 = vector.load %arg7[%c0_6, %c0_7] : memref<4x1xf32, #tpu.memory_space<vmem>>, vector<4x1xf32>
    %cst_8 = arith.constant dense<0xFF800000> : vector<4xf32>
    %9 = vector.multi_reduction <maximumf>, %7, %cst_8 [1] : vector<4x4xf32> to vector<4xf32>
    %10 = vector.shape_cast %9 : vector<4xf32> to vector<4x1xf32>
    %11 = arith.maximumf %8, %10 : vector<4x1xf32>
    %c0_9 = arith.constant 0 : index
    %c0_10 = arith.constant 0 : index
    %12 = vector.load %arg7[%c0_9, %c0_10] : memref<4x1xf32, #tpu.memory_space<vmem>>, vector<4x1xf32>
    %13 = arith.subf %12, %11 : vector<4x1xf32>
    %14 = math.exp %13 : vector<4x1xf32>
    %15 = vector.broadcast %11 : vector<4x1xf32> to vector<4x4xf32>
    %16 = arith.subf %7, %15 : vector<4x4xf32>
    %17 = math.exp %16 : vector<4x4xf32>
    %c0_11 = arith.constant 0 : index
    %c0_12 = arith.constant 0 : index
    %18 = vector.load %arg8[%c0_11, %c0_12] : memref<4x1xf32, #tpu.memory_space<vmem>>, vector<4x1xf32>
    %19 = arith.mulf %14, %18 : vector<4x1xf32>
    %cst_13 = arith.constant dense<0.000000e+00> : vector<4xf32>
    %20 = vector.multi_reduction <add>, %17, %cst_13 [1] : vector<4x4xf32> to vector<4xf32>
    %21 = vector.shape_cast %20 : vector<4xf32> to vector<4x1xf32>
    %22 = arith.addf %19, %21 : vector<4x1xf32>
    %c0_14 = arith.constant 0 : index
    %c0_15 = arith.constant 0 : index
    %23 = vector.load %arg8[%c0_14, %c0_15] : memref<4x1xf32, #tpu.memory_space<vmem>>, vector<4x1xf32>
    tpu.vector_store %arg8[%c0_14, %c0_15], %22 {strides = array<i32>} : memref<4x1xf32, #tpu.memory_space<vmem>>, vector<4x1xf32>,
    %c0_16 = arith.constant 0 : index
    %c0_17 = arith.constant 0 : index
    %24 = vector.load %arg9[%c0_16, %c0_17] : memref<4x64xf32, #tpu.memory_space<vmem>>, vector<4x64xf32>
    %25 = vector.broadcast %14 : vector<4x1xf32> to vector<4x64xf32>
    %26 = arith.mulf %25, %24 : vector<4x64xf32>
    %27 = arith.truncf %17 : vector<4x4xf32> to vector<4x4xbf16>
    %c0_18 = arith.constant 0 : index
    %c0_19 = arith.constant 0 : index
    %c0_20 = arith.constant 0 : index
    %28 = vector.load %arg5[%c0_18, %c0_19, %c0_20] : memref<1x4x64xbf16, #tpu.memory_space<vmem>>, vector<1x4x64xbf16>
    %29 = vector.shape_cast %28 : vector<1x4x64xbf16> to vector<4x64xbf16>
    %cst_21 = arith.constant dense<0.000000e+00> : vector<4x64xf32>
    %30 = tpu.matmul %27, %29, %cst_21 {dimension_numbers = #tpu.dot_dimension_numbers<[1], [0], [0], [1], [0, 0, 1, 1], [], []>} : vector<4x4xbf16>, vector<4x64xbf16>, vector<4x64xf32> -> vector<4x64xf32>
    %31 = arith.addf %26, %30 : vector<4x64xf32>
    %c0_22 = arith.constant 0 : index
    %c0_23 = arith.constant 0 : index
    %32 = vector.load %arg9[%c0_22, %c0_23] : memref<4x64xf32, #tpu.memory_space<vmem>>, vector<4x64xf32>
    tpu.vector_store %arg9[%c0_22, %c0_23], %31 {strides = array<i32>} : memref<4x64xf32, #tpu.memory_space<vmem>>, vector<4x64xf32>,
    %c0_24 = arith.constant 0 : index
    %c0_25 = arith.constant 0 : index
    %33 = vector.load %arg7[%c0_24, %c0_25] : memref<4x1xf32, #tpu.memory_space<vmem>>, vector<4x1xf32>
    tpu.vector_store %arg7[%c0_24, %c0_25], %11 {strides = array<i32>} : memref<4x1xf32, #tpu.memory_space<vmem>>, vector<4x1xf32>,
    %c0_i32_26 = arith.constant 0 : i32
    %34 = arith.cmpi eq, %arg2, %c0_i32_26 : i32
    %35 = arith.extui %34 : i1 to i32
    %c0_i32_27 = arith.constant 0 : i32
    %36 = arith.cmpi ne, %35, %c0_i32_27 : i32
    scf.if %36 {
      %c0_28 = arith.constant 0 : index
      %c0_29 = arith.constant 0 : index
      %37 = vector.load %arg9[%c0_28, %c0_29] : memref<4x64xf32, #tpu.memory_space<vmem>>, vector<4x64xf32>
      %c0_30 = arith.constant 0 : index
      %c0_31 = arith.constant 0 : index
      %38 = vector.load %arg8[%c0_30, %c0_31] : memref<4x1xf32, #tpu.memory_space<vmem>>, vector<4x1xf32>
      %39 = tpu.reciprocal %38 {approx = true} : vector<4x1xf32> -> vector<4x1xf32>
      %40 = vector.broadcast %39 : vector<4x1xf32> to vector<4x64xf32>
      %41 = arith.mulf %37, %40 : vector<4x64xf32>
      %42 = arith.truncf %41 : vector<4x64xf32> to vector<4x64xbf16>
      %c0_32 = arith.constant 0 : index
      %c0_33 = arith.constant 0 : index
      %c0_34 = arith.constant 0 : index
      %43 = vector.load %arg6[%c0_32, %c0_33, %c0_34] : memref<1x4x64xbf16, #tpu.memory_space<vmem>>, vector<1x4x64xbf16>
      %44 = vector.shape_cast %43 : vector<1x4x64xbf16> to vector<4x64xbf16>
      %45 = vector.shape_cast %42 : vector<4x64xbf16> to vector<1x4x64xbf16>
      tpu.vector_store %arg6[%c0_32, %c0_33, %c0_34], %45 {strides = array<i32>} : memref<1x4x64xbf16, #tpu.memory_space<vmem>>, vector<1x4x64xbf16>,
    } else {
    }
    return
  }
  func.func @transform_0(%arg0: i32, %arg1: i32, %arg2: i32) -> (i32, i32, i32) {
    %c0_i32 = arith.constant 0 : i32
    %c0_i32_0 = arith.constant 0 : i32
    return %arg0, %arg1, %c0_i32 : i32, i32, i32
  }
  func.func @transform_1(%arg0: i32, %arg1: i32, %arg2: i32) -> (i32, i32, i32) {
    %c0_i32 = arith.constant 0 : i32
    %c0_i32_0 = arith.constant 0 : i32
    return %arg0, %arg2, %c0_i32 : i32, i32, i32
  }
  func.func @transform_2(%arg0: i32, %arg1: i32, %arg2: i32) -> (i32, i32, i32) {
    %c0_i32 = arith.constant 0 : i32
    %c0_i32_0 = arith.constant 0 : i32
    return %arg0, %arg2, %c0_i32 : i32, i32, i32
  }
  func.func @transform_3(%arg0: i32, %arg1: i32, %arg2: i32) -> (i32, i32, i32) {
    %c0_i32 = arith.constant 0 : i32
    %c0_i32_0 = arith.constant 0 : i32
    return %arg0, %arg1, %c0_i32 : i32, i32, i32
  }
}

module attributes {stable_mosaic.version = 11 : i64} {
  func.func @kernel(%arg0: i32, %arg1: i32, %arg2: i32, %arg3: memref<8x128xbf16, #tpu.memory_space<vmem>>, %arg4: memref<128x128xbf16, #tpu.memory_space<vmem>>, %arg5: memref<1x128xf32, #tpu.memory_space<vmem>>, %arg6: memref<8x128xbf16, #tpu.memory_space<vmem>>, %arg7: memref<8x128xf32, #tpu.memory_space<vmem>>) attributes {dimension_semantics = [#tpu.dimension_semantics<parallel>, #tpu.dimension_semantics<parallel>, #tpu.dimension_semantics<arbitrary>], iteration_bounds = array<i64: 1, 1, 1>, scalar_prefetch = 0 : i64, scratch_operands = 1 : i64, tpu.core_type = #tpu.core_type<tc>, window_params = [{transform_indices = @transform_0, window_bounds = array<i64: 8, 128>}, {transform_indices = @transform_1, window_bounds = array<i64: 128, 128>}, {transform_indices = @transform_2, window_bounds = array<i64: 1, 128>}, {transform_indices = @transform_3, window_bounds = array<i64: 8, 128>}]} {
    %c0_i32 = arith.constant 0 : i32
    %0 = arith.cmpi eq, %arg2, %c0_i32 : i32
    %1 = arith.extui %0 : i1 to i32
    %c0_i32_0 = arith.constant 0 : i32
    %2 = arith.cmpi ne, %1, %c0_i32_0 : i32
    scf.if %2 {
      %cst_10 = arith.constant 0.000000e+00 : f32
      %12 = vector.broadcast %cst_10 : f32 to vector<8x128xf32>
      %c0_11 = arith.constant 0 : index
      %c0_12 = arith.constant 0 : index
      %13 = vector.load %arg7[%c0_11, %c0_12] : memref<8x128xf32, #tpu.memory_space<vmem>>, vector<8x128xf32>
      tpu.vector_store %arg7[%c0_11, %c0_12], %12 {strides = array<i32>} : memref<8x128xf32, #tpu.memory_space<vmem>>, vector<8x128xf32>,
    } else {
    }
    %c0 = arith.constant 0 : index
    %c0_1 = arith.constant 0 : index
    %3 = vector.load %arg7[%c0, %c0_1] : memref<8x128xf32, #tpu.memory_space<vmem>>, vector<8x128xf32>
    %c0_2 = arith.constant 0 : index
    %c0_3 = arith.constant 0 : index
    %4 = vector.load %arg3[%c0_2, %c0_3] : memref<8x128xbf16, #tpu.memory_space<vmem>>, vector<8x128xbf16>
    %c0_4 = arith.constant 0 : index
    %c0_5 = arith.constant 0 : index
    %5 = vector.load %arg4[%c0_4, %c0_5] : memref<128x128xbf16, #tpu.memory_space<vmem>>, vector<128x128xbf16>
    %cst = arith.constant dense<0.000000e+00> : vector<8x128xf32>
    %6 = tpu.matmul %4, %5, %cst {dimension_numbers = #tpu.dot_dimension_numbers<[1], [0], [0], [1], [0, 0, 1, 1], [], []>} : vector<8x128xbf16>, vector<128x128xbf16>, vector<8x128xf32> -> vector<8x128xf32>
    %7 = arith.addf %3, %6 : vector<8x128xf32>
    %c0_6 = arith.constant 0 : index
    %c0_7 = arith.constant 0 : index
    %8 = vector.load %arg7[%c0_6, %c0_7] : memref<8x128xf32, #tpu.memory_space<vmem>>, vector<8x128xf32>
    tpu.vector_store %arg7[%c0_6, %c0_7], %7 {strides = array<i32>} : memref<8x128xf32, #tpu.memory_space<vmem>>, vector<8x128xf32>,
    %c0_i32_8 = arith.constant 0 : i32
    %9 = arith.cmpi eq, %arg2, %c0_i32_8 : i32
    %10 = arith.extui %9 : i1 to i32
    %c0_i32_9 = arith.constant 0 : i32
    %11 = arith.cmpi ne, %10, %c0_i32_9 : i32
    scf.if %11 {
      %c0_10 = arith.constant 0 : index
      %c0_11 = arith.constant 0 : index
      %12 = vector.load %arg7[%c0_10, %c0_11] : memref<8x128xf32, #tpu.memory_space<vmem>>, vector<8x128xf32>
      %c0_12 = arith.constant 0 : index
      %c0_13 = arith.constant 0 : index
      %13 = vector.load %arg5[%c0_12, %c0_13] : memref<1x128xf32, #tpu.memory_space<vmem>>, vector<1x128xf32>
      %14 = vector.broadcast %13 : vector<1x128xf32> to vector<8x128xf32>
      %15 = arith.addf %12, %14 : vector<8x128xf32>
      %16 = arith.truncf %15 : vector<8x128xf32> to vector<8x128xbf16>
      %c0_14 = arith.constant 0 : index
      %c0_15 = arith.constant 0 : index
      %17 = vector.load %arg6[%c0_14, %c0_15] : memref<8x128xbf16, #tpu.memory_space<vmem>>, vector<8x128xbf16>
      tpu.vector_store %arg6[%c0_14, %c0_15], %16 {strides = array<i32>} : memref<8x128xbf16, #tpu.memory_space<vmem>>, vector<8x128xbf16>,
    } else {
    }
    return
  }
  func.func @transform_0(%arg0: i32, %arg1: i32, %arg2: i32) -> (i32, i32) {
    %c0_i32 = arith.constant 0 : i32
    return %arg0, %arg2 : i32, i32
  }
  func.func @transform_1(%arg0: i32, %arg1: i32, %arg2: i32) -> (i32, i32) {
    %c0_i32 = arith.constant 0 : i32
    return %arg2, %arg1 : i32, i32
  }
  func.func @transform_2(%arg0: i32, %arg1: i32, %arg2: i32) -> (i32, i32) {
    %c0_i32 = arith.constant 0 : i32
    %c0_i32_0 = arith.constant 0 : i32
    return %c0_i32, %arg1 : i32, i32
  }
  func.func @transform_3(%arg0: i32, %arg1: i32, %arg2: i32) -> (i32, i32) {
    %c0_i32 = arith.constant 0 : i32
    return %arg0, %arg1 : i32, i32
  }
}

module attributes {stable_mosaic.version = 11 : i64} {
  func.func @kernel(%arg0: i32, %arg1: i32, %arg2: i32, %arg3: memref<8x128xbf16, #tpu.memory_space<vmem>>, %arg4: memref<128x128xbf16, #tpu.memory_space<vmem>>, %arg5: memref<1x128xf32, #tpu.memory_space<vmem>>, %arg6: memref<8x128xbf16, #tpu.memory_space<vmem>>, %arg7: memref<1x128xf32, #tpu.memory_space<vmem>>, %arg8: memref<1x128xf32, #tpu.memory_space<vmem>>, %arg9: memref<8x128xf32, #tpu.memory_space<vmem>>) attributes {dimension_semantics = [#tpu.dimension_semantics<parallel>, #tpu.dimension_semantics<arbitrary>, #tpu.dimension_semantics<arbitrary>], iteration_bounds = array<i64: 1, 1, 1>, scalar_prefetch = 0 : i64, scratch_operands = 1 : i64, tpu.core_type = #tpu.core_type<tc>, window_params = [{transform_indices = @transform_0, window_bounds = array<i64: 8, 128>}, {transform_indices = @transform_1, window_bounds = array<i64: 128, 128>}, {transform_indices = @transform_2, window_bounds = array<i64: 1, 128>}, {transform_indices = @transform_3, window_bounds = array<i64: 8, 128>}, {transform_indices = @transform_4, window_bounds = array<i64: 1, 128>}, {transform_indices = @transform_5, window_bounds = array<i64: 1, 128>}]} {
    %c0_i32 = arith.constant 0 : i32
    %0 = arith.cmpi eq, %arg2, %c0_i32 : i32
    %1 = arith.extui %0 : i1 to i32
    %c0_i32_0 = arith.constant 0 : i32
    %2 = arith.cmpi ne, %1, %c0_i32_0 : i32
    scf.if %2 {
      %cst_13 = arith.constant 0.000000e+00 : f32
      %17 = vector.broadcast %cst_13 : f32 to vector<8x128xf32>
      %c0_14 = arith.constant 0 : index
      %c0_15 = arith.constant 0 : index
      %18 = vector.load %arg9[%c0_14, %c0_15] : memref<8x128xf32, #tpu.memory_space<vmem>>, vector<8x128xf32>
      tpu.vector_store %arg9[%c0_14, %c0_15], %17 {strides = array<i32>} : memref<8x128xf32, #tpu.memory_space<vmem>>, vector<8x128xf32>,
    } else {
    }
    %c0 = arith.constant 0 : index
    %c0_1 = arith.constant 0 : index
    %3 = vector.load %arg9[%c0, %c0_1] : memref<8x128xf32, #tpu.memory_space<vmem>>, vector<8x128xf32>
    %c0_2 = arith.constant 0 : index
    %c0_3 = arith.constant 0 : index
    %4 = vector.load %arg3[%c0_2, %c0_3] : memref<8x128xbf16, #tpu.memory_space<vmem>>, vector<8x128xbf16>
    %c0_4 = arith.constant 0 : index
    %c0_5 = arith.constant 0 : index
    %5 = vector.load %arg4[%c0_4, %c0_5] : memref<128x128xbf16, #tpu.memory_space<vmem>>, vector<128x128xbf16>
    %cst = arith.constant dense<0.000000e+00> : vector<8x128xf32>
    %6 = tpu.matmul %4, %5, %cst {dimension_numbers = #tpu.dot_dimension_numbers<[1], [0], [0], [1], [0, 0, 1, 1], [], []>} : vector<8x128xbf16>, vector<128x128xbf16>, vector<8x128xf32> -> vector<8x128xf32>
    %7 = arith.addf %3, %6 : vector<8x128xf32>
    %c0_6 = arith.constant 0 : index
    %c0_7 = arith.constant 0 : index
    %8 = vector.load %arg9[%c0_6, %c0_7] : memref<8x128xf32, #tpu.memory_space<vmem>>, vector<8x128xf32>
    tpu.vector_store %arg9[%c0_6, %c0_7], %7 {strides = array<i32>} : memref<8x128xf32, #tpu.memory_space<vmem>>, vector<8x128xf32>,
    %c0_i32_8 = arith.constant 0 : i32
    %9 = arith.cmpi eq, %arg1, %c0_i32_8 : i32
    %c0_i32_9 = arith.constant 0 : i32
    %10 = arith.cmpi eq, %arg2, %c0_i32_9 : i32
    %11 = arith.andi %9, %10 : i1
    %12 = arith.extui %11 : i1 to i32
    %c0_i32_10 = arith.constant 0 : i32
    %13 = arith.cmpi ne, %12, %c0_i32_10 : i32
    scf.if %13 {
      %cst_13 = arith.constant 0.000000e+00 : f32
      %17 = vector.broadcast %cst_13 : f32 to vector<1x128xf32>
      %c0_14 = arith.constant 0 : index
      %c0_15 = arith.constant 0 : index
      %18 = vector.load %arg7[%c0_14, %c0_15] : memref<1x128xf32, #tpu.memory_space<vmem>>, vector<1x128xf32>
      tpu.vector_store %arg7[%c0_14, %c0_15], %17 {strides = array<i32>} : memref<1x128xf32, #tpu.memory_space<vmem>>, vector<1x128xf32>,
      %cst_16 = arith.constant 0.000000e+00 : f32
      %19 = vector.broadcast %cst_16 : f32 to vector<1x128xf32>
      %c0_17 = arith.constant 0 : index
      %c0_18 = arith.constant 0 : index
      %20 = vector.load %arg8[%c0_17, %c0_18] : memref<1x128xf32, #tpu.memory_space<vmem>>, vector<1x128xf32>
      tpu.vector_store %arg8[%c0_17, %c0_18], %19 {strides = array<i32>} : memref<1x128xf32, #tpu.memory_space<vmem>>, vector<1x128xf32>,
    } else {
    }
    %c0_i32_11 = arith.constant 0 : i32
    %14 = arith.cmpi eq, %arg2, %c0_i32_11 : i32
    %15 = arith.extui %14 : i1 to i32
    %c0_i32_12 = arith.constant 0 : i32
    %16 = arith.cmpi ne, %15, %c0_i32_12 : i32
    scf.if %16 {
      %c0_13 = arith.constant 0 : index
      %c0_14 = arith.constant 0 : index
      %17 = vector.load %arg9[%c0_13, %c0_14] : memref<8x128xf32, #tpu.memory_space<vmem>>, vector<8x128xf32>
      %c0_15 = arith.constant 0 : index
      %c0_16 = arith.constant 0 : index
      %18 = vector.load %arg5[%c0_15, %c0_16] : memref<1x128xf32, #tpu.memory_space<vmem>>, vector<1x128xf32>
      %19 = vector.broadcast %18 : vector<1x128xf32> to vector<8x128xf32>
      %20 = arith.addf %17, %19 : vector<8x128xf32>
      %21 = arith.truncf %20 : vector<8x128xf32> to vector<8x128xbf16>
      %c0_17 = arith.constant 0 : index
      %c0_18 = arith.constant 0 : index
      %22 = vector.load %arg6[%c0_17, %c0_18] : memref<8x128xbf16, #tpu.memory_space<vmem>>, vector<8x128xbf16>
      tpu.vector_store %arg6[%c0_17, %c0_18], %21 {strides = array<i32>} : memref<8x128xbf16, #tpu.memory_space<vmem>>, vector<8x128xbf16>,
      %c0_19 = arith.constant 0 : index
      %c0_20 = arith.constant 0 : index
      %23 = vector.load %arg7[%c0_19, %c0_20] : memref<1x128xf32, #tpu.memory_space<vmem>>, vector<1x128xf32>
      %cst_21 = arith.constant dense<0.000000e+00> : vector<128xf32>
      %24 = vector.multi_reduction <add>, %20, %cst_21 [0] : vector<8x128xf32> to vector<128xf32>
      %25 = vector.shape_cast %24 : vector<128xf32> to vector<1x128xf32>
      %26 = arith.addf %23, %25 : vector<1x128xf32>
      %c0_22 = arith.constant 0 : index
      %c0_23 = arith.constant 0 : index
      %27 = vector.load %arg7[%c0_22, %c0_23] : memref<1x128xf32, #tpu.memory_space<vmem>>, vector<1x128xf32>
      tpu.vector_store %arg7[%c0_22, %c0_23], %26 {strides = array<i32>} : memref<1x128xf32, #tpu.memory_space<vmem>>, vector<1x128xf32>,
      %c0_24 = arith.constant 0 : index
      %c0_25 = arith.constant 0 : index
      %28 = vector.load %arg8[%c0_24, %c0_25] : memref<1x128xf32, #tpu.memory_space<vmem>>, vector<1x128xf32>
      %29 = arith.mulf %20, %20 : vector<8x128xf32>
      %cst_26 = arith.constant dense<0.000000e+00> : vector<128xf32>
      %30 = vector.multi_reduction <add>, %29, %cst_26 [0] : vector<8x128xf32> to vector<128xf32>
      %31 = vector.shape_cast %30 : vector<128xf32> to vector<1x128xf32>
      %32 = arith.addf %28, %31 : vector<1x128xf32>
      %c0_27 = arith.constant 0 : index
      %c0_28 = arith.constant 0 : index
      %33 = vector.load %arg8[%c0_27, %c0_28] : memref<1x128xf32, #tpu.memory_space<vmem>>, vector<1x128xf32>
      tpu.vector_store %arg8[%c0_27, %c0_28], %32 {strides = array<i32>} : memref<1x128xf32, #tpu.memory_space<vmem>>, vector<1x128xf32>,
    } else {
    }
    return
  }
  func.func @transform_0(%arg0: i32, %arg1: i32, %arg2: i32) -> (i32, i32) {
    %c0_i32 = arith.constant 0 : i32
    return %arg1, %arg2 : i32, i32
  }
  func.func @transform_1(%arg0: i32, %arg1: i32, %arg2: i32) -> (i32, i32) {
    %c0_i32 = arith.constant 0 : i32
    return %arg2, %arg0 : i32, i32
  }
  func.func @transform_2(%arg0: i32, %arg1: i32, %arg2: i32) -> (i32, i32) {
    %c0_i32 = arith.constant 0 : i32
    %c0_i32_0 = arith.constant 0 : i32
    return %c0_i32, %arg0 : i32, i32
  }
  func.func @transform_3(%arg0: i32, %arg1: i32, %arg2: i32) -> (i32, i32) {
    %c0_i32 = arith.constant 0 : i32
    return %arg1, %arg0 : i32, i32
  }
  func.func @transform_4(%arg0: i32, %arg1: i32, %arg2: i32) -> (i32, i32) {
    %c0_i32 = arith.constant 0 : i32
    %c0_i32_0 = arith.constant 0 : i32
    return %c0_i32, %arg0 : i32, i32
  }
  func.func @transform_5(%arg0: i32, %arg1: i32, %arg2: i32) -> (i32, i32) {
    %c0_i32 = arith.constant 0 : i32
    %c0_i32_0 = arith.constant 0 : i32
    return %c0_i32, %arg0 : i32, i32
  }
}

module attributes {stable_mosaic.version = 11 : i64} {
  func.func @kernel(%arg0: i32, %arg1: memref<8x128xbf16, #tpu.memory_space<vmem>>, %arg2: memref<8x128xbf16, #tpu.memory_space<vmem>>, %arg3: memref<1x128xf32, #tpu.memory_space<vmem>>, %arg4: memref<1x128xf32, #tpu.memory_space<vmem>>, %arg5: memref<8x128xbf16, #tpu.memory_space<vmem>>) attributes {dimension_semantics = [#tpu.dimension_semantics<parallel>], iteration_bounds = array<i64: 1>, scalar_prefetch = 0 : i64, scratch_operands = 0 : i64, tpu.core_type = #tpu.core_type<tc>, window_params = [{transform_indices = @transform_0, window_bounds = array<i64: 8, 128>}, {transform_indices = @transform_1, window_bounds = array<i64: 8, 128>}, {pipeline_mode = #tpu.pipeline_mode<synchronous>, transform_indices = @transform_2, window_bounds = array<i64: 1, 128>}, {pipeline_mode = #tpu.pipeline_mode<synchronous>, transform_indices = @transform_3, window_bounds = array<i64: 1, 128>}, {transform_indices = @transform_4, window_bounds = array<i64: 8, 128>}]} {
    %c0 = arith.constant 0 : index
    %c0_0 = arith.constant 0 : index
    %0 = vector.load %arg1[%c0, %c0_0] : memref<8x128xbf16, #tpu.memory_space<vmem>>, vector<8x128xbf16>
    %1 = arith.extf %0 : vector<8x128xbf16> to vector<8x128xf32>
    %c0_1 = arith.constant 0 : index
    %c0_2 = arith.constant 0 : index
    %2 = vector.load %arg3[%c0_1, %c0_2] : memref<1x128xf32, #tpu.memory_space<vmem>>, vector<1x128xf32>
    %3 = vector.broadcast %2 : vector<1x128xf32> to vector<8x128xf32>
    %4 = arith.mulf %1, %3 : vector<8x128xf32>
    %c0_3 = arith.constant 0 : index
    %c0_4 = arith.constant 0 : index
    %5 = vector.load %arg4[%c0_3, %c0_4] : memref<1x128xf32, #tpu.memory_space<vmem>>, vector<1x128xf32>
    %6 = vector.broadcast %5 : vector<1x128xf32> to vector<8x128xf32>
    %7 = arith.addf %4, %6 : vector<8x128xf32>
    %c0_5 = arith.constant 0 : index
    %c0_6 = arith.constant 0 : index
    %8 = vector.load %arg2[%c0_5, %c0_6] : memref<8x128xbf16, #tpu.memory_space<vmem>>, vector<8x128xbf16>
    %9 = arith.extf %8 : vector<8x128xbf16> to vector<8x128xf32>
    %10 = arith.addf %7, %9 : vector<8x128xf32>
    %11 = arith.truncf %10 : vector<8x128xf32> to vector<8x128xbf16>
    %c0_7 = arith.constant 0 : index
    %c0_8 = arith.constant 0 : index
    %12 = vector.load %arg5[%c0_7, %c0_8] : memref<8x128xbf16, #tpu.memory_space<vmem>>, vector<8x128xbf16>
    tpu.vector_store %arg5[%c0_7, %c0_8], %11 {strides = array<i32>} : memref<8x128xbf16, #tpu.memory_space<vmem>>, vector<8x128xbf16>,
    return
  }
  func.func @transform_0(%arg0: i32) -> (i32, i32) {
    %c0_i32 = arith.constant 0 : i32
    %c0_i32_0 = arith.constant 0 : i32
    return %arg0, %c0_i32 : i32, i32
  }
  func.func @transform_1(%arg0: i32) -> (i32, i32) {
    %c0_i32 = arith.constant 0 : i32
    %c0_i32_0 = arith.constant 0 : i32
    return %arg0, %c0_i32 : i32, i32
  }
  func.func @transform_2(%arg0: i32) -> (i32, i32) {
    %c0_i32 = arith.constant 0 : i32
    %c0_i32_0 = arith.constant 0 : i32
    %c0_i32_1 = arith.constant 0 : i32
    return %c0_i32, %c0_i32_0 : i32, i32
  }
  func.func @transform_3(%arg0: i32) -> (i32, i32) {
    %c0_i32 = arith.constant 0 : i32
    %c0_i32_0 = arith.constant 0 : i32
    %c0_i32_1 = arith.constant 0 : i32
    return %c0_i32, %c0_i32_0 : i32, i32
  }
  func.func @transform_4(%arg0: i32) -> (i32, i32) {
    %c0_i32 = arith.constant 0 : i32
    %c0_i32_0 = arith.constant 0 : i32
    return %arg0, %c0_i32 : i32, i32
  }
}

module attributes {stable_mosaic.version = 11 : i64} {
  func.func @kernel(%arg0: i32, %arg1: i32, %arg2: i32, %arg3: memref<8x384xbf16, #tpu.memory_space<vmem>>, %arg4: memref<384x256xbf16, #tpu.memory_space<vmem>>, %arg5: memref<8x256xbf16, #tpu.memory_space<vmem>>, %arg6: memref<1x256xf32, #tpu.memory_space<vmem>>, %arg7: memref<1x256xf32, #tpu.memory_space<vmem>>, %arg8: memref<8x256xf32, #tpu.memory_space<vmem>>) attributes {dimension_semantics = [#tpu.dimension_semantics<parallel>, #tpu.dimension_semantics<arbitrary>, #tpu.dimension_semantics<arbitrary>], iteration_bounds = array<i64: 1, 1, 9>, scalar_prefetch = 0 : i64, scratch_operands = 1 : i64, tpu.core_type = #tpu.core_type<tc>, window_params = [{transform_indices = @transform_0, window_bounds = array<i64: 8, 384>}, {transform_indices = @transform_1, window_bounds = array<i64: 384, 256>}, {transform_indices = @transform_2, window_bounds = array<i64: 8, 256>}, {transform_indices = @transform_3, window_bounds = array<i64: 1, 256>}, {transform_indices = @transform_4, window_bounds = array<i64: 1, 256>}]} {
    %c0_i32 = arith.constant 0 : i32
    %0 = arith.cmpi eq, %arg2, %c0_i32 : i32
    %1 = arith.extui %0 : i1 to i32
    %c0_i32_0 = arith.constant 0 : i32
    %2 = arith.cmpi ne, %1, %c0_i32_0 : i32
    scf.if %2 {
      %cst_12 = arith.constant 0.000000e+00 : f32
      %17 = vector.broadcast %cst_12 : f32 to vector<8x256xf32>
      %c0_13 = arith.constant 0 : index
      %c0_14 = arith.constant 0 : index
      %18 = vector.load %arg8[%c0_13, %c0_14] : memref<8x256xf32, #tpu.memory_space<vmem>>, vector<8x256xf32>
      tpu.vector_store %arg8[%c0_13, %c0_14], %17 {strides = array<i32>} : memref<8x256xf32, #tpu.memory_space<vmem>>, vector<8x256xf32>,
    } else {
    }
    %c0 = arith.constant 0 : index
    %c0_1 = arith.constant 0 : index
    %3 = vector.load %arg8[%c0, %c0_1] : memref<8x256xf32, #tpu.memory_space<vmem>>, vector<8x256xf32>
    %c0_2 = arith.constant 0 : index
    %c0_3 = arith.constant 0 : index
    %4 = vector.load %arg3[%c0_2, %c0_3] : memref<8x384xbf16, #tpu.memory_space<vmem>>, vector<8x384xbf16>
    %c0_4 = arith.constant 0 : index
    %c0_5 = arith.constant 0 : index
    %5 = vector.load %arg4[%c0_4, %c0_5] : memref<384x256xbf16, #tpu.memory_space<vmem>>, vector<384x256xbf16>
    %cst = arith.constant dense<0.000000e+00> : vector<8x256xf32>
    %6 = tpu.matmul %4, %5, %cst {dimension_numbers = #tpu.dot_dimension_numbers<[1], [0], [0], [1], [0, 0, 1, 1], [], []>} : vector<8x384xbf16>, vector<384x256xbf16>, vector<8x256xf32> -> vector<8x256xf32>
    %7 = arith.addf %3, %6 : vector<8x256xf32>
    %c0_6 = arith.constant 0 : index
    %c0_7 = arith.constant 0 : index
    %8 = vector.load %arg8[%c0_6, %c0_7] : memref<8x256xf32, #tpu.memory_space<vmem>>, vector<8x256xf32>
    tpu.vector_store %arg8[%c0_6, %c0_7], %7 {strides = array<i32>} : memref<8x256xf32, #tpu.memory_space<vmem>>, vector<8x256xf32>,
    %c0_i32_8 = arith.constant 0 : i32
    %9 = arith.cmpi eq, %arg1, %c0_i32_8 : i32
    %c0_i32_9 = arith.constant 0 : i32
    %10 = arith.cmpi eq, %arg2, %c0_i32_9 : i32
    %11 = arith.andi %9, %10 : i1
    %12 = arith.extui %11 : i1 to i32
    %c0_i32_10 = arith.constant 0 : i32
    %13 = arith.cmpi ne, %12, %c0_i32_10 : i32
    scf.if %13 {
      %cst_12 = arith.constant 0.000000e+00 : f32
      %17 = vector.broadcast %cst_12 : f32 to vector<1x256xf32>
      %c0_13 = arith.constant 0 : index
      %c0_14 = arith.constant 0 : index
      %18 = vector.load %arg6[%c0_13, %c0_14] : memref<1x256xf32, #tpu.memory_space<vmem>>, vector<1x256xf32>
      tpu.vector_store %arg6[%c0_13, %c0_14], %17 {strides = array<i32>} : memref<1x256xf32, #tpu.memory_space<vmem>>, vector<1x256xf32>,
      %cst_15 = arith.constant 0.000000e+00 : f32
      %19 = vector.broadcast %cst_15 : f32 to vector<1x256xf32>
      %c0_16 = arith.constant 0 : index
      %c0_17 = arith.constant 0 : index
      %20 = vector.load %arg7[%c0_16, %c0_17] : memref<1x256xf32, #tpu.memory_space<vmem>>, vector<1x256xf32>
      tpu.vector_store %arg7[%c0_16, %c0_17], %19 {strides = array<i32>} : memref<1x256xf32, #tpu.memory_space<vmem>>, vector<1x256xf32>,
    } else {
    }
    %c8_i32 = arith.constant 8 : i32
    %14 = arith.cmpi eq, %arg2, %c8_i32 : i32
    %15 = arith.extui %14 : i1 to i32
    %c0_i32_11 = arith.constant 0 : i32
    %16 = arith.cmpi ne, %15, %c0_i32_11 : i32
    scf.if %16 {
      %c0_12 = arith.constant 0 : index
      %c0_13 = arith.constant 0 : index
      %17 = vector.load %arg8[%c0_12, %c0_13] : memref<8x256xf32, #tpu.memory_space<vmem>>, vector<8x256xf32>
      %18 = arith.truncf %17 : vector<8x256xf32> to vector<8x256xbf16>
      %c0_14 = arith.constant 0 : index
      %c0_15 = arith.constant 0 : index
      %19 = vector.load %arg5[%c0_14, %c0_15] : memref<8x256xbf16, #tpu.memory_space<vmem>>, vector<8x256xbf16>
      tpu.vector_store %arg5[%c0_14, %c0_15], %18 {strides = array<i32>} : memref<8x256xbf16, #tpu.memory_space<vmem>>, vector<8x256xbf16>,
      %c0_16 = arith.constant 0 : index
      %c0_17 = arith.constant 0 : index
      %20 = vector.load %arg6[%c0_16, %c0_17] : memref<1x256xf32, #tpu.memory_space<vmem>>, vector<1x256xf32>
      %cst_18 = arith.constant dense<0.000000e+00> : vector<256xf32>
      %21 = vector.multi_reduction <add>, %17, %cst_18 [0] : vector<8x256xf32> to vector<256xf32>
      %22 = vector.shape_cast %21 : vector<256xf32> to vector<1x256xf32>
      %23 = arith.addf %20, %22 : vector<1x256xf32>
      %c0_19 = arith.constant 0 : index
      %c0_20 = arith.constant 0 : index
      %24 = vector.load %arg6[%c0_19, %c0_20] : memref<1x256xf32, #tpu.memory_space<vmem>>, vector<1x256xf32>
      tpu.vector_store %arg6[%c0_19, %c0_20], %23 {strides = array<i32>} : memref<1x256xf32, #tpu.memory_space<vmem>>, vector<1x256xf32>,
      %c0_21 = arith.constant 0 : index
      %c0_22 = arith.constant 0 : index
      %25 = vector.load %arg7[%c0_21, %c0_22] : memref<1x256xf32, #tpu.memory_space<vmem>>, vector<1x256xf32>
      %26 = arith.mulf %17, %17 : vector<8x256xf32>
      %cst_23 = arith.constant dense<0.000000e+00> : vector<256xf32>
      %27 = vector.multi_reduction <add>, %26, %cst_23 [0] : vector<8x256xf32> to vector<256xf32>
      %28 = vector.shape_cast %27 : vector<256xf32> to vector<1x256xf32>
      %29 = arith.addf %25, %28 : vector<1x256xf32>
      %c0_24 = arith.constant 0 : index
      %c0_25 = arith.constant 0 : index
      %30 = vector.load %arg7[%c0_24, %c0_25] : memref<1x256xf32, #tpu.memory_space<vmem>>, vector<1x256xf32>
      tpu.vector_store %arg7[%c0_24, %c0_25], %29 {strides = array<i32>} : memref<1x256xf32, #tpu.memory_space<vmem>>, vector<1x256xf32>,
    } else {
    }
    return
  }
  func.func @transform_0(%arg0: i32, %arg1: i32, %arg2: i32) -> (i32, i32) {
    %c0_i32 = arith.constant 0 : i32
    return %arg1, %arg2 : i32, i32
  }
  func.func @transform_1(%arg0: i32, %arg1: i32, %arg2: i32) -> (i32, i32) {
    %c0_i32 = arith.constant 0 : i32
    return %arg2, %arg0 : i32, i32
  }
  func.func @transform_2(%arg0: i32, %arg1: i32, %arg2: i32) -> (i32, i32) {
    %c0_i32 = arith.constant 0 : i32
    return %arg1, %arg0 : i32, i32
  }
  func.func @transform_3(%arg0: i32, %arg1: i32, %arg2: i32) -> (i32, i32) {
    %c0_i32 = arith.constant 0 : i32
    %c0_i32_0 = arith.constant 0 : i32
    return %c0_i32, %arg0 : i32, i32
  }
  func.func @transform_4(%arg0: i32, %arg1: i32, %arg2: i32) -> (i32, i32) {
    %c0_i32 = arith.constant 0 : i32
    %c0_i32_0 = arith.constant 0 : i32
    return %c0_i32, %arg0 : i32, i32
  }
}

module attributes {stable_mosaic.version = 11 : i64} {
  func.func @kernel(%arg0: i32, %arg1: memref<8x256xbf16, #tpu.memory_space<vmem>>, %arg2: memref<1x256xf32, #tpu.memory_space<vmem>>, %arg3: memref<1x256xf32, #tpu.memory_space<vmem>>, %arg4: memref<8x256xbf16, #tpu.memory_space<vmem>>) attributes {dimension_semantics = [#tpu.dimension_semantics<parallel>], iteration_bounds = array<i64: 1>, scalar_prefetch = 0 : i64, scratch_operands = 0 : i64, tpu.core_type = #tpu.core_type<tc>, window_params = [{transform_indices = @transform_0, window_bounds = array<i64: 8, 256>}, {pipeline_mode = #tpu.pipeline_mode<synchronous>, transform_indices = @transform_1, window_bounds = array<i64: 1, 256>}, {pipeline_mode = #tpu.pipeline_mode<synchronous>, transform_indices = @transform_2, window_bounds = array<i64: 1, 256>}, {transform_indices = @transform_3, window_bounds = array<i64: 8, 256>}]} {
    %c0 = arith.constant 0 : index
    %c0_0 = arith.constant 0 : index
    %0 = vector.load %arg1[%c0, %c0_0] : memref<8x256xbf16, #tpu.memory_space<vmem>>, vector<8x256xbf16>
    %1 = arith.extf %0 : vector<8x256xbf16> to vector<8x256xf32>
    %c0_1 = arith.constant 0 : index
    %c0_2 = arith.constant 0 : index
    %2 = vector.load %arg2[%c0_1, %c0_2] : memref<1x256xf32, #tpu.memory_space<vmem>>, vector<1x256xf32>
    %3 = vector.broadcast %2 : vector<1x256xf32> to vector<8x256xf32>
    %4 = arith.mulf %1, %3 : vector<8x256xf32>
    %c0_3 = arith.constant 0 : index
    %c0_4 = arith.constant 0 : index
    %5 = vector.load %arg3[%c0_3, %c0_4] : memref<1x256xf32, #tpu.memory_space<vmem>>, vector<1x256xf32>
    %6 = vector.broadcast %5 : vector<1x256xf32> to vector<8x256xf32>
    %7 = arith.addf %4, %6 : vector<8x256xf32>
    %cst = arith.constant 0.000000e+00 : f32
    %8 = vector.broadcast %cst : f32 to vector<8x256xf32>
    %9 = arith.maximumf %7, %8 : vector<8x256xf32>
    %10 = arith.truncf %9 : vector<8x256xf32> to vector<8x256xbf16>
    %c0_5 = arith.constant 0 : index
    %c0_6 = arith.constant 0 : index
    %11 = vector.load %arg4[%c0_5, %c0_6] : memref<8x256xbf16, #tpu.memory_space<vmem>>, vector<8x256xbf16>
    tpu.vector_store %arg4[%c0_5, %c0_6], %10 {strides = array<i32>} : memref<8x256xbf16, #tpu.memory_space<vmem>>, vector<8x256xbf16>,
    return
  }
  func.func @transform_0(%arg0: i32) -> (i32, i32) {
    %c0_i32 = arith.constant 0 : i32
    %c0_i32_0 = arith.constant 0 : i32
    return %arg0, %c0_i32 : i32, i32
  }
  func.func @transform_1(%arg0: i32) -> (i32, i32) {
    %c0_i32 = arith.constant 0 : i32
    %c0_i32_0 = arith.constant 0 : i32
    %c0_i32_1 = arith.constant 0 : i32
    return %c0_i32, %c0_i32_0 : i32, i32
  }
  func.func @transform_2(%arg0: i32) -> (i32, i32) {
    %c0_i32 = arith.constant 0 : i32
    %c0_i32_0 = arith.constant 0 : i32
    %c0_i32_1 = arith.constant 0 : i32
    return %c0_i32, %c0_i32_0 : i32, i32
  }
  func.func @transform_3(%arg0: i32) -> (i32, i32) {
    %c0_i32 = arith.constant 0 : i32
    %c0_i32_0 = arith.constant 0 : i32
    return %arg0, %c0_i32 : i32, i32
  }
}

module attributes {stable_mosaic.version = 11 : i64} {
  func.func @kernel(%arg0: i32, %arg1: i32, %arg2: i32, %arg3: memref<8x384xbf16, #tpu.memory_space<vmem>>, %arg4: memref<384x256xbf16, #tpu.memory_space<vmem>>, %arg5: memref<8x256xbf16, #tpu.memory_space<vmem>>, %arg6: memref<1x256xf32, #tpu.memory_space<vmem>>, %arg7: memref<1x256xf32, #tpu.memory_space<vmem>>, %arg8: memref<8x256xf32, #tpu.memory_space<vmem>>) attributes {dimension_semantics = [#tpu.dimension_semantics<parallel>, #tpu.dimension_semantics<arbitrary>, #tpu.dimension_semantics<arbitrary>], iteration_bounds = array<i64: 1, 1, 18>, scalar_prefetch = 0 : i64, scratch_operands = 1 : i64, tpu.core_type = #tpu.core_type<tc>, window_params = [{transform_indices = @transform_0, window_bounds = array<i64: 8, 384>}, {transform_indices = @transform_1, window_bounds = array<i64: 384, 256>}, {transform_indices = @transform_2, window_bounds = array<i64: 8, 256>}, {transform_indices = @transform_3, window_bounds = array<i64: 1, 256>}, {transform_indices = @transform_4, window_bounds = array<i64: 1, 256>}]} {
    %c0_i32 = arith.constant 0 : i32
    %0 = arith.cmpi eq, %arg2, %c0_i32 : i32
    %1 = arith.extui %0 : i1 to i32
    %c0_i32_0 = arith.constant 0 : i32
    %2 = arith.cmpi ne, %1, %c0_i32_0 : i32
    scf.if %2 {
      %cst_12 = arith.constant 0.000000e+00 : f32
      %17 = vector.broadcast %cst_12 : f32 to vector<8x256xf32>
      %c0_13 = arith.constant 0 : index
      %c0_14 = arith.constant 0 : index
      %18 = vector.load %arg8[%c0_13, %c0_14] : memref<8x256xf32, #tpu.memory_space<vmem>>, vector<8x256xf32>
      tpu.vector_store %arg8[%c0_13, %c0_14], %17 {strides = array<i32>} : memref<8x256xf32, #tpu.memory_space<vmem>>, vector<8x256xf32>,
    } else {
    }
    %c0 = arith.constant 0 : index
    %c0_1 = arith.constant 0 : index
    %3 = vector.load %arg8[%c0, %c0_1] : memref<8x256xf32, #tpu.memory_space<vmem>>, vector<8x256xf32>
    %c0_2 = arith.constant 0 : index
    %c0_3 = arith.constant 0 : index
    %4 = vector.load %arg3[%c0_2, %c0_3] : memref<8x384xbf16, #tpu.memory_space<vmem>>, vector<8x384xbf16>
    %c0_4 = arith.constant 0 : index
    %c0_5 = arith.constant 0 : index
    %5 = vector.load %arg4[%c0_4, %c0_5] : memref<384x256xbf16, #tpu.memory_space<vmem>>, vector<384x256xbf16>
    %cst = arith.constant dense<0.000000e+00> : vector<8x256xf32>
    %6 = tpu.matmul %4, %5, %cst {dimension_numbers = #tpu.dot_dimension_numbers<[1], [0], [0], [1], [0, 0, 1, 1], [], []>} : vector<8x384xbf16>, vector<384x256xbf16>, vector<8x256xf32> -> vector<8x256xf32>
    %7 = arith.addf %3, %6 : vector<8x256xf32>
    %c0_6 = arith.constant 0 : index
    %c0_7 = arith.constant 0 : index
    %8 = vector.load %arg8[%c0_6, %c0_7] : memref<8x256xf32, #tpu.memory_space<vmem>>, vector<8x256xf32>
    tpu.vector_store %arg8[%c0_6, %c0_7], %7 {strides = array<i32>} : memref<8x256xf32, #tpu.memory_space<vmem>>, vector<8x256xf32>,
    %c0_i32_8 = arith.constant 0 : i32
    %9 = arith.cmpi eq, %arg1, %c0_i32_8 : i32
    %c0_i32_9 = arith.constant 0 : i32
    %10 = arith.cmpi eq, %arg2, %c0_i32_9 : i32
    %11 = arith.andi %9, %10 : i1
    %12 = arith.extui %11 : i1 to i32
    %c0_i32_10 = arith.constant 0 : i32
    %13 = arith.cmpi ne, %12, %c0_i32_10 : i32
    scf.if %13 {
      %cst_12 = arith.constant 0.000000e+00 : f32
      %17 = vector.broadcast %cst_12 : f32 to vector<1x256xf32>
      %c0_13 = arith.constant 0 : index
      %c0_14 = arith.constant 0 : index
      %18 = vector.load %arg6[%c0_13, %c0_14] : memref<1x256xf32, #tpu.memory_space<vmem>>, vector<1x256xf32>
      tpu.vector_store %arg6[%c0_13, %c0_14], %17 {strides = array<i32>} : memref<1x256xf32, #tpu.memory_space<vmem>>, vector<1x256xf32>,
      %cst_15 = arith.constant 0.000000e+00 : f32
      %19 = vector.broadcast %cst_15 : f32 to vector<1x256xf32>
      %c0_16 = arith.constant 0 : index
      %c0_17 = arith.constant 0 : index
      %20 = vector.load %arg7[%c0_16, %c0_17] : memref<1x256xf32, #tpu.memory_space<vmem>>, vector<1x256xf32>
      tpu.vector_store %arg7[%c0_16, %c0_17], %19 {strides = array<i32>} : memref<1x256xf32, #tpu.memory_space<vmem>>, vector<1x256xf32>,
    } else {
    }
    %c17_i32 = arith.constant 17 : i32
    %14 = arith.cmpi eq, %arg2, %c17_i32 : i32
    %15 = arith.extui %14 : i1 to i32
    %c0_i32_11 = arith.constant 0 : i32
    %16 = arith.cmpi ne, %15, %c0_i32_11 : i32
    scf.if %16 {
      %c0_12 = arith.constant 0 : index
      %c0_13 = arith.constant 0 : index
      %17 = vector.load %arg8[%c0_12, %c0_13] : memref<8x256xf32, #tpu.memory_space<vmem>>, vector<8x256xf32>
      %18 = arith.truncf %17 : vector<8x256xf32> to vector<8x256xbf16>
      %c0_14 = arith.constant 0 : index
      %c0_15 = arith.constant 0 : index
      %19 = vector.load %arg5[%c0_14, %c0_15] : memref<8x256xbf16, #tpu.memory_space<vmem>>, vector<8x256xbf16>
      tpu.vector_store %arg5[%c0_14, %c0_15], %18 {strides = array<i32>} : memref<8x256xbf16, #tpu.memory_space<vmem>>, vector<8x256xbf16>,
      %c0_16 = arith.constant 0 : index
      %c0_17 = arith.constant 0 : index
      %20 = vector.load %arg6[%c0_16, %c0_17] : memref<1x256xf32, #tpu.memory_space<vmem>>, vector<1x256xf32>
      %cst_18 = arith.constant dense<0.000000e+00> : vector<256xf32>
      %21 = vector.multi_reduction <add>, %17, %cst_18 [0] : vector<8x256xf32> to vector<256xf32>
      %22 = vector.shape_cast %21 : vector<256xf32> to vector<1x256xf32>
      %23 = arith.addf %20, %22 : vector<1x256xf32>
      %c0_19 = arith.constant 0 : index
      %c0_20 = arith.constant 0 : index
      %24 = vector.load %arg6[%c0_19, %c0_20] : memref<1x256xf32, #tpu.memory_space<vmem>>, vector<1x256xf32>
      tpu.vector_store %arg6[%c0_19, %c0_20], %23 {strides = array<i32>} : memref<1x256xf32, #tpu.memory_space<vmem>>, vector<1x256xf32>,
      %c0_21 = arith.constant 0 : index
      %c0_22 = arith.constant 0 : index
      %25 = vector.load %arg7[%c0_21, %c0_22] : memref<1x256xf32, #tpu.memory_space<vmem>>, vector<1x256xf32>
      %26 = arith.mulf %17, %17 : vector<8x256xf32>
      %cst_23 = arith.constant dense<0.000000e+00> : vector<256xf32>
      %27 = vector.multi_reduction <add>, %26, %cst_23 [0] : vector<8x256xf32> to vector<256xf32>
      %28 = vector.shape_cast %27 : vector<256xf32> to vector<1x256xf32>
      %29 = arith.addf %25, %28 : vector<1x256xf32>
      %c0_24 = arith.constant 0 : index
      %c0_25 = arith.constant 0 : index
      %30 = vector.load %arg7[%c0_24, %c0_25] : memref<1x256xf32, #tpu.memory_space<vmem>>, vector<1x256xf32>
      tpu.vector_store %arg7[%c0_24, %c0_25], %29 {strides = array<i32>} : memref<1x256xf32, #tpu.memory_space<vmem>>, vector<1x256xf32>,
    } else {
    }
    return
  }
  func.func @transform_0(%arg0: i32, %arg1: i32, %arg2: i32) -> (i32, i32) {
    %c0_i32 = arith.constant 0 : i32
    return %arg1, %arg2 : i32, i32
  }
  func.func @transform_1(%arg0: i32, %arg1: i32, %arg2: i32) -> (i32, i32) {
    %c0_i32 = arith.constant 0 : i32
    return %arg2, %arg0 : i32, i32
  }
  func.func @transform_2(%arg0: i32, %arg1: i32, %arg2: i32) -> (i32, i32) {
    %c0_i32 = arith.constant 0 : i32
    return %arg1, %arg0 : i32, i32
  }
  func.func @transform_3(%arg0: i32, %arg1: i32, %arg2: i32) -> (i32, i32) {
    %c0_i32 = arith.constant 0 : i32
    %c0_i32_0 = arith.constant 0 : i32
    return %c0_i32, %arg0 : i32, i32
  }
  func.func @transform_4(%arg0: i32, %arg1: i32, %arg2: i32) -> (i32, i32) {
    %c0_i32 = arith.constant 0 : i32
    %c0_i32_0 = arith.constant 0 : i32
    return %c0_i32, %arg0 : i32, i32
  }
}

module attributes {stable_mosaic.version = 11 : i64} {
  func.func @kernel(%arg0: i32, %arg1: memref<8x256xbf16, #tpu.memory_space<vmem>>, %arg2: memref<8x256xbf16, #tpu.memory_space<vmem>>, %arg3: memref<1x256xf32, #tpu.memory_space<vmem>>, %arg4: memref<1x256xf32, #tpu.memory_space<vmem>>, %arg5: memref<8x256xbf16, #tpu.memory_space<vmem>>) attributes {dimension_semantics = [#tpu.dimension_semantics<parallel>], iteration_bounds = array<i64: 1>, scalar_prefetch = 0 : i64, scratch_operands = 0 : i64, tpu.core_type = #tpu.core_type<tc>, window_params = [{transform_indices = @transform_0, window_bounds = array<i64: 8, 256>}, {transform_indices = @transform_1, window_bounds = array<i64: 8, 256>}, {pipeline_mode = #tpu.pipeline_mode<synchronous>, transform_indices = @transform_2, window_bounds = array<i64: 1, 256>}, {pipeline_mode = #tpu.pipeline_mode<synchronous>, transform_indices = @transform_3, window_bounds = array<i64: 1, 256>}, {transform_indices = @transform_4, window_bounds = array<i64: 8, 256>}]} {
    %c0 = arith.constant 0 : index
    %c0_0 = arith.constant 0 : index
    %0 = vector.load %arg1[%c0, %c0_0] : memref<8x256xbf16, #tpu.memory_space<vmem>>, vector<8x256xbf16>
    %1 = arith.extf %0 : vector<8x256xbf16> to vector<8x256xf32>
    %c0_1 = arith.constant 0 : index
    %c0_2 = arith.constant 0 : index
    %2 = vector.load %arg3[%c0_1, %c0_2] : memref<1x256xf32, #tpu.memory_space<vmem>>, vector<1x256xf32>
    %3 = vector.broadcast %2 : vector<1x256xf32> to vector<8x256xf32>
    %4 = arith.mulf %1, %3 : vector<8x256xf32>
    %c0_3 = arith.constant 0 : index
    %c0_4 = arith.constant 0 : index
    %5 = vector.load %arg4[%c0_3, %c0_4] : memref<1x256xf32, #tpu.memory_space<vmem>>, vector<1x256xf32>
    %6 = vector.broadcast %5 : vector<1x256xf32> to vector<8x256xf32>
    %7 = arith.addf %4, %6 : vector<8x256xf32>
    %c0_5 = arith.constant 0 : index
    %c0_6 = arith.constant 0 : index
    %8 = vector.load %arg2[%c0_5, %c0_6] : memref<8x256xbf16, #tpu.memory_space<vmem>>, vector<8x256xbf16>
    %9 = arith.extf %8 : vector<8x256xbf16> to vector<8x256xf32>
    %10 = arith.addf %7, %9 : vector<8x256xf32>
    %cst = arith.constant 0.000000e+00 : f32
    %11 = vector.broadcast %cst : f32 to vector<8x256xf32>
    %12 = arith.maximumf %10, %11 : vector<8x256xf32>
    %13 = arith.truncf %12 : vector<8x256xf32> to vector<8x256xbf16>
    %c0_7 = arith.constant 0 : index
    %c0_8 = arith.constant 0 : index
    %14 = vector.load %arg5[%c0_7, %c0_8] : memref<8x256xbf16, #tpu.memory_space<vmem>>, vector<8x256xbf16>
    tpu.vector_store %arg5[%c0_7, %c0_8], %13 {strides = array<i32>} : memref<8x256xbf16, #tpu.memory_space<vmem>>, vector<8x256xbf16>,
    return
  }
  func.func @transform_0(%arg0: i32) -> (i32, i32) {
    %c0_i32 = arith.constant 0 : i32
    %c0_i32_0 = arith.constant 0 : i32
    return %arg0, %c0_i32 : i32, i32
  }
  func.func @transform_1(%arg0: i32) -> (i32, i32) {
    %c0_i32 = arith.constant 0 : i32
    %c0_i32_0 = arith.constant 0 : i32
    return %arg0, %c0_i32 : i32, i32
  }
  func.func @transform_2(%arg0: i32) -> (i32, i32) {
    %c0_i32 = arith.constant 0 : i32
    %c0_i32_0 = arith.constant 0 : i32
    %c0_i32_1 = arith.constant 0 : i32
    return %c0_i32, %c0_i32_0 : i32, i32
  }
  func.func @transform_3(%arg0: i32) -> (i32, i32) {
    %c0_i32 = arith.constant 0 : i32
    %c0_i32_0 = arith.constant 0 : i32
    %c0_i32_1 = arith.constant 0 : i32
    return %c0_i32, %c0_i32_0 : i32, i32
  }
  func.func @transform_4(%arg0: i32) -> (i32, i32) {
    %c0_i32 = arith.constant 0 : i32
    %c0_i32_0 = arith.constant 0 : i32
    return %arg0, %c0_i32 : i32, i32
  }
}

module attributes {stable_mosaic.version = 11 : i64} {
  func.func @kernel(%arg0: i32, %arg1: i32, %arg2: i32, %arg3: memref<8x384xbf16, #tpu.memory_space<vmem>>, %arg4: memref<384x256xbf16, #tpu.memory_space<vmem>>, %arg5: memref<8x256xbf16, #tpu.memory_space<vmem>>, %arg6: memref<1x256xf32, #tpu.memory_space<vmem>>, %arg7: memref<1x256xf32, #tpu.memory_space<vmem>>, %arg8: memref<8x256xf32, #tpu.memory_space<vmem>>) attributes {dimension_semantics = [#tpu.dimension_semantics<parallel>, #tpu.dimension_semantics<arbitrary>, #tpu.dimension_semantics<arbitrary>], iteration_bounds = array<i64: 2, 1, 18>, scalar_prefetch = 0 : i64, scratch_operands = 1 : i64, tpu.core_type = #tpu.core_type<tc>, window_params = [{transform_indices = @transform_0, window_bounds = array<i64: 8, 384>}, {transform_indices = @transform_1, window_bounds = array<i64: 384, 256>}, {transform_indices = @transform_2, window_bounds = array<i64: 8, 256>}, {transform_indices = @transform_3, window_bounds = array<i64: 1, 256>}, {transform_indices = @transform_4, window_bounds = array<i64: 1, 256>}]} {
    %c0_i32 = arith.constant 0 : i32
    %0 = arith.cmpi eq, %arg2, %c0_i32 : i32
    %1 = arith.extui %0 : i1 to i32
    %c0_i32_0 = arith.constant 0 : i32
    %2 = arith.cmpi ne, %1, %c0_i32_0 : i32
    scf.if %2 {
      %cst_12 = arith.constant 0.000000e+00 : f32
      %17 = vector.broadcast %cst_12 : f32 to vector<8x256xf32>
      %c0_13 = arith.constant 0 : index
      %c0_14 = arith.constant 0 : index
      %18 = vector.load %arg8[%c0_13, %c0_14] : memref<8x256xf32, #tpu.memory_space<vmem>>, vector<8x256xf32>
      tpu.vector_store %arg8[%c0_13, %c0_14], %17 {strides = array<i32>} : memref<8x256xf32, #tpu.memory_space<vmem>>, vector<8x256xf32>,
    } else {
    }
    %c0 = arith.constant 0 : index
    %c0_1 = arith.constant 0 : index
    %3 = vector.load %arg8[%c0, %c0_1] : memref<8x256xf32, #tpu.memory_space<vmem>>, vector<8x256xf32>
    %c0_2 = arith.constant 0 : index
    %c0_3 = arith.constant 0 : index
    %4 = vector.load %arg3[%c0_2, %c0_3] : memref<8x384xbf16, #tpu.memory_space<vmem>>, vector<8x384xbf16>
    %c0_4 = arith.constant 0 : index
    %c0_5 = arith.constant 0 : index
    %5 = vector.load %arg4[%c0_4, %c0_5] : memref<384x256xbf16, #tpu.memory_space<vmem>>, vector<384x256xbf16>
    %cst = arith.constant dense<0.000000e+00> : vector<8x256xf32>
    %6 = tpu.matmul %4, %5, %cst {dimension_numbers = #tpu.dot_dimension_numbers<[1], [0], [0], [1], [0, 0, 1, 1], [], []>} : vector<8x384xbf16>, vector<384x256xbf16>, vector<8x256xf32> -> vector<8x256xf32>
    %7 = arith.addf %3, %6 : vector<8x256xf32>
    %c0_6 = arith.constant 0 : index
    %c0_7 = arith.constant 0 : index
    %8 = vector.load %arg8[%c0_6, %c0_7] : memref<8x256xf32, #tpu.memory_space<vmem>>, vector<8x256xf32>
    tpu.vector_store %arg8[%c0_6, %c0_7], %7 {strides = array<i32>} : memref<8x256xf32, #tpu.memory_space<vmem>>, vector<8x256xf32>,
    %c0_i32_8 = arith.constant 0 : i32
    %9 = arith.cmpi eq, %arg1, %c0_i32_8 : i32
    %c0_i32_9 = arith.constant 0 : i32
    %10 = arith.cmpi eq, %arg2, %c0_i32_9 : i32
    %11 = arith.andi %9, %10 : i1
    %12 = arith.extui %11 : i1 to i32
    %c0_i32_10 = arith.constant 0 : i32
    %13 = arith.cmpi ne, %12, %c0_i32_10 : i32
    scf.if %13 {
      %cst_12 = arith.constant 0.000000e+00 : f32
      %17 = vector.broadcast %cst_12 : f32 to vector<1x256xf32>
      %c0_13 = arith.constant 0 : index
      %c0_14 = arith.constant 0 : index
      %18 = vector.load %arg6[%c0_13, %c0_14] : memref<1x256xf32, #tpu.memory_space<vmem>>, vector<1x256xf32>
      tpu.vector_store %arg6[%c0_13, %c0_14], %17 {strides = array<i32>} : memref<1x256xf32, #tpu.memory_space<vmem>>, vector<1x256xf32>,
      %cst_15 = arith.constant 0.000000e+00 : f32
      %19 = vector.broadcast %cst_15 : f32 to vector<1x256xf32>
      %c0_16 = arith.constant 0 : index
      %c0_17 = arith.constant 0 : index
      %20 = vector.load %arg7[%c0_16, %c0_17] : memref<1x256xf32, #tpu.memory_space<vmem>>, vector<1x256xf32>
      tpu.vector_store %arg7[%c0_16, %c0_17], %19 {strides = array<i32>} : memref<1x256xf32, #tpu.memory_space<vmem>>, vector<1x256xf32>,
    } else {
    }
    %c17_i32 = arith.constant 17 : i32
    %14 = arith.cmpi eq, %arg2, %c17_i32 : i32
    %15 = arith.extui %14 : i1 to i32
    %c0_i32_11 = arith.constant 0 : i32
    %16 = arith.cmpi ne, %15, %c0_i32_11 : i32
    scf.if %16 {
      %c0_12 = arith.constant 0 : index
      %c0_13 = arith.constant 0 : index
      %17 = vector.load %arg8[%c0_12, %c0_13] : memref<8x256xf32, #tpu.memory_space<vmem>>, vector<8x256xf32>
      %18 = arith.truncf %17 : vector<8x256xf32> to vector<8x256xbf16>
      %c0_14 = arith.constant 0 : index
      %c0_15 = arith.constant 0 : index
      %19 = vector.load %arg5[%c0_14, %c0_15] : memref<8x256xbf16, #tpu.memory_space<vmem>>, vector<8x256xbf16>
      tpu.vector_store %arg5[%c0_14, %c0_15], %18 {strides = array<i32>} : memref<8x256xbf16, #tpu.memory_space<vmem>>, vector<8x256xbf16>,
      %c0_16 = arith.constant 0 : index
      %c0_17 = arith.constant 0 : index
      %20 = vector.load %arg6[%c0_16, %c0_17] : memref<1x256xf32, #tpu.memory_space<vmem>>, vector<1x256xf32>
      %cst_18 = arith.constant dense<0.000000e+00> : vector<256xf32>
      %21 = vector.multi_reduction <add>, %17, %cst_18 [0] : vector<8x256xf32> to vector<256xf32>
      %22 = vector.shape_cast %21 : vector<256xf32> to vector<1x256xf32>
      %23 = arith.addf %20, %22 : vector<1x256xf32>
      %c0_19 = arith.constant 0 : index
      %c0_20 = arith.constant 0 : index
      %24 = vector.load %arg6[%c0_19, %c0_20] : memref<1x256xf32, #tpu.memory_space<vmem>>, vector<1x256xf32>
      tpu.vector_store %arg6[%c0_19, %c0_20], %23 {strides = array<i32>} : memref<1x256xf32, #tpu.memory_space<vmem>>, vector<1x256xf32>,
      %c0_21 = arith.constant 0 : index
      %c0_22 = arith.constant 0 : index
      %25 = vector.load %arg7[%c0_21, %c0_22] : memref<1x256xf32, #tpu.memory_space<vmem>>, vector<1x256xf32>
      %26 = arith.mulf %17, %17 : vector<8x256xf32>
      %cst_23 = arith.constant dense<0.000000e+00> : vector<256xf32>
      %27 = vector.multi_reduction <add>, %26, %cst_23 [0] : vector<8x256xf32> to vector<256xf32>
      %28 = vector.shape_cast %27 : vector<256xf32> to vector<1x256xf32>
      %29 = arith.addf %25, %28 : vector<1x256xf32>
      %c0_24 = arith.constant 0 : index
      %c0_25 = arith.constant 0 : index
      %30 = vector.load %arg7[%c0_24, %c0_25] : memref<1x256xf32, #tpu.memory_space<vmem>>, vector<1x256xf32>
      tpu.vector_store %arg7[%c0_24, %c0_25], %29 {strides = array<i32>} : memref<1x256xf32, #tpu.memory_space<vmem>>, vector<1x256xf32>,
    } else {
    }
    return
  }
  func.func @transform_0(%arg0: i32, %arg1: i32, %arg2: i32) -> (i32, i32) {
    %c0_i32 = arith.constant 0 : i32
    return %arg1, %arg2 : i32, i32
  }
  func.func @transform_1(%arg0: i32, %arg1: i32, %arg2: i32) -> (i32, i32) {
    %c0_i32 = arith.constant 0 : i32
    return %arg2, %arg0 : i32, i32
  }
  func.func @transform_2(%arg0: i32, %arg1: i32, %arg2: i32) -> (i32, i32) {
    %c0_i32 = arith.constant 0 : i32
    return %arg1, %arg0 : i32, i32
  }
  func.func @transform_3(%arg0: i32, %arg1: i32, %arg2: i32) -> (i32, i32) {
    %c0_i32 = arith.constant 0 : i32
    %c0_i32_0 = arith.constant 0 : i32
    return %c0_i32, %arg0 : i32, i32
  }
  func.func @transform_4(%arg0: i32, %arg1: i32, %arg2: i32) -> (i32, i32) {
    %c0_i32 = arith.constant 0 : i32
    %c0_i32_0 = arith.constant 0 : i32
    return %c0_i32, %arg0 : i32, i32
  }
}

module attributes {stable_mosaic.version = 11 : i64} {
  func.func @kernel(%arg0: i32, %arg1: memref<8x512xbf16, #tpu.memory_space<vmem>>, %arg2: memref<1x512xf32, #tpu.memory_space<vmem>>, %arg3: memref<1x512xf32, #tpu.memory_space<vmem>>, %arg4: memref<8x512xbf16, #tpu.memory_space<vmem>>) attributes {dimension_semantics = [#tpu.dimension_semantics<parallel>], iteration_bounds = array<i64: 1>, scalar_prefetch = 0 : i64, scratch_operands = 0 : i64, tpu.core_type = #tpu.core_type<tc>, window_params = [{transform_indices = @transform_0, window_bounds = array<i64: 8, 512>}, {pipeline_mode = #tpu.pipeline_mode<synchronous>, transform_indices = @transform_1, window_bounds = array<i64: 1, 512>}, {pipeline_mode = #tpu.pipeline_mode<synchronous>, transform_indices = @transform_2, window_bounds = array<i64: 1, 512>}, {transform_indices = @transform_3, window_bounds = array<i64: 8, 512>}]} {
    %c0 = arith.constant 0 : index
    %c0_0 = arith.constant 0 : index
    %0 = vector.load %arg1[%c0, %c0_0] : memref<8x512xbf16, #tpu.memory_space<vmem>>, vector<8x512xbf16>
    %1 = arith.extf %0 : vector<8x512xbf16> to vector<8x512xf32>
    %c0_1 = arith.constant 0 : index
    %c0_2 = arith.constant 0 : index
    %2 = vector.load %arg2[%c0_1, %c0_2] : memref<1x512xf32, #tpu.memory_space<vmem>>, vector<1x512xf32>
    %3 = vector.broadcast %2 : vector<1x512xf32> to vector<8x512xf32>
    %4 = arith.mulf %1, %3 : vector<8x512xf32>
    %c0_3 = arith.constant 0 : index
    %c0_4 = arith.constant 0 : index
    %5 = vector.load %arg3[%c0_3, %c0_4] : memref<1x512xf32, #tpu.memory_space<vmem>>, vector<1x512xf32>
    %6 = vector.broadcast %5 : vector<1x512xf32> to vector<8x512xf32>
    %7 = arith.addf %4, %6 : vector<8x512xf32>
    %cst = arith.constant 0.000000e+00 : f32
    %8 = vector.broadcast %cst : f32 to vector<8x512xf32>
    %9 = arith.maximumf %7, %8 : vector<8x512xf32>
    %10 = arith.truncf %9 : vector<8x512xf32> to vector<8x512xbf16>
    %c0_5 = arith.constant 0 : index
    %c0_6 = arith.constant 0 : index
    %11 = vector.load %arg4[%c0_5, %c0_6] : memref<8x512xbf16, #tpu.memory_space<vmem>>, vector<8x512xbf16>
    tpu.vector_store %arg4[%c0_5, %c0_6], %10 {strides = array<i32>} : memref<8x512xbf16, #tpu.memory_space<vmem>>, vector<8x512xbf16>,
    return
  }
  func.func @transform_0(%arg0: i32) -> (i32, i32) {
    %c0_i32 = arith.constant 0 : i32
    %c0_i32_0 = arith.constant 0 : i32
    return %arg0, %c0_i32 : i32, i32
  }
  func.func @transform_1(%arg0: i32) -> (i32, i32) {
    %c0_i32 = arith.constant 0 : i32
    %c0_i32_0 = arith.constant 0 : i32
    %c0_i32_1 = arith.constant 0 : i32
    return %c0_i32, %c0_i32_0 : i32, i32
  }
  func.func @transform_2(%arg0: i32) -> (i32, i32) {
    %c0_i32 = arith.constant 0 : i32
    %c0_i32_0 = arith.constant 0 : i32
    %c0_i32_1 = arith.constant 0 : i32
    return %c0_i32, %c0_i32_0 : i32, i32
  }
  func.func @transform_3(%arg0: i32) -> (i32, i32) {
    %c0_i32 = arith.constant 0 : i32
    %c0_i32_0 = arith.constant 0 : i32
    return %arg0, %c0_i32 : i32, i32
  }
}

module attributes {stable_mosaic.version = 11 : i64} {
  func.func @kernel(%arg0: i32, %arg1: i32, %arg2: i32, %arg3: memref<8x512xbf16, #tpu.memory_space<vmem>>, %arg4: memref<512x256xbf16, #tpu.memory_space<vmem>>, %arg5: memref<8x256xbf16, #tpu.memory_space<vmem>>, %arg6: memref<1x256xf32, #tpu.memory_space<vmem>>, %arg7: memref<1x256xf32, #tpu.memory_space<vmem>>, %arg8: memref<8x256xf32, #tpu.memory_space<vmem>>) attributes {dimension_semantics = [#tpu.dimension_semantics<parallel>, #tpu.dimension_semantics<arbitrary>, #tpu.dimension_semantics<arbitrary>], iteration_bounds = array<i64: 2, 1, 27>, scalar_prefetch = 0 : i64, scratch_operands = 1 : i64, tpu.core_type = #tpu.core_type<tc>, window_params = [{transform_indices = @transform_0, window_bounds = array<i64: 8, 512>}, {transform_indices = @transform_1, window_bounds = array<i64: 512, 256>}, {transform_indices = @transform_2, window_bounds = array<i64: 8, 256>}, {transform_indices = @transform_3, window_bounds = array<i64: 1, 256>}, {transform_indices = @transform_4, window_bounds = array<i64: 1, 256>}]} {
    %c0_i32 = arith.constant 0 : i32
    %0 = arith.cmpi eq, %arg2, %c0_i32 : i32
    %1 = arith.extui %0 : i1 to i32
    %c0_i32_0 = arith.constant 0 : i32
    %2 = arith.cmpi ne, %1, %c0_i32_0 : i32
    scf.if %2 {
      %cst_12 = arith.constant 0.000000e+00 : f32
      %17 = vector.broadcast %cst_12 : f32 to vector<8x256xf32>
      %c0_13 = arith.constant 0 : index
      %c0_14 = arith.constant 0 : index
      %18 = vector.load %arg8[%c0_13, %c0_14] : memref<8x256xf32, #tpu.memory_space<vmem>>, vector<8x256xf32>
      tpu.vector_store %arg8[%c0_13, %c0_14], %17 {strides = array<i32>} : memref<8x256xf32, #tpu.memory_space<vmem>>, vector<8x256xf32>,
    } else {
    }
    %c0 = arith.constant 0 : index
    %c0_1 = arith.constant 0 : index
    %3 = vector.load %arg8[%c0, %c0_1] : memref<8x256xf32, #tpu.memory_space<vmem>>, vector<8x256xf32>
    %c0_2 = arith.constant 0 : index
    %c0_3 = arith.constant 0 : index
    %4 = vector.load %arg3[%c0_2, %c0_3] : memref<8x512xbf16, #tpu.memory_space<vmem>>, vector<8x512xbf16>
    %c0_4 = arith.constant 0 : index
    %c0_5 = arith.constant 0 : index
    %5 = vector.load %arg4[%c0_4, %c0_5] : memref<512x256xbf16, #tpu.memory_space<vmem>>, vector<512x256xbf16>
    %cst = arith.constant dense<0.000000e+00> : vector<8x256xf32>
    %6 = tpu.matmul %4, %5, %cst {dimension_numbers = #tpu.dot_dimension_numbers<[1], [0], [0], [1], [0, 0, 1, 1], [], []>} : vector<8x512xbf16>, vector<512x256xbf16>, vector<8x256xf32> -> vector<8x256xf32>
    %7 = arith.addf %3, %6 : vector<8x256xf32>
    %c0_6 = arith.constant 0 : index
    %c0_7 = arith.constant 0 : index
    %8 = vector.load %arg8[%c0_6, %c0_7] : memref<8x256xf32, #tpu.memory_space<vmem>>, vector<8x256xf32>
    tpu.vector_store %arg8[%c0_6, %c0_7], %7 {strides = array<i32>} : memref<8x256xf32, #tpu.memory_space<vmem>>, vector<8x256xf32>,
    %c0_i32_8 = arith.constant 0 : i32
    %9 = arith.cmpi eq, %arg1, %c0_i32_8 : i32
    %c0_i32_9 = arith.constant 0 : i32
    %10 = arith.cmpi eq, %arg2, %c0_i32_9 : i32
    %11 = arith.andi %9, %10 : i1
    %12 = arith.extui %11 : i1 to i32
    %c0_i32_10 = arith.constant 0 : i32
    %13 = arith.cmpi ne, %12, %c0_i32_10 : i32
    scf.if %13 {
      %cst_12 = arith.constant 0.000000e+00 : f32
      %17 = vector.broadcast %cst_12 : f32 to vector<1x256xf32>
      %c0_13 = arith.constant 0 : index
      %c0_14 = arith.constant 0 : index
      %18 = vector.load %arg6[%c0_13, %c0_14] : memref<1x256xf32, #tpu.memory_space<vmem>>, vector<1x256xf32>
      tpu.vector_store %arg6[%c0_13, %c0_14], %17 {strides = array<i32>} : memref<1x256xf32, #tpu.memory_space<vmem>>, vector<1x256xf32>,
      %cst_15 = arith.constant 0.000000e+00 : f32
      %19 = vector.broadcast %cst_15 : f32 to vector<1x256xf32>
      %c0_16 = arith.constant 0 : index
      %c0_17 = arith.constant 0 : index
      %20 = vector.load %arg7[%c0_16, %c0_17] : memref<1x256xf32, #tpu.memory_space<vmem>>, vector<1x256xf32>
      tpu.vector_store %arg7[%c0_16, %c0_17], %19 {strides = array<i32>} : memref<1x256xf32, #tpu.memory_space<vmem>>, vector<1x256xf32>,
    } else {
    }
    %c26_i32 = arith.constant 26 : i32
    %14 = arith.cmpi eq, %arg2, %c26_i32 : i32
    %15 = arith.extui %14 : i1 to i32
    %c0_i32_11 = arith.constant 0 : i32
    %16 = arith.cmpi ne, %15, %c0_i32_11 : i32
    scf.if %16 {
      %c0_12 = arith.constant 0 : index
      %c0_13 = arith.constant 0 : index
      %17 = vector.load %arg8[%c0_12, %c0_13] : memref<8x256xf32, #tpu.memory_space<vmem>>, vector<8x256xf32>
      %18 = arith.truncf %17 : vector<8x256xf32> to vector<8x256xbf16>
      %c0_14 = arith.constant 0 : index
      %c0_15 = arith.constant 0 : index
      %19 = vector.load %arg5[%c0_14, %c0_15] : memref<8x256xbf16, #tpu.memory_space<vmem>>, vector<8x256xbf16>
      tpu.vector_store %arg5[%c0_14, %c0_15], %18 {strides = array<i32>} : memref<8x256xbf16, #tpu.memory_space<vmem>>, vector<8x256xbf16>,
      %c0_16 = arith.constant 0 : index
      %c0_17 = arith.constant 0 : index
      %20 = vector.load %arg6[%c0_16, %c0_17] : memref<1x256xf32, #tpu.memory_space<vmem>>, vector<1x256xf32>
      %cst_18 = arith.constant dense<0.000000e+00> : vector<256xf32>
      %21 = vector.multi_reduction <add>, %17, %cst_18 [0] : vector<8x256xf32> to vector<256xf32>
      %22 = vector.shape_cast %21 : vector<256xf32> to vector<1x256xf32>
      %23 = arith.addf %20, %22 : vector<1x256xf32>
      %c0_19 = arith.constant 0 : index
      %c0_20 = arith.constant 0 : index
      %24 = vector.load %arg6[%c0_19, %c0_20] : memref<1x256xf32, #tpu.memory_space<vmem>>, vector<1x256xf32>
      tpu.vector_store %arg6[%c0_19, %c0_20], %23 {strides = array<i32>} : memref<1x256xf32, #tpu.memory_space<vmem>>, vector<1x256xf32>,
      %c0_21 = arith.constant 0 : index
      %c0_22 = arith.constant 0 : index
      %25 = vector.load %arg7[%c0_21, %c0_22] : memref<1x256xf32, #tpu.memory_space<vmem>>, vector<1x256xf32>
      %26 = arith.mulf %17, %17 : vector<8x256xf32>
      %cst_23 = arith.constant dense<0.000000e+00> : vector<256xf32>
      %27 = vector.multi_reduction <add>, %26, %cst_23 [0] : vector<8x256xf32> to vector<256xf32>
      %28 = vector.shape_cast %27 : vector<256xf32> to vector<1x256xf32>
      %29 = arith.addf %25, %28 : vector<1x256xf32>
      %c0_24 = arith.constant 0 : index
      %c0_25 = arith.constant 0 : index
      %30 = vector.load %arg7[%c0_24, %c0_25] : memref<1x256xf32, #tpu.memory_space<vmem>>, vector<1x256xf32>
      tpu.vector_store %arg7[%c0_24, %c0_25], %29 {strides = array<i32>} : memref<1x256xf32, #tpu.memory_space<vmem>>, vector<1x256xf32>,
    } else {
    }
    return
  }
  func.func @transform_0(%arg0: i32, %arg1: i32, %arg2: i32) -> (i32, i32) {
    %c0_i32 = arith.constant 0 : i32
    return %arg1, %arg2 : i32, i32
  }
  func.func @transform_1(%arg0: i32, %arg1: i32, %arg2: i32) -> (i32, i32) {
    %c0_i32 = arith.constant 0 : i32
    return %arg2, %arg0 : i32, i32
  }
  func.func @transform_2(%arg0: i32, %arg1: i32, %arg2: i32) -> (i32, i32) {
    %c0_i32 = arith.constant 0 : i32
    return %arg1, %arg0 : i32, i32
  }
  func.func @transform_3(%arg0: i32, %arg1: i32, %arg2: i32) -> (i32, i32) {
    %c0_i32 = arith.constant 0 : i32
    %c0_i32_0 = arith.constant 0 : i32
    return %c0_i32, %arg0 : i32, i32
  }
  func.func @transform_4(%arg0: i32, %arg1: i32, %arg2: i32) -> (i32, i32) {
    %c0_i32 = arith.constant 0 : i32
    %c0_i32_0 = arith.constant 0 : i32
    return %c0_i32, %arg0 : i32, i32
  }
}

module attributes {stable_mosaic.version = 11 : i64} {
  func.func @kernel(%arg0: i32, %arg1: memref<8x512xbf16, #tpu.memory_space<vmem>>, %arg2: memref<8x512xbf16, #tpu.memory_space<vmem>>, %arg3: memref<1x512xf32, #tpu.memory_space<vmem>>, %arg4: memref<1x512xf32, #tpu.memory_space<vmem>>, %arg5: memref<8x512xbf16, #tpu.memory_space<vmem>>) attributes {dimension_semantics = [#tpu.dimension_semantics<parallel>], iteration_bounds = array<i64: 1>, scalar_prefetch = 0 : i64, scratch_operands = 0 : i64, tpu.core_type = #tpu.core_type<tc>, window_params = [{transform_indices = @transform_0, window_bounds = array<i64: 8, 512>}, {transform_indices = @transform_1, window_bounds = array<i64: 8, 512>}, {pipeline_mode = #tpu.pipeline_mode<synchronous>, transform_indices = @transform_2, window_bounds = array<i64: 1, 512>}, {pipeline_mode = #tpu.pipeline_mode<synchronous>, transform_indices = @transform_3, window_bounds = array<i64: 1, 512>}, {transform_indices = @transform_4, window_bounds = array<i64: 8, 512>}]} {
    %c0 = arith.constant 0 : index
    %c0_0 = arith.constant 0 : index
    %0 = vector.load %arg1[%c0, %c0_0] : memref<8x512xbf16, #tpu.memory_space<vmem>>, vector<8x512xbf16>
    %1 = arith.extf %0 : vector<8x512xbf16> to vector<8x512xf32>
    %c0_1 = arith.constant 0 : index
    %c0_2 = arith.constant 0 : index
    %2 = vector.load %arg3[%c0_1, %c0_2] : memref<1x512xf32, #tpu.memory_space<vmem>>, vector<1x512xf32>
    %3 = vector.broadcast %2 : vector<1x512xf32> to vector<8x512xf32>
    %4 = arith.mulf %1, %3 : vector<8x512xf32>
    %c0_3 = arith.constant 0 : index
    %c0_4 = arith.constant 0 : index
    %5 = vector.load %arg4[%c0_3, %c0_4] : memref<1x512xf32, #tpu.memory_space<vmem>>, vector<1x512xf32>
    %6 = vector.broadcast %5 : vector<1x512xf32> to vector<8x512xf32>
    %7 = arith.addf %4, %6 : vector<8x512xf32>
    %c0_5 = arith.constant 0 : index
    %c0_6 = arith.constant 0 : index
    %8 = vector.load %arg2[%c0_5, %c0_6] : memref<8x512xbf16, #tpu.memory_space<vmem>>, vector<8x512xbf16>
    %9 = arith.extf %8 : vector<8x512xbf16> to vector<8x512xf32>
    %10 = arith.addf %7, %9 : vector<8x512xf32>
    %cst = arith.constant 0.000000e+00 : f32
    %11 = vector.broadcast %cst : f32 to vector<8x512xf32>
    %12 = arith.maximumf %10, %11 : vector<8x512xf32>
    %13 = arith.truncf %12 : vector<8x512xf32> to vector<8x512xbf16>
    %c0_7 = arith.constant 0 : index
    %c0_8 = arith.constant 0 : index
    %14 = vector.load %arg5[%c0_7, %c0_8] : memref<8x512xbf16, #tpu.memory_space<vmem>>, vector<8x512xbf16>
    tpu.vector_store %arg5[%c0_7, %c0_8], %13 {strides = array<i32>} : memref<8x512xbf16, #tpu.memory_space<vmem>>, vector<8x512xbf16>,
    return
  }
  func.func @transform_0(%arg0: i32) -> (i32, i32) {
    %c0_i32 = arith.constant 0 : i32
    %c0_i32_0 = arith.constant 0 : i32
    return %arg0, %c0_i32 : i32, i32
  }
  func.func @transform_1(%arg0: i32) -> (i32, i32) {
    %c0_i32 = arith.constant 0 : i32
    %c0_i32_0 = arith.constant 0 : i32
    return %arg0, %c0_i32 : i32, i32
  }
  func.func @transform_2(%arg0: i32) -> (i32, i32) {
    %c0_i32 = arith.constant 0 : i32
    %c0_i32_0 = arith.constant 0 : i32
    %c0_i32_1 = arith.constant 0 : i32
    return %c0_i32, %c0_i32_0 : i32, i32
  }
  func.func @transform_3(%arg0: i32) -> (i32, i32) {
    %c0_i32 = arith.constant 0 : i32
    %c0_i32_0 = arith.constant 0 : i32
    %c0_i32_1 = arith.constant 0 : i32
    return %c0_i32, %c0_i32_0 : i32, i32
  }
  func.func @transform_4(%arg0: i32) -> (i32, i32) {
    %c0_i32 = arith.constant 0 : i32
    %c0_i32_0 = arith.constant 0 : i32
    return %arg0, %c0_i32 : i32, i32
  }
}

module attributes {stable_mosaic.version = 11 : i64} {
  func.func @_avgpool_kernel(%arg0: i32, %arg1: memref<1x1x512xbf16, #tpu.memory_space<vmem>>, %arg2: memref<1x1x512xf32, #tpu.memory_space<vmem>>) attributes {dimension_semantics = [#tpu.dimension_semantics<parallel>], iteration_bounds = array<i64: 2>, scalar_prefetch = 0 : i64, scratch_operands = 0 : i64, tpu.core_type = #tpu.core_type<tc>, window_params = [{transform_indices = @transform_0, window_bounds = array<i64: 1, 1, 512>}, {transform_indices = @transform_1, window_bounds = array<i64: 1, 1, 512>}]} {
    %c0 = arith.constant 0 : index
    %c0_0 = arith.constant 0 : index
    %c0_1 = arith.constant 0 : index
    %0 = vector.load %arg1[%c0, %c0_0, %c0_1] : memref<1x1x512xbf16, #tpu.memory_space<vmem>>, vector<1x1x512xbf16>
    %1 = vector.shape_cast %0 : vector<1x1x512xbf16> to vector<1x512xbf16>
    %2 = arith.extf %1 : vector<1x512xbf16> to vector<1x512xf32>
    %cst = arith.constant dense<0.000000e+00> : vector<512xf32>
    %3 = vector.multi_reduction <add>, %2, %cst [0] : vector<1x512xf32> to vector<512xf32>
    %4 = vector.shape_cast %3 : vector<512xf32> to vector<1x512xf32>
    %c0_2 = arith.constant 0 : index
    %c0_3 = arith.constant 0 : index
    %c0_4 = arith.constant 0 : index
    %5 = vector.load %arg2[%c0_2, %c0_3, %c0_4] : memref<1x1x512xf32, #tpu.memory_space<vmem>>, vector<1x1x512xf32>
    %6 = vector.shape_cast %5 : vector<1x1x512xf32> to vector<1x512xf32>
    %7 = vector.shape_cast %4 : vector<1x512xf32> to vector<1x1x512xf32>
    tpu.vector_store %arg2[%c0_2, %c0_3, %c0_4], %7 {strides = array<i32>} : memref<1x1x512xf32, #tpu.memory_space<vmem>>, vector<1x1x512xf32>,
    return
  }
  func.func @transform_0(%arg0: i32) -> (i32, i32, i32) {
    %c0_i32 = arith.constant 0 : i32
    %c0_i32_0 = arith.constant 0 : i32
    %c0_i32_1 = arith.constant 0 : i32
    return %arg0, %c0_i32, %c0_i32_0 : i32, i32, i32
  }
  func.func @transform_1(%arg0: i32) -> (i32, i32, i32) {
    %c0_i32 = arith.constant 0 : i32
    %c0_i32_0 = arith.constant 0 : i32
    %c0_i32_1 = arith.constant 0 : i32
    return %arg0, %c0_i32, %c0_i32_0 : i32, i32, i32
  }
}

module attributes {stable_mosaic.version = 11 : i64} {
  func.func @kernel(%arg0: i32, %arg1: i32, %arg2: i32, %arg3: memref<8x512xbf16, #tpu.memory_space<vmem>>, %arg4: memref<512x128xbf16, #tpu.memory_space<vmem>>, %arg5: memref<1x128xf32, #tpu.memory_space<vmem>>, %arg6: memref<8x128xf32, #tpu.memory_space<vmem>>, %arg7: memref<8x128xf32, #tpu.memory_space<vmem>>) attributes {dimension_semantics = [#tpu.dimension_semantics<parallel>, #tpu.dimension_semantics<parallel>, #tpu.dimension_semantics<arbitrary>], iteration_bounds = array<i64: 1, 1, 1>, scalar_prefetch = 0 : i64, scratch_operands = 1 : i64, tpu.core_type = #tpu.core_type<tc>, window_params = [{transform_indices = @transform_0, window_bounds = array<i64: 8, 512>}, {transform_indices = @transform_1, window_bounds = array<i64: 512, 128>}, {transform_indices = @transform_2, window_bounds = array<i64: 1, 128>}, {transform_indices = @transform_3, window_bounds = array<i64: 8, 128>}]} {
    %c0_i32 = arith.constant 0 : i32
    %0 = arith.cmpi eq, %arg2, %c0_i32 : i32
    %1 = arith.extui %0 : i1 to i32
    %c0_i32_0 = arith.constant 0 : i32
    %2 = arith.cmpi ne, %1, %c0_i32_0 : i32
    scf.if %2 {
      %cst_10 = arith.constant 0.000000e+00 : f32
      %12 = vector.broadcast %cst_10 : f32 to vector<8x128xf32>
      %c0_11 = arith.constant 0 : index
      %c0_12 = arith.constant 0 : index
      %13 = vector.load %arg7[%c0_11, %c0_12] : memref<8x128xf32, #tpu.memory_space<vmem>>, vector<8x128xf32>
      tpu.vector_store %arg7[%c0_11, %c0_12], %12 {strides = array<i32>} : memref<8x128xf32, #tpu.memory_space<vmem>>, vector<8x128xf32>,
    } else {
    }
    %c0 = arith.constant 0 : index
    %c0_1 = arith.constant 0 : index
    %3 = vector.load %arg7[%c0, %c0_1] : memref<8x128xf32, #tpu.memory_space<vmem>>, vector<8x128xf32>
    %c0_2 = arith.constant 0 : index
    %c0_3 = arith.constant 0 : index
    %4 = vector.load %arg3[%c0_2, %c0_3] : memref<8x512xbf16, #tpu.memory_space<vmem>>, vector<8x512xbf16>
    %c0_4 = arith.constant 0 : index
    %c0_5 = arith.constant 0 : index
    %5 = vector.load %arg4[%c0_4, %c0_5] : memref<512x128xbf16, #tpu.memory_space<vmem>>, vector<512x128xbf16>
    %cst = arith.constant dense<0.000000e+00> : vector<8x128xf32>
    %6 = tpu.matmul %4, %5, %cst {dimension_numbers = #tpu.dot_dimension_numbers<[1], [0], [0], [1], [0, 0, 1, 1], [], []>} : vector<8x512xbf16>, vector<512x128xbf16>, vector<8x128xf32> -> vector<8x128xf32>
    %7 = arith.addf %3, %6 : vector<8x128xf32>
    %c0_6 = arith.constant 0 : index
    %c0_7 = arith.constant 0 : index
    %8 = vector.load %arg7[%c0_6, %c0_7] : memref<8x128xf32, #tpu.memory_space<vmem>>, vector<8x128xf32>
    tpu.vector_store %arg7[%c0_6, %c0_7], %7 {strides = array<i32>} : memref<8x128xf32, #tpu.memory_space<vmem>>, vector<8x128xf32>,
    %c0_i32_8 = arith.constant 0 : i32
    %9 = arith.cmpi eq, %arg2, %c0_i32_8 : i32
    %10 = arith.extui %9 : i1 to i32
    %c0_i32_9 = arith.constant 0 : i32
    %11 = arith.cmpi ne, %10, %c0_i32_9 : i32
    scf.if %11 {
      %c0_10 = arith.constant 0 : index
      %c0_11 = arith.constant 0 : index
      %12 = vector.load %arg7[%c0_10, %c0_11] : memref<8x128xf32, #tpu.memory_space<vmem>>, vector<8x128xf32>
      %c0_12 = arith.constant 0 : index
      %c0_13 = arith.constant 0 : index
      %13 = vector.load %arg5[%c0_12, %c0_13] : memref<1x128xf32, #tpu.memory_space<vmem>>, vector<1x128xf32>
      %14 = vector.broadcast %13 : vector<1x128xf32> to vector<8x128xf32>
      %15 = arith.addf %12, %14 : vector<8x128xf32>
      %c0_14 = arith.constant 0 : index
      %c0_15 = arith.constant 0 : index
      %16 = vector.load %arg6[%c0_14, %c0_15] : memref<8x128xf32, #tpu.memory_space<vmem>>, vector<8x128xf32>
      tpu.vector_store %arg6[%c0_14, %c0_15], %15 {strides = array<i32>} : memref<8x128xf32, #tpu.memory_space<vmem>>, vector<8x128xf32>,
    } else {
    }
    return
  }
  func.func @transform_0(%arg0: i32, %arg1: i32, %arg2: i32) -> (i32, i32) {
    %c0_i32 = arith.constant 0 : i32
    return %arg0, %arg2 : i32, i32
  }
  func.func @transform_1(%arg0: i32, %arg1: i32, %arg2: i32) -> (i32, i32) {
    %c0_i32 = arith.constant 0 : i32
    return %arg2, %arg1 : i32, i32
  }
  func.func @transform_2(%arg0: i32, %arg1: i32, %arg2: i32) -> (i32, i32) {
    %c0_i32 = arith.constant 0 : i32
    %c0_i32_0 = arith.constant 0 : i32
    return %c0_i32, %arg1 : i32, i32
  }
  func.func @transform_3(%arg0: i32, %arg1: i32, %arg2: i32) -> (i32, i32) {
    %c0_i32 = arith.constant 0 : i32
    return %arg0, %arg1 : i32, i32
  }
}

</mosaic_0001>

<bundles_post_ra>
// kernel: tile.43
= control target key start
LH: loop header
LB: loop body
LE: loop exit
PB: predicated region body
PF: predicated region fallthrough
CT: control target
= control target key end

     0   :  { %s22_s0 = inlined_call_operand.vmem [shape: f32[64], index: 0, kind: input, shape index: {}]   ;;  %s23_s1 = inlined_call_operand.vmem [shape: f32[2,64], index: 1, kind: output, shape index: {}]  }
   0x1   :  { %v4_v0 = vld [vmem:[%s22_s0] ss:$0 sm:$0xff] }
   0x2   :  { %5 = vst [vmem:[%s23_s1] sm:$0x3] %v4_v0 }

// kernel: tile.48
= control target key start
LH: loop header
LB: loop body
LE: loop exit
PB: predicated region body
PF: predicated region fallthrough
CT: control target
= control target key end

     0   :  { %vm7_vm0 = vcmask 523264   ;;  %vm13_vm1 = vcmask 1048064   ;;  %s39_s0 = inlined_call_operand.vmem [shape: f32[2,64], index: 0, kind: input, shape index: {}]   ;;  %s40_s1 = inlined_call_operand.vmem [shape: f32[1,128], index: 1, kind: output, shape index: {}]  }
   0x1   :  { %v4_v0 = vld [vmem:[%s39_s0] sm:$0x3]  ;;  %s22_s0 = smov 64  }
   0x2   :  { %5 = vst [vmem:[#allocation1] sm:$0x3] %v4_v0 }
   0x9   :  { %v10_v1 = vld [vmem:[#allocation1 + $0x1] sm:$0x1]   ;;  %v6_v2 = vld [vmem:[#allocation1] sm:$0x1]  }
   0xa   :  { %11 = vrot.lane.b32.xlu0 %v10_v1, %s22_s0  ;;  %8 = vst.msk [vmem:[#allocation0] sm:$0x1] %vm7_vm0, %v6_v2  }
  0x7c   :  { %v12_v3 = vpop.permute.xlu0 %11  }
  0x7d   :  { %14 = vst.msk [vmem:[#allocation0] sm:$0x1] %vm13_vm1, %v12_v3  }
  0x84   :  { %v17_v4 = vld [vmem:[#allocation0] sm:$0x1] }
  0x85   :  { %20 = vst [vmem:[%s40_s1] sm:$0x1] %v17_v4 }

// kernel: forward.36
= control target key start
LH: loop header
LB: loop body
LE: loop exit
PB: predicated region body
PF: predicated region fallthrough
CT: control target
= control target key end

     0   :  { %s616_s0 = inlined_call_operand.vmem [shape: bf16[256,128], index: 0, kind: input, shape index: {}]   ;;  %s617_s1 = inlined_call_operand.vmem [shape: f32[1,128], index: 1, kind: input, shape index: {}]   ;;  %s618_s2 = inlined_call_operand.vmem [shape: f32[1,128], index: 2, kind: input, shape index: {}]   ;;  %s619_s3 = inlined_call_operand.vmem [shape: bf16[256,128], index: 3, kind: output, shape index: {}]  }
   0x1   :  { %v251_v0 = vld [vmem:[%s616_s0] sm:$0xff]   ;;  %v394_v5 = vld [vmem:[%s616_s0 + $0x8] sm:$0xff]   ;;  %v395_v8 = vld [vmem:[%s616_s0 + $0x10] sm:$0xff]  }
   0x2   :  { %v452_v1 = vld [vmem:[%s617_s1] ss:$0 sm:$0xff]  ;;  %v252_v2 = vunpack.c.l.bf16 %v251_v0  ;;  %v253_v3 = vunpack.c.h.bf16 %v251_v0  ;;  %v256_v6 = vunpack.c.l.bf16 %v394_v5  ;;  %v257_v7 = vunpack.c.h.bf16 %v394_v5  ;;  %v396_v9 = vld [vmem:[%s616_s0 + $0x18] sm:$0xff]   ;;  %v398_v35 = vld [vmem:[%s616_s0 + $0x28] sm:$0xff]  }
   0x3   :  { %v457_v4 = vld [vmem:[%s618_s2] ss:$0 sm:$0xff]  ;;  %v260_v12 = vunpack.c.l.bf16 %v395_v8  ;;  %v261_v13 = vunpack.c.h.bf16 %v395_v8  ;;  %v264_v16 = vunpack.c.l.bf16 %v396_v9  ;;  %v265_v17 = vunpack.c.h.bf16 %v396_v9  ;;  %v399_v40 = vld [vmem:[%s616_s0 + $0x30] sm:$0xff]   ;;  %v400_v45 = vld [vmem:[%s616_s0 + $0x38] sm:$0xff]  }
   0x4   :  { %v82_v10 = vmul.f32 %v452_v1, %v252_v2  ;;  %v83_v11 = vmul.f32 %v452_v1, %v253_v3  ;;  %v84_v14 = vmul.f32 %v452_v1, %v256_v6  ;;  %v85_v15 = vmul.f32 %v452_v1, %v257_v7  ;;  %v397_v26 = vld [vmem:[%s616_s0 + $0x20] sm:$0xff]  }
   0x5   :  { %v86_v20 = vmul.f32 %v452_v1, %v260_v12  ;;  %v87_v21 = vmul.f32 %v452_v1, %v261_v13  ;;  %v88_v24 = vmul.f32 %v452_v1, %v264_v16  ;;  %v89_v25 = vmul.f32 %v452_v1, %v265_v17  ;;  %v401_v62 = vld [vmem:[%s616_s0 + $0x40] sm:$0xff]   ;;  %v402_v13 = vld [vmem:[%s616_s0 + $0x48] sm:$0xff]  }
   0x6   :  { %v118_v18 = vadd.f32 %v457_v4, %v82_v10  ;;  %v119_v19 = vadd.f32 %v457_v4, %v83_v11  ;;  %v120_v22 = vadd.f32 %v457_v4, %v84_v14  ;;  %v121_v23 = vadd.f32 %v457_v4, %v85_v15 }
   0x7   :  { %v122_v29 = vadd.f32 %v457_v4, %v86_v20  ;;  %v123_v30 = vadd.f32 %v457_v4, %v87_v21  ;;  %v124_v33 = vadd.f32 %v457_v4, %v88_v24  ;;  %v125_v34 = vadd.f32 %v457_v4, %v89_v25 }
   0x8   :  { %v150_v27 = vmax.f32 %v118_v18, 0.0  ;;  %v151_v28 = vmax.f32 %v119_v19, 0.0  ;;  %v152_v31 = vmax.f32 %v120_v22, 0.0  ;;  %v153_v32 = vmax.f32 %v121_v23, 0.0  ;;  %v403_v18 = vld [vmem:[%s616_s0 + $0x50] sm:$0xff]   ;;  %v404_v23 = vld [vmem:[%s616_s0 + $0x58] sm:$0xff]  }
   0x9   :  { %v154_v37 = vmax.f32 %v122_v29, 0.0  ;;  %v155_v38 = vmax.f32 %v123_v30, 0.0  ;;  %v268_v39 = vunpack.c.l.bf16 %v397_v26  ;;  %v156_v42 = vmax.f32 %v124_v33, 0.0 }
   0xa   :  { %v317_v36 = vpack.c.bf16 %v151_v28, %v150_v27  ;;  %v322_v41 = vpack.c.bf16 %v153_v32, %v152_v31  ;;  %v157_v43 = vmax.f32 %v125_v34, 0.0  ;;  %v269_v44 = vunpack.c.h.bf16 %v397_v26 }
   0xb   :  { %v327_v46 = vpack.c.bf16 %v155_v38, %v154_v37  ;;  %v90_v47 = vmul.f32 %v452_v1, %v268_v39  ;;  %v272_v48 = vunpack.c.l.bf16 %v398_v35  ;;  %v273_v49 = vunpack.c.h.bf16 %v398_v35 }
   0xc   :  { %318 = vst [vmem:[%s619_s3] sm:$0xff] %v317_v36   ;;  %v332_v50 = vpack.c.bf16 %v157_v43, %v156_v42  ;;  %v91_v51 = vmul.f32 %v452_v1, %v269_v44  ;;  %v276_v52 = vunpack.c.l.bf16 %v399_v40  ;;  %v277_v53 = vunpack.c.h.bf16 %v399_v40  ;;  %v405_v36 = vld [vmem:[%s616_s0 + $0x60] sm:$0xff]  }
   0xd   :  { %409 = vst [vmem:[%s619_s3 + $0x8] sm:$0xff] %v322_v41   ;;  %v126_v54 = vadd.f32 %v457_v4, %v90_v47  ;;  %v92_v55 = vmul.f32 %v452_v1, %v272_v48  ;;  %v93_v56 = vmul.f32 %v452_v1, %v273_v49  ;;  %v280_v57 = vunpack.c.l.bf16 %v400_v45 }
   0xe   :  { %410 = vst [vmem:[%s619_s3 + $0x10] sm:$0xff] %v327_v46   ;;  %v127_v58 = vadd.f32 %v457_v4, %v91_v51  ;;  %v94_v59 = vmul.f32 %v452_v1, %v276_v52  ;;  %v95_v60 = vmul.f32 %v452_v1, %v277_v53  ;;  %v281_v61 = vunpack.c.h.bf16 %v400_v45  ;;  %v406_v53 = vld [vmem:[%s616_s0 + $0x68] sm:$0xff]  }
   0xf   :  { %411 = vst [vmem:[%s619_s3 + $0x18] sm:$0xff] %v332_v50   ;;  %v158_v63 = vmax.f32 %v126_v54, 0.0  ;;  %v128_v0 = vadd.f32 %v457_v4, %v92_v55  ;;  %v129_v2 = vadd.f32 %v457_v4, %v93_v56  ;;  %v96_v3 = vmul.f32 %v452_v1, %v280_v57 }
  0x10   :  { %v159_v5 = vmax.f32 %v127_v58, 0.0  ;;  %v130_v6 = vadd.f32 %v457_v4, %v94_v59  ;;  %v131_v7 = vadd.f32 %v457_v4, %v95_v60  ;;  %v97_v8 = vmul.f32 %v452_v1, %v281_v61  ;;  %v407_v58 = vld [vmem:[%s616_s0 + $0x70] sm:$0xff]  }
  0x11   :  { %v160_v9 = vmax.f32 %v128_v0, 0.0  ;;  %v161_v10 = vmax.f32 %v129_v2, 0.0  ;;  %v132_v11 = vadd.f32 %v457_v4, %v96_v3  ;;  %v284_v12 = vunpack.c.l.bf16 %v401_v62 }
  0x12   :  { %v337_v14 = vpack.c.bf16 %v159_v5, %v158_v63  ;;  %v162_v15 = vmax.f32 %v130_v6, 0.0  ;;  %v163_v16 = vmax.f32 %v131_v7, 0.0  ;;  %v133_v17 = vadd.f32 %v457_v4, %v97_v8  ;;  %v408_v63 = vld [vmem:[%s616_s0 + $0x78] sm:$0xff]  }
  0x13   :  { %v342_v19 = vpack.c.bf16 %v161_v10, %v160_v9  ;;  %v164_v20 = vmax.f32 %v132_v11, 0.0  ;;  %v285_v21 = vunpack.c.h.bf16 %v401_v62  ;;  %v98_v22 = vmul.f32 %v452_v1, %v284_v12 }
  0x14   :  { %412 = vst [vmem:[%s619_s3 + $0x20] sm:$0xff] %v337_v14   ;;  %v347_v24 = vpack.c.bf16 %v163_v16, %v162_v15  ;;  %v165_v25 = vmax.f32 %v133_v17, 0.0  ;;  %v288_v26 = vunpack.c.l.bf16 %v402_v13  ;;  %v289_v27 = vunpack.c.h.bf16 %v402_v13 }
  0x15   :  { %413 = vst [vmem:[%s619_s3 + $0x28] sm:$0xff] %v342_v19   ;;  %v99_v28 = vmul.f32 %v452_v1, %v285_v21  ;;  %v134_v29 = vadd.f32 %v457_v4, %v98_v22  ;;  %v292_v30 = vunpack.c.l.bf16 %v403_v18  ;;  %v293_v31 = vunpack.c.h.bf16 %v403_v18 }
  0x16   :  { %414 = vst [vmem:[%s619_s3 + $0x30] sm:$0xff] %v347_v24   ;;  %v352_v32 = vpack.c.bf16 %v165_v25, %v164_v20  ;;  %v100_v33 = vmul.f32 %v452_v1, %v288_v26  ;;  %v101_v34 = vmul.f32 %v452_v1, %v289_v27  ;;  %v296_v35 = vunpack.c.l.bf16 %v404_v23 }
  0x17   :  { %v135_v37 = vadd.f32 %v457_v4, %v99_v28  ;;  %v166_v38 = vmax.f32 %v134_v29, 0.0  ;;  %v102_v39 = vmul.f32 %v452_v1, %v292_v30  ;;  %v103_v40 = vmul.f32 %v452_v1, %v293_v31 }
  0x18   :  { %415 = vst [vmem:[%s619_s3 + $0x38] sm:$0xff] %v352_v32   ;;  %v136_v41 = vadd.f32 %v457_v4, %v100_v33  ;;  %v137_v42 = vadd.f32 %v457_v4, %v101_v34  ;;  %v297_v43 = vunpack.c.h.bf16 %v404_v23  ;;  %v104_v44 = vmul.f32 %v452_v1, %v296_v35 }
  0x19   :  { %v167_v45 = vmax.f32 %v135_v37, 0.0  ;;  %v138_v46 = vadd.f32 %v457_v4, %v102_v39  ;;  %v139_v47 = vadd.f32 %v457_v4, %v103_v40  ;;  %v300_v48 = vunpack.c.l.bf16 %v405_v36 }
  0x1a   :  { %v168_v49 = vmax.f32 %v136_v41, 0.0  ;;  %v169_v50 = vmax.f32 %v137_v42, 0.0  ;;  %v105_v51 = vmul.f32 %v452_v1, %v297_v43  ;;  %v140_v52 = vadd.f32 %v457_v4, %v104_v44 }
  0x1b   :  { %v357_v54 = vpack.c.bf16 %v167_v45, %v166_v38  ;;  %v170_v55 = vmax.f32 %v138_v46, 0.0  ;;  %v171_v56 = vmax.f32 %v139_v47, 0.0  ;;  %v301_v57 = vunpack.c.h.bf16 %v405_v36 }
  0x1c   :  { %v362_v59 = vpack.c.bf16 %v169_v50, %v168_v49  ;;  %v141_v60 = vadd.f32 %v457_v4, %v105_v51  ;;  %v172_v61 = vmax.f32 %v140_v52, 0.0  ;;  %v106_v62 = vmul.f32 %v452_v1, %v300_v48 }
  0x1d   :  { %416 = vst [vmem:[%s619_s3 + $0x40] sm:$0xff] %v357_v54   ;;  %v367_v0 = vpack.c.bf16 %v171_v56, %v170_v55  ;;  %v107_v2 = vmul.f32 %v452_v1, %v301_v57  ;;  %v304_v3 = vunpack.c.l.bf16 %v406_v53  ;;  %v305_v5 = vunpack.c.h.bf16 %v406_v53 }
  0x1e   :  { %417 = vst [vmem:[%s619_s3 + $0x48] sm:$0xff] %v362_v59   ;;  %v173_v6 = vmax.f32 %v141_v60, 0.0  ;;  %v142_v7 = vadd.f32 %v457_v4, %v106_v62  ;;  %v308_v8 = vunpack.c.l.bf16 %v407_v58  ;;  %v309_v9 = vunpack.c.h.bf16 %v407_v58 }
  0x1f   :  { %418 = vst [vmem:[%s619_s3 + $0x50] sm:$0xff] %v367_v0   ;;  %v143_v10 = vadd.f32 %v457_v4, %v107_v2  ;;  %v108_v11 = vmul.f32 %v452_v1, %v304_v3  ;;  %v109_v12 = vmul.f32 %v452_v1, %v305_v5  ;;  %v312_v13 = vunpack.c.l.bf16 %v408_v63 }
  0x20   :  { %v372_v14 = vpack.c.bf16 %v173_v6, %v172_v61  ;;  %v174_v15 = vmax.f32 %v142_v7, 0.0  ;;  %v110_v16 = vmul.f32 %v452_v1, %v308_v8  ;;  %v111_v17 = vmul.f32 %v452_v1, %v309_v9 }
  0x21   :  { %v175_v18 = vmax.f32 %v143_v10, 0.0  ;;  %v144_v19 = vadd.f32 %v457_v4, %v108_v11  ;;  %v145_v20 = vadd.f32 %v457_v4, %v109_v12  ;;  %v313_v21 = vunpack.c.h.bf16 %v408_v63 }
  0x22   :  { %419 = vst [vmem:[%s619_s3 + $0x58] sm:$0xff] %v372_v14   ;;  %v146_v22 = vadd.f32 %v457_v4, %v110_v16  ;;  %v147_v23 = vadd.f32 %v457_v4, %v111_v17  ;;  %v112_v24 = vmul.f32 %v452_v1, %v312_v13 }
  0x23   :  { %v377_v25 = vpack.c.bf16 %v175_v18, %v174_v15  ;;  %v176_v26 = vmax.f32 %v144_v19, 0.0  ;;  %v177_v27 = vmax.f32 %v145_v20, 0.0  ;;  %v113_v28 = vmul.f32 %v452_v1, %v313_v21 }
  0x24   :  { %v178_v29 = vmax.f32 %v146_v22, 0.0  ;;  %v179_v30 = vmax.f32 %v147_v23, 0.0  ;;  %v148_v31 = vadd.f32 %v457_v4, %v112_v24 }
  0x25   :  { %420 = vst [vmem:[%s619_s3 + $0x60] sm:$0xff] %v377_v25   ;;  %v382_v32 = vpack.c.bf16 %v177_v27, %v176_v26  ;;  %v149_v33 = vadd.f32 %v457_v4, %v113_v28 }
  0x26   :  { %v387_v34 = vpack.c.bf16 %v179_v30, %v178_v29  ;;  %v180_v35 = vmax.f32 %v148_v31, 0.0 }
  0x27   :  { %421 = vst [vmem:[%s619_s3 + $0x68] sm:$0xff] %v382_v32   ;;  %v181_v36 = vmax.f32 %v149_v33, 0.0 }
  0x28   :  { %422 = vst [vmem:[%s619_s3 + $0x70] sm:$0xff] %v387_v34  }
  0x29   :  { %v392_v1 = vpack.c.bf16 %v181_v36, %v180_v35 }
  0x2b   :  { %423 = vst [vmem:[%s619_s3 + $0x78] sm:$0xff] %v392_v1  }

// kernel: forward.35
= control target key start
LH: loop header
LB: loop body
LE: loop exit
PB: predicated region body
PF: predicated region fallthrough
CT: control target
= control target key end

     0   :  { %s2426_s15 = smov 0   ;;  %s2428_s16 = smov 0   ;;  %s2982_s0 = inlined_call_operand.vmem [shape: bf16[512,1152], index: 0, kind: input, shape index: {}]   ;;  %s2983_s1 = inlined_call_operand.vmem [shape: bf16[1152,128], index: 1, kind: input, shape index: {}]   ;;  %s2984_s2 = inlined_call_operand.vmem [shape: bf16[512,128], index: 2, kind: output, shape index: {0}]   ;;  %s2985_s3 = inlined_call_operand.vmem [shape: f32[1,128], index: 3, kind: output, shape index: {1}]   ;;  %s2986_s4 = inlined_call_operand.vmem [shape: f32[1,128], index: 4, kind: output, shape index: {2}]  }
   0x1   :  { %s2430_s17 = smov 0   ;;  %s2432_s18 = smov 0  }
   0x2   :  { %s2434_s19 = smov 0   ;;  %s2436_s20 = smov 0  }
   0x3   :  { %s2438_s21 = smov 0  }
   0x4 LB: > { %s27_s22 = sadd.s32 1, %s2389_s19  ;;  %s30_s23 = sadd.s32 1, %s2393_s20  ;;  %s2397_s21 = sphi %s2438_s21, %s15_s21   ;;  %s2393_s20 = sphi %s2436_s20, %s2993_s20   ;;  %s2389_s19 = sphi %s2434_s19, %s2992_s19   ;;  %s2385_s18 = sphi %s2432_s18, %s2991_s18   ;;  %s2381_s17 = sphi %s2430_s17, %s2990_s17   ;;  %s2377_s16 = sphi %s2428_s16, %s2989_s16   ;;  %s2373_s15 = sphi %s2426_s15, %s2988_s15  }
   0x5   : > { %p28_p0 = scmp.ge.s32.totalorder %s27_s22, 3  ;;  %p50_p1 = scmp.ne.s32.totalorder %s2377_s16, %s2373_s15 }
   0x6   : > { %p51_p2 = scmp.eq.s32.totalorder %s2397_s21, 0  ;;  %s43_s27 = sadd.s32 1, %s2377_s16 }
   0x7   : > { %s2995_s22 = smov (%p28_p0, %s27_s22), 0  ;;  %s2997_s23 = smov (!%p28_p0, %s30_s23), %s2393_s20 }
   0x8   : > { %p52_p3 = por %p51_p2, %p50_p1  ;;  %p32_p4 = scmp.ge.s32.totalorder %s2997_s23, 2 }
   0x9   : > { %s39_s24 = ssub.s32 %s2389_s19, %s2995_s22  ;;  %p1725_p6 = scmp.ge.s32.totalorder %s2397_s21, 6 }
   0xa   : > { %s2999_s23 = smov (%p32_p4, %s2997_s23), 0 }
   0xb   : > { %s38_s25 = ssub.s32 %s2393_s20, %s2999_s23  ;;  %184 = sbr.rel (%p1725_p6) target bundleno = 89 (0x59), region = 16 }
   0xc   : > { %s40_s26 = sor.u32 %s39_s24, %s38_s25 }
   0xd   : > { %p41_p5 = scmp.eq.s32.totalorder %s40_s26, 0 }
   0xf   : > { %s2477_s28 = scalar_select %p41_p5, %s2377_s16, %s43_s27  }
  0x10   : > { %187 = sbr.rel (!%p52_p3) target bundleno = 89 (0x59), region = 20  ;;  %s189_s29 = sand.u32 (%p52_p3), 1, %s2377_s16  }
  0x11   : > { %s193_s30 = smul.u32 (%p52_p3), 3, %s2389_s19 }
  0x12   : > { %s2282_s5 = smul.u32 (%p52_p3), 384, %s189_s29 }
  0x13   : > { %s2283_s6 = smul.u32 (%p52_p3), 288, %s2393_s20 }
  0x14   : > { %s2491_s12 = scalar_lea.vmem (%p52_p3), [#allocation3], %s2282_s5 }
  0x15   : > { %s195_s7 = sadd.s32 %s2283_s6, %s193_s30 }
  0x16   : > { %s1728_s8 = sshll.u32 %s195_s7, 2 }
  0x17   : > { %s2486_s11 = scalar_lea.vmem %s2982_s0, %s1728_s8 }
  0x18   : > { %v212_v0 = vld [vmem:[%s2486_s11] sm:$0xff]  ;;  %v216_v2 = vld [vmem:[%s2486_s11 + $0x48] sm:$0xff]  ;;  %v220_v4 = vld [vmem:[%s2486_s11 + $0x90] sm:$0xff] }
  0x19   : > { %v214_v1 = vld [vmem:[%s2486_s11 + $0x24] sm:$0xff]  ;;  %213 = vst [vmem:[%s2491_s12] sm:$0xff] %v212_v0  ;;  %v218_v3 = vld [vmem:[%s2486_s11 + $0x6c] sm:$0xff]  ;;  %v222_v5 = vld [vmem:[%s2486_s11 + $0xb4] sm:$0xff] }
  0x1a   : > { %215 = vst [vmem:[%s2491_s12 + $0xc] sm:$0xff] %v214_v1  ;;  %v224_v6 = vld [vmem:[%s2486_s11 + $0xd8] sm:$0xff]  ;;  %v228_v8 = vld [vmem:[%s2486_s11 + $0x120] sm:$0xff]  ;;  %v232_v10 = vld [vmem:[%s2486_s11 + $0x168] sm:$0xff] }
  0x1b   : > { %217 = vst [vmem:[%s2491_s12 + $0x18] sm:$0xff] %v216_v2  ;;  %v226_v7 = vld [vmem:[%s2486_s11 + $0xfc] sm:$0xff]  ;;  %v230_v9 = vld [vmem:[%s2486_s11 + $0x144] sm:$0xff]  ;;  %v234_v11 = vld [vmem:[%s2486_s11 + $0x18c] sm:$0xff] }
  0x1c   : > { %219 = vst [vmem:[%s2491_s12 + $0x24] sm:$0xff] %v218_v3  ;;  %v236_v12 = vld [vmem:[%s2486_s11 + $0x1b0] sm:$0xff]  ;;  %v240_v14 = vld [vmem:[%s2486_s11 + $0x1f8] sm:$0xff]  ;;  %v244_v16 = vld [vmem:[%s2486_s11 + $0x240] sm:$0xff] }
  0x1d   : > { %221 = vst [vmem:[%s2491_s12 + $0x30] sm:$0xff] %v220_v4  ;;  %v238_v13 = vld [vmem:[%s2486_s11 + $0x1d4] sm:$0xff]  ;;  %v242_v15 = vld [vmem:[%s2486_s11 + $0x21c] sm:$0xff]  ;;  %v246_v17 = vld [vmem:[%s2486_s11 + $0x264] sm:$0xff] }
  0x1e   : > { %223 = vst [vmem:[%s2491_s12 + $0x3c] sm:$0xff] %v222_v5  ;;  %v248_v18 = vld [vmem:[%s2486_s11 + $0x288] sm:$0xff]  ;;  %v252_v20 = vld [vmem:[%s2486_s11 + $0x2d0] sm:$0xff]  ;;  %v256_v22 = vld [vmem:[%s2486_s11 + $0x318] sm:$0xff] }
  0x1f   : > { %225 = vst [vmem:[%s2491_s12 + $0x48] sm:$0xff] %v224_v6  ;;  %v250_v19 = vld [vmem:[%s2486_s11 + $0x2ac] sm:$0xff]  ;;  %v254_v21 = vld [vmem:[%s2486_s11 + $0x2f4] sm:$0xff]  ;;  %v258_v23 = vld [vmem:[%s2486_s11 + $0x33c] sm:$0xff] }
  0x20   : > { %227 = vst [vmem:[%s2491_s12 + $0x54] sm:$0xff] %v226_v7  ;;  %v260_v24 = vld [vmem:[%s2486_s11 + $0x360] sm:$0xff]  ;;  %v264_v26 = vld [vmem:[%s2486_s11 + $0x3a8] sm:$0xff]  ;;  %v268_v28 = vld [vmem:[%s2486_s11 + $0x3f0] sm:$0xff] }
  0x21   : > { %229 = vst [vmem:[%s2491_s12 + $0x60] sm:$0xff] %v228_v8  ;;  %v262_v25 = vld [vmem:[%s2486_s11 + $0x384] sm:$0xff]  ;;  %v266_v27 = vld [vmem:[%s2486_s11 + $0x3cc] sm:$0xff]  ;;  %v270_v29 = vld [vmem:[%s2486_s11 + $0x414] sm:$0xff] }
  0x22   : > { %231 = vst [vmem:[%s2491_s12 + $0x6c] sm:$0xff] %v230_v9  ;;  %v272_v30 = vld [vmem:[%s2486_s11 + $0x438] sm:$0xff]  ;;  %v1729_v32 = vld [vmem:[%s2486_s11 + $0x8] sm:$0xf]  ;;  %v1731_v33 = vld [vmem:[%s2486_s11 + $0x2c] sm:$0xf] }
  0x23   : > { %233 = vst [vmem:[%s2491_s12 + $0x78] sm:$0xff] %v232_v10  ;;  %v274_v31 = vld [vmem:[%s2486_s11 + $0x45c] sm:$0xff]  ;;  %v1733_v34 = vld [vmem:[%s2486_s11 + $0x50] sm:$0xf]  ;;  %v1735_v35 = vld [vmem:[%s2486_s11 + $0x74] sm:$0xf] }
  0x24   : > { %235 = vst [vmem:[%s2491_s12 + $0x84] sm:$0xff] %v234_v11  ;;  %v1737_v36 = vld [vmem:[%s2486_s11 + $0x98] sm:$0xf]  ;;  %v1739_v37 = vld [vmem:[%s2486_s11 + $0xbc] sm:$0xf] }
  0x25   : > { %237 = vst [vmem:[%s2491_s12 + $0x90] sm:$0xff] %v236_v12  ;;  %v1741_v38 = vld [vmem:[%s2486_s11 + $0xe0] sm:$0xf]  ;;  %v1743_v39 = vld [vmem:[%s2486_s11 + $0x104] sm:$0xf] }
  0x26   : > { %239 = vst [vmem:[%s2491_s12 + $0x9c] sm:$0xff] %v238_v13  ;;  %v1745_v40 = vld [vmem:[%s2486_s11 + $0x128] sm:$0xf]  ;;  %v1747_v41 = vld [vmem:[%s2486_s11 + $0x14c] sm:$0xf] }
  0x27   : > { %241 = vst [vmem:[%s2491_s12 + $0xa8] sm:$0xff] %v240_v14  ;;  %v1749_v42 = vld [vmem:[%s2486_s11 + $0x170] sm:$0xf]  ;;  %v1751_v43 = vld [vmem:[%s2486_s11 + $0x194] sm:$0xf] }
  0x28   : > { %243 = vst [vmem:[%s2491_s12 + $0xb4] sm:$0xff] %v242_v15  ;;  %v1753_v44 = vld [vmem:[%s2486_s11 + $0x1b8] sm:$0xf]  ;;  %v1755_v45 = vld [vmem:[%s2486_s11 + $0x1dc] sm:$0xf] }
  0x29   : > { %245 = vst [vmem:[%s2491_s12 + $0xc0] sm:$0xff] %v244_v16  ;;  %v1757_v46 = vld [vmem:[%s2486_s11 + $0x200] sm:$0xf]  ;;  %v1759_v47 = vld [vmem:[%s2486_s11 + $0x224] sm:$0xf] }
  0x2a   : > { %247 = vst [vmem:[%s2491_s12 + $0xcc] sm:$0xff] %v246_v17  ;;  %v1761_v48 = vld [vmem:[%s2486_s11 + $0x248] sm:$0xf]  ;;  %v1763_v49 = vld [vmem:[%s2486_s11 + $0x26c] sm:$0xf] }
  0x2b   : > { %249 = vst [vmem:[%s2491_s12 + $0xd8] sm:$0xff] %v248_v18  ;;  %v1765_v50 = vld [vmem:[%s2486_s11 + $0x290] sm:$0xf]  ;;  %v1767_v51 = vld [vmem:[%s2486_s11 + $0x2b4] sm:$0xf] }
  0x2c   : > { %251 = vst [vmem:[%s2491_s12 + $0xe4] sm:$0xff] %v250_v19  ;;  %v1769_v52 = vld [vmem:[%s2486_s11 + $0x2d8] sm:$0xf]  ;;  %v1771_v53 = vld [vmem:[%s2486_s11 + $0x2fc] sm:$0xf] }
  0x2d   : > { %253 = vst [vmem:[%s2491_s12 + $0xf0] sm:$0xff] %v252_v20  ;;  %v1773_v54 = vld [vmem:[%s2486_s11 + $0x320] sm:$0xf]  ;;  %v1775_v55 = vld [vmem:[%s2486_s11 + $0x344] sm:$0xf] }
  0x2e   : > { %255 = vst [vmem:[%s2491_s12 + $0xfc] sm:$0xff] %v254_v21  ;;  %v1777_v56 = vld [vmem:[%s2486_s11 + $0x368] sm:$0xf]  ;;  %v1779_v57 = vld [vmem:[%s2486_s11 + $0x38c] sm:$0xf] }
  0x2f   : > { %257 = vst [vmem:[%s2491_s12 + $0x108] sm:$0xff] %v256_v22  ;;  %v1781_v58 = vld [vmem:[%s2486_s11 + $0x3b0] sm:$0xf]  ;;  %v1783_v59 = vld [vmem:[%s2486_s11 + $0x3d4] sm:$0xf] }
  0x30   : > { %259 = vst [vmem:[%s2491_s12 + $0x114] sm:$0xff] %v258_v23  ;;  %v1785_v60 = vld [vmem:[%s2486_s11 + $0x3f8] sm:$0xf]  ;;  %v1787_v61 = vld [vmem:[%s2486_s11 + $0x41c] sm:$0xf] }
  0x31   : > { %261 = vst [vmem:[%s2491_s12 + $0x120] sm:$0xff] %v260_v24  ;;  %v1789_v62 = vld [vmem:[%s2486_s11 + $0x440] sm:$0xf]  ;;  %v1791_v63 = vld [vmem:[%s2486_s11 + $0x464] sm:$0xf] }
  0x32   : > { %263 = vst [vmem:[%s2491_s12 + $0x12c] sm:$0xff] %v262_v25 }
  0x33   : > { %265 = vst [vmem:[%s2491_s12 + $0x138] sm:$0xff] %v264_v26 }
  0x34   : > { %267 = vst [vmem:[%s2491_s12 + $0x144] sm:$0xff] %v266_v27 }
  0x35   : > { %269 = vst [vmem:[%s2491_s12 + $0x150] sm:$0xff] %v268_v28 }
  0x36   : > { %271 = vst [vmem:[%s2491_s12 + $0x15c] sm:$0xff] %v270_v29 }
  0x37   : > { %273 = vst [vmem:[%s2491_s12 + $0x168] sm:$0xff] %v272_v30 }
  0x38   : > { %275 = vst [vmem:[%s2491_s12 + $0x174] sm:$0xff] %v274_v31 }
  0x39   : > { %1730 = vst [vmem:[%s2491_s12 + $0x8] sm:$0xf] %v1729_v32 }
  0x3a   : > { %1732 = vst [vmem:[%s2491_s12 + $0x14] sm:$0xf] %v1731_v33 }
  0x3b   : > { %1734 = vst [vmem:[%s2491_s12 + $0x20] sm:$0xf] %v1733_v34 }
  0x3c   : > { %1736 = vst [vmem:[%s2491_s12 + $0x2c] sm:$0xf] %v1735_v35 }
  0x3d   : > { %1738 = vst [vmem:[%s2491_s12 + $0x38] sm:$0xf] %v1737_v36 }
  0x3e   : > { %1740 = vst [vmem:[%s2491_s12 + $0x44] sm:$0xf] %v1739_v37 }
  0x3f   : > { %1742 = vst [vmem:[%s2491_s12 + $0x50] sm:$0xf] %v1741_v38 }
  0x40   : > { %1744 = vst [vmem:[%s2491_s12 + $0x5c] sm:$0xf] %v1743_v39 }
  0x41   : > { %1746 = vst [vmem:[%s2491_s12 + $0x68] sm:$0xf] %v1745_v40 }
  0x42   : > { %1748 = vst [vmem:[%s2491_s12 + $0x74] sm:$0xf] %v1747_v41 }
  0x43   : > { %1750 = vst [vmem:[%s2491_s12 + $0x80] sm:$0xf] %v1749_v42 }
  0x44   : > { %1752 = vst [vmem:[%s2491_s12 + $0x8c] sm:$0xf] %v1751_v43 }
  0x45   : > { %1754 = vst [vmem:[%s2491_s12 + $0x98] sm:$0xf] %v1753_v44 }
  0x46   : > { %1756 = vst [vmem:[%s2491_s12 + $0xa4] sm:$0xf] %v1755_v45 }
  0x47   : > { %1758 = vst [vmem:[%s2491_s12 + $0xb0] sm:$0xf] %v1757_v46 }
  0x48   : > { %1760 = vst [vmem:[%s2491_s12 + $0xbc] sm:$0xf] %v1759_v47 }
  0x49   : > { %1762 = vst [vmem:[%s2491_s12 + $0xc8] sm:$0xf] %v1761_v48 }
  0x4a   : > { %1764 = vst [vmem:[%s2491_s12 + $0xd4] sm:$0xf] %v1763_v49 }
  0x4b   : > { %1766 = vst [vmem:[%s2491_s12 + $0xe0] sm:$0xf] %v1765_v50 }
  0x4c   : > { %1768 = vst [vmem:[%s2491_s12 + $0xec] sm:$0xf] %v1767_v51 }
  0x4d   : > { %1770 = vst [vmem:[%s2491_s12 + $0xf8] sm:$0xf] %v1769_v52 }
  0x4e   : > { %1772 = vst [vmem:[%s2491_s12 + $0x104] sm:$0xf] %v1771_v53 }
  0x4f   : > { %1774 = vst [vmem:[%s2491_s12 + $0x110] sm:$0xf] %v1773_v54 }
  0x50   : > { %1776 = vst [vmem:[%s2491_s12 + $0x11c] sm:$0xf] %v1775_v55 }
  0x51   : > { %1778 = vst [vmem:[%s2491_s12 + $0x128] sm:$0xf] %v1777_v56 }
  0x52   : > { %1780 = vst [vmem:[%s2491_s12 + $0x134] sm:$0xf] %v1779_v57 }
  0x53   : > { %1782 = vst [vmem:[%s2491_s12 + $0x140] sm:$0xf] %v1781_v58 }
  0x54   : > { %1784 = vst [vmem:[%s2491_s12 + $0x14c] sm:$0xf] %v1783_v59 }
  0x55   : > { %1786 = vst [vmem:[%s2491_s12 + $0x158] sm:$0xf] %v1785_v60 }
  0x56   : > { %1788 = vst [vmem:[%s2491_s12 + $0x164] sm:$0xf] %v1787_v61 }
  0x57   : > { %1790 = vst [vmem:[%s2491_s12 + $0x170] sm:$0xf] %v1789_v62 }
  0x58   : > { %1792 = vst [vmem:[%s2491_s12 + $0x17c] sm:$0xf] %v1791_v63 }
  0x59 PF: > { %p1793_p7 = scmp.ge.s32.totalorder %s2397_s21, 1  ;;  %p364_p8 = scmp.lt.s32.totalorder %s2397_s21, 7 }
  0x5b   : > { %p365_p9 = pnand %p1793_p7, %p364_p8 }
  0x5c   : > { %s371_s13 = sand.u32 (!%p365_p9), 1, %s2373_s15   ;;  %s415_s14 = smul.u32 (!%p365_p9), 48, %s2381_s17 }
  0x5d   : > { %368 = sbr.rel (%p365_p9) target bundleno = 584 (0x248), region = 50  ;;  %s1795_s25 = sshll.u32 (!%p365_p9), %s2385_s18, 5 }
  0x5e   : > { %s2284_s24 = smul.u32 (!%p365_p9), 384, %s371_s13  ;;  %p416_p10 = scmp.lt.s32.totalorder (!%p365_p9), %s415_s14, 143 }
  0x5f   : > { %p425_p11 = scmp.lt.s32.totalorder (!%p365_p9), %s1795_s25, 63  ;;  %p439_p12 = scmp.eq.s32.totalorder (!%p365_p9), %s2381_s17, 0 }
  0x60   : > { %s2634_s15 = scalar_lea.vmem (!%p365_p9), [#allocation3], %s2284_s24  ;;  %p1797_p13 = scmp.ne.s32.totalorder (!%p365_p9), %s2381_s17, 0 }
  0x62   : > { %s3001_s14 = smov (!%p416_p10, %s415_s14), 143  ;;  %s3003_s25 = smov (!%p425_p11, %s1795_s25), 63 }
  0x63   : > { %s1794_s26 = sshll.u32 %s3001_s14, 2  ;;  %s1796_s5 = sshll.u32 %s3003_s25, 2 }
  0x64   : > { %s2627_s30 = scalar_lea.vmem %s2983_s1, %s1794_s26  ;;  %s2632_s8 = scalar_lea.vmem %s2984_s2, %s1796_s5 }
  0x65   : > { %442 = sbr.rel (%p1797_p13) target bundleno = 139 (0x8b), region = 58 }
  0x6a   : > { %v2399_v0 = vmov 0.0  }
  0x6b   : > { %443 = vst [vmem:[#allocation2 + $0xb0] sm:$0xff] %v2399_v0 }
  0x6c   : > { %444 = vst [vmem:[#allocation2] sm:$0xff] %v2399_v0 }
  0x6d   : > { %445 = vst [vmem:[#allocation2 + $0xd8] sm:$0xff] %v2399_v0 }
  0x6e   : > { %446 = vst [vmem:[#allocation2 + $0x18] sm:$0xff] %v2399_v0 }
  0x6f   : > { %447 = vst [vmem:[#allocation2 + $0x50] sm:$0xff] %v2399_v0 }
  0x70   : > { %448 = vst [vmem:[#allocation2 + $0x68] sm:$0xff] %v2399_v0 }
  0x71   : > { %449 = vst [vmem:[#allocation2 + $0x30] sm:$0xff] %v2399_v0 }
  0x72   : > { %450 = vst [vmem:[#allocation2 + $0x48] sm:$0xff] %v2399_v0 }
  0x73   : > { %451 = vst [vmem:[#allocation2 + $0x80] sm:$0xff] %v2399_v0 }
  0x74   : > { %452 = vst [vmem:[#allocation2 + $0x88] sm:$0xff] %v2399_v0 }
  0x75   : > { %453 = vst [vmem:[#allocation2 + $0xe8] sm:$0xff] %v2399_v0 }
  0x76   : > { %454 = vst [vmem:[#allocation2 + $0xb8] sm:$0xff] %v2399_v0 }
  0x77   : > { %455 = vst [vmem:[#allocation2 + $0x60] sm:$0xff] %v2399_v0 }
  0x78   : > { %456 = vst [vmem:[#allocation2 + $0xf0] sm:$0xff] %v2399_v0 }
  0x79   : > { %457 = vst [vmem:[#allocation2 + $0x8] sm:$0xff] %v2399_v0 }
  0x7a   : > { %458 = vst [vmem:[#allocation2 + $0x78] sm:$0xff] %v2399_v0 }
  0x7b   : > { %459 = vst [vmem:[#allocation2 + $0x38] sm:$0xff] %v2399_v0 }
  0x7c   : > { %460 = vst [vmem:[#allocation2 + $0x58] sm:$0xff] %v2399_v0 }
  0x7d   : > { %461 = vst [vmem:[#allocation2 + $0x40] sm:$0xff] %v2399_v0 }
  0x7e   : > { %462 = vst [vmem:[#allocation2 + $0xc8] sm:$0xff] %v2399_v0 }
  0x7f   : > { %463 = vst [vmem:[#allocation2 + $0xe0] sm:$0xff] %v2399_v0 }
  0x80   : > { %464 = vst [vmem:[#allocation2 + $0x90] sm:$0xff] %v2399_v0 }
  0x81   : > { %465 = vst [vmem:[#allocation2 + $0x70] sm:$0xff] %v2399_v0 }
  0x82   : > { %466 = vst [vmem:[#allocation2 + $0xc0] sm:$0xff] %v2399_v0 }
  0x83   : > { %467 = vst [vmem:[#allocation2 + $0xa8] sm:$0xff] %v2399_v0 }
  0x84   : > { %468 = vst [vmem:[#allocation2 + $0xd0] sm:$0xff] %v2399_v0 }
  0x85   : > { %469 = vst [vmem:[#allocation2 + $0x10] sm:$0xff] %v2399_v0 }
  0x86   : > { %470 = vst [vmem:[#allocation2 + $0x28] sm:$0xff] %v2399_v0 }
  0x87   : > { %471 = vst [vmem:[#allocation2 + $0xa0] sm:$0xff] %v2399_v0 }
  0x88   : > { %472 = vst [vmem:[#allocation2 + $0xf8] sm:$0xff] %v2399_v0 }
  0x89   : > { %473 = vst [vmem:[#allocation2 + $0x20] sm:$0xff] %v2399_v0 }
  0x8a   : > { %474 = vst [vmem:[#allocation2 + $0x98] sm:$0xff] %v2399_v0 }
  0x8b PF: > { %v2146_v1 = vld [vmem:[%s2627_s30 + $0x38] sm:$0xff]  ;;  %v2145_v4 = vld [vmem:[%s2627_s30 + $0x30] sm:$0xff]  ;;  %v2144_v7 = vld [vmem:[%s2627_s30 + $0x28] sm:$0xff]  ;;  %p1350_p0 = scmp.eq.s32.totalorder %s2385_s18, 0 }
  0x8c   : > { %v2639_v2 = vld [vmem:[%s2627_s30 + $0x78] sm:$0xff]  ;;  %1019 = vmatpush.bf16.msra.mxu0 %v2146_v1  ;;  %2258 = vmatpush.bf16.msra.mxu3 %v2146_v1  ;;  %v2648_v5 = vld [vmem:[%s2627_s30 + $0x70] sm:$0xff]  ;;  %v2152_v8 = vld [vmem:[%s2627_s30 + $0x68] sm:$0xff] }
  0x8d   : > { %v2642_v3 = vld [vmem:[%s2627_s30 + $0xb8] sm:$0xff]  ;;  %1108 = vmatpush.bf16.msra.mxu1 %v2639_v2  ;;  %v2651_v6 = vld [vmem:[%s2627_s30 + $0xb0] sm:$0xff]  ;;  %v2658_v9 = vld [vmem:[%s2627_s30 + $0xa8] sm:$0xff]  ;;  %p2816_p1 = pnand %p1350_p0, %p439_p12 }
  0x8e   : > { %1197 = vmatpush.bf16.msra.mxu2 %v2642_v3  ;;  %v2143_v10 = vld [vmem:[%s2627_s30 + $0x20] sm:$0xff]  ;;  %v2142_v13 = vld [vmem:[%s2627_s30 + $0x18] sm:$0xff]  ;;  %v2141_v16 = vld [vmem:[%s2627_s30 + $0x10] sm:$0xff] }
  0x8f   : > { %v2151_v11 = vld [vmem:[%s2627_s30 + $0x60] sm:$0xff]  ;;  %v2150_v14 = vld [vmem:[%s2627_s30 + $0x58] sm:$0xff]  ;;  %v2149_v17 = vld [vmem:[%s2627_s30 + $0x50] sm:$0xff] }
  0x90   : > { %1020 = vmatpush.bf16.msra.mxu0 %v2145_v4  ;;  %2259 = vmatpush.bf16.msra.mxu3 %v2145_v4  ;;  %v2664_v12 = vld [vmem:[%s2627_s30 + $0xa0] sm:$0xff]  ;;  %v2670_v15 = vld [vmem:[%s2627_s30 + $0x98] sm:$0xff]  ;;  %v2676_v18 = vld [vmem:[%s2627_s30 + $0x90] sm:$0xff] }
  0x91   : > { %1109 = vmatpush.bf16.msra.mxu1 %v2648_v5  ;;  %v2140_v19 = vld [vmem:[%s2627_s30 + $0x8] sm:$0xff]  ;;  %v2139_v22 = vld [vmem:[%s2627_s30] sm:$0xff]  ;;  %v1802_v30 = vld [vmem:[%s2634_s15 + $0xc] sm:$0xf0] }
  0x92   : > { %1198 = vmatpush.bf16.msra.mxu2 %v2651_v6  ;;  %v2148_v20 = vld [vmem:[%s2627_s30 + $0x48] sm:$0xff]  ;;  %v2147_v23 = vld [vmem:[%s2627_s30 + $0x40] sm:$0xff]  ;;  %v2093_v32 = vld [vmem:[%s2634_s15 + $0x10] sm:$0xf0] }
  0x93   : > { %v2682_v21 = vld [vmem:[%s2627_s30 + $0x88] sm:$0xff]  ;;  %v2687_v24 = vld [vmem:[%s2627_s30 + $0x80] sm:$0xff]  ;;  %v1812_v37 = vld [vmem:[%s2634_s15 + $0x18] sm:$0xf] }
  0x94   : > { %1021 = vmatpush.bf16.msra.mxu0 %v2144_v7  ;;  %2260 = vmatpush.bf16.msra.mxu3 %v2144_v7  ;;  %v1800_v25 = vld [vmem:[%s2634_s15] sm:$0xf]  ;;  %v2092_v26 = vld [vmem:[%s2634_s15 + $0x8] sm:$0xf0]  ;;  %v2091_v29 = vld [vmem:[%s2634_s15 + $0x4] sm:$0xf] }
  0x95   : > { %1110 = vmatpush.bf16.msra.mxu1 %v2152_v8  ;;  %v1944_v27 = vld [vmem:[%s2634_s15 + $0x120] sm:$0xf]  ;;  %v2128_v28 = vld [vmem:[%s2634_s15 + $0x128] sm:$0xf0]  ;;  %v1808_v31 = vld [vmem:[%s2634_s15 + $0x8] sm:$0xf]  ;;  %v1801_v33 = vor.u32 %v2092_v26, %v1800_v25  ;;  %v1805_v35 = vor.u32 %v2091_v29, %v1802_v30 }
  0x96   : > { %1199 = vmatpush.bf16.msra.mxu2 %v2658_v9  ;;  %v1945_v34 = vor.u32 %v2128_v28, %v1944_v27  ;;  %v1809_v36 = vor.u32 %v2093_v32, %v1808_v31  ;;  %v2095_v38 = vld [vmem:[%s2634_s15 + $0x20] sm:$0xf0]  ;;  %v1956_v39 = vld [vmem:[%s2634_s15 + $0x138] sm:$0xf]  ;;  %v2094_v41 = vld [vmem:[%s2634_s15 + $0x1c] sm:$0xf] }
  0x97   : > { %v2131_v40 = vld [vmem:[%s2634_s15 + $0x140] sm:$0xf0]  ;;  %v1814_v42 = vld [vmem:[%s2634_s15 + $0x24] sm:$0xf0]  ;;  %v1820_v43 = vld [vmem:[%s2634_s15 + $0x20] sm:$0xf]  ;;  %v1813_v45 = vor.u32 %v2095_v38, %v1812_v37 }
  0x98   : > { %1022 = vmatpush.bf16.msra.mxu0 %v2143_v10  ;;  %2261 = vmatpush.bf16.msra.mxu3 %v2143_v10  ;;  %v2096_v44 = vld [vmem:[%s2634_s15 + $0x28] sm:$0xf0]  ;;  %v1957_v46 = vor.u32 %v2131_v40, %v1956_v39  ;;  %v1817_v47 = vor.u32 %v2094_v41, %v1814_v42  ;;  %v1824_v49 = vld [vmem:[%s2634_s15 + $0x30] sm:$0xf]  ;;  %v2098_v50 = vld [vmem:[%s2634_s15 + $0x38] sm:$0xf0] }
  0x99   : > { %1111 = vmatpush.bf16.msra.mxu1 %v2151_v11  ;;  %v1821_v48 = vor.u32 %v2096_v44, %v1820_v43  ;;  %v1968_v51 = vld [vmem:[%s2634_s15 + $0x150] sm:$0xf]  ;;  %v2134_v52 = vld [vmem:[%s2634_s15 + $0x158] sm:$0xf0]  ;;  %v2097_v53 = vld [vmem:[%s2634_s15 + $0x34] sm:$0xf]  ;;  %v1825_v57 = vor.u32 %v2098_v50, %v1824_v49 }
  0x9a   : > { %1200 = vmatpush.bf16.msra.mxu2 %v2664_v12  ;;  %v1826_v54 = vld [vmem:[%s2634_s15 + $0x3c] sm:$0xf0]  ;;  %v1832_v55 = vld [vmem:[%s2634_s15 + $0x38] sm:$0xf]  ;;  %v2099_v56 = vld [vmem:[%s2634_s15 + $0x40] sm:$0xf0]  ;;  %v1969_v58 = vor.u32 %v2134_v52, %v1968_v51 }
  0x9b   : > { %v1829_v59 = vor.u32 %v2097_v53, %v1826_v54  ;;  %v1833_v60 = vor.u32 %v2099_v56, %v1832_v55  ;;  %v1836_v61 = vld [vmem:[%s2634_s15 + $0x48] sm:$0xf]  ;;  %v2101_v62 = vld [vmem:[%s2634_s15 + $0x50] sm:$0xf0]  ;;  %v2100_v1 = vld [vmem:[%s2634_s15 + $0x4c] sm:$0xf] }
  0x9c   : > { %1023 = vmatpush.bf16.msra.mxu0 %v2142_v13  ;;  %2262 = vmatpush.bf16.msra.mxu3 %v2142_v13  ;;  %v1980_v63 = vld [vmem:[%s2634_s15 + $0x168] sm:$0xf]  ;;  %v2137_v0 = vld [vmem:[%s2634_s15 + $0x170] sm:$0xf0]  ;;  %v2102_v4 = vld [vmem:[%s2634_s15 + $0x58] sm:$0xf0] }
  0x9d   : > { %1112 = vmatpush.bf16.msra.mxu1 %v2150_v14  ;;  %v2104_v10 = vld [vmem:[%s2634_s15 + $0x68] sm:$0xf0]  ;;  %v1946_v13 = vld [vmem:[%s2634_s15 + $0x12c] sm:$0xf0]  ;;  %v2130_v25 = vld [vmem:[%s2634_s15 + $0x13c] sm:$0xf] }
  0x9e   : > { %1201 = vmatpush.bf16.msra.mxu2 %v2670_v15  ;;  %v1958_v26 = vld [vmem:[%s2634_s15 + $0x144] sm:$0xf0]  ;;  %v1868_v27 = vld [vmem:[%s2634_s15 + $0x80] sm:$0xf]  ;;  %v2108_v28 = vld [vmem:[%s2634_s15 + $0x88] sm:$0xf0] }
  0x9f   : > { %v1961_v30 = vor.u32 %v2130_v25, %v1958_v26  ;;  %v1869_v32 = vor.u32 %v2108_v28, %v1868_v27  ;;  %v1970_v37 = vld [vmem:[%s2634_s15 + $0x15c] sm:$0xf0]  ;;  %v1880_v39 = vld [vmem:[%s2634_s15 + $0x98] sm:$0xf]  ;;  %v2111_v40 = vld [vmem:[%s2634_s15 + $0xa0] sm:$0xf0] }
  0xa0   : > { %1024 = vmatpush.bf16.msra.mxu0 %v2141_v16  ;;  %2263 = vmatpush.bf16.msra.mxu3 %v2141_v16  ;;  %v2105_v16 = vld [vmem:[%s2634_s15 + $0x70] sm:$0xf0]  ;;  %v1874_v38 = vld [vmem:[%s2634_s15 + $0x9c] sm:$0xf0]  ;;  %v1881_v44 = vor.u32 %v2111_v40, %v1880_v39  ;;  %v1982_v49 = vld [vmem:[%s2634_s15 + $0x174] sm:$0xf0] }
  0xa1   : > { %1113 = vmatpush.bf16.msra.mxu1 %v2149_v17  ;;  %v1886_v50 = vld [vmem:[%s2634_s15 + $0xb4] sm:$0xf0]  ;;  %v1892_v51 = vld [vmem:[%s2634_s15 + $0xb0] sm:$0xf]  ;;  %v2114_v52 = vld [vmem:[%s2634_s15 + $0xb8] sm:$0xf0] }
  0xa2   : > { %1202 = vmatpush.bf16.msra.mxu2 %v2676_v18  ;;  %v1893_v56 = vor.u32 %v2114_v52, %v1892_v51  ;;  %v476_v26 = vld [vmem:[#allocation2] sm:$0xff] }
  0xa4   : > { %1025 = vmatpush.bf16.msra.mxu0 %v2140_v19  ;;  %2264 = vmatpush.bf16.msra.mxu3 %v2140_v19 }
  0xa5   : > { %1114 = vmatpush.bf16.msra.mxu1 %v2148_v20 }
  0xa6   : > { %1203 = vmatpush.bf16.msra.mxu2 %v2682_v21 }
  0xa8   : > { %1026 = vmatpush.bf16.msra.mxu0 %v2139_v22  ;;  %2265 = vmatpush.bf16.msra.mxu3 %v2139_v22  ;;  %v2107_v22 = vld [vmem:[%s2634_s15 + $0x80] sm:$0xf0] }
  0xa9   : > { %1115 = vmatpush.bf16.msra.mxu1 %v2147_v23 }
  0xaa   : > { %1204 = vmatpush.bf16.msra.mxu2 %v2687_v24 }
  0xab   : > { %1027 = vmatmul.bf16.vlgmr.msra.gmra.mxu0 %v1801_v33  ;;  %1087 = vmatmul.bf16.vlgmr.msra.gmra.mxu3 %v1945_v34  ;;  %v1872_v33 = vld [vmem:[%s2634_s15 + $0x90] sm:$0xf]  ;;  %v2110_v34 = vld [vmem:[%s2634_s15 + $0x98] sm:$0xf0] }
  0xac   : > { %2266 = vmatpush.bf16.msrb.mxu3 %v2639_v2  ;;  %1116 = vmatmul.bf16.vlgmr.msra.gmra.mxu1 %v1805_v35  ;;  %v1838_v2 = vld [vmem:[%s2634_s15 + $0x54] sm:$0xf0]  ;;  %v2109_v35 = vld [vmem:[%s2634_s15 + $0x94] sm:$0xf]  ;;  %v1873_v41 = vor.u32 %v2110_v34, %v1872_v33 }
  0xad   : > { %1205 = vmatmul.bf16.vlgmr.msra.gmra.mxu2 %v1809_v36  ;;  %v1841_v7 = vor.u32 %v2100_v1, %v1838_v2  ;;  %v2133_v36 = vld [vmem:[%s2634_s15 + $0x154] sm:$0xf]  ;;  %v1877_v43 = vor.u32 %v2109_v35, %v1874_v38 }
  0xae   : > { %v1973_v42 = vor.u32 %v2133_v36, %v1970_v37  ;;  %v477_v37 = vld [vmem:[#allocation2 + $0xd8] sm:$0xff] }
  0xb0   : > { %2267 = vmatpush.bf16.msrb.mxu3 %v2648_v5  ;;  %v1837_v5 = vor.u32 %v2101_v62, %v1836_v61  ;;  %v2129_v61 = vld [vmem:[%s2634_s15 + $0x130] sm:$0xf0]  ;;  %v1898_v62 = vld [vmem:[%s2634_s15 + $0xcc] sm:$0xf0] }
  0xb4   : > { %2268 = vmatpush.bf16.msrb.mxu3 %v2152_v8 }
  0xb8   : > { %2269 = vmatpush.bf16.msrb.mxu3 %v2151_v11  ;;  %v2103_v11 = vld [vmem:[%s2634_s15 + $0x64] sm:$0xf] }
  0xbb   : > { %1032 = vmatmul.bf16.gmra.mxu0 %v1813_v45  ;;  %1092 = vmatmul.bf16.gmra.mxu3 %v1957_v46  ;;  %v1884_v45 = vld [vmem:[%s2634_s15 + $0xa8] sm:$0xf]  ;;  %v2113_v46 = vld [vmem:[%s2634_s15 + $0xb0] sm:$0xf0] }
  0xbc   : > { %2270 = vmatpush.bf16.msrb.mxu3 %v2150_v14  ;;  %1121 = vmatmul.bf16.gmra.mxu1 %v1817_v47  ;;  %v1850_v14 = vld [vmem:[%s2634_s15 + $0x6c] sm:$0xf0]  ;;  %v2112_v47 = vld [vmem:[%s2634_s15 + $0xac] sm:$0xf]  ;;  %v1885_v53 = vor.u32 %v2113_v46, %v1884_v45  ;;  %v2121_v45 = vld [vmem:[%s2634_s15 + $0xf4] sm:$0xf] }
  0xbd   : > { %1210 = vmatmul.bf16.gmra.mxu2 %v1821_v48  ;;  %v1853_v19 = vor.u32 %v2103_v11, %v1850_v14  ;;  %v2136_v48 = vld [vmem:[%s2634_s15 + $0x16c] sm:$0xf]  ;;  %v1889_v55 = vor.u32 %v2112_v47, %v1886_v50  ;;  %v1976_v46 = vld [vmem:[%s2634_s15 + $0x158] sm:$0xf]  ;;  %v2135_v47 = vld [vmem:[%s2634_s15 + $0x160] sm:$0xf0] }
  0xbe   : > { %v1985_v54 = vor.u32 %v2136_v48, %v1982_v49  ;;  %v1922_v48 = vld [vmem:[%s2634_s15 + $0xfc] sm:$0xf0]  ;;  %v1928_v49 = vld [vmem:[%s2634_s15 + $0xf8] sm:$0xf]  ;;  %v2123_v50 = vld [vmem:[%s2634_s15 + $0x100] sm:$0xf0] }
  0xc0   : > { %2271 = vmatpush.bf16.msrb.mxu3 %v2149_v17 }
  0xc4   : > { %2272 = vmatpush.bf16.msrb.mxu3 %v2148_v20 }
  0xc8   : > { %2273 = vmatpush.bf16.msrb.mxu3 %v2147_v23  ;;  %v2106_v23 = vld [vmem:[%s2634_s15 + $0x7c] sm:$0xf] }
  0xcb   : > { %1037 = vmatmul.bf16.gmra.mxu0 %v1825_v57  ;;  %1097 = vmatmul.bf16.gmra.mxu3 %v1969_v58  ;;  %v1896_v57 = vld [vmem:[%s2634_s15 + $0xc0] sm:$0xf]  ;;  %v2116_v58 = vld [vmem:[%s2634_s15 + $0xc8] sm:$0xf0] }
  0xcc   : > { %2274 = vmatpush.bf16.msra.mxu3 %v2642_v3  ;;  %1126 = vmatmul.bf16.gmra.mxu1 %v1829_v59  ;;  %v1844_v3 = vld [vmem:[%s2634_s15 + $0x50] sm:$0xf]  ;;  %v2115_v59 = vld [vmem:[%s2634_s15 + $0xc4] sm:$0xf]  ;;  %v1897_v1 = vor.u32 %v2116_v58, %v1896_v57 }
  0xcd   : > { %1215 = vmatmul.bf16.gmra.mxu2 %v1833_v60  ;;  %v1845_v8 = vor.u32 %v2102_v4, %v1844_v3  ;;  %v1952_v60 = vld [vmem:[%s2634_s15 + $0x128] sm:$0xf]  ;;  %v1901_v4 = vor.u32 %v2115_v59, %v1898_v62  ;;  %v1925_v59 = vor.u32 %v2121_v45, %v1922_v48  ;;  %v483_v48 = vld [vmem:[#allocation2 + $0x80] sm:$0xff] }
  0xce   : > { %v1953_v2 = vor.u32 %v2129_v61, %v1952_v60  ;;  %v1929_v60 = vor.u32 %v2123_v50, %v1928_v49 }
  0xd0   : > { %2275 = vmatpush.bf16.msra.mxu3 %v2651_v6  ;;  %v1981_v6 = vor.u32 %v2137_v0, %v1980_v63  ;;  %v1904_v63 = vld [vmem:[%s2634_s15 + $0xc8] sm:$0xf]  ;;  %v2117_v0 = vld [vmem:[%s2634_s15 + $0xd0] sm:$0xf0] }
  0xd4   : > { %2276 = vmatpush.bf16.msra.mxu3 %v2658_v9  ;;  %v1848_v9 = vld [vmem:[%s2634_s15 + $0x60] sm:$0xf] }
  0xd5   : > { %v1849_v17 = vor.u32 %v2104_v10, %v1848_v9  ;;  %v475_v9 = vld [vmem:[#allocation2 + $0xb0] sm:$0xff] }
  0xd8   : > { %2277 = vmatpush.bf16.msra.mxu3 %v2664_v12  ;;  %v2127_v12 = vld [vmem:[%s2634_s15 + $0x124] sm:$0xf] }
  0xdb   : > { %1042 = vmatmul.bf16.gmra.mxu0 %v1837_v5  ;;  %1102 = vmatmul.bf16.gmra.mxu3 %v1981_v6  ;;  %v1905_v5 = vor.u32 %v2117_v0, %v1904_v63 }
  0xdc   : > { %2278 = vmatpush.bf16.msra.mxu3 %v2670_v15  ;;  %1131 = vmatmul.bf16.gmra.mxu1 %v1841_v7  ;;  %v1856_v15 = vld [vmem:[%s2634_s15 + $0x68] sm:$0xf] }
  0xdd   : > { %1220 = vmatmul.bf16.gmra.mxu2 %v1845_v8  ;;  %v1857_v20 = vor.u32 %v2105_v16, %v1856_v15  ;;  %v1908_v15 = vld [vmem:[%s2634_s15 + $0xd8] sm:$0xf]  ;;  %v2119_v16 = vld [vmem:[%s2634_s15 + $0xe0] sm:$0xf0] }
  0xde   : > { %v1909_v27 = vor.u32 %v2119_v16, %v1908_v15  ;;  %v2126_v15 = vld [vmem:[%s2634_s15 + $0x118] sm:$0xf0] }
  0xe0   : > { %2279 = vmatpush.bf16.msra.mxu3 %v2676_v18  ;;  %v1949_v18 = vor.u32 %v2127_v12, %v1946_v13 }
  0xe4   : > { %2280 = vmatpush.bf16.msra.mxu3 %v2682_v21  ;;  %v1860_v21 = vld [vmem:[%s2634_s15 + $0x78] sm:$0xf] }
  0xe5   : > { %v1861_v29 = vor.u32 %v2107_v22, %v1860_v21  ;;  %v1916_v21 = vld [vmem:[%s2634_s15 + $0xe0] sm:$0xf]  ;;  %v2120_v22 = vld [vmem:[%s2634_s15 + $0xe8] sm:$0xf0] }
  0xe8   : > { %2281 = vmatpush.bf16.msra.mxu3 %v2687_v24  ;;  %v1862_v24 = vld [vmem:[%s2634_s15 + $0x84] sm:$0xf0] }
  0xe9   : > { %v1865_v31 = vor.u32 %v2106_v23, %v1862_v24 }
  0xeb   : > { %1047 = vmatmul.bf16.gmra.mxu0 %v1849_v17  ;;  %1176 = vmatmul.bf16.vlgmr.msrb.gmra.mxu3 %v1949_v18  ;;  %v2118_v17 = vld [vmem:[%s2634_s15 + $0xdc] sm:$0xf]  ;;  %v1964_v18 = vld [vmem:[%s2634_s15 + $0x140] sm:$0xf] }
  0xec   : > { %1136 = vmatmul.bf16.gmra.mxu1 %v1853_v19  ;;  %v2132_v19 = vld [vmem:[%s2634_s15 + $0x148] sm:$0xf0] }
  0xed   : > { %1225 = vmatmul.bf16.gmra.mxu2 %v1857_v20  ;;  %v1910_v20 = vld [vmem:[%s2634_s15 + $0xe4] sm:$0xf0]  ;;  %v1965_v28 = vor.u32 %v2132_v19, %v1964_v18 }
  0xee   : > { %v480_v18 = vld [vmem:[#allocation2 + $0x68] sm:$0xff] }
  0xfb   : > { %1052 = vmatmul.bf16.gmra.mxu0 %v1861_v29  ;;  %1181 = vmatmul.bf16.gmra.mxu3 %v1961_v30 }
  0xfc   : > { %1141 = vmatmul.bf16.gmra.mxu1 %v1865_v31  ;;  %v1913_v31 = vor.u32 %v2118_v17, %v1910_v20 }
  0xfd   : > { %1230 = vmatmul.bf16.gmra.mxu2 %v1869_v32  ;;  %v1917_v32 = vor.u32 %v2120_v22, %v1916_v21 }
 0x10b   : > { %1057 = vmatmul.bf16.gmra.mxu0 %v1873_v41  ;;  %1186 = vmatmul.bf16.gmra.mxu3 %v1973_v42 }
 0x10c   : > { %1146 = vmatmul.bf16.gmra.mxu1 %v1877_v43  ;;  %v1920_v43 = vld [vmem:[%s2634_s15 + $0xf0] sm:$0xf] }
 0x10d   : > { %1235 = vmatmul.bf16.gmra.mxu2 %v1881_v44  ;;  %v2122_v44 = vld [vmem:[%s2634_s15 + $0xf8] sm:$0xf0] }
 0x11b   : > { %1062 = vmatmul.bf16.gmra.mxu0 %v1885_v53  ;;  %1191 = vmatmul.bf16.gmra.mxu3 %v1985_v54  ;;  %v478_v53 = vld [vmem:[#allocation2 + $0x18] sm:$0xff] }
 0x11c   : > { %1151 = vmatmul.bf16.gmra.mxu1 %v1889_v55  ;;  %v1921_v55 = vor.u32 %v2122_v44, %v1920_v43 }
 0x11d   : > { %1240 = vmatmul.bf16.gmra.mxu2 %v1893_v56  ;;  %v1977_v56 = vor.u32 %v2135_v47, %v1976_v46 }
 0x128   : > { %v1028_v3 = vpop.f32.mrf.mxu0 }
 0x129   : > { %v1117_v6 = vpop.f32.mrf.mxu1 }
 0x12a   : > { %v1118_v7 = vadd.f32 %v1117_v6, %v1028_v3 }
 0x12b   : > { %1067 = vmatmul.bf16.gmra.mxu0 %v1897_v1  ;;  %1265 = vmatmul.bf16.vlgmr.msra.gmra.mxu3 %v1953_v2  ;;  %v479_v1 = vld [vmem:[#allocation2 + $0x50] sm:$0xff] }
 0x12c   : > { %1156 = vmatmul.bf16.gmra.mxu1 %v1901_v4 }
 0x12d   : > { %1245 = vmatmul.bf16.gmra.mxu2 %v1905_v5 }
 0x12e   : > { %v2773_v8 = vpop.f32.mrf.mxu3 }
 0x130   : > { %v1206_v10 = vpop.f32.mrf.mxu2  ;;  %v1030_v12 = vpop.f32.mrf.mxu0 }
 0x131   : > { %v1207_v11 = vadd.f32 %v1206_v10, %v1118_v7  ;;  %v1119_v13 = vpop.f32.mrf.mxu1  ;;  %v1932_v7 = vld [vmem:[%s2634_s15 + $0x108] sm:$0xf]  ;;  %v2124_v10 = vld [vmem:[%s2634_s15 + $0x10c] sm:$0xf] }
 0x132   : > { %v1120_v23 = vadd.f32 %v1119_v13, %v1030_v12  ;;  %v2138_v12 = vld [vmem:[%s2634_s15 + $0x178] sm:$0xf0]  ;;  %v1934_v13 = vld [vmem:[%s2634_s15 + $0x114] sm:$0xf0] }
 0x133   : > { %v1286_v14 = vadd.f32 %v1207_v11, %v475_v9  ;;  %v2125_v9 = vld [vmem:[%s2634_s15 + $0x110] sm:$0xf0]  ;;  %v1988_v11 = vld [vmem:[%s2634_s15 + $0x170] sm:$0xf] }
 0x134   : > { %v1933_v20 = vor.u32 %v2125_v9, %v1932_v7  ;;  %v1989_v21 = vor.u32 %v2138_v12, %v1988_v11  ;;  %v486_v11 = vld [vmem:[#allocation2 + $0xb8] sm:$0xff] }
 0x135   : > { %1318 = vst [vmem:[#allocation2 + $0xb0] sm:$0xff] %v1286_v14  ;;  %v1940_v14 = vld [vmem:[%s2634_s15 + $0x110] sm:$0xf] }
 0x136   : > { %v2783_v25 = vpop.f32.mrf.mxu3 }
 0x138   : > { %v1208_v24 = vpop.f32.mrf.mxu2  ;;  %v1033_v30 = vpop.f32.mrf.mxu0 }
 0x139   : > { %v1209_v29 = vadd.f32 %v1208_v24, %v1120_v23  ;;  %v1122_v33 = vpop.f32.mrf.mxu1  ;;  %v1941_v24 = vor.u32 %v2126_v15, %v1940_v14 }
 0x13a   : > { %v1123_v35 = vadd.f32 %v1122_v33, %v1033_v30 }
 0x13b   : > { %v1287_v34 = vadd.f32 %v1209_v29, %v476_v26  ;;  %1072 = vmatmul.bf16.gmra.mxu0 %v1909_v27  ;;  %1270 = vmatmul.bf16.gmra.mxu3 %v1965_v28  ;;  %v1937_v26 = vor.u32 %v2124_v10, %v1934_v13 }
 0x13c   : > { %1161 = vmatmul.bf16.gmra.mxu1 %v1913_v31  ;;  %v481_v31 = vld [vmem:[#allocation2 + $0x30] sm:$0xff] }
 0x13d   : > { %1319 = vst [vmem:[#allocation2] sm:$0xff] %v1287_v34  ;;  %1250 = vmatmul.bf16.gmra.mxu2 %v1917_v32 }
 0x13e   : > { %v2785_v36 = vpop.f32.mrf.mxu3 }
 0x140   : > { %v1211_v38 = vpop.f32.mrf.mxu2  ;;  %v1035_v40 = vpop.f32.mrf.mxu0 }
 0x141   : > { %v1212_v39 = vadd.f32 %v1211_v38, %v1123_v35  ;;  %v1124_v41 = vpop.f32.mrf.mxu1 }
 0x142   : > { %v1125_v51 = vadd.f32 %v1124_v41, %v1035_v40  ;;  %v482_v40 = vld [vmem:[#allocation2 + $0x48] sm:$0xff] }
 0x143   : > { %v1288_v42 = vadd.f32 %v1212_v39, %v477_v37 }
 0x145   : > { %1320 = vst [vmem:[#allocation2 + $0xd8] sm:$0xff] %v1288_v42 }
 0x146   : > { %v2795_v52 = vpop.f32.mrf.mxu3 }
 0x148   : > { %v1213_v54 = vpop.f32.mrf.mxu2  ;;  %v1038_v58 = vpop.f32.mrf.mxu0 }
 0x149   : > { %v1214_v57 = vadd.f32 %v1213_v54, %v1125_v51  ;;  %v1127_v61 = vpop.f32.mrf.mxu1 }
 0x14a   : > { %v1128_v63 = vadd.f32 %v1127_v61, %v1038_v58 }
 0x14b   : > { %v1289_v62 = vadd.f32 %v1214_v57, %v478_v53  ;;  %1077 = vmatmul.bf16.gmra.mxu0 %v1921_v55  ;;  %1275 = vmatmul.bf16.gmra.mxu3 %v1977_v56  ;;  %v484_v57 = vld [vmem:[#allocation2 + $0x88] sm:$0xff] }
 0x14c   : > { %1166 = vmatmul.bf16.gmra.mxu1 %v1925_v59 }
 0x14d   : > { %1321 = vst [vmem:[#allocation2 + $0x18] sm:$0xff] %v1289_v62  ;;  %1255 = vmatmul.bf16.gmra.mxu2 %v1929_v60 }
 0x14e   : > { %v2797_v0 = vpop.f32.mrf.mxu3 }
 0x150   : > { %v1216_v2 = vpop.f32.mrf.mxu2  ;;  %v1040_v4 = vpop.f32.mrf.mxu0 }
 0x151   : > { %v1217_v3 = vadd.f32 %v1216_v2, %v1128_v63  ;;  %v1129_v5 = vpop.f32.mrf.mxu1  ;;  %v485_v2 = vld [vmem:[#allocation2 + $0xe8] sm:$0xff] }
 0x152   : > { %v1130_v16 = vadd.f32 %v1129_v5, %v1040_v4 }
 0x153   : > { %v1290_v6 = vadd.f32 %v1217_v3, %v479_v1 }
 0x155   : > { %1322 = vst [vmem:[#allocation2 + $0x50] sm:$0xff] %v1290_v6 }
 0x156   : > { %v2807_v17 = vpop.f32.mrf.mxu3 }
 0x158   : > { %v1218_v19 = vpop.f32.mrf.mxu2  ;;  %v1043_v23 = vpop.f32.mrf.mxu0 }
 0x159   : > { %v1219_v22 = vadd.f32 %v1218_v19, %v1130_v16  ;;  %v1132_v27 = vpop.f32.mrf.mxu1 }
 0x15a   : > { %v1133_v29 = vadd.f32 %v1132_v27, %v1043_v23 }
 0x15b   : > { %v1291_v28 = vadd.f32 %v1219_v22, %v480_v18  ;;  %1082 = vmatmul.bf16.gmra.mxu0 %v1933_v20  ;;  %1280 = vmatmul.bf16.gmra.mxu3 %v1989_v21  ;;  %v487_v20 = vld [vmem:[#allocation2 + $0x60] sm:$0xff] }
 0x15c   : > { %1171 = vmatmul.bf16.gmra.mxu1 %v1937_v26 }
 0x15d   : > { %1323 = vst [vmem:[#allocation2 + $0x68] sm:$0xff] %v1291_v28  ;;  %1260 = vmatmul.bf16.gmra.mxu2 %v1941_v24 }
 0x15e   : > { %v2809_v30 = vpop.f32.mrf.mxu3 }
 0x160   : > { %v1221_v32 = vpop.f32.mrf.mxu2  ;;  %v1045_v34 = vpop.f32.mrf.mxu0 }
 0x161   : > { %v1222_v33 = vadd.f32 %v1221_v32, %v1133_v29  ;;  %v1134_v35 = vpop.f32.mrf.mxu1  ;;  %v488_v29 = vld [vmem:[#allocation2 + $0xf0] sm:$0xff] }
 0x162   : > { %v1135_v38 = vadd.f32 %v1134_v35, %v1045_v34 }
 0x163   : > { %v1292_v37 = vadd.f32 %v1222_v33, %v481_v31 }
 0x165   : > { %1324 = vst [vmem:[#allocation2 + $0x30] sm:$0xff] %v1292_v37 }
 0x166   : > { %v2811_v39 = vpop.f32.mrf.mxu3 }
 0x168   : > { %v1223_v41 = vpop.f32.mrf.mxu2  ;;  %v1048_v43 = vpop.f32.mrf.mxu0 }
 0x169   : > { %v1224_v42 = vadd.f32 %v1223_v41, %v1135_v38  ;;  %v1137_v44 = vpop.f32.mrf.mxu1 }
 0x16a   : > { %v1138_v46 = vadd.f32 %v1137_v44, %v1048_v43 }
 0x16b   : > { %v1293_v45 = vadd.f32 %v1224_v42, %v482_v40  ;;  %v489_v40 = vld [vmem:[#allocation2 + $0x8] sm:$0xff] }
 0x16d   : > { %1325 = vst [vmem:[#allocation2 + $0x48] sm:$0xff] %v1293_v45 }
 0x16e   : > { %v2820_v47 = vpop.f32.mrf.mxu3 }
 0x170   : > { %v1226_v49 = vpop.f32.mrf.mxu2  ;;  %v1050_v51 = vpop.f32.mrf.mxu0 }
 0x171   : > { %v1227_v50 = vadd.f32 %v1226_v49, %v1138_v46  ;;  %v1139_v53 = vpop.f32.mrf.mxu1  ;;  %v490_v49 = vld [vmem:[#allocation2 + $0x78] sm:$0xff] }
 0x172   : > { %v1140_v55 = vadd.f32 %v1139_v53, %v1050_v51 }
 0x173   : > { %v1294_v54 = vadd.f32 %v1227_v50, %v483_v48 }
 0x175   : > { %1326 = vst [vmem:[#allocation2 + $0x80] sm:$0xff] %v1294_v54 }
 0x176   : > { %v2822_v56 = vpop.f32.mrf.mxu3 }
 0x178   : > { %v1228_v58 = vpop.f32.mrf.mxu2  ;;  %v1053_v60 = vpop.f32.mrf.mxu0 }
 0x179   : > { %v1229_v59 = vadd.f32 %v1228_v58, %v1140_v55  ;;  %v1142_v61 = vpop.f32.mrf.mxu1  ;;  %v1178_v58 = vadd.f32 %v2820_v47, %v2773_v8 }
 0x17a   : > { %v1143_v63 = vadd.f32 %v1142_v61, %v1053_v60  ;;  %v491_v61 = vld [vmem:[#allocation2 + $0x38] sm:$0xff] }
 0x17b   : > { %v1295_v62 = vadd.f32 %v1229_v59, %v484_v57  ;;  %v499_v59 = vld [vmem:[#allocation2 + $0xa8] sm:$0xff] }
 0x17d   : > { %1327 = vst [vmem:[#allocation2 + $0x88] sm:$0xff] %v1295_v62 }
 0x17e   : > { %v2824_v1 = vpop.f32.mrf.mxu3 }
 0x180   : > { %v1231_v3 = vpop.f32.mrf.mxu2  ;;  %v1055_v5 = vpop.f32.mrf.mxu0 }
 0x181   : > { %v1232_v4 = vadd.f32 %v1231_v3, %v1143_v63  ;;  %v1144_v6 = vpop.f32.mrf.mxu1 }
 0x182   : > { %v1145_v9 = vadd.f32 %v1144_v6, %v1055_v5 }
 0x183   : > { %v1296_v7 = vadd.f32 %v1232_v4, %v485_v2 }
 0x185   : > { %1328 = vst [vmem:[#allocation2 + $0xe8] sm:$0xff] %v1296_v7  ;;  %v1180_v7 = vadd.f32 %v2822_v56, %v2783_v25  ;;  %v493_v25 = vld [vmem:[#allocation2 + $0x40] sm:$0xff] }
 0x186   : > { %v2826_v10 = vpop.f32.mrf.mxu3 }
 0x188   : > { %v1233_v12 = vpop.f32.mrf.mxu2  ;;  %v1058_v14 = vpop.f32.mrf.mxu0 }
 0x189   : > { %v1234_v13 = vadd.f32 %v1233_v12, %v1145_v9  ;;  %v1147_v15 = vpop.f32.mrf.mxu1 }
 0x18a   : > { %v1148_v18 = vadd.f32 %v1147_v15, %v1058_v14 }
 0x18b   : > { %v1297_v16 = vadd.f32 %v1234_v13, %v486_v11  ;;  %v500_v11 = vld [vmem:[#allocation2 + $0xd0] sm:$0xff]  ;;  %v492_v13 = vld [vmem:[#allocation2 + $0x58] sm:$0xff] }
 0x18d   : > { %1329 = vst [vmem:[#allocation2 + $0xb8] sm:$0xff] %v1297_v16 }
 0x18e   : > { %v2828_v19 = vpop.f32.mrf.mxu3 }
 0x190   : > { %v1236_v21 = vpop.f32.mrf.mxu2  ;;  %v1060_v23 = vpop.f32.mrf.mxu0 }
 0x191   : > { %v1237_v22 = vadd.f32 %v1236_v21, %v1148_v18  ;;  %v1149_v26 = vpop.f32.mrf.mxu1 }
 0x192   : > { %v1150_v27 = vadd.f32 %v1149_v26, %v1060_v23  ;;  %v501_v23 = vld [vmem:[#allocation2 + $0x10] sm:$0xff] }
 0x193   : > { %v1298_v24 = vadd.f32 %v1237_v22, %v487_v20  ;;  %v1183_v22 = vadd.f32 %v2824_v1, %v2785_v36 }
 0x195   : > { %1330 = vst [vmem:[#allocation2 + $0x60] sm:$0xff] %v1298_v24 }
 0x196   : > { %v2830_v28 = vpop.f32.mrf.mxu3 }
 0x198   : > { %v1238_v31 = vpop.f32.mrf.mxu2  ;;  %v1063_v33 = vpop.f32.mrf.mxu0 }
 0x199   : > { %v1239_v32 = vadd.f32 %v1238_v31, %v1150_v27  ;;  %v1152_v34 = vpop.f32.mrf.mxu1 }
 0x19a   : > { %v1153_v37 = vadd.f32 %v1152_v34, %v1063_v33  ;;  %v1185_v34 = vadd.f32 %v2826_v10, %v2795_v52  ;;  %v495_v52 = vld [vmem:[#allocation2 + $0xe0] sm:$0xff] }
 0x19b   : > { %v1299_v35 = vadd.f32 %v1239_v32, %v488_v29 }
 0x19d   : > { %1331 = vst [vmem:[#allocation2 + $0xf0] sm:$0xff] %v1299_v35 }
 0x19e   : > { %v2832_v38 = vpop.f32.mrf.mxu3 }
 0x1a0   : > { %v1241_v41 = vpop.f32.mrf.mxu2  ;;  %v1065_v43 = vpop.f32.mrf.mxu0 }
 0x1a1   : > { %v1242_v42 = vadd.f32 %v1241_v41, %v1153_v37  ;;  %v1154_v44 = vpop.f32.mrf.mxu1  ;;  %v502_v37 = vld [vmem:[#allocation2 + $0x28] sm:$0xff] }
 0x1a2   : > { %v1155_v46 = vadd.f32 %v1154_v44, %v1065_v43  ;;  %v494_v41 = vld [vmem:[#allocation2 + $0xc8] sm:$0xff] }
 0x1a3   : > { %v1300_v45 = vadd.f32 %v1242_v42, %v489_v40 }
 0x1a5   : > { %1332 = vst [vmem:[#allocation2 + $0x8] sm:$0xff] %v1300_v45 }
 0x1a6   : > { %v2834_v48 = vpop.f32.mrf.mxu3 }
 0x1a8   : > { %v1243_v50 = vpop.f32.mrf.mxu2  ;;  %v1068_v53 = vpop.f32.mrf.mxu0 }
 0x1a9   : > { %v1244_v51 = vadd.f32 %v1243_v50, %v1155_v46  ;;  %v1157_v54 = vpop.f32.mrf.mxu1  ;;  %v1188_v50 = vadd.f32 %v2828_v19, %v2797_v0 }
 0x1aa   : > { %v1158_v57 = vadd.f32 %v1157_v54, %v1068_v53 }
 0x1ab   : > { %v1301_v55 = vadd.f32 %v1244_v51, %v490_v49  ;;  %v503_v51 = vld [vmem:[#allocation2 + $0xa0] sm:$0xff] }
 0x1ad   : > { %1333 = vst [vmem:[#allocation2 + $0x78] sm:$0xff] %v1301_v55 }
 0x1ae   : > { %v1266_v60 = vpop.f32.mrf.mxu3 }
 0x1af   : > { %v1267_v63 = vadd.f32 %v1266_v60, %v1178_v58 }
 0x1b0   : > { %v1246_v62 = vpop.f32.mrf.mxu2  ;;  %v1070_v3 = vpop.f32.mrf.mxu0 }
 0x1b1   : > { %v1247_v2 = vadd.f32 %v1246_v62, %v1158_v57  ;;  %v1310_v4 = vadd.f32 %v1267_v63, %v499_v59  ;;  %v1159_v5 = vpop.f32.mrf.mxu1  ;;  %v504_v63 = vld [vmem:[#allocation2 + $0xf8] sm:$0xff] }
 0x1b2   : > { %v1160_v9 = vadd.f32 %v1159_v5, %v1070_v3  ;;  %v496_v3 = vld [vmem:[#allocation2 + $0x90] sm:$0xff] }
 0x1b3   : > { %v1302_v6 = vadd.f32 %v1247_v2, %v491_v61  ;;  %1342 = vst [vmem:[#allocation2 + $0xa8] sm:$0xff] %v1310_v4  ;;  %v1190_v61 = vadd.f32 %v2830_v28, %v2807_v17  ;;  %v497_v17 = vld [vmem:[#allocation2 + $0x70] sm:$0xff] }
 0x1b5   : > { %1334 = vst [vmem:[#allocation2 + $0x38] sm:$0xff] %v1302_v6 }
 0x1b6   : > { %v1268_v12 = vpop.f32.mrf.mxu3 }
 0x1b7   : > { %v1269_v47 = vadd.f32 %v1268_v12, %v1180_v7  ;;  %v1193_v12 = vadd.f32 %v2832_v38, %v2809_v30 }
 0x1b8   : > { %v1248_v8 = vpop.f32.mrf.mxu2  ;;  %v1073_v15 = vpop.f32.mrf.mxu0 }
 0x1b9   : > { %v1249_v14 = vadd.f32 %v1248_v8, %v1160_v9  ;;  %v1311_v16 = vadd.f32 %v1269_v47, %v500_v11  ;;  %v1162_v18 = vpop.f32.mrf.mxu1 }
 0x1ba   : > { %v1163_v21 = vadd.f32 %v1162_v18, %v1073_v15 }
 0x1bb   : > { %v1303_v20 = vadd.f32 %v1249_v14, %v492_v13  ;;  %1343 = vst [vmem:[#allocation2 + $0xd0] sm:$0xff] %v1311_v16  ;;  %v505_v13 = vld [vmem:[#allocation2 + $0x20] sm:$0xff] }
 0x1bd   : > { %1335 = vst [vmem:[#allocation2 + $0x58] sm:$0xff] %v1303_v20 }
 0x1be   : > { %v1271_v26 = vpop.f32.mrf.mxu3 }
 0x1bf   : > { %v1272_v24 = vadd.f32 %v1271_v26, %v1183_v22 }
 0x1c0   : > { %v1251_v56 = vpop.f32.mrf.mxu2  ;;  %v1075_v29 = vpop.f32.mrf.mxu0 }
 0x1c1   : > { %v1252_v27 = vadd.f32 %v1251_v56, %v1163_v21  ;;  %v1312_v31 = vadd.f32 %v1272_v24, %v501_v23  ;;  %v1164_v32 = vpop.f32.mrf.mxu1  ;;  %v1195_v21 = vadd.f32 %v2834_v48, %v2811_v39  ;;  %v506_v23 = vld [vmem:[#allocation2 + $0x98] sm:$0xff] }
 0x1c2   : > { %v1165_v35 = vadd.f32 %v1164_v32, %v1075_v29 }
 0x1c3   : > { %v1304_v33 = vadd.f32 %v1252_v27, %v493_v25  ;;  %1344 = vst [vmem:[#allocation2 + $0x10] sm:$0xff] %v1312_v31  ;;  %v498_v25 = vld [vmem:[#allocation2 + $0xc0] sm:$0xff] }
 0x1c5   : > { %1336 = vst [vmem:[#allocation2 + $0x40] sm:$0xff] %v1304_v33 }
 0x1c6   : > { %v1273_v40 = vpop.f32.mrf.mxu3 }
 0x1c7   : > { %v1274_v1 = vadd.f32 %v1273_v40, %v1185_v34 }
 0x1c8   : > { %v1253_v36 = vpop.f32.mrf.mxu2  ;;  %v1078_v43 = vpop.f32.mrf.mxu0 }
 0x1c9   : > { %v1254_v42 = vadd.f32 %v1253_v36, %v1165_v35  ;;  %v1313_v44 = vadd.f32 %v1274_v1, %v502_v37  ;;  %v1167_v45 = vpop.f32.mrf.mxu1 }
 0x1ca   : > { %v1168_v49 = vadd.f32 %v1167_v45, %v1078_v43 }
 0x1cb   : > { %v1305_v46 = vadd.f32 %v1254_v42, %v494_v41  ;;  %1345 = vst [vmem:[#allocation2 + $0x28] sm:$0xff] %v1313_v44 }
 0x1cd   : > { %1337 = vst [vmem:[#allocation2 + $0xc8] sm:$0xff] %v1305_v46 }
 0x1ce   : > { %v1276_v53 = vpop.f32.mrf.mxu3 }
 0x1cf   : > { %v1277_v54 = vadd.f32 %v1276_v53, %v1188_v50 }
 0x1d0   : > { %v1256_v10 = vpop.f32.mrf.mxu2  ;;  %v1080_v57 = vpop.f32.mrf.mxu0 }
 0x1d1   : > { %v1257_v55 = vadd.f32 %v1256_v10, %v1168_v49  ;;  %v1314_v58 = vadd.f32 %v1277_v54, %v503_v51  ;;  %v1169_v59 = vpop.f32.mrf.mxu1 }
 0x1d2   : > { %v1170_v62 = vadd.f32 %v1169_v59, %v1080_v57 }
 0x1d3   : > { %v1306_v60 = vadd.f32 %v1257_v55, %v495_v52  ;;  %1346 = vst [vmem:[#allocation2 + $0xa0] sm:$0xff] %v1314_v58 }
 0x1d5   : > { %1338 = vst [vmem:[#allocation2 + $0xe0] sm:$0xff] %v1306_v60 }
 0x1d6   : > { %v1278_v2 = vpop.f32.mrf.mxu3 }
 0x1d7   : > { %v1279_v19 = vadd.f32 %v1278_v2, %v1190_v61 }
 0x1d8   : > { %v1258_v0 = vpop.f32.mrf.mxu2  ;;  %v1083_v6 = vpop.f32.mrf.mxu0 }
 0x1d9   : > { %v1259_v4 = vadd.f32 %v1258_v0, %v1170_v62  ;;  %v1315_v5 = vadd.f32 %v1279_v19, %v504_v63  ;;  %v1172_v7 = vpop.f32.mrf.mxu1 }
 0x1da   : > { %v1173_v11 = vadd.f32 %v1172_v7, %v1083_v6 }
 0x1db   : > { %v1307_v9 = vadd.f32 %v1259_v4, %v496_v3  ;;  %1347 = vst [vmem:[#allocation2 + $0xf8] sm:$0xff] %v1315_v5 }
 0x1dd   : > { %1339 = vst [vmem:[#allocation2 + $0x90] sm:$0xff] %v1307_v9 }
 0x1de   : > { %v1281_v8 = vpop.f32.mrf.mxu3 }
 0x1df   : > { %v1282_v47 = vadd.f32 %v1281_v8, %v1193_v12 }
 0x1e0   : > { %v1261_v28 = vpop.f32.mrf.mxu2  ;;  %v1085_v18 = vpop.f32.mrf.mxu0 }
 0x1e1   : > { %v1262_v14 = vadd.f32 %v1261_v28, %v1173_v11  ;;  %v1316_v15 = vadd.f32 %v1282_v47, %v505_v13  ;;  %v1174_v20 = vpop.f32.mrf.mxu1 }
 0x1e2   : > { %v1175_v22 = vadd.f32 %v1174_v20, %v1085_v18 }
 0x1e3   : > { %v1308_v16 = vadd.f32 %v1262_v14, %v497_v17  ;;  %1348 = vst [vmem:[#allocation2 + $0x20] sm:$0xff] %v1316_v15 }
 0x1e5   : > { %1340 = vst [vmem:[#allocation2 + $0x70] sm:$0xff] %v1308_v16 }
 0x1e6   : > { %v1283_v26 = vpop.f32.mrf.mxu3 }
 0x1e7   : > { %v1284_v38 = vadd.f32 %v1283_v26, %v1195_v21 }
 0x1e8   : > { %v1263_v30 = vpop.f32.mrf.mxu2 }
 0x1e9   : > { %v1264_v56 = vadd.f32 %v1263_v30, %v1175_v22  ;;  %v1317_v24 = vadd.f32 %v1284_v38, %v506_v23  ;;  %1354 = sbr.rel (%p2816_p1) target bundleno = 497 (0x1f1), region = 62 }
 0x1eb   : > { %v1309_v27 = vadd.f32 %v1264_v56, %v498_v25  ;;  %1349 = vst [vmem:[#allocation2 + $0x98] sm:$0xff] %v1317_v24 }
 0x1ed   : > { %1341 = vst [vmem:[#allocation2 + $0xc0] sm:$0xff] %v1309_v27 }
 0x1ee   : > { %v2400_v29 = vmov 0.0  }
 0x1ef   : > { %1355 = vst [vmem:[%s2985_s3] sm:$0x1] %v2400_v29 }
 0x1f0   : > { %1356 = vst [vmem:[%s2986_s4] sm:$0x1] %v2400_v29 }
 0x1f1 PF: > { %p2086_p2 = scmp.ne.s32.totalorder %s2381_s17, 2 }
 0x1f3   : > { %1360 = sbr.rel (%p2086_p2) target bundleno = 584 (0x248), region = 66 }
 0x1f8   : > { %v1361_v39 = vld [vmem:[#allocation2 + $0xb0] sm:$0xff]  ;;  %v1362_v48 = vld [vmem:[#allocation2] sm:$0xff]  ;;  %v1363_v31 = vld [vmem:[#allocation2 + $0xd8] sm:$0xff] }
 0x1f9   : > { %v2166_v32 = vpack.c.bf16 %v1362_v48, %v1361_v39  ;;  %v1458_v33 = vadd.f32 %v1362_v48, %v1361_v39  ;;  %v1498_v34 = vmul.f32 %v1361_v39, %v1361_v39  ;;  %v1499_v35 = vmul.f32 %v1362_v48, %v1362_v48  ;;  %v1364_v37 = vld [vmem:[#allocation2 + $0x18] sm:$0xff]  ;;  %v1365_v40 = vld [vmem:[#allocation2 + $0x50] sm:$0xff]  ;;  %v1366_v41 = vld [vmem:[#allocation2 + $0x68] sm:$0xff] }
 0x1fa   : > { %v2171_v36 = vpack.c.bf16 %v1364_v37, %v1363_v31  ;;  %v1500_v1 = vmul.f32 %v1363_v31, %v1363_v31  ;;  %v2176_v42 = vpack.c.bf16 %v1366_v41, %v1365_v40  ;;  %v1367_v43 = vld [vmem:[#allocation2 + $0x30] sm:$0xff]  ;;  %v1501_v46 = vmul.f32 %v1364_v37, %v1364_v37  ;;  %v1368_v49 = vld [vmem:[#allocation2 + $0x48] sm:$0xff]  ;;  %v1369_v50 = vld [vmem:[#allocation2 + $0x80] sm:$0xff] }
 0x1fb   : > { %2167 = vst [vmem:[%s2632_s8] sm:$0xff] %v2166_v32   ;;  %v1530_v44 = vadd.f32 %v1499_v35, %v1498_v34  ;;  %v1459_v45 = vadd.f32 %v1458_v33, %v1363_v31  ;;  %v1370_v51 = vld [vmem:[#allocation2 + $0x88] sm:$0xff]  ;;  %v2181_v53 = vpack.c.bf16 %v1368_v49, %v1367_v43  ;;  %v1502_v57 = vmul.f32 %v1365_v40, %v1365_v40  ;;  %v1372_v58 = vld [vmem:[#allocation2 + $0xb8] sm:$0xff]  ;;  %v1373_v59 = vld [vmem:[#allocation2 + $0x60] sm:$0xff] }
 0x1fc   : > { %2243 = vst [vmem:[%s2632_s8 + $0x8] sm:$0xff] %v2171_v36   ;;  %v2186_v52 = vpack.c.bf16 %v1370_v51, %v1369_v50  ;;  %v1371_v10 = vld [vmem:[#allocation2 + $0xe8] sm:$0xff]  ;;  %v2864_v60 = vld [vmem:[#allocation2 + $0xf0] sm:$0xff]  ;;  %v1503_v0 = vmul.f32 %v1366_v41, %v1366_v41  ;;  %v2871_v19 = vld [vmem:[#allocation2 + $0x78] sm:$0xff]  ;;  %v1504_v13 = vmul.f32 %v1367_v43, %v1367_v43  ;;  %v1505_v18 = vmul.f32 %v1368_v49, %v1368_v49 }
 0x1fd   : > { %v1460_v54 = vadd.f32 %v1459_v45, %v1364_v37  ;;  %v1531_v55 = vadd.f32 %v1530_v44, %v1500_v1  ;;  %2244 = vst [vmem:[%s2632_s8 + $0x10] sm:$0xff] %v2176_v42   ;;  %v2191_v61 = vpack.c.bf16 %v1372_v58, %v1371_v10  ;;  %v2196_v62 = vpack.c.bf16 %v2864_v60, %v1373_v59  ;;  %v2868_v63 = vld [vmem:[#allocation2 + $0x8] sm:$0xff]  ;;  %v2873_v4 = vld [vmem:[#allocation2 + $0x38] sm:$0xff]  ;;  %v2882_v9 = vld [vmem:[#allocation2 + $0x40] sm:$0xff] }
 0x1fe   : > { %2245 = vst [vmem:[%s2632_s8 + $0x18] sm:$0xff] %v2181_v53   ;;  %v2875_v5 = vld [vmem:[#allocation2 + $0x58] sm:$0xff]  ;;  %v2201_v6 = vpack.c.bf16 %v2871_v19, %v2868_v63  ;;  %v2885_v8 = vld [vmem:[#allocation2 + $0xc8] sm:$0xff]  ;;  %v2887_v17 = vld [vmem:[#allocation2 + $0xe0] sm:$0xff]  ;;  %v1506_v25 = vmul.f32 %v1369_v50, %v1369_v50  ;;  %v1507_v56 = vmul.f32 %v1370_v51, %v1370_v51  ;;  %v1508_v31 = vmul.f32 %v1371_v10, %v1371_v10 }
 0x1ff   : > { %v1532_v2 = vadd.f32 %v1531_v55, %v1501_v46  ;;  %v1461_v3 = vadd.f32 %v1460_v54, %v1365_v40  ;;  %2246 = vst [vmem:[%s2632_s8 + $0x20] sm:$0xff] %v2186_v52   ;;  %v2206_v7 = vpack.c.bf16 %v2875_v5, %v2873_v4  ;;  %v2889_v28 = vld [vmem:[#allocation2 + $0x90] sm:$0xff]  ;;  %v2211_v47 = vpack.c.bf16 %v2885_v8, %v2882_v9  ;;  %v2899_v21 = vld [vmem:[#allocation2 + $0xc0] sm:$0xff]  ;;  %v1385_v24 = vld [vmem:[#allocation2 + $0xa8] sm:$0xff] }
 0x200   : > { %2247 = vst [vmem:[%s2632_s8 + $0x28] sm:$0xff] %v2191_v61   ;;  %v2216_v14 = vpack.c.bf16 %v2889_v28, %v2887_v17  ;;  %v2897_v20 = vld [vmem:[#allocation2 + $0x70] sm:$0xff]  ;;  %v1509_v34 = vmul.f32 %v1372_v58, %v1372_v58  ;;  %v1388_v37 = vld [vmem:[#allocation2 + $0x28] sm:$0xff]  ;;  %v1510_v1 = vmul.f32 %v1373_v59, %v1373_v59  ;;  %v1511_v44 = vmul.f32 %v2864_v60, %v2864_v60  ;;  %v1389_v45 = vld [vmem:[#allocation2 + $0xa0] sm:$0xff] }
 0x201   : > { %v1462_v11 = vadd.f32 %v1461_v3, %v1366_v41  ;;  %v1533_v12 = vadd.f32 %v1532_v2, %v1502_v57  ;;  %2248 = vst [vmem:[%s2632_s8 + $0x30] sm:$0xff] %v2196_v62   ;;  %v2221_v22 = vpack.c.bf16 %v2899_v21, %v2897_v20  ;;  %v2906_v27 = vld [vmem:[#allocation2 + $0xd0] sm:$0xff]  ;;  %v1390_v46 = vld [vmem:[#allocation2 + $0xf8] sm:$0xff]  ;;  %v1512_v53 = vmul.f32 %v2868_v63, %v2868_v63  ;;  %v1391_v55 = vld [vmem:[#allocation2 + $0x20] sm:$0xff] }
 0x202   : > { %2249 = vst [vmem:[%s2632_s8 + $0x38] sm:$0xff] %v2201_v6   ;;  %v2226_v29 = vpack.c.bf16 %v2906_v27, %v1385_v24  ;;  %v1387_v35 = vld [vmem:[#allocation2 + $0x10] sm:$0xff]  ;;  %v1513_v54 = vmul.f32 %v2871_v19, %v2871_v19  ;;  %v1392_v57 = vld [vmem:[#allocation2 + $0x98] sm:$0xff]  ;;  %v1515_v3 = vmul.f32 %v2875_v5, %v2875_v5  ;;  %v1516_v6 = vmul.f32 %v2882_v9, %v2882_v9 }
 0x203   : > { %v1534_v15 = vadd.f32 %v1533_v12, %v1503_v0  ;;  %v1463_v16 = vadd.f32 %v1462_v11, %v1367_v43  ;;  %2250 = vst [vmem:[%s2632_s8 + $0x40] sm:$0xff] %v2206_v7   ;;  %v2231_v40 = vpack.c.bf16 %v1388_v37, %v1387_v35  ;;  %v1517_v11 = vmul.f32 %v2885_v8, %v2885_v8 }
 0x204   : > { %2251 = vst [vmem:[%s2632_s8 + $0x48] sm:$0xff] %v2211_v47  }
 0x205   : > { %v1464_v23 = vadd.f32 %v1463_v16, %v1368_v49  ;;  %v1535_v26 = vadd.f32 %v1534_v15, %v1504_v13  ;;  %2252 = vst [vmem:[%s2632_s8 + $0x50] sm:$0xff] %v2216_v14   ;;  %v2236_v49 = vpack.c.bf16 %v1390_v46, %v1389_v45 }
 0x206   : > { %2253 = vst [vmem:[%s2632_s8 + $0x58] sm:$0xff] %v2221_v22  }
 0x207   : > { %v1536_v30 = vadd.f32 %v1535_v26, %v1505_v18  ;;  %v1465_v38 = vadd.f32 %v1464_v23, %v1369_v50  ;;  %2254 = vst [vmem:[%s2632_s8 + $0x60] sm:$0xff] %v2226_v29   ;;  %v1524_v29 = vmul.f32 %v1387_v35, %v1387_v35 }
 0x208   : > { %2255 = vst [vmem:[%s2632_s8 + $0x68] sm:$0xff] %v2231_v40  }
 0x209   : > { %v1466_v39 = vadd.f32 %v1465_v38, %v1370_v51  ;;  %v1537_v48 = vadd.f32 %v1536_v30, %v1506_v25  ;;  %2256 = vst [vmem:[%s2632_s8 + $0x70] sm:$0xff] %v2236_v49   ;;  %v1522_v25 = vmul.f32 %v1385_v24, %v1385_v24  ;;  %v1523_v38 = vmul.f32 %v2906_v27, %v2906_v27 }
 0x20b   : > { %v1538_v32 = vadd.f32 %v1537_v48, %v1507_v56  ;;  %v1467_v33 = vadd.f32 %v1466_v39, %v1371_v10 }
 0x20d   : > { %v1468_v41 = vadd.f32 %v1467_v33, %v1372_v58  ;;  %v1539_v36 = vadd.f32 %v1538_v32, %v1508_v31  ;;  %v2241_v58 = vpack.c.bf16 %v1392_v57, %v1391_v55  ;;  %v1525_v31 = vmul.f32 %v1388_v37, %v1388_v37 }
 0x20e   : > { %v1526_v33 = vmul.f32 %v1389_v45, %v1389_v45 }
 0x20f   : > { %v1540_v42 = vadd.f32 %v1539_v36, %v1509_v34  ;;  %v1469_v43 = vadd.f32 %v1468_v41, %v1373_v59  ;;  %2257 = vst [vmem:[%s2632_s8 + $0x78] sm:$0xff] %v2241_v58  }
 0x211   : > { %v1470_v50 = vadd.f32 %v1469_v43, %v2864_v60  ;;  %v1541_v51 = vadd.f32 %v1540_v42, %v1510_v1  ;;  %v1514_v60 = vmul.f32 %v2873_v4, %v2873_v4  ;;  %v1528_v1 = vmul.f32 %v1391_v55, %v1391_v55 }
 0x212   : > { %v1529_v43 = vmul.f32 %v1392_v57, %v1392_v57 }
 0x213   : > { %v1542_v52 = vadd.f32 %v1541_v51, %v1511_v44  ;;  %v1471_v10 = vadd.f32 %v1470_v50, %v2868_v63 }
 0x215   : > { %v1472_v59 = vadd.f32 %v1471_v10, %v2871_v19  ;;  %v1543_v61 = vadd.f32 %v1542_v52, %v1512_v53 }
 0x217   : > { %v1544_v62 = vadd.f32 %v1543_v61, %v1513_v54  ;;  %v1473_v2 = vadd.f32 %v1472_v59, %v2873_v4  ;;  %v1518_v4 = vmul.f32 %v2887_v17, %v2887_v17 }
 0x219   : > { %v1474_v63 = vadd.f32 %v1473_v2, %v2875_v5  ;;  %v1545_v0 = vadd.f32 %v1544_v62, %v1514_v60  ;;  %v1519_v5 = vmul.f32 %v2889_v28, %v2889_v28 }
 0x21b   : > { %v1546_v7 = vadd.f32 %v1545_v0, %v1515_v3  ;;  %v1475_v19 = vadd.f32 %v1474_v63, %v2882_v9  ;;  %v1520_v9 = vmul.f32 %v2897_v20, %v2897_v20 }
 0x21d   : > { %v1476_v12 = vadd.f32 %v1475_v19, %v2885_v8  ;;  %v1547_v13 = vadd.f32 %v1546_v7, %v1516_v6  ;;  %v1521_v8 = vmul.f32 %v2899_v21, %v2899_v21 }
 0x21f   : > { %v1548_v47 = vadd.f32 %v1547_v13, %v1517_v11  ;;  %v1477_v14 = vadd.f32 %v1476_v12, %v2887_v17 }
 0x221   : > { %v1478_v15 = vadd.f32 %v1477_v14, %v2889_v28  ;;  %v1549_v16 = vadd.f32 %v1548_v47, %v1518_v4 }
 0x223   : > { %v1550_v18 = vadd.f32 %v1549_v16, %v1519_v5  ;;  %v1479_v22 = vadd.f32 %v1478_v15, %v2897_v20 }
 0x225   : > { %v1480_v23 = vadd.f32 %v1479_v22, %v2899_v21  ;;  %v1551_v26 = vadd.f32 %v1550_v18, %v1520_v9  ;;  %v1527_v21 = vmul.f32 %v1390_v46, %v1390_v46 }
 0x227   : > { %v1552_v17 = vadd.f32 %v1551_v26, %v1521_v8  ;;  %v1481_v30 = vadd.f32 %v1480_v23, %v1385_v24 }
 0x229   : > { %v1482_v28 = vadd.f32 %v1481_v30, %v2906_v27  ;;  %v1553_v56 = vadd.f32 %v1552_v17, %v1522_v25 }
 0x22b   : > { %v1554_v39 = vadd.f32 %v1553_v56, %v1523_v38  ;;  %v1483_v48 = vadd.f32 %v1482_v28, %v1387_v35 }
 0x22d   : > { %v1484_v20 = vadd.f32 %v1483_v48, %v1388_v37  ;;  %v1555_v32 = vadd.f32 %v1554_v39, %v1524_v29 }
 0x22f   : > { %v1556_v34 = vadd.f32 %v1555_v32, %v1525_v31  ;;  %v1485_v40 = vadd.f32 %v1484_v20, %v1389_v45  ;;  %v1457_v45 = vld [vmem:[%s2985_s3] sm:$0x1] }
 0x231   : > { %v1486_v41 = vadd.f32 %v1485_v40, %v1390_v46  ;;  %v1557_v36 = vadd.f32 %v1556_v34, %v1526_v33 }
 0x233   : > { %v1558_v24 = vadd.f32 %v1557_v36, %v1527_v21  ;;  %v1487_v42 = vadd.f32 %v1486_v41, %v1391_v55  ;;  %v1497_v55 = vld [vmem:[%s2986_s4] sm:$0x1] }
 0x235   : > { %v1488_v44 = vadd.f32 %v1487_v42, %v1392_v57  ;;  %v1559_v49 = vadd.f32 %v1558_v24, %v1528_v1 }
 0x237   : > { %v1489_v27 = vrot.slane %v1488_v44, 4  ;;  %v1560_v50 = vadd.f32 %v1559_v49, %v1529_v43 }
 0x239   : > { %v1490_v51 = vadd.f32 %v1489_v27, %v1488_v44  ;;  %v1561_v53 = vrot.slane %v1560_v50, 4 }
 0x23b   : > { %v1491_v35 = vrot.slane %v1490_v51, 2  ;;  %v1562_v52 = vadd.f32 %v1561_v53, %v1560_v50 }
 0x23d   : > { %v1492_v37 = vadd.f32 %v1491_v35, %v1490_v51  ;;  %v1563_v10 = vrot.slane %v1562_v52, 2 }
 0x23f   : > { %v1493_v54 = vrot.slane %v1492_v37, 1  ;;  %v1564_v58 = vadd.f32 %v1563_v10, %v1562_v52 }
 0x241   : > { %v1494_v46 = vadd.f32 %v1493_v54, %v1492_v37  ;;  %v1565_v59 = vrot.slane %v1564_v58, 1 }
 0x243   : > { %v1495_v57 = vadd.f32 %v1494_v46, %v1457_v45  ;;  %v1566_v61 = vadd.f32 %v1565_v59, %v1564_v58 }
 0x245   : > { %1496 = vst [vmem:[%s2985_s3] sm:$0x1] %v1495_v57  ;;  %v1567_v60 = vadd.f32 %v1566_v61, %v1497_v55 }
 0x247   : > { %1568 = vst [vmem:[%s2986_s4] sm:$0x1] %v1567_v60 }
 0x248 PF: > { %s15_s21 = sadd.s32 1, %s2397_s21   ;;  %s2988_s15 = smov %s2377_s16 }
 0x249   : > { %p12_p3 = scmp.ge.s32.totalorder %s15_s21, 8   ;;  %s2989_s16 = smov %s2477_s28 }
 0x24a   : > { %s2990_s17 = smov %s2389_s19  ;;  %s2991_s18 = smov %s2393_s20 }
 0x24b   : > { %s2992_s19 = smov %s2995_s22  ;;  %s2993_s20 = smov %s2999_s23 }
 0x24c   :  { %14 = sbr.rel (!%p12_p3) target bundleno = 4 (0x4), region = 134 }

// kernel: forward.37
= control target key start
LH: loop header
LB: loop body
LE: loop exit
PB: predicated region body
PF: predicated region fallthrough
CT: control target
= control target key end

     0   :  { %s490_s0 = inlined_call_operand.vmem [shape: bf16[128,128], index: 0, kind: input, shape index: {}]   ;;  %s491_s1 = inlined_call_operand.vmem [shape: bf16[128,128], index: 1, kind: input, shape index: {}]   ;;  %s492_s2 = inlined_call_operand.vmem [shape: bf16[128,128], index: 2, kind: input, shape index: {}]   ;;  %s493_s3 = inlined_call_operand.vmem [shape: bf16[128,128], index: 3, kind: output, shape index: {}]  }
   0x1   :  { %v211_v0 = vld [vmem:[%s490_s0] sm:$0xff]   ;;  %v346_v7 = vld [vmem:[%s490_s0 + $0x8] sm:$0xff]   ;;  %v347_v14 = vld [vmem:[%s490_s0 + $0x10] sm:$0xff]  }
   0x2   :  { %v243_v1 = vld [vmem:[%s491_s1] sm:$0xff]   ;;  %v212_v3 = vunpack.c.l.bf16 %v211_v0  ;;  %v213_v4 = vunpack.c.h.bf16 %v211_v0  ;;  %v353_v8 = vld [vmem:[%s491_s1 + $0x8] sm:$0xff]   ;;  %v216_v12 = vunpack.c.l.bf16 %v346_v7  ;;  %v217_v13 = vunpack.c.h.bf16 %v346_v7  ;;  %v354_v19 = vld [vmem:[%s491_s1 + $0x10] sm:$0xff]  }
   0x3   :  { %v275_v2 = vld [vmem:[%s492_s2] sm:$0xff]   ;;  %v244_v5 = vunpack.c.l.bf16 %v243_v1  ;;  %v245_v6 = vunpack.c.h.bf16 %v243_v1  ;;  %v360_v9 = vld [vmem:[%s492_s2 + $0x8] sm:$0xff]   ;;  %v248_v17 = vunpack.c.l.bf16 %v353_v8  ;;  %v249_v18 = vunpack.c.h.bf16 %v353_v8  ;;  %v361_v20 = vld [vmem:[%s492_s2 + $0x10] sm:$0xff]  }
   0x4   :  { %v276_v10 = vunpack.c.l.bf16 %v275_v2  ;;  %v277_v11 = vunpack.c.h.bf16 %v275_v2  ;;  %v280_v21 = vunpack.c.l.bf16 %v360_v9  ;;  %v281_v22 = vunpack.c.h.bf16 %v360_v9  ;;  %v348_v25 = vld [vmem:[%s490_s0 + $0x18] sm:$0xff]   ;;  %v349_v40 = vld [vmem:[%s490_s0 + $0x20] sm:$0xff]   ;;  %v350_v55 = vld [vmem:[%s490_s0 + $0x28] sm:$0xff]  }
   0x5   :  { %v78_v15 = vmax.f32 %v212_v3, %v244_v5  ;;  %v79_v16 = vmax.f32 %v213_v4, %v245_v6  ;;  %v220_v23 = vunpack.c.l.bf16 %v347_v14  ;;  %v221_v24 = vunpack.c.h.bf16 %v347_v14  ;;  %v355_v30 = vld [vmem:[%s491_s1 + $0x18] sm:$0xff]   ;;  %v356_v45 = vld [vmem:[%s491_s1 + $0x20] sm:$0xff]   ;;  %v357_v60 = vld [vmem:[%s491_s1 + $0x28] sm:$0xff]  }
   0x6   :  { %v80_v28 = vmax.f32 %v216_v12, %v248_v17  ;;  %v81_v29 = vmax.f32 %v217_v13, %v249_v18  ;;  %v252_v31 = vunpack.c.l.bf16 %v354_v19  ;;  %v253_v32 = vunpack.c.h.bf16 %v354_v19  ;;  %v362_v35 = vld [vmem:[%s492_s2 + $0x18] sm:$0xff]   ;;  %v363_v50 = vld [vmem:[%s492_s2 + $0x20] sm:$0xff]   ;;  %v364_v61 = vld [vmem:[%s492_s2 + $0x28] sm:$0xff]  }
   0x7   :  { %v158_v26 = vmax.f32 %v78_v15, %v276_v10  ;;  %v159_v27 = vmax.f32 %v79_v16, %v277_v11  ;;  %v284_v33 = vunpack.c.l.bf16 %v361_v20  ;;  %v285_v34 = vunpack.c.h.bf16 %v361_v20  ;;  %v351_v6 = vld [vmem:[%s490_s0 + $0x30] sm:$0xff]   ;;  %v352_v17 = vld [vmem:[%s490_s0 + $0x38] sm:$0xff]  }
   0x8   :  { %v160_v37 = vmax.f32 %v80_v28, %v280_v21  ;;  %v161_v38 = vmax.f32 %v81_v29, %v281_v22  ;;  %v224_v39 = vunpack.c.l.bf16 %v348_v25  ;;  %v82_v41 = vmax.f32 %v220_v23, %v252_v31  ;;  %v358_v11 = vld [vmem:[%s491_s1 + $0x30] sm:$0xff]   ;;  %v359_v22 = vld [vmem:[%s491_s1 + $0x38] sm:$0xff]  }
   0x9   :  { %v309_v36 = vpack.c.bf16 %v159_v27, %v158_v26  ;;  %v83_v42 = vmax.f32 %v221_v24, %v253_v32  ;;  %v225_v43 = vunpack.c.h.bf16 %v348_v25  ;;  %v256_v44 = vunpack.c.l.bf16 %v355_v30  ;;  %v365_v12 = vld [vmem:[%s492_s2 + $0x30] sm:$0xff]   ;;  %v366_v27 = vld [vmem:[%s492_s2 + $0x38] sm:$0xff]  }
   0xa   :  { %v314_v46 = vpack.c.bf16 %v161_v38, %v160_v37  ;;  %v257_v47 = vunpack.c.h.bf16 %v355_v30  ;;  %v288_v48 = vunpack.c.l.bf16 %v362_v35  ;;  %v289_v49 = vunpack.c.h.bf16 %v362_v35 }
   0xb   :  { %310 = vst [vmem:[%s493_s3] sm:$0xff] %v309_v36   ;;  %v162_v51 = vmax.f32 %v82_v41, %v284_v33  ;;  %v163_v52 = vmax.f32 %v83_v42, %v285_v34  ;;  %v84_v53 = vmax.f32 %v224_v39, %v256_v44  ;;  %v228_v54 = vunpack.c.l.bf16 %v349_v40 }
   0xc   :  { %367 = vst [vmem:[%s493_s3 + $0x8] sm:$0xff] %v314_v46   ;;  %v85_v56 = vmax.f32 %v225_v43, %v257_v47  ;;  %v229_v57 = vunpack.c.h.bf16 %v349_v40  ;;  %v260_v58 = vunpack.c.l.bf16 %v356_v45  ;;  %v261_v59 = vunpack.c.h.bf16 %v356_v45 }
   0xd   :  { %v319_v62 = vpack.c.bf16 %v163_v52, %v162_v51  ;;  %v164_v63 = vmax.f32 %v84_v53, %v288_v48  ;;  %v292_v0 = vunpack.c.l.bf16 %v363_v50  ;;  %v293_v1 = vunpack.c.h.bf16 %v363_v50 }
   0xe   :  { %v165_v2 = vmax.f32 %v85_v56, %v289_v49  ;;  %v86_v3 = vmax.f32 %v228_v54, %v260_v58  ;;  %v87_v4 = vmax.f32 %v229_v57, %v261_v59  ;;  %v232_v5 = vunpack.c.l.bf16 %v350_v55 }
   0xf   :  { %368 = vst [vmem:[%s493_s3 + $0x10] sm:$0xff] %v319_v62   ;;  %v233_v7 = vunpack.c.h.bf16 %v350_v55  ;;  %v264_v8 = vunpack.c.l.bf16 %v357_v60  ;;  %v265_v9 = vunpack.c.h.bf16 %v357_v60  ;;  %v296_v10 = vunpack.c.l.bf16 %v364_v61 }
  0x10   :  { %v324_v13 = vpack.c.bf16 %v165_v2, %v164_v63  ;;  %v166_v14 = vmax.f32 %v86_v3, %v292_v0  ;;  %v167_v15 = vmax.f32 %v87_v4, %v293_v1  ;;  %v297_v16 = vunpack.c.h.bf16 %v364_v61 }
  0x11   :  { %v88_v18 = vmax.f32 %v232_v5, %v264_v8  ;;  %v89_v19 = vmax.f32 %v233_v7, %v265_v9  ;;  %v236_v20 = vunpack.c.l.bf16 %v351_v6  ;;  %v237_v21 = vunpack.c.h.bf16 %v351_v6 }
  0x12   :  { %369 = vst [vmem:[%s493_s3 + $0x18] sm:$0xff] %v324_v13   ;;  %v329_v23 = vpack.c.bf16 %v167_v15, %v166_v14  ;;  %v268_v24 = vunpack.c.l.bf16 %v358_v11  ;;  %v269_v25 = vunpack.c.h.bf16 %v358_v11  ;;  %v300_v26 = vunpack.c.l.bf16 %v365_v12 }
  0x13   :  { %v168_v28 = vmax.f32 %v88_v18, %v296_v10  ;;  %v169_v29 = vmax.f32 %v89_v19, %v297_v16  ;;  %v301_v30 = vunpack.c.h.bf16 %v365_v12  ;;  %v240_v31 = vunpack.c.l.bf16 %v352_v17 }
  0x14   :  { %370 = vst [vmem:[%s493_s3 + $0x20] sm:$0xff] %v329_v23   ;;  %v90_v32 = vmax.f32 %v236_v20, %v268_v24  ;;  %v91_v33 = vmax.f32 %v237_v21, %v269_v25  ;;  %v241_v34 = vunpack.c.h.bf16 %v352_v17  ;;  %v272_v35 = vunpack.c.l.bf16 %v359_v22 }
  0x15   :  { %v334_v36 = vpack.c.bf16 %v169_v29, %v168_v28  ;;  %v273_v37 = vunpack.c.h.bf16 %v359_v22  ;;  %v304_v38 = vunpack.c.l.bf16 %v366_v27  ;;  %v305_v39 = vunpack.c.h.bf16 %v366_v27 }
  0x16   :  { %v170_v40 = vmax.f32 %v90_v32, %v300_v26  ;;  %v171_v41 = vmax.f32 %v91_v33, %v301_v30  ;;  %v92_v42 = vmax.f32 %v240_v31, %v272_v35 }
  0x17   :  { %371 = vst [vmem:[%s493_s3 + $0x28] sm:$0xff] %v334_v36   ;;  %v93_v43 = vmax.f32 %v241_v34, %v273_v37 }
  0x18   :  { %v339_v44 = vpack.c.bf16 %v171_v41, %v170_v40  ;;  %v172_v45 = vmax.f32 %v92_v42, %v304_v38 }
  0x19   :  { %v173_v46 = vmax.f32 %v93_v43, %v305_v39 }
  0x1a   :  { %372 = vst [vmem:[%s493_s3 + $0x30] sm:$0xff] %v339_v44  }
  0x1b   :  { %v344_v47 = vpack.c.bf16 %v173_v46, %v172_v45 }
  0x1d   :  { %373 = vst [vmem:[%s493_s3 + $0x38] sm:$0xff] %v344_v47  }

// kernel: forward.38
= control target key start
LH: loop header
LB: loop body
LE: loop exit
PB: predicated region body
PF: predicated region fallthrough
CT: control target
= control target key end

     0   :  { %s262_s0 = inlined_call_operand.vmem [shape: bf16[64,128], index: 0, kind: input, shape index: {}]   ;;  %s263_s1 = inlined_call_operand.vmem [shape: bf16[64,128], index: 1, kind: input, shape index: {}]   ;;  %s264_s2 = inlined_call_operand.vmem [shape: bf16[64,128], index: 2, kind: input, shape index: {}]   ;;  %s265_s3 = inlined_call_operand.vmem [shape: bf16[64,128], index: 3, kind: output, shape index: {}]  }
   0x1   :  { %v115_v0 = vld [vmem:[%s262_s0] sm:$0xff]   ;;  %v182_v7 = vld [vmem:[%s262_s0 + $0x8] sm:$0xff]   ;;  %v183_v14 = vld [vmem:[%s262_s0 + $0x10] sm:$0xff]  }
   0x2   :  { %v131_v1 = vld [vmem:[%s263_s1] sm:$0xff]   ;;  %v116_v3 = vunpack.c.l.bf16 %v115_v0  ;;  %v117_v4 = vunpack.c.h.bf16 %v115_v0  ;;  %v185_v8 = vld [vmem:[%s263_s1 + $0x8] sm:$0xff]   ;;  %v120_v12 = vunpack.c.l.bf16 %v182_v7  ;;  %v121_v13 = vunpack.c.h.bf16 %v182_v7  ;;  %v186_v19 = vld [vmem:[%s263_s1 + $0x10] sm:$0xff]  }
   0x3   :  { %v147_v2 = vld [vmem:[%s264_s2] sm:$0xff]   ;;  %v132_v5 = vunpack.c.l.bf16 %v131_v1  ;;  %v133_v6 = vunpack.c.h.bf16 %v131_v1  ;;  %v188_v9 = vld [vmem:[%s264_s2 + $0x8] sm:$0xff]   ;;  %v136_v17 = vunpack.c.l.bf16 %v185_v8  ;;  %v137_v18 = vunpack.c.h.bf16 %v185_v8  ;;  %v189_v20 = vld [vmem:[%s264_s2 + $0x10] sm:$0xff]  }
   0x4   :  { %v148_v10 = vunpack.c.l.bf16 %v147_v2  ;;  %v149_v11 = vunpack.c.h.bf16 %v147_v2  ;;  %v152_v21 = vunpack.c.l.bf16 %v188_v9  ;;  %v153_v22 = vunpack.c.h.bf16 %v188_v9  ;;  %v184_v25 = vld [vmem:[%s262_s0 + $0x18] sm:$0xff]  }
   0x5   :  { %v46_v15 = vmax.f32 %v116_v3, %v132_v5  ;;  %v47_v16 = vmax.f32 %v117_v4, %v133_v6  ;;  %v124_v23 = vunpack.c.l.bf16 %v183_v14  ;;  %v125_v24 = vunpack.c.h.bf16 %v183_v14  ;;  %v187_v30 = vld [vmem:[%s263_s1 + $0x18] sm:$0xff]  }
   0x6   :  { %v48_v28 = vmax.f32 %v120_v12, %v136_v17  ;;  %v49_v29 = vmax.f32 %v121_v13, %v137_v18  ;;  %v140_v31 = vunpack.c.l.bf16 %v186_v19  ;;  %v141_v32 = vunpack.c.h.bf16 %v186_v19  ;;  %v190_v35 = vld [vmem:[%s264_s2 + $0x18] sm:$0xff]  }
   0x7   :  { %v86_v26 = vmax.f32 %v46_v15, %v148_v10  ;;  %v87_v27 = vmax.f32 %v47_v16, %v149_v11  ;;  %v156_v33 = vunpack.c.l.bf16 %v189_v20  ;;  %v157_v34 = vunpack.c.h.bf16 %v189_v20 }
   0x8   :  { %v88_v37 = vmax.f32 %v48_v28, %v152_v21  ;;  %v89_v38 = vmax.f32 %v49_v29, %v153_v22  ;;  %v128_v39 = vunpack.c.l.bf16 %v184_v25  ;;  %v50_v40 = vmax.f32 %v124_v23, %v140_v31 }
   0x9   :  { %v165_v36 = vpack.c.bf16 %v87_v27, %v86_v26  ;;  %v51_v41 = vmax.f32 %v125_v24, %v141_v32  ;;  %v129_v42 = vunpack.c.h.bf16 %v184_v25  ;;  %v144_v43 = vunpack.c.l.bf16 %v187_v30 }
   0xa   :  { %v170_v44 = vpack.c.bf16 %v89_v38, %v88_v37  ;;  %v145_v45 = vunpack.c.h.bf16 %v187_v30  ;;  %v160_v46 = vunpack.c.l.bf16 %v190_v35  ;;  %v161_v47 = vunpack.c.h.bf16 %v190_v35 }
   0xb   :  { %166 = vst [vmem:[%s265_s3] sm:$0xff] %v165_v36   ;;  %v90_v48 = vmax.f32 %v50_v40, %v156_v33  ;;  %v91_v49 = vmax.f32 %v51_v41, %v157_v34  ;;  %v52_v50 = vmax.f32 %v128_v39, %v144_v43 }
   0xc   :  { %191 = vst [vmem:[%s265_s3 + $0x8] sm:$0xff] %v170_v44   ;;  %v53_v51 = vmax.f32 %v129_v42, %v145_v45 }
   0xd   :  { %v175_v52 = vpack.c.bf16 %v91_v49, %v90_v48  ;;  %v92_v53 = vmax.f32 %v52_v50, %v160_v46 }
   0xe   :  { %v93_v54 = vmax.f32 %v53_v51, %v161_v47 }
   0xf   :  { %192 = vst [vmem:[%s265_s3 + $0x10] sm:$0xff] %v175_v52  }
  0x10   :  { %v180_v55 = vpack.c.bf16 %v93_v54, %v92_v53 }
  0x12   :  { %193 = vst [vmem:[%s265_s3 + $0x18] sm:$0xff] %v180_v55  }

// kernel: forward.39
= control target key start
LH: loop header
LB: loop body
LE: loop exit
PB: predicated region body
PF: predicated region fallthrough
CT: control target
= control target key end

     0   :  { %s148_s0 = inlined_call_operand.vmem [shape: bf16[32,128], index: 0, kind: input, shape index: {}]   ;;  %s149_s1 = inlined_call_operand.vmem [shape: bf16[32,128], index: 1, kind: input, shape index: {}]   ;;  %s150_s2 = inlined_call_operand.vmem [shape: bf16[32,128], index: 2, kind: input, shape index: {}]   ;;  %s151_s3 = inlined_call_operand.vmem [shape: bf16[32,128], index: 3, kind: output, shape index: {}]  }
   0x1   :  { %v67_v0 = vld [vmem:[%s148_s0] sm:$0xff]   ;;  %v100_v7 = vld [vmem:[%s148_s0 + $0x8] sm:$0xff]  }
   0x2   :  { %v75_v1 = vld [vmem:[%s149_s1] sm:$0xff]   ;;  %v68_v3 = vunpack.c.l.bf16 %v67_v0  ;;  %v69_v4 = vunpack.c.h.bf16 %v67_v0  ;;  %v101_v8 = vld [vmem:[%s149_s1 + $0x8] sm:$0xff]   ;;  %v72_v12 = vunpack.c.l.bf16 %v100_v7  ;;  %v73_v13 = vunpack.c.h.bf16 %v100_v7 }
   0x3   :  { %v83_v2 = vld [vmem:[%s150_s2] sm:$0xff]   ;;  %v76_v5 = vunpack.c.l.bf16 %v75_v1  ;;  %v77_v6 = vunpack.c.h.bf16 %v75_v1  ;;  %v102_v9 = vld [vmem:[%s150_s2 + $0x8] sm:$0xff]   ;;  %v80_v16 = vunpack.c.l.bf16 %v101_v8  ;;  %v81_v17 = vunpack.c.h.bf16 %v101_v8 }
   0x4   :  { %v84_v10 = vunpack.c.l.bf16 %v83_v2  ;;  %v85_v11 = vunpack.c.h.bf16 %v83_v2  ;;  %v88_v18 = vunpack.c.l.bf16 %v102_v9  ;;  %v89_v19 = vunpack.c.h.bf16 %v102_v9 }
   0x5   :  { %v30_v14 = vmax.f32 %v68_v3, %v76_v5  ;;  %v31_v15 = vmax.f32 %v69_v4, %v77_v6  ;;  %v32_v22 = vmax.f32 %v72_v12, %v80_v16  ;;  %v33_v23 = vmax.f32 %v73_v13, %v81_v17 }
   0x7   :  { %v50_v20 = vmax.f32 %v30_v14, %v84_v10  ;;  %v51_v21 = vmax.f32 %v31_v15, %v85_v11  ;;  %v52_v25 = vmax.f32 %v32_v22, %v88_v18  ;;  %v53_v26 = vmax.f32 %v33_v23, %v89_v19 }
   0x9   :  { %v93_v24 = vpack.c.bf16 %v51_v21, %v50_v20  ;;  %v98_v27 = vpack.c.bf16 %v53_v26, %v52_v25 }
   0xb   :  { %94 = vst [vmem:[%s151_s3] sm:$0xff] %v93_v24  }
   0xc   :  { %103 = vst [vmem:[%s151_s3 + $0x8] sm:$0xff] %v98_v27  }

// kernel: forward.41
= control target key start
LH: loop header
LB: loop body
LE: loop exit
PB: predicated region body
PF: predicated region fallthrough
CT: control target
= control target key end

     0   :  { %s114_s0 = inlined_call_operand.vmem [shape: bf16[32,128], index: 0, kind: input, shape index: {}]   ;;  %s115_s1 = inlined_call_operand.vmem [shape: f32[1,128], index: 1, kind: input, shape index: {}]   ;;  %s116_s2 = inlined_call_operand.vmem [shape: f32[1,128], index: 2, kind: input, shape index: {}]   ;;  %s117_s3 = inlined_call_operand.vmem [shape: bf16[32,128], index: 3, kind: output, shape index: {}]  }
   0x1   :  { %v55_v0 = vld [vmem:[%s114_s0] sm:$0xff]   ;;  %v72_v5 = vld [vmem:[%s114_s0 + $0x8] sm:$0xff]  }
   0x2   :  { %v74_v1 = vld [vmem:[%s115_s1] ss:$0 sm:$0xff]  ;;  %v56_v2 = vunpack.c.l.bf16 %v55_v0  ;;  %v57_v3 = vunpack.c.h.bf16 %v55_v0  ;;  %v60_v6 = vunpack.c.l.bf16 %v72_v5  ;;  %v61_v7 = vunpack.c.h.bf16 %v72_v5 }
   0x3   :  { %v75_v4 = vld [vmem:[%s116_s2] ss:$0 sm:$0xff] }
   0x4   :  { %v26_v8 = vmul.f32 %v74_v1, %v56_v2  ;;  %v27_v9 = vmul.f32 %v74_v1, %v57_v3  ;;  %v28_v10 = vmul.f32 %v74_v1, %v60_v6  ;;  %v29_v11 = vmul.f32 %v74_v1, %v61_v7 }
   0x6   :  { %v34_v12 = vadd.f32 %v75_v4, %v26_v8  ;;  %v35_v13 = vadd.f32 %v75_v4, %v27_v9  ;;  %v36_v14 = vadd.f32 %v75_v4, %v28_v10  ;;  %v37_v15 = vadd.f32 %v75_v4, %v29_v11 }
   0x8   :  { %v38_v16 = vmax.f32 %v34_v12, 0.0  ;;  %v39_v17 = vmax.f32 %v35_v13, 0.0  ;;  %v40_v18 = vmax.f32 %v36_v14, 0.0  ;;  %v41_v19 = vmax.f32 %v37_v15, 0.0 }
   0xa   :  { %v65_v20 = vpack.c.bf16 %v39_v17, %v38_v16  ;;  %v70_v21 = vpack.c.bf16 %v41_v19, %v40_v18 }
   0xc   :  { %66 = vst [vmem:[%s117_s3] sm:$0xff] %v65_v20  }
   0xd   :  { %73 = vst [vmem:[%s117_s3 + $0x8] sm:$0xff] %v70_v21  }

// kernel: forward.40
= control target key start
LH: loop header
LB: loop body
LE: loop exit
PB: predicated region body
PF: predicated region fallthrough
CT: control target
= control target key end

     0   :  { %s1124_s15 = smov 0   ;;  %s1126_s16 = smov 0   ;;  %s1260_s0 = inlined_call_operand.vmem [shape: bf16[64,1792], index: 0, kind: input, shape index: {}]   ;;  %s1261_s1 = inlined_call_operand.vmem [shape: bf16[1792,128], index: 1, kind: input, shape index: {}]   ;;  %s1262_s2 = inlined_call_operand.vmem [shape: bf16[64,128], index: 2, kind: output, shape index: {0}]   ;;  %s1263_s3 = inlined_call_operand.vmem [shape: f32[1,128], index: 3, kind: output, shape index: {1}]   ;;  %s1264_s4 = inlined_call_operand.vmem [shape: f32[1,128], index: 4, kind: output, shape index: {2}]  }
   0x1   :  { %s1128_s17 = smov 0   ;;  %s1130_s18 = smov 0  }
   0x2   :  { %s1132_s19 = smov 0  }
   0x3 LB: > { %s27_s20 = sadd.s32 1, %s1091_s18  ;;  %p50_p1 = scmp.ne.s32.totalorder %s1083_s16, %s1079_s15  ;;  %s1095_s19 = sphi %s1132_s19, %s15_s19   ;;  %s1091_s18 = sphi %s1130_s18, %s1268_s18   ;;  %s1087_s17 = sphi %s1128_s17, %s1267_s17   ;;  %s1083_s16 = sphi %s1126_s16, %s1266_s16   ;;  %s1079_s15 = sphi %s1124_s15, %s1265_s15  }
   0x4   : > { %p28_p0 = scmp.ge.s32.totalorder %s27_s20, 7  ;;  %p51_p2 = scmp.eq.s32.totalorder %s1095_s19, 0 }
   0x5   : > { %s43_s22 = sadd.s32 1, %s1083_s16  ;;  %p837_p5 = scmp.ge.s32.totalorder %s1095_s19, 7 }
   0x6   : > { %s1270_s20 = smov (%p28_p0, %s27_s20), 0  ;;  %p52_p3 = por %p51_p2, %p50_p1 }
   0x7   : > { %s39_s21 = ssub.s32 %s1091_s18, %s1270_s20  ;;  %184 = sbr.rel (%p837_p5) target bundleno = 24 (0x18), region = 16 }
   0x8   : > { %p41_p4 = scmp.eq.s32.totalorder %s39_s21, 0 }
   0xa   : > { %s1159_s23 = scalar_select %p41_p4, %s1083_s16, %s43_s22  }
   0xc   : > { %187 = sbr.rel (!%p52_p3) target bundleno = 24 (0x18), region = 20  ;;  %s189_s24 = sand.u32 (%p52_p3), 1, %s1083_s16  }
   0xd   : > { %s950_s25 = sshll.u32 (%p52_p3), %s1091_s18, 3  ;;  %s838_s26 = sshll.u32 (%p52_p3), %s189_s24, 6 }
   0xe   : > { %s197_s29 = scalar_lea.vmem (%p52_p3), %s1260_s0, %s950_s25  ;;  %s191_s30 = scalar_lea.vmem (%p52_p3), [#allocation3], %s838_s26 }
   0xf   : > { %v240_v0 = vld [vmem:[%s197_s29] sm:$0xff] (%p52_p3)  ;;  %v242_v1 = vld [vmem:[%s197_s29 + $0x38] sm:$0xff] (%p52_p3)  ;;  %v244_v2 = vld [vmem:[%s197_s29 + $0x70] sm:$0xff] (%p52_p3) }
  0x10   : > { %241 = vst [vmem:[%s191_s30] sm:$0xff] (%p52_p3), %v240_v0  ;;  %v246_v3 = vld [vmem:[%s197_s29 + $0xa8] sm:$0xff] (%p52_p3)  ;;  %v248_v4 = vld [vmem:[%s197_s29 + $0xe0] sm:$0xff] (%p52_p3)  ;;  %v250_v5 = vld [vmem:[%s197_s29 + $0x118] sm:$0xff] (%p52_p3) }
  0x11   : > { %243 = vst [vmem:[%s191_s30 + $0x8] sm:$0xff] %v242_v1  ;;  %v252_v6 = vld [vmem:[%s197_s29 + $0x150] sm:$0xff]  ;;  %v254_v7 = vld [vmem:[%s197_s29 + $0x188] sm:$0xff] }
  0x12   : > { %245 = vst [vmem:[%s191_s30 + $0x10] sm:$0xff] %v244_v2 }
  0x13   : > { %247 = vst [vmem:[%s191_s30 + $0x18] sm:$0xff] %v246_v3 }
  0x14   : > { %249 = vst [vmem:[%s191_s30 + $0x20] sm:$0xff] %v248_v4 }
  0x15   : > { %251 = vst [vmem:[%s191_s30 + $0x28] sm:$0xff] %v250_v5 }
  0x16   : > { %253 = vst [vmem:[%s191_s30 + $0x30] sm:$0xff] %v252_v6 }
  0x17   : > { %255 = vst [vmem:[%s191_s30 + $0x38] sm:$0xff] %v254_v7 }
  0x18 PF: > { %p841_p6 = scmp.ge.s32.totalorder %s1095_s19, 1  ;;  %p272_p7 = scmp.lt.s32.totalorder %s1095_s19, 8 }
  0x1a   : > { %p273_p8 = pnand %p841_p6, %p272_p7 }
  0x1b   : > { %s279_s5 = sand.u32 (!%p273_p8), 1, %s1079_s15   ;;  %s843_s6 = sshll.u32 (!%p273_p8), %s1087_s17, 5 }
  0x1c   : > { %276 = sbr.rel (%p273_p8) target bundleno = 280 (0x118), region = 62  ;;  %s842_s7 = sshll.u32 (!%p273_p8), %s279_s5, 6 }
  0x1d   : > { %p324_p9 = scmp.lt.s32.totalorder (!%p273_p8), %s843_s6, 223  ;;  %p347_p10 = scmp.eq.s32.totalorder (!%p273_p8), %s1087_s17, 0 }
  0x1e   : > { %s1177_s12 = scalar_lea.vmem (!%p273_p8), [#allocation3], %s842_s7  ;;  %p845_p11 = scmp.ne.s32.totalorder (!%p273_p8), %s1087_s17, 0 }
  0x21   : > { %s1272_s6 = smov (!%p324_p9, %s843_s6), 223  ;;  %350 = sbr.rel (%p845_p11) target bundleno = 47 (0x2f), region = 70 }
  0x22   : > { %s844_s8 = sshll.u32 %s1272_s6, 2 }
  0x23   : > { %s1175_s11 = scalar_lea.vmem %s1261_s1, %s844_s8 }
  0x26   : > { %v1097_v8 = vmov 0.0  }
  0x27   : > { %351 = vst [vmem:[#allocation2 + $0x30] sm:$0xff] %v1097_v8 }
  0x28   : > { %352 = vst [vmem:[#allocation2] sm:$0xff] %v1097_v8 }
  0x29   : > { %353 = vst [vmem:[#allocation2 + $0x18] sm:$0xff] %v1097_v8 }
  0x2a   : > { %354 = vst [vmem:[#allocation2 + $0x10] sm:$0xff] %v1097_v8 }
  0x2b   : > { %355 = vst [vmem:[#allocation2 + $0x8] sm:$0xff] %v1097_v8 }
  0x2c   : > { %356 = vst [vmem:[#allocation2 + $0x20] sm:$0xff] %v1097_v8 }
  0x2d   : > { %357 = vst [vmem:[#allocation2 + $0x28] sm:$0xff] %v1097_v8 }
  0x2e   : > { %358 = vst [vmem:[#allocation2 + $0x38] sm:$0xff] %v1097_v8 }
  0x2f PF: > { %v966_v9 = vld [vmem:[%s1175_s11 + $0x38] sm:$0xff]  ;;  %v965_v11 = vld [vmem:[%s1175_s11 + $0x30] sm:$0xff]  ;;  %v964_v13 = vld [vmem:[%s1175_s11 + $0x28] sm:$0xff] }
  0x30   : > { %v974_v10 = vld [vmem:[%s1175_s11 + $0x78] sm:$0xff]  ;;  %543 = vmatpush.bf16.msra.mxu0 %v966_v9  ;;  %999 = vmatpush.bf16.msra.mxu2 %v966_v9  ;;  %v973_v12 = vld [vmem:[%s1175_s11 + $0x70] sm:$0xff]  ;;  %v972_v14 = vld [vmem:[%s1175_s11 + $0x68] sm:$0xff] }
  0x31   : > { %572 = vmatpush.bf16.msra.mxu1 %v974_v10  ;;  %1007 = vmatpush.bf16.msra.mxu3 %v974_v10  ;;  %v963_v15 = vld [vmem:[%s1175_s11 + $0x20] sm:$0xff]  ;;  %v962_v17 = vld [vmem:[%s1175_s11 + $0x18] sm:$0xff]  ;;  %v961_v19 = vld [vmem:[%s1175_s11 + $0x10] sm:$0xff] }
  0x32   : > { %v971_v16 = vld [vmem:[%s1175_s11 + $0x60] sm:$0xff]  ;;  %v970_v18 = vld [vmem:[%s1175_s11 + $0x58] sm:$0xff]  ;;  %v969_v20 = vld [vmem:[%s1175_s11 + $0x50] sm:$0xff] }
  0x33   : > { %v960_v21 = vld [vmem:[%s1175_s11 + $0x8] sm:$0xff]  ;;  %v959_v23 = vld [vmem:[%s1175_s11] sm:$0xff]  ;;  %v856_v37 = vld [vmem:[%s1177_s12 + $0x10] sm:$0xf] }
  0x34   : > { %544 = vmatpush.bf16.msra.mxu0 %v965_v11  ;;  %1000 = vmatpush.bf16.msra.mxu2 %v965_v11  ;;  %v968_v22 = vld [vmem:[%s1175_s11 + $0x48] sm:$0xff]  ;;  %v967_v24 = vld [vmem:[%s1175_s11 + $0x40] sm:$0xff]  ;;  %v954_v38 = vld [vmem:[%s1177_s12 + $0x14] sm:$0xf0] }
  0x35   : > { %573 = vmatpush.bf16.msra.mxu1 %v973_v12  ;;  %1008 = vmatpush.bf16.msra.mxu3 %v973_v12  ;;  %v848_v25 = vld [vmem:[%s1177_s12] sm:$0xf]  ;;  %v952_v26 = vld [vmem:[%s1177_s12 + $0x4] sm:$0xf0]  ;;  %v951_v29 = vld [vmem:[%s1177_s12 + $0x4] sm:$0xf]  ;;  %v857_v45 = vor.u32 %v954_v38, %v856_v37 }
  0x36   : > { %v864_v27 = vld [vmem:[%s1177_s12 + $0x20] sm:$0xf]  ;;  %v956_v28 = vld [vmem:[%s1177_s12 + $0x24] sm:$0xf0]  ;;  %v850_v30 = vld [vmem:[%s1177_s12 + $0x8] sm:$0xf0]  ;;  %v849_v33 = vor.u32 %v952_v26, %v848_v25 }
  0x37   : > { %v955_v31 = vld [vmem:[%s1177_s12 + $0x24] sm:$0xf]  ;;  %v866_v32 = vld [vmem:[%s1177_s12 + $0x28] sm:$0xf0]  ;;  %v865_v34 = vor.u32 %v956_v28, %v864_v27  ;;  %v853_v35 = vor.u32 %v951_v29, %v850_v30  ;;  %v872_v39 = vld [vmem:[%s1177_s12 + $0x30] sm:$0xf] }
  0x38   : > { %545 = vmatpush.bf16.msra.mxu0 %v964_v13  ;;  %1001 = vmatpush.bf16.msra.mxu2 %v964_v13  ;;  %v869_v36 = vor.u32 %v955_v31, %v866_v32  ;;  %v958_v40 = vld [vmem:[%s1177_s12 + $0x34] sm:$0xf0]  ;;  %v953_v41 = vld [vmem:[%s1177_s12 + $0x14] sm:$0xf]  ;;  %v858_v42 = vld [vmem:[%s1177_s12 + $0x18] sm:$0xf0] }
  0x39   : > { %574 = vmatpush.bf16.msra.mxu1 %v972_v14  ;;  %1009 = vmatpush.bf16.msra.mxu3 %v972_v14  ;;  %v957_v43 = vld [vmem:[%s1177_s12 + $0x34] sm:$0xf]  ;;  %v874_v44 = vld [vmem:[%s1177_s12 + $0x38] sm:$0xf0]  ;;  %v873_v46 = vor.u32 %v958_v40, %v872_v39  ;;  %v861_v47 = vor.u32 %v953_v41, %v858_v42  ;;  %v363_v55 = vld [vmem:[#allocation2 + $0x8] sm:$0xff]  ;;  %v1098_v25 = vmov (%p347_p10), 0.0  }
  0x3a   : > { %v877_v48 = vor.u32 %v957_v43, %v874_v44  ;;  %v359_v50 = vld [vmem:[#allocation2 + $0x30] sm:$0xff]  ;;  %v360_v59 = vld [vmem:[#allocation2] sm:$0xff]  ;;  %v361_v5 = vld [vmem:[#allocation2 + $0x18] sm:$0xff]  ;;  %622 = vst [vmem:[%s1263_s3] sm:$0x1] (%p347_p10), %v1098_v25 }
  0x3b   : > { %v364_v1 = vld [vmem:[#allocation2 + $0x20] sm:$0xff]  ;;  %v365_v11 = vld [vmem:[#allocation2 + $0x28] sm:$0xff]  ;;  %623 = vst [vmem:[%s1264_s4] sm:$0x1] (%p347_p10), %v1098_v25 }
  0x3c   : > { %546 = vmatpush.bf16.msra.mxu0 %v963_v15  ;;  %1002 = vmatpush.bf16.msra.mxu2 %v963_v15  ;;  %v362_v15 = vld [vmem:[#allocation2 + $0x10] sm:$0xff] }
  0x3d   : > { %575 = vmatpush.bf16.msra.mxu1 %v971_v16  ;;  %1010 = vmatpush.bf16.msra.mxu3 %v971_v16 }
  0x40   : > { %547 = vmatpush.bf16.msra.mxu0 %v962_v17  ;;  %1003 = vmatpush.bf16.msra.mxu2 %v962_v17 }
  0x41   : > { %576 = vmatpush.bf16.msra.mxu1 %v970_v18  ;;  %1011 = vmatpush.bf16.msra.mxu3 %v970_v18 }
  0x44   : > { %548 = vmatpush.bf16.msra.mxu0 %v961_v19  ;;  %1004 = vmatpush.bf16.msra.mxu2 %v961_v19 }
  0x45   : > { %577 = vmatpush.bf16.msra.mxu1 %v969_v20  ;;  %1012 = vmatpush.bf16.msra.mxu3 %v969_v20 }
  0x48   : > { %549 = vmatpush.bf16.msra.mxu0 %v960_v21  ;;  %1005 = vmatpush.bf16.msra.mxu2 %v960_v21  ;;  %v366_v21 = vld [vmem:[#allocation2 + $0x38] sm:$0xff] }
  0x49   : > { %578 = vmatpush.bf16.msra.mxu1 %v968_v22  ;;  %1013 = vmatpush.bf16.msra.mxu3 %v968_v22 }
  0x4c   : > { %550 = vmatpush.bf16.msra.mxu0 %v959_v23  ;;  %1006 = vmatpush.bf16.msra.mxu2 %v959_v23 }
  0x4d   : > { %579 = vmatpush.bf16.msra.mxu1 %v967_v24  ;;  %1014 = vmatpush.bf16.msra.mxu3 %v967_v24 }
  0x4f   : > { %551 = vmatmul.bf16.vlgmr.msra.gmra.mxu0 %v849_v33  ;;  %561 = vmatmul.bf16.vlgmr.msra.gmra.mxu2 %v865_v34 }
  0x50   : > { %580 = vmatmul.bf16.vlgmr.msra.gmra.mxu1 %v853_v35  ;;  %590 = vmatmul.bf16.vlgmr.msra.gmra.mxu3 %v869_v36 }
  0x5f   : > { %556 = vmatmul.bf16.gmra.mxu0 %v857_v45  ;;  %566 = vmatmul.bf16.gmra.mxu2 %v873_v46 }
  0x60   : > { %585 = vmatmul.bf16.gmra.mxu1 %v861_v47  ;;  %595 = vmatmul.bf16.gmra.mxu3 %v877_v48 }
  0xcc   : > { %v552_v49 = vpop.f32.mrf.mxu0 }
  0xcd   : > { %v581_v51 = vpop.f32.mrf.mxu1 }
  0xce   : > { %v582_v52 = vadd.f32 %v581_v51, %v552_v49 }
  0xd0   : > { %v601_v53 = vadd.f32 %v582_v52, %v359_v50 }
  0xd2   : > { %609 = vst [vmem:[#allocation2 + $0x30] sm:$0xff] %v601_v53  ;;  %v562_v54 = vpop.f32.mrf.mxu2 }
  0xd3   : > { %v591_v56 = vpop.f32.mrf.mxu3 }
  0xd4   : > { %v592_v57 = vadd.f32 %v591_v56, %v562_v54  ;;  %v554_v58 = vpop.f32.mrf.mxu0 }
  0xd5   : > { %v583_v60 = vpop.f32.mrf.mxu1 }
  0xd6   : > { %v605_v61 = vadd.f32 %v592_v57, %v363_v55  ;;  %v584_v62 = vadd.f32 %v583_v60, %v554_v58 }
  0xd8   : > { %613 = vst [vmem:[#allocation2 + $0x8] sm:$0xff] %v605_v61  ;;  %v602_v63 = vadd.f32 %v584_v62, %v360_v59 }
  0xda   : > { %610 = vst [vmem:[#allocation2] sm:$0xff] %v602_v63  ;;  %v564_v0 = vpop.f32.mrf.mxu2 }
  0xdb   : > { %v593_v2 = vpop.f32.mrf.mxu3 }
  0xdc   : > { %v594_v3 = vadd.f32 %v593_v2, %v564_v0  ;;  %v557_v4 = vpop.f32.mrf.mxu0 }
  0xdd   : > { %v586_v6 = vpop.f32.mrf.mxu1 }
  0xde   : > { %v606_v7 = vadd.f32 %v594_v3, %v364_v1  ;;  %v587_v8 = vadd.f32 %v586_v6, %v557_v4 }
  0xe0   : > { %614 = vst [vmem:[#allocation2 + $0x20] sm:$0xff] %v606_v7  ;;  %v603_v9 = vadd.f32 %v587_v8, %v361_v5 }
  0xe2   : > { %611 = vst [vmem:[#allocation2 + $0x18] sm:$0xff] %v603_v9  ;;  %v567_v10 = vpop.f32.mrf.mxu2 }
  0xe3   : > { %v596_v12 = vpop.f32.mrf.mxu3 }
  0xe4   : > { %v597_v13 = vadd.f32 %v596_v12, %v567_v10  ;;  %v559_v14 = vpop.f32.mrf.mxu0 }
  0xe5   : > { %v588_v16 = vpop.f32.mrf.mxu1 }
  0xe6   : > { %v607_v17 = vadd.f32 %v597_v13, %v365_v11  ;;  %v589_v18 = vadd.f32 %v588_v16, %v559_v14 }
  0xe8   : > { %615 = vst [vmem:[#allocation2 + $0x28] sm:$0xff] %v607_v17  ;;  %v604_v19 = vadd.f32 %v589_v18, %v362_v15 }
  0xea   : > { %612 = vst [vmem:[#allocation2 + $0x10] sm:$0xff] %v604_v19  ;;  %v569_v20 = vpop.f32.mrf.mxu2 }
  0xeb   : > { %v598_v22 = vpop.f32.mrf.mxu3 }
  0xec   : > { %v599_v23 = vadd.f32 %v598_v22, %v569_v20  ;;  %621 = sbr.rel (!%p347_p10) target bundleno = 241 (0xf1), region = 74 }
  0xee   : > { %v608_v24 = vadd.f32 %v599_v23, %v366_v21 }
  0xf0   : > { %616 = vst [vmem:[#allocation2 + $0x38] sm:$0xff] %v608_v24 }
  0xf1 PF: > { %p943_p12 = scmp.ne.s32.totalorder %s1087_s17, 6 }
  0xf3   : > { %627 = sbr.rel (%p943_p12) target bundleno = 280 (0x118), region = 78 }
  0xf8   : > { %v628_v26 = vld [vmem:[#allocation2 + $0x30] sm:$0xff]  ;;  %v629_v27 = vld [vmem:[#allocation2] sm:$0xff]  ;;  %v630_v28 = vld [vmem:[#allocation2 + $0x18] sm:$0xff] }
  0xf9   : > { %v979_v29 = vpack.c.bf16 %v629_v27, %v628_v26  ;;  %v653_v30 = vadd.f32 %v629_v27, %v628_v26  ;;  %v669_v31 = vmul.f32 %v628_v26, %v628_v26  ;;  %v670_v32 = vmul.f32 %v629_v27, %v629_v27  ;;  %v631_v33 = vld [vmem:[#allocation2 + $0x10] sm:$0xff]  ;;  %v632_v34 = vld [vmem:[#allocation2 + $0x8] sm:$0xff]  ;;  %v633_v35 = vld [vmem:[#allocation2 + $0x20] sm:$0xff] }
  0xfa   : > { %v984_v36 = vpack.c.bf16 %v631_v33, %v630_v28  ;;  %v671_v37 = vmul.f32 %v630_v28, %v630_v28  ;;  %v989_v38 = vpack.c.bf16 %v633_v35, %v632_v34  ;;  %v672_v41 = vmul.f32 %v631_v33, %v631_v33  ;;  %v634_v42 = vld [vmem:[#allocation2 + $0x28] sm:$0xff]  ;;  %v635_v43 = vld [vmem:[#allocation2 + $0x38] sm:$0xff]  ;;  %v652_v5 = vld [vmem:[%s1263_s3] sm:$0x1] }
  0xfb   : > { %980 = vst [vmem:[%s1262_s2] sm:$0xff] %v979_v29   ;;  %v677_v39 = vadd.f32 %v670_v32, %v669_v31  ;;  %v654_v40 = vadd.f32 %v653_v30, %v630_v28  ;;  %v994_v44 = vpack.c.bf16 %v635_v43, %v634_v42  ;;  %v673_v47 = vmul.f32 %v632_v34, %v632_v34  ;;  %v668_v8 = vld [vmem:[%s1264_s4] sm:$0x1] }
  0xfc   : > { %996 = vst [vmem:[%s1262_s2 + $0x8] sm:$0xff] %v984_v36   ;;  %v674_v50 = vmul.f32 %v633_v35, %v633_v35  ;;  %v675_v53 = vmul.f32 %v634_v42, %v634_v42  ;;  %v676_v56 = vmul.f32 %v635_v43, %v635_v43 }
  0xfd   : > { %v655_v45 = vadd.f32 %v654_v40, %v631_v33  ;;  %v678_v46 = vadd.f32 %v677_v39, %v671_v37  ;;  %997 = vst [vmem:[%s1262_s2 + $0x10] sm:$0xff] %v989_v38  }
  0xfe   : > { %998 = vst [vmem:[%s1262_s2 + $0x18] sm:$0xff] %v994_v44  }
  0xff   : > { %v679_v48 = vadd.f32 %v678_v46, %v672_v41  ;;  %v656_v49 = vadd.f32 %v655_v45, %v632_v34 }
 0x101   : > { %v657_v51 = vadd.f32 %v656_v49, %v633_v35  ;;  %v680_v52 = vadd.f32 %v679_v48, %v673_v47 }
 0x103   : > { %v681_v54 = vadd.f32 %v680_v52, %v674_v50  ;;  %v658_v55 = vadd.f32 %v657_v51, %v634_v42 }
 0x105   : > { %v659_v57 = vadd.f32 %v658_v55, %v635_v43  ;;  %v682_v58 = vadd.f32 %v681_v54, %v675_v53 }
 0x107   : > { %v660_v59 = vrot.slane %v659_v57, 4  ;;  %v683_v60 = vadd.f32 %v682_v58, %v676_v56 }
 0x109   : > { %v661_v61 = vadd.f32 %v660_v59, %v659_v57  ;;  %v684_v62 = vrot.slane %v683_v60, 4 }
 0x10b   : > { %v662_v63 = vrot.slane %v661_v61, 2  ;;  %v685_v0 = vadd.f32 %v684_v62, %v683_v60 }
 0x10d   : > { %v663_v1 = vadd.f32 %v662_v63, %v661_v61  ;;  %v686_v2 = vrot.slane %v685_v0, 2 }
 0x10f   : > { %v664_v3 = vrot.slane %v663_v1, 1  ;;  %v687_v4 = vadd.f32 %v686_v2, %v685_v0 }
 0x111   : > { %v665_v6 = vadd.f32 %v664_v3, %v663_v1  ;;  %v688_v7 = vrot.slane %v687_v4, 1 }
 0x113   : > { %v666_v9 = vadd.f32 %v665_v6, %v652_v5  ;;  %v689_v10 = vadd.f32 %v688_v7, %v687_v4 }
 0x115   : > { %667 = vst [vmem:[%s1263_s3] sm:$0x1] %v666_v9  ;;  %v690_v11 = vadd.f32 %v689_v10, %v668_v8 }
 0x117   : > { %691 = vst [vmem:[%s1264_s4] sm:$0x1] %v690_v11 }
 0x118 PF: > { %s15_s19 = sadd.s32 1, %s1095_s19   ;;  %s1265_s15 = smov %s1083_s16 }
 0x119   : > { %p12_p13 = scmp.ge.s32.totalorder %s15_s19, 9   ;;  %s1266_s16 = smov %s1159_s23 }
 0x11a   : > { %s1267_s17 = smov %s1091_s18  ;;  %s1268_s18 = smov %s1270_s20 }
 0x11b   :  { %14 = sbr.rel (!%p12_p13) target bundleno = 3 (0x3), region = 140 }

// kernel: forward.43
= control target key start
LH: loop header
LB: loop body
LE: loop exit
PB: predicated region body
PF: predicated region fallthrough
CT: control target
= control target key end

     0   :  { %s149_s0 = inlined_call_operand.vmem [shape: bf16[32,128], index: 0, kind: input, shape index: {}]   ;;  %s150_s1 = inlined_call_operand.vmem [shape: bf16[32,128], index: 1, kind: input, shape index: {}]   ;;  %s151_s2 = inlined_call_operand.vmem [shape: f32[1,128], index: 2, kind: input, shape index: {}]   ;;  %s152_s3 = inlined_call_operand.vmem [shape: f32[1,128], index: 3, kind: input, shape index: {}]   ;;  %s153_s4 = inlined_call_operand.vmem [shape: bf16[32,128], index: 4, kind: output, shape index: {}]  }
   0x1   :  { %v70_v0 = vld [vmem:[%s149_s0] sm:$0xff]   ;;  %v95_v8 = vld [vmem:[%s149_s0 + $0x8] sm:$0xff]  }
   0x2   :  { %v98_v1 = vld [vmem:[%s151_s2] ss:$0 sm:$0xff]  ;;  %v71_v2 = vunpack.c.l.bf16 %v70_v0  ;;  %v72_v3 = vunpack.c.h.bf16 %v70_v0  ;;  %v96_v9 = vld [vmem:[%s150_s1 + $0x8] sm:$0xff]   ;;  %v75_v12 = vunpack.c.l.bf16 %v95_v8  ;;  %v76_v13 = vunpack.c.h.bf16 %v95_v8 }
   0x3   :  { %v99_v4 = vld [vmem:[%s152_s3] ss:$0 sm:$0xff]  ;;  %v83_v14 = vunpack.c.l.bf16 %v96_v9  ;;  %v84_v15 = vunpack.c.h.bf16 %v96_v9 }
   0x4   :  { %v78_v5 = vld [vmem:[%s150_s1] sm:$0xff]   ;;  %v29_v10 = vmul.f32 %v98_v1, %v71_v2  ;;  %v30_v11 = vmul.f32 %v98_v1, %v72_v3  ;;  %v31_v18 = vmul.f32 %v98_v1, %v75_v12  ;;  %v32_v19 = vmul.f32 %v98_v1, %v76_v13 }
   0x5   :  { %v79_v6 = vunpack.c.l.bf16 %v78_v5  ;;  %v80_v7 = vunpack.c.h.bf16 %v78_v5 }
   0x6   :  { %v37_v16 = vadd.f32 %v99_v4, %v29_v10  ;;  %v38_v17 = vadd.f32 %v99_v4, %v30_v11  ;;  %v39_v22 = vadd.f32 %v99_v4, %v31_v18  ;;  %v40_v23 = vadd.f32 %v99_v4, %v32_v19 }
   0x8   :  { %v49_v20 = vadd.f32 %v79_v6, %v37_v16  ;;  %v50_v21 = vadd.f32 %v80_v7, %v38_v17  ;;  %v51_v26 = vadd.f32 %v83_v14, %v39_v22  ;;  %v52_v27 = vadd.f32 %v84_v15, %v40_v23 }
   0xa   :  { %v53_v24 = vmax.f32 %v49_v20, 0.0  ;;  %v54_v25 = vmax.f32 %v50_v21, 0.0  ;;  %v55_v29 = vmax.f32 %v51_v26, 0.0  ;;  %v56_v30 = vmax.f32 %v52_v27, 0.0 }
   0xc   :  { %v88_v28 = vpack.c.bf16 %v54_v25, %v53_v24  ;;  %v93_v31 = vpack.c.bf16 %v56_v30, %v55_v29 }
   0xe   :  { %89 = vst [vmem:[%s153_s4] sm:$0xff] %v88_v28  }
   0xf   :  { %97 = vst [vmem:[%s153_s4 + $0x8] sm:$0xff] %v93_v31  }

// kernel: forward.45
= control target key start
LH: loop header
LB: loop body
LE: loop exit
PB: predicated region body
PF: predicated region fallthrough
CT: control target
= control target key end

     0   :  { %s397_s1 = inlined_call_operand.vmem [shape: bf16[128,128], index: 1, kind: input, shape index: {}]   ;;  %s398_s2 = inlined_call_operand.vmem [shape: f32[1,128], index: 2, kind: input, shape index: {}]   ;;  %s399_s0 = inlined_call_operand.vmem [shape: bf16[64,128], index: 0, kind: input, shape index: {}]   ;;  %s400_s3 = inlined_call_operand.vmem [shape: bf16[64,128], index: 3, kind: output, shape index: {}]  }
   0x1   :  { %v277_v0 = vld [vmem:[%s397_s1 + $0x38] sm:$0xff]  ;;  %v276_v1 = vld [vmem:[%s397_s1 + $0x30] sm:$0xff]  ;;  %v275_v2 = vld [vmem:[%s397_s1 + $0x28] sm:$0xff] }
   0x2   :  { %130 = vmatpush.bf16.msra.mxu0 %v277_v0  ;;  %301 = vmatpush.bf16.msra.mxu1 %v277_v0  ;;  %v274_v3 = vld [vmem:[%s397_s1 + $0x20] sm:$0xff]  ;;  %v273_v4 = vld [vmem:[%s397_s1 + $0x18] sm:$0xff]  ;;  %v272_v5 = vld [vmem:[%s397_s1 + $0x10] sm:$0xff] }
   0x3   :  { %302 = vmatpush.bf16.msra.mxu2 %v277_v0  ;;  %303 = vmatpush.bf16.msra.mxu3 %v277_v0  ;;  %v271_v6 = vld [vmem:[%s397_s1 + $0x8] sm:$0xff]  ;;  %v270_v7 = vld [vmem:[%s397_s1] sm:$0xff]  ;;  %v268_v10 = vld [vmem:[%s399_s0 + $0x10] sm:$0xff] }
   0x4   :  { %v266_v8 = vld [vmem:[%s399_s0] sm:$0xff]  ;;  %v267_v9 = vld [vmem:[%s399_s0 + $0x8] sm:$0xff]  ;;  %v269_v11 = vld [vmem:[%s399_s0 + $0x18] sm:$0xff] }
   0x5   :  { %v325_v14 = vld [vmem:[%s398_s2] ss:$0 sm:$0xff] }
   0x6   :  { %131 = vmatpush.bf16.msra.mxu0 %v276_v1  ;;  %304 = vmatpush.bf16.msra.mxu1 %v276_v1 }
   0x7   :  { %305 = vmatpush.bf16.msra.mxu2 %v276_v1  ;;  %306 = vmatpush.bf16.msra.mxu3 %v276_v1 }
   0xa   :  { %132 = vmatpush.bf16.msra.mxu0 %v275_v2  ;;  %307 = vmatpush.bf16.msra.mxu1 %v275_v2 }
   0xb   :  { %308 = vmatpush.bf16.msra.mxu2 %v275_v2  ;;  %309 = vmatpush.bf16.msra.mxu3 %v275_v2 }
   0xe   :  { %133 = vmatpush.bf16.msra.mxu0 %v274_v3  ;;  %310 = vmatpush.bf16.msra.mxu1 %v274_v3 }
   0xf   :  { %311 = vmatpush.bf16.msra.mxu2 %v274_v3  ;;  %312 = vmatpush.bf16.msra.mxu3 %v274_v3 }
  0x12   :  { %134 = vmatpush.bf16.msra.mxu0 %v273_v4  ;;  %313 = vmatpush.bf16.msra.mxu1 %v273_v4 }
  0x13   :  { %314 = vmatpush.bf16.msra.mxu2 %v273_v4  ;;  %315 = vmatpush.bf16.msra.mxu3 %v273_v4 }
  0x16   :  { %135 = vmatpush.bf16.msra.mxu0 %v272_v5  ;;  %316 = vmatpush.bf16.msra.mxu1 %v272_v5 }
  0x17   :  { %317 = vmatpush.bf16.msra.mxu2 %v272_v5  ;;  %318 = vmatpush.bf16.msra.mxu3 %v272_v5 }
  0x1a   :  { %136 = vmatpush.bf16.msra.mxu0 %v271_v6  ;;  %319 = vmatpush.bf16.msra.mxu1 %v271_v6 }
  0x1b   :  { %320 = vmatpush.bf16.msra.mxu2 %v271_v6  ;;  %321 = vmatpush.bf16.msra.mxu3 %v271_v6 }
  0x1e   :  { %137 = vmatpush.bf16.msra.mxu0 %v270_v7  ;;  %322 = vmatpush.bf16.msra.mxu1 %v270_v7 }
  0x1f   :  { %323 = vmatpush.bf16.msra.mxu2 %v270_v7  ;;  %324 = vmatpush.bf16.msra.mxu3 %v270_v7 }
  0x21   :  { %138 = vmatmul.bf16.vlgmr.msra.gmra.mxu0 %v266_v8  ;;  %143 = vmatmul.bf16.vlgmr.msra.gmra.mxu1 %v267_v9 }
  0x22   :  { %148 = vmatmul.bf16.vlgmr.msra.gmra.mxu2 %v268_v10  ;;  %153 = vmatmul.bf16.vlgmr.msra.gmra.mxu3 %v269_v11 }
  0x9e   :  { %v139_v12 = vpop.f32.mrf.mxu0  ;;  %v144_v13 = vpop.f32.mrf.mxu1 }
  0x9f   :  { %v190_v19 = vadd.f32 %v325_v14, %v139_v12  ;;  %v192_v20 = vadd.f32 %v325_v14, %v144_v13 }
  0xa5   :  { %v149_v15 = vpop.f32.mrf.mxu2  ;;  %v154_v16 = vpop.f32.mrf.mxu3 }
  0xa6   :  { %v141_v17 = vpop.f32.mrf.mxu0  ;;  %v146_v18 = vpop.f32.mrf.mxu1  ;;  %v194_v27 = vadd.f32 %v325_v14, %v149_v15  ;;  %v196_v28 = vadd.f32 %v325_v14, %v154_v16 }
  0xa7   :  { %v191_v21 = vadd.f32 %v325_v14, %v141_v17  ;;  %v193_v22 = vadd.f32 %v325_v14, %v146_v18 }
  0xa9   :  { %v281_v23 = vpack.c.bf16 %v191_v21, %v190_v19  ;;  %v286_v24 = vpack.c.bf16 %v193_v22, %v192_v20 }
  0xab   :  { %282 = vst [vmem:[%s400_s3] sm:$0xff] %v281_v23  }
  0xac   :  { %298 = vst [vmem:[%s400_s3 + $0x8] sm:$0xff] %v286_v24  }
  0xad   :  { %v151_v25 = vpop.f32.mrf.mxu2  ;;  %v156_v26 = vpop.f32.mrf.mxu3 }
  0xae   :  { %v195_v29 = vadd.f32 %v325_v14, %v151_v25  ;;  %v197_v30 = vadd.f32 %v325_v14, %v156_v26 }
  0xb0   :  { %v291_v31 = vpack.c.bf16 %v195_v29, %v194_v27  ;;  %v296_v32 = vpack.c.bf16 %v197_v30, %v196_v28 }
  0xb2   :  { %299 = vst [vmem:[%s400_s3 + $0x10] sm:$0xff] %v291_v31  }
  0xb3   :  { %300 = vst [vmem:[%s400_s3 + $0x18] sm:$0xff] %v296_v32  }

// kernel: forward.47
= control target key start
LH: loop header
LB: loop body
LE: loop exit
PB: predicated region body
PF: predicated region fallthrough
CT: control target
= control target key end

     0   :  { %s876_s12 = smov 0   ;;  %s878_s13 = smov 0   ;;  %s971_s0 = inlined_call_operand.vmem [shape: bf16[2,32,32], index: 0, kind: input, shape index: {}]   ;;  %s972_s1 = inlined_call_operand.vmem [shape: bf16[2,32,32], index: 1, kind: input, shape index: {}]   ;;  %s973_s2 = inlined_call_operand.vmem [shape: bf16[2,32,32], index: 2, kind: input, shape index: {}]   ;;  %s974_s3 = inlined_call_operand.vmem [shape: bf16[2,32,32], index: 3, kind: output, shape index: {}]  }
   0x1   :  { %s880_s14 = smov 0  }
   0x2 LB: > { %s32_s15 = sadd.s32 1, %s847_s13  ;;  %p722_p0 = scmp.ge.s32.totalorder %s851_s14, 1  ;;  %s851_s14 = sphi %s880_s14, %s13_s14   ;;  %s847_s13 = sphi %s878_s13, %s976_s13   ;;  %s843_s12 = sphi %s876_s12, %s975_s12  }
   0x3   : > { %p34_p1 = scmp.ge.s32.totalorder %s32_s15, 2  ;;  %p199_p2 = scmp.lt.s32.totalorder %s851_s14, 3 }
   0x5   : > { %s978_s15 = smov (%p34_p1, %s32_s15), 0  ;;  %p200_p3 = pnand %p722_p0, %p199_p2 }
   0x6   : > { %p250_p4 = scmp.lt.s32.totalorder (!%p200_p3), %s843_s12, 1 }
   0x7   : > { %203 = sbr.rel (%p200_p3) target bundleno = 706 (0x2c2), region = 32 }
   0xc   : > { %s980_s12 = smov (!%p250_p4, %s843_s12), 1  ;;  %vm303_vm0 = vcmask 261120   ;;  %vm294_vm1 = vcmask 7168   ;;  %v853_v6 = vmov -inf   ;;  %v854_v15 = vmov 0  }
   0xd   : > { %s894_s16 = sshll.u32 %s980_s12, 4  ;;  %295 = vst.msk [vmem:[#allocation2] sm:$0xff] %vm294_vm1, %v853_v6  ;;  %803 = vset.pattern.permute.xlu0 %v854_v15  ;;  %802 = vset.pattern.permute.xlu2 %v854_v15  ;;  %v855_v16 = vmov 0.0   ;;  %vm587_vm2 = vcmask 257024  }
   0xe   : > { %s267_s19 = scalar_lea.vmem %s972_s1, %s894_s16  ;;  %s257_s22 = scalar_lea.vmem %s971_s0, %s894_s16  ;;  %296 = vst.msk [vmem:[#allocation2 + $0x8] sm:$0xff] %vm294_vm1, %v853_v6  ;;  %804 = vset.pattern.permute.xlu1 %v854_v15 }
   0xf   : > { %v768_v0 = vld [vmem:[%s267_s19 + $0x8] sm:$0xff]  ;;  %v767_v2 = vld [vmem:[%s267_s19] sm:$0xff]  ;;  %297 = vst.msk [vmem:[#allocation2 + $0x10] sm:$0xff] %vm294_vm1, %v853_v6  ;;  %s277_s25 = scalar_lea.vmem %s973_s2, %s894_s16  ;;  %s287_s28 = scalar_lea.vmem %s974_s3, %s894_s16 }
  0x10   : > { %v347_v1 = vsel %vm303_vm0, %v768_v0, 0  ;;  %v344_v3 = vsel %vm303_vm0, %v767_v2, 0  ;;  %v765_v4 = vld [vmem:[%s257_s22] sm:$0xff]  ;;  %v766_v5 = vld [vmem:[%s257_s22 + $0x8] sm:$0xff]  ;;  %298 = vst.msk [vmem:[#allocation2 + $0x18] sm:$0xff] %vm294_vm1, %v853_v6 }
  0x11   : > { %355 = vmatpush.bf16.xpose.msra.mxu0 %v347_v1  ;;  %771 = vmatpush.bf16.xpose.msra.mxu2 %v347_v1  ;;  %301 = vst.msk [vmem:[#allocation3 + $0x10] sm:$0xff] %vm294_vm1, %v855_v16  ;;  %v770_v33 = vld [vmem:[%s277_s25 + $0x8] sm:$0xff]  ;;  %v769_v34 = vld [vmem:[%s277_s25] sm:$0xff] }
  0x12   : > { %299 = vst.msk [vmem:[#allocation3] sm:$0xff] %vm294_vm1, %v855_v16  ;;  %773 = vmatpush.bf16.msra.mxu3 %v770_v33  ;;  %519 = vmatpush.bf16.msra.mxu1 %v770_v33 }
  0x13   : > { %300 = vst.msk [vmem:[#allocation3 + $0x8] sm:$0xff] %vm294_vm1, %v855_v16 }
  0x14   : > { %302 = vst.msk [vmem:[#allocation3 + $0x18] sm:$0xff] %vm294_vm1, %v855_v16  ;;  %v368_v17 = vld [vmem:[#allocation2] sm:$0xff] }
  0x15   : > { %304 = vst.msk [vmem:[#allocation4] sm:$0xff] %vm303_vm0, %v855_v16  ;;  %v369_v23 = vld [vmem:[#allocation2 + $0x8] sm:$0xff] }
  0x16   : > { %305 = vst.msk [vmem:[#allocation4 + $0x8] sm:$0xff] %vm303_vm0, %v855_v16  ;;  %v370_v21 = vld [vmem:[#allocation2 + $0x10] sm:$0xff]  ;;  %774 = vmatpush.bf16.msra.mxu3 %v769_v34  ;;  %520 = vmatpush.bf16.msra.mxu1 %v769_v34 }
  0x17   : > { %306 = vst.msk [vmem:[#allocation4 + $0x10] sm:$0xff] %vm303_vm0, %v855_v16  ;;  %v371_v29 = vld [vmem:[#allocation2 + $0x18] sm:$0xff] }
  0x18   : > { %307 = vst.msk [vmem:[#allocation4 + $0x18] sm:$0xff] %vm303_vm0, %v855_v16  ;;  %v434_v0 = vld [vmem:[#allocation3 + $0x10] sm:$0xff] }
  0x19   : > { %356 = vmatpush.bf16.xpose.msra.mxu0 %v344_v3  ;;  %772 = vmatpush.bf16.xpose.msra.mxu2 %v344_v3  ;;  %v432_v6 = vld [vmem:[#allocation3] sm:$0xff] }
  0x1b   : > { %v435_v34 = vld [vmem:[#allocation3 + $0x18] sm:$0xff] }
  0x20   : > { %747 = vmatmul.msk.bf16.vlgmr.msra.gmra.mxu0 %vm303_vm0, %v765_v4  ;;  %748 = vmatmul.msk.bf16.vlgmr.msra.gmra.mxu2 %vm303_vm0, %v766_v5 }
  0x9d   : > { %v912_v7 = vpop.f32.mrf.mxu0 }
  0x9e   : > { %v372_v8 = vsel %vm303_vm0, %v912_v7, -inf }
  0x9f   : > { %373 = vmax.xlane.f32.xlu1 %v372_v8 }
  0xa3   : > { %v363_v9 = vpop.f32.mrf.mxu2 }
  0xa4   : > { %v378_v10 = vsel %vm303_vm0, %v363_v9, -inf }
  0xa5   : > { %379 = vmax.xlane.f32.xlu0 %v378_v10  ;;  %v917_v11 = vpop.f32.mrf.mxu0 }
  0xa6   : > { %v375_v12 = vsel %vm303_vm0, %v917_v11, -inf }
  0xa7   : > { %376 = vmax.xlane.f32.xlu1 %v375_v12 }
  0xab   : > { %v365_v13 = vpop.f32.mrf.mxu2 }
  0xac   : > { %v381_v14 = vsel %vm303_vm0, %v365_v13, -inf }
  0xad   : > { %382 = vmax.xlane.f32.xlu0 %v381_v14 }
 0x112   : > { %v374_v18 = vpop.xlane.xlu1 %373 }
 0x113   : > { %v384_v19 = vmax.f32 %v368_v17, %v374_v18  ;;  %v461_v18 = vld [vmem:[#allocation4] sm:$0xff] }
 0x115   : > { %v388_v20 = vsub.f32 %v368_v17, %v384_v19  ;;  %540 = vst.msk [vmem:[#allocation2] sm:$0xff] %vm294_vm1, %v384_v19  ;;  %402 = vperm.xlu0 %803, %v384_v19   ;;  %v463_v17 = vld [vmem:[#allocation4 + $0x10] sm:$0xff] }
 0x117   : > { %v392_v56 = vmul.f32 1.442695, %v388_v20 }
 0x118   : > { %v380_v22 = vpop.xlane.xlu0 %379 }
 0x119   : > { %v386_v24 = vmax.f32 %v370_v21, %v380_v22 }
 0x11a   : > { %v377_v25 = vpop.xlane.xlu1 %376 }
 0x11b   : > { %v390_v26 = vsub.f32 %v370_v21, %v386_v24  ;;  %542 = vst.msk [vmem:[#allocation2 + $0x10] sm:$0xff] %vm294_vm1, %v386_v24  ;;  %v385_v27 = vmax.f32 %v369_v23, %v377_v25  ;;  %412 = vperm.xlu2 %802, %v386_v24  }
 0x11d   : > { %v389_v28 = vsub.f32 %v369_v23, %v385_v27  ;;  %541 = vst.msk [vmem:[#allocation2 + $0x8] sm:$0xff] %vm294_vm1, %v385_v27  ;;  %407 = vperm.xlu1 %804, %v385_v27   ;;  %v396_v57 = vmul.f32 1.442695, %v390_v26 }
 0x11f   : > { %v394_v58 = vmul.f32 1.442695, %v389_v28 }
 0x120   : > { %v383_v30 = vpop.xlane.xlu0 %382 }
 0x121   : > { %v387_v31 = vmax.f32 %v371_v29, %v383_v30 }
 0x123   : > { %v391_v32 = vsub.f32 %v371_v29, %v387_v31  ;;  %543 = vst.msk [vmem:[#allocation2 + $0x18] sm:$0xff] %vm294_vm1, %v387_v31  ;;  %417 = vperm.xlu2 %802, %v387_v31   ;;  %v462_v29 = vld [vmem:[#allocation4 + $0x8] sm:$0xff] }
 0x125   : > { %v398_v63 = vmul.f32 1.442695, %v391_v32 }
 0x175   : > { %v413_v35 = vpop.permute.xlu2 %412 }
 0x176   : > { %v422_v36 = vsub.f32 %v363_v9, %v413_v35 }
 0x178   : > { %v428_v37 = vmul.f32 1.442695, %v422_v36 }
 0x17a   : > { %805 = vpow2.f32 %v428_v37 }
 0x17d   : > { %v418_v38 = vpop.permute.xlu2 %417 }
 0x17e   : > { %v423_v39 = vsub.f32 %v365_v13, %v418_v38  ;;  %v464_v38 = vld [vmem:[#allocation4 + $0x18] sm:$0xff] }
 0x180   : > { %v806_v40 = vpop.eup %805  ;;  %v430_v41 = vmul.f32 1.442695, %v423_v39 }
 0x181   : > { %v446_v42 = vsel %vm303_vm0, %v806_v40, 0.0 }
 0x182   : > { %807 = vpow2.f32 %v430_v41  ;;  %447 = vadd.xlane.f32.xlu0 %v446_v42 }
 0x187   : > { %v403_v43 = vpop.permute.xlu0 %402 }
 0x188   : > { %v808_v44 = vpop.eup %807  ;;  %v420_v45 = vsub.f32 %v912_v7, %v403_v43 }
 0x189   : > { %v490_v46 = vpack.c.bf16 %v808_v44, %v806_v40  ;;  %v449_v62 = vsel %vm303_vm0, %v808_v44, 0.0 }
 0x18a   : > { %v424_v47 = vmul.f32 1.442695, %v420_v45 }
 0x18b   : > { %758 = vmatmul.msk.bf16.vlgmr.msra.gmra.mxu3 %vm303_vm0, %v490_v46 }
 0x18c   : > { %809 = vpow2.f32 %v424_v47 }
 0x18f   : > { %v408_v48 = vpop.permute.xlu1 %407 }
 0x190   : > { %v421_v49 = vsub.f32 %v917_v11, %v408_v48  ;;  %v433_v11 = vld [vmem:[#allocation3 + $0x8] sm:$0xff] }
 0x192   : > { %v810_v50 = vpop.eup %809  ;;  %v426_v51 = vmul.f32 1.442695, %v421_v49 }
 0x193   : > { %v440_v52 = vsel %vm303_vm0, %v810_v50, 0.0 }
 0x194   : > { %811 = vpow2.f32 %v426_v51  ;;  %441 = vadd.xlane.f32.xlu2 %v440_v52 }
 0x195   : > { %813 = vpow2.f32 %v392_v56 }
 0x196   : > { %815 = vpow2.f32 %v396_v57 }
 0x197   : > { %817 = vpow2.f32 %v394_v58 }
 0x198   : > { %819 = vpow2.f32 %v398_v63 }
 0x19a   : > { %v812_v53 = vpop.eup %811 }
 0x19b   : > { %v443_v54 = vsel %vm303_vm0, %v812_v53, 0.0  ;;  %v489_v55 = vpack.c.bf16 %v812_v53, %v810_v50  ;;  %v814_v59 = vpop.eup %813 }
 0x19c   : > { %444 = vadd.xlane.f32.xlu1 %v443_v54  ;;  %v816_v60 = vpop.eup %815  ;;  %v436_v8 = vmul.f32 %v814_v59, %v432_v6 }
 0x19d   : > { %757 = vmatmul.msk.bf16.vlgmr.msra.gmra.mxu1 %vm303_vm0, %v489_v55  ;;  %v818_v61 = vpop.eup %817  ;;  %v438_v2 = vmul.f32 %v816_v60, %v434_v0 }
 0x19e   : > { %v820_v1 = vpop.eup %819  ;;  %v437_v12 = vmul.f32 %v818_v61, %v433_v11 }
 0x19f   : > { %v439_v35 = vmul.f32 %v820_v1, %v435_v34 }
 0x1ac   : > { %467 = vperm.xlu2 %802, %v814_v59  }
 0x1b4   : > { %477 = vperm.xlu2 %802, %v816_v60  }
 0x1b5   : > { %472 = vperm.xlu1 %804, %v818_v61  }
 0x1dd   : > { %450 = vadd.xlane.f32.xlu2 %v449_v62 }
 0x1f5   : > { %v448_v3 = vpop.xlane.xlu0 %447  ;;  %482 = vperm.xlu2 %802, %v820_v1  }
 0x1f6   : > { %v454_v4 = vadd.f32 %v448_v3, %v438_v2 }
 0x1f8   : > { %459 = vst.msk [vmem:[#allocation3 + $0x10] sm:$0xff] %vm294_vm1, %v454_v4 }
 0x1ff   : > { %v553_v5 = vld [vmem:[#allocation3 + $0x10] sm:$0xff] }
 0x200   : > { %821 = vrcp.f32 %v553_v5 }
 0x206   : > { %v822_v7 = vpop.eup %821 }
 0x207   : > { %v442_v9 = vpop.xlane.xlu2 %441  ;;  %571 = vperm.xlu1 %804, %v822_v7  }
 0x208   : > { %v452_v10 = vadd.f32 %v442_v9, %v436_v8 }
 0x20a   : > { %457 = vst.msk [vmem:[#allocation3] sm:$0xff] %vm294_vm1, %v452_v10 }
 0x20e   : > { %v527_v22 = vpop.f32.mrf.mxu3 }
 0x20f   : > { %v468_v13 = vpop.permute.xlu2 %467  ;;  %v445_v14 = vpop.xlane.xlu1 %444 }
 0x210   : > { %v453_v15 = vadd.f32 %v445_v14, %v437_v12  ;;  %v485_v23 = vmul.f32 %v468_v13, %v461_v18 }
 0x211   : > { %v551_v16 = vld [vmem:[#allocation3] sm:$0xff] }
 0x212   : > { %458 = vst.msk [vmem:[#allocation3 + $0x8] sm:$0xff] %vm294_vm1, %v453_v15  ;;  %823 = vrcp.f32 %v551_v16 }
 0x216   : > { %v529_v41 = vpop.f32.mrf.mxu3 }
 0x217   : > { %v478_v19 = vpop.permute.xlu2 %477 }
 0x218   : > { %v824_v20 = vpop.eup %823  ;;  %v487_v21 = vmul.f32 %v478_v19, %v463_v17 }
 0x219   : > { %561 = vperm.xlu0 %803, %v824_v20   ;;  %v552_v24 = vld [vmem:[#allocation3 + $0x8] sm:$0xff] }
 0x21a   : > { %v534_v25 = vadd.f32 %v527_v22, %v487_v21  ;;  %v522_v26 = vpop.f32.mrf.mxu1  ;;  %825 = vrcp.f32 %v552_v24 }
 0x21b   : > { %v532_v27 = vadd.f32 %v522_v26, %v485_v23 }
 0x21c   : > { %538 = vst.msk [vmem:[#allocation4 + $0x10] sm:$0xff] %vm303_vm0, %v534_v25 }
 0x21d   : > { %536 = vst.msk [vmem:[#allocation4] sm:$0xff] %vm303_vm0, %v532_v27 }
 0x220   : > { %v826_v28 = vpop.eup %825 }
 0x221   : > { %566 = vperm.xlu2 %802, %v826_v28  }
 0x222   : > { %v524_v32 = vpop.f32.mrf.mxu1 }
 0x223   : > { %v549_v45 = vld [vmem:[#allocation4 + $0x10] sm:$0xff] }
 0x224   : > { %v547_v54 = vld [vmem:[#allocation4] sm:$0xff] }
 0x227   : > { %v473_v30 = vpop.permute.xlu1 %472 }
 0x228   : > { %v486_v31 = vmul.f32 %v473_v30, %v462_v29 }
 0x22a   : > { %v533_v33 = vadd.f32 %v524_v32, %v486_v31 }
 0x22c   : > { %537 = vst.msk [vmem:[#allocation4 + $0x8] sm:$0xff] %vm303_vm0, %v533_v33 }
 0x233   : > { %v548_v48 = vld [vmem:[#allocation4 + $0x8] sm:$0xff] }
 0x250   : > { %v451_v36 = vpop.xlane.xlu2 %450 }
 0x251   : > { %v455_v37 = vadd.f32 %v451_v36, %v439_v35 }
 0x253   : > { %460 = vst.msk [vmem:[#allocation3 + $0x18] sm:$0xff] %vm294_vm1, %v455_v37 }
 0x258   : > { %v483_v39 = vpop.permute.xlu2 %482 }
 0x259   : > { %v488_v40 = vmul.f32 %v483_v39, %v464_v38 }
 0x25a   : > { %v554_v42 = vld [vmem:[#allocation3 + $0x18] sm:$0xff] }
 0x25b   : > { %v535_v43 = vadd.f32 %v529_v41, %v488_v40  ;;  %827 = vrcp.f32 %v554_v42 }
 0x25d   : > { %539 = vst.msk [vmem:[#allocation4 + $0x18] sm:$0xff] %vm303_vm0, %v535_v43 }
 0x261   : > { %v828_v44 = vpop.eup %827 }
 0x262   : > { %576 = vperm.xlu2 %802, %v828_v44  }
 0x264   : > { %v550_v57 = vld [vmem:[#allocation4 + $0x18] sm:$0xff] }
 0x279   : > { %v572_v46 = vpop.permute.xlu1 %571 }
 0x27a   : > { %v581_v47 = vmul.f32 %v572_v46, %v549_v45 }
 0x27b   : > { %v567_v49 = vpop.permute.xlu2 %566 }
 0x27c   : > { %v585_v50 = vpack.c.bf16 %v581_v47, %v581_v47  ;;  %v580_v51 = vmul.f32 %v567_v49, %v548_v48 }
 0x27e   : > { %590 = vst.msk [vmem:[%s287_s28 + $0x8] sm:$0xf] %vm587_vm2, %v585_v50  ;;  %v584_v52 = vpack.c.bf16 %v580_v51, %v580_v51 }
 0x280   : > { %589 = vst.msk [vmem:[%s287_s28 + $0x4] sm:$0xf] %vm587_vm2, %v584_v52 }
 0x28b   : > { %v562_v53 = vpop.permute.xlu0 %561 }
 0x28c   : > { %v579_v55 = vmul.f32 %v562_v53, %v547_v54 }
 0x28e   : > { %v583_v56 = vpack.c.bf16 %v579_v55, %v579_v55 }
 0x290   : > { %588 = vst.msk [vmem:[%s287_s28] sm:$0xf] %vm587_vm2, %v583_v56 }
 0x2bc   : > { %v577_v58 = vpop.permute.xlu2 %576 }
 0x2bd   : > { %v582_v59 = vmul.f32 %v577_v58, %v550_v57 }
 0x2bf   : > { %v586_v60 = vpack.c.bf16 %v582_v59, %v582_v59 }
 0x2c1   : > { %591 = vst.msk [vmem:[%s287_s28 + $0xc] sm:$0xf] %vm587_vm2, %v586_v60 }
 0x2c2 PF: > { %s13_s14 = sadd.s32 1, %s851_s14   ;;  %s975_s12 = smov %s847_s13 }
 0x2c3   : > { %p10_p5 = scmp.ge.s32.totalorder %s13_s14, 4   ;;  %s976_s13 = smov %s978_s15 }
 0x2c5   :  { %12 = sbr.rel (!%p10_p5) target bundleno = 2 (0x2), region = 76 }

// kernel: forward.49
= control target key start
LH: loop header
LB: loop body
LE: loop exit
PB: predicated region body
PF: predicated region fallthrough
CT: control target
= control target key end

     0   :  { %s145_s0 = inlined_call_operand.vmem [shape: bf16[32,128], index: 0, kind: input, shape index: {}]   ;;  %s146_s1 = inlined_call_operand.vmem [shape: bf16[32,128], index: 1, kind: input, shape index: {}]   ;;  %s147_s2 = inlined_call_operand.vmem [shape: f32[1,128], index: 2, kind: input, shape index: {}]   ;;  %s148_s3 = inlined_call_operand.vmem [shape: f32[1,128], index: 3, kind: input, shape index: {}]   ;;  %s149_s4 = inlined_call_operand.vmem [shape: bf16[32,128], index: 4, kind: output, shape index: {}]  }
   0x1   :  { %v66_v0 = vld [vmem:[%s145_s0] sm:$0xff]   ;;  %v91_v8 = vld [vmem:[%s145_s0 + $0x8] sm:$0xff]  }
   0x2   :  { %v94_v1 = vld [vmem:[%s147_s2] ss:$0 sm:$0xff]  ;;  %v67_v2 = vunpack.c.l.bf16 %v66_v0  ;;  %v68_v3 = vunpack.c.h.bf16 %v66_v0  ;;  %v92_v9 = vld [vmem:[%s146_s1 + $0x8] sm:$0xff]   ;;  %v71_v12 = vunpack.c.l.bf16 %v91_v8  ;;  %v72_v13 = vunpack.c.h.bf16 %v91_v8 }
   0x3   :  { %v95_v4 = vld [vmem:[%s148_s3] ss:$0 sm:$0xff]  ;;  %v79_v14 = vunpack.c.l.bf16 %v92_v9  ;;  %v80_v15 = vunpack.c.h.bf16 %v92_v9 }
   0x4   :  { %v74_v5 = vld [vmem:[%s146_s1] sm:$0xff]   ;;  %v29_v10 = vmul.f32 %v94_v1, %v67_v2  ;;  %v30_v11 = vmul.f32 %v94_v1, %v68_v3  ;;  %v31_v18 = vmul.f32 %v94_v1, %v71_v12  ;;  %v32_v19 = vmul.f32 %v94_v1, %v72_v13 }
   0x5   :  { %v75_v6 = vunpack.c.l.bf16 %v74_v5  ;;  %v76_v7 = vunpack.c.h.bf16 %v74_v5 }
   0x6   :  { %v37_v16 = vadd.f32 %v95_v4, %v29_v10  ;;  %v38_v17 = vadd.f32 %v95_v4, %v30_v11  ;;  %v39_v22 = vadd.f32 %v95_v4, %v31_v18  ;;  %v40_v23 = vadd.f32 %v95_v4, %v32_v19 }
   0x8   :  { %v49_v20 = vadd.f32 %v75_v6, %v37_v16  ;;  %v50_v21 = vadd.f32 %v76_v7, %v38_v17  ;;  %v51_v25 = vadd.f32 %v79_v14, %v39_v22  ;;  %v52_v26 = vadd.f32 %v80_v15, %v40_v23 }
   0xa   :  { %v84_v24 = vpack.c.bf16 %v50_v21, %v49_v20  ;;  %v89_v27 = vpack.c.bf16 %v52_v26, %v51_v25 }
   0xc   :  { %85 = vst [vmem:[%s149_s4] sm:$0xff] %v84_v24  }
   0xd   :  { %93 = vst [vmem:[%s149_s4 + $0x8] sm:$0xff] %v89_v27  }

// kernel: forward.48
= control target key start
LH: loop header
LB: loop body
LE: loop exit
PB: predicated region body
PF: predicated region fallthrough
CT: control target
= control target key end

     0   :  { %v385_v12 = vmov 0.0   ;;  %s485_s1 = inlined_call_operand.vmem [shape: bf16[128,128], index: 1, kind: input, shape index: {}]   ;;  %s486_s2 = inlined_call_operand.vmem [shape: f32[1,128], index: 2, kind: input, shape index: {}]   ;;  %s487_s0 = inlined_call_operand.vmem [shape: bf16[64,128], index: 0, kind: input, shape index: {}]   ;;  %s488_s4 = inlined_call_operand.vmem [shape: f32[1,128], index: 4, kind: output, shape index: {1}]   ;;  %s489_s5 = inlined_call_operand.vmem [shape: f32[1,128], index: 5, kind: output, shape index: {2}]   ;;  %s490_s3 = inlined_call_operand.vmem [shape: bf16[64,128], index: 3, kind: output, shape index: {0}]  }
   0x1   :  { %v335_v0 = vld [vmem:[%s485_s1 + $0x38] sm:$0xff]  ;;  %v334_v1 = vld [vmem:[%s485_s1 + $0x30] sm:$0xff]  ;;  %v333_v2 = vld [vmem:[%s485_s1 + $0x28] sm:$0xff]  ;;  %183 = vst [vmem:[%s488_s4] sm:$0x1] %v385_v12 }
   0x2   :  { %133 = vmatpush.bf16.msra.mxu0 %v335_v0  ;;  %359 = vmatpush.bf16.msra.mxu1 %v335_v0  ;;  %v332_v3 = vld [vmem:[%s485_s1 + $0x20] sm:$0xff]  ;;  %v331_v4 = vld [vmem:[%s485_s1 + $0x18] sm:$0xff]  ;;  %v330_v5 = vld [vmem:[%s485_s1 + $0x10] sm:$0xff]  ;;  %184 = vst [vmem:[%s489_s5] sm:$0x1] %v385_v12 }
   0x3   :  { %360 = vmatpush.bf16.msra.mxu2 %v335_v0  ;;  %361 = vmatpush.bf16.msra.mxu3 %v335_v0  ;;  %v329_v6 = vld [vmem:[%s485_s1 + $0x8] sm:$0xff]  ;;  %v328_v7 = vld [vmem:[%s485_s1] sm:$0xff]  ;;  %v326_v10 = vld [vmem:[%s487_s0 + $0x10] sm:$0xff] }
   0x4   :  { %v324_v8 = vld [vmem:[%s487_s0] sm:$0xff]  ;;  %v325_v9 = vld [vmem:[%s487_s0 + $0x8] sm:$0xff]  ;;  %v327_v11 = vld [vmem:[%s487_s0 + $0x18] sm:$0xff] }
   0x5   :  { %v384_v15 = vld [vmem:[%s486_s2] ss:$0 sm:$0xff] }
   0x6   :  { %134 = vmatpush.bf16.msra.mxu0 %v334_v1  ;;  %362 = vmatpush.bf16.msra.mxu1 %v334_v1 }
   0x7   :  { %363 = vmatpush.bf16.msra.mxu2 %v334_v1  ;;  %364 = vmatpush.bf16.msra.mxu3 %v334_v1 }
   0x8   :  { %v224_v1 = vld [vmem:[%s488_s4] sm:$0x1] }
   0xa   :  { %135 = vmatpush.bf16.msra.mxu0 %v333_v2  ;;  %365 = vmatpush.bf16.msra.mxu1 %v333_v2 }
   0xb   :  { %366 = vmatpush.bf16.msra.mxu2 %v333_v2  ;;  %367 = vmatpush.bf16.msra.mxu3 %v333_v2 }
   0xe   :  { %136 = vmatpush.bf16.msra.mxu0 %v332_v3  ;;  %368 = vmatpush.bf16.msra.mxu1 %v332_v3 }
   0xf   :  { %369 = vmatpush.bf16.msra.mxu2 %v332_v3  ;;  %370 = vmatpush.bf16.msra.mxu3 %v332_v3 }
  0x12   :  { %137 = vmatpush.bf16.msra.mxu0 %v331_v4  ;;  %371 = vmatpush.bf16.msra.mxu1 %v331_v4 }
  0x13   :  { %372 = vmatpush.bf16.msra.mxu2 %v331_v4  ;;  %373 = vmatpush.bf16.msra.mxu3 %v331_v4  ;;  %v240_v4 = vld [vmem:[%s489_s5] sm:$0x1] }
  0x16   :  { %138 = vmatpush.bf16.msra.mxu0 %v330_v5  ;;  %374 = vmatpush.bf16.msra.mxu1 %v330_v5 }
  0x17   :  { %375 = vmatpush.bf16.msra.mxu2 %v330_v5  ;;  %376 = vmatpush.bf16.msra.mxu3 %v330_v5 }
  0x1a   :  { %139 = vmatpush.bf16.msra.mxu0 %v329_v6  ;;  %377 = vmatpush.bf16.msra.mxu1 %v329_v6 }
  0x1b   :  { %378 = vmatpush.bf16.msra.mxu2 %v329_v6  ;;  %379 = vmatpush.bf16.msra.mxu3 %v329_v6 }
  0x1e   :  { %140 = vmatpush.bf16.msra.mxu0 %v328_v7  ;;  %380 = vmatpush.bf16.msra.mxu1 %v328_v7 }
  0x1f   :  { %381 = vmatpush.bf16.msra.mxu2 %v328_v7  ;;  %382 = vmatpush.bf16.msra.mxu3 %v328_v7 }
  0x21   :  { %141 = vmatmul.bf16.vlgmr.msra.gmra.mxu0 %v324_v8  ;;  %146 = vmatmul.bf16.vlgmr.msra.gmra.mxu1 %v325_v9 }
  0x22   :  { %151 = vmatmul.bf16.vlgmr.msra.gmra.mxu2 %v326_v10  ;;  %156 = vmatmul.bf16.vlgmr.msra.gmra.mxu3 %v327_v11 }
  0x9e   :  { %v142_v13 = vpop.f32.mrf.mxu0  ;;  %v147_v14 = vpop.f32.mrf.mxu1 }
  0x9f   :  { %v200_v16 = vadd.f32 %v384_v15, %v142_v13  ;;  %v202_v21 = vadd.f32 %v384_v15, %v147_v14 }
  0xa1   :  { %v241_v24 = vmul.f32 %v200_v16, %v200_v16  ;;  %v243_v29 = vmul.f32 %v202_v21, %v202_v21 }
  0xa5   :  { %v152_v17 = vpop.f32.mrf.mxu2  ;;  %v157_v18 = vpop.f32.mrf.mxu3 }
  0xa6   :  { %v144_v19 = vpop.f32.mrf.mxu0  ;;  %v149_v20 = vpop.f32.mrf.mxu1  ;;  %v204_v30 = vadd.f32 %v384_v15, %v152_v17  ;;  %v206_v38 = vadd.f32 %v384_v15, %v157_v18 }
  0xa7   :  { %v201_v22 = vadd.f32 %v384_v15, %v144_v19  ;;  %v203_v23 = vadd.f32 %v384_v15, %v149_v20 }
  0xa8   :  { %v245_v41 = vmul.f32 %v204_v30, %v204_v30  ;;  %v247_v49 = vmul.f32 %v206_v38, %v206_v38 }
  0xa9   :  { %v339_v25 = vpack.c.bf16 %v201_v22, %v200_v16  ;;  %v225_v26 = vadd.f32 %v201_v22, %v200_v16  ;;  %v242_v27 = vmul.f32 %v201_v22, %v201_v22  ;;  %v344_v28 = vpack.c.bf16 %v203_v23, %v202_v21 }
  0xaa   :  { %v244_v34 = vmul.f32 %v203_v23, %v203_v23 }
  0xab   :  { %340 = vst [vmem:[%s490_s3] sm:$0xff] %v339_v25   ;;  %v249_v31 = vadd.f32 %v242_v27, %v241_v24  ;;  %v226_v32 = vadd.f32 %v225_v26, %v202_v21 }
  0xac   :  { %356 = vst [vmem:[%s490_s3 + $0x8] sm:$0xff] %v344_v28  }
  0xad   :  { %v227_v33 = vadd.f32 %v226_v32, %v203_v23  ;;  %v250_v35 = vadd.f32 %v249_v31, %v243_v29  ;;  %v154_v36 = vpop.f32.mrf.mxu2  ;;  %v159_v37 = vpop.f32.mrf.mxu3 }
  0xae   :  { %v205_v39 = vadd.f32 %v384_v15, %v154_v36  ;;  %v207_v40 = vadd.f32 %v384_v15, %v159_v37 }
  0xaf   :  { %v251_v42 = vadd.f32 %v250_v35, %v244_v34  ;;  %v228_v43 = vadd.f32 %v227_v33, %v204_v30 }
  0xb0   :  { %v349_v44 = vpack.c.bf16 %v205_v39, %v204_v30  ;;  %v354_v45 = vpack.c.bf16 %v207_v40, %v206_v38  ;;  %v246_v47 = vmul.f32 %v205_v39, %v205_v39  ;;  %v248_v53 = vmul.f32 %v207_v40, %v207_v40 }
  0xb1   :  { %v229_v46 = vadd.f32 %v228_v43, %v205_v39  ;;  %v252_v48 = vadd.f32 %v251_v42, %v245_v41 }
  0xb2   :  { %357 = vst [vmem:[%s490_s3 + $0x10] sm:$0xff] %v349_v44  }
  0xb3   :  { %v253_v50 = vadd.f32 %v252_v48, %v246_v47  ;;  %358 = vst [vmem:[%s490_s3 + $0x18] sm:$0xff] %v354_v45   ;;  %v230_v51 = vadd.f32 %v229_v46, %v206_v38 }
  0xb5   :  { %v231_v52 = vadd.f32 %v230_v51, %v207_v40  ;;  %v254_v54 = vadd.f32 %v253_v50, %v247_v49 }
  0xb7   :  { %v232_v55 = vrot.slane %v231_v52, 4  ;;  %v255_v56 = vadd.f32 %v254_v54, %v248_v53 }
  0xb9   :  { %v233_v57 = vadd.f32 %v232_v55, %v231_v52  ;;  %v256_v58 = vrot.slane %v255_v56, 4 }
  0xbb   :  { %v234_v59 = vrot.slane %v233_v57, 2  ;;  %v257_v60 = vadd.f32 %v256_v58, %v255_v56 }
  0xbd   :  { %v235_v61 = vadd.f32 %v234_v59, %v233_v57  ;;  %v258_v62 = vrot.slane %v257_v60, 2 }
  0xbf   :  { %v236_v63 = vrot.slane %v235_v61, 1  ;;  %v259_v0 = vadd.f32 %v258_v62, %v257_v60 }
  0xc1   :  { %v237_v2 = vadd.f32 %v236_v63, %v235_v61  ;;  %v260_v3 = vrot.slane %v259_v0, 1 }
  0xc3   :  { %v238_v5 = vadd.f32 %v237_v2, %v224_v1  ;;  %v261_v6 = vadd.f32 %v260_v3, %v259_v0 }
  0xc5   :  { %239 = vst [vmem:[%s488_s4] sm:$0x1] %v238_v5  ;;  %v262_v7 = vadd.f32 %v261_v6, %v240_v4 }
  0xc7   :  { %263 = vst [vmem:[%s489_s5] sm:$0x1] %v262_v7 }

// kernel: forward.51
= control target key start
LH: loop header
LB: loop body
LE: loop exit
PB: predicated region body
PF: predicated region fallthrough
CT: control target
= control target key end

     0   :  { %s67_s0 = inlined_call_operand.vmem [shape: bf16[8,128], index: 0, kind: input, shape index: {}]   ;;  %s68_s1 = inlined_call_operand.vmem [shape: f32[1,128], index: 1, kind: input, shape index: {}]   ;;  %s69_s2 = inlined_call_operand.vmem [shape: f32[1,128], index: 2, kind: input, shape index: {}]   ;;  %s70_s3 = inlined_call_operand.vmem [shape: bf16[8,128], index: 3, kind: output, shape index: {}]  }
   0x1   :  { %v14_v0 = vld [vmem:[%s67_s0] sm:$0xf] }
   0x2   :  { %v33_v1 = vld [vmem:[%s68_s1] ss:$0 sm:$0xff]  ;;  %v15_v2 = vunpack.c.l.bf16 %v14_v0 }
   0x3   :  { %v34_v3 = vld [vmem:[%s69_s2] ss:$0 sm:$0xff] }
   0x4   :  { %v20_v4 = vmul.f32 %v33_v1, %v15_v2 }
   0x6   :  { %v25_v5 = vadd.f32 %v34_v3, %v20_v4 }
   0x8   :  { %v26_v6 = vmax.f32 %v25_v5, 0.0 }
   0xa   :  { %v27_v7 = vpack.c.bf16 %v26_v6, %v26_v6 }
   0xc   :  { %28 = vst [vmem:[%s70_s3] sm:$0xf] %v27_v7 }

// kernel: forward.50
= control target key start
LH: loop header
LB: loop body
LE: loop exit
PB: predicated region body
PF: predicated region fallthrough
CT: control target
= control target key end

     0   :  { %s803_s15 = smov 0   ;;  %s805_s16 = smov 0   ;;  %s887_s0 = inlined_call_operand.vmem [shape: bf16[8,1792], index: 0, kind: input, shape index: {}]   ;;  %s888_s1 = inlined_call_operand.vmem [shape: bf16[1792,128], index: 1, kind: input, shape index: {}]   ;;  %s889_s2 = inlined_call_operand.vmem [shape: bf16[8,128], index: 2, kind: output, shape index: {0}]   ;;  %s890_s3 = inlined_call_operand.vmem [shape: f32[1,128], index: 3, kind: output, shape index: {1}]   ;;  %s891_s4 = inlined_call_operand.vmem [shape: f32[1,128], index: 4, kind: output, shape index: {2}]  }
   0x1   :  { %s807_s17 = smov 0  }
   0x2 LB: > { %s27_s18 = sadd.s32 1, %s770_s16  ;;  %p632_p0 = scmp.ge.s32.totalorder %s774_s17, 1  ;;  %s774_s17 = sphi %s807_s17, %s15_s17   ;;  %s770_s16 = sphi %s805_s16, %s893_s16   ;;  %s766_s15 = sphi %s803_s15, %s892_s15  }
   0x3   : > { %p28_p1 = scmp.ge.s32.totalorder %s27_s18, 7  ;;  %p211_p2 = scmp.lt.s32.totalorder %s774_s17, 8 }
   0x5   : > { %s895_s18 = smov (%p28_p1, %s27_s18), 0  ;;  %p212_p3 = pnand %p632_p0, %p211_p2 }
   0x6   : > { %s633_s19 = sshll.u32 (!%p212_p3), %s766_s15, 1  ;;  %s635_s20 = sshll.u32 (!%p212_p3), %s766_s15, 5 }
   0x7   : > { %215 = sbr.rel (%p212_p3) target bundleno = 214 (0xd6), region = 28  ;;  %p260_p4 = scmp.lt.s32.totalorder (!%p212_p3), %s633_s19, 13 }
   0x8   : > { %p268_p5 = scmp.lt.s32.totalorder (!%p212_p3), %s635_s20, 223  ;;  %p289_p6 = scmp.eq.s32.totalorder (!%p212_p3), %s766_s15, 0 }
   0x9   : > { %p637_p7 = scmp.ne.s32.totalorder (!%p212_p3), %s766_s15, 0 }
   0xc   : > { %s897_s19 = smov (!%p260_p4, %s633_s19), 13  ;;  %s899_s20 = smov (!%p268_p5, %s635_s20), 223 }
   0xd   : > { %s634_s21 = sshll.u32 %s897_s19, 2  ;;  %s636_s25 = sshll.u32 %s899_s20, 2 }
   0xe   : > { %s829_s24 = scalar_lea.vmem %s887_s0, %s634_s21  ;;  %s834_s28 = scalar_lea.vmem %s888_s1, %s636_s25 }
   0xf   : > { %292 = sbr.rel (%p637_p7) target bundleno = 22 (0x16), region = 32 }
  0x14   : > { %v776_v0 = vmov 0.0  }
  0x15   : > { %293 = vst [vmem:[#allocation2] sm:$0xff] %v776_v0 }
  0x16 PF: > { %v716_v1 = vld [vmem:[%s834_s28 + $0x38] sm:$0xff]  ;;  %v715_v3 = vld [vmem:[%s834_s28 + $0x30] sm:$0xff]  ;;  %v714_v5 = vld [vmem:[%s834_s28 + $0x28] sm:$0xff]  ;;  %v777_v29 = vmov (%p289_p6), 0.0  }
  0x17   : > { %v724_v2 = vld [vmem:[%s834_s28 + $0x78] sm:$0xff]  ;;  %431 = vmatpush.bf16.msra.mxu0 %v716_v1  ;;  %v723_v4 = vld [vmem:[%s834_s28 + $0x70] sm:$0xff]  ;;  %v722_v6 = vld [vmem:[%s834_s28 + $0x68] sm:$0xff]  ;;  %464 = vst [vmem:[%s890_s3] sm:$0x1] (%p289_p6), %v777_v29 }
  0x18   : > { %444 = vmatpush.bf16.msra.mxu1 %v724_v2  ;;  %v713_v7 = vld [vmem:[%s834_s28 + $0x20] sm:$0xff]  ;;  %v712_v9 = vld [vmem:[%s834_s28 + $0x18] sm:$0xff]  ;;  %v711_v11 = vld [vmem:[%s834_s28 + $0x10] sm:$0xff]  ;;  %465 = vst [vmem:[%s891_s4] sm:$0x1] (%p289_p6), %v777_v29 }
  0x19   : > { %v721_v8 = vld [vmem:[%s834_s28 + $0x60] sm:$0xff]  ;;  %v720_v10 = vld [vmem:[%s834_s28 + $0x58] sm:$0xff]  ;;  %v719_v12 = vld [vmem:[%s834_s28 + $0x50] sm:$0xff] }
  0x1a   : > { %v710_v13 = vld [vmem:[%s834_s28 + $0x8] sm:$0xff]  ;;  %v295_v15 = vld [vmem:[%s829_s24] sm:$0xff] }
  0x1b   : > { %432 = vmatpush.bf16.msra.mxu0 %v715_v3  ;;  %v718_v14 = vld [vmem:[%s834_s28 + $0x48] sm:$0xff]  ;;  %v329_v16 = vunpack.c.l.b16 %v295_v15  ;;  %v330_v17 = vunpack.c.h.b16 %v295_v15  ;;  %v709_v18 = vld [vmem:[%s834_s28] sm:$0xff] }
  0x1c   : > { %445 = vmatpush.bf16.msra.mxu1 %v723_v4  ;;  %v717_v19 = vld [vmem:[%s834_s28 + $0x40] sm:$0xff] }
  0x1d   : > { %v331_v20 = vpack.c.b16 %v329_v16, %v329_v16  ;;  %v332_v21 = vpack.c.b16 %v330_v17, %v330_v17  ;;  %v294_v23 = vld [vmem:[#allocation2] sm:$0xff] }
  0x1f   : > { %433 = vmatpush.bf16.msra.mxu0 %v714_v5 }
  0x20   : > { %446 = vmatpush.bf16.msra.mxu1 %v722_v6 }
  0x23   : > { %434 = vmatpush.bf16.msra.mxu0 %v713_v7 }
  0x24   : > { %447 = vmatpush.bf16.msra.mxu1 %v721_v8 }
  0x27   : > { %435 = vmatpush.bf16.msra.mxu0 %v712_v9 }
  0x28   : > { %448 = vmatpush.bf16.msra.mxu1 %v720_v10 }
  0x2b   : > { %436 = vmatpush.bf16.msra.mxu0 %v711_v11 }
  0x2c   : > { %449 = vmatpush.bf16.msra.mxu1 %v719_v12 }
  0x2f   : > { %437 = vmatpush.bf16.msra.mxu0 %v710_v13 }
  0x30   : > { %450 = vmatpush.bf16.msra.mxu1 %v718_v14 }
  0x33   : > { %438 = vmatpush.bf16.msra.mxu0 %v709_v18 }
  0x34   : > { %451 = vmatpush.bf16.msra.mxu1 %v717_v19 }
  0x36   : > { %439 = vmatmul.bf16.vlgmr.msra.gmra.mxu0 %v331_v20 }
  0x37   : > { %452 = vmatmul.bf16.vlgmr.msra.gmra.mxu1 %v332_v21 }
  0xb3   : > { %v440_v22 = vpop.f32.mrf.mxu0 }
  0xb4   : > { %v453_v24 = vpop.f32.mrf.mxu1 }
  0xb5   : > { %v454_v25 = vadd.f32 %v453_v24, %v440_v22 }
  0xb7   : > { %v457_v26 = vadd.f32 %v454_v25, %v294_v23 }
  0xb8   : > { %463 = sbr.rel (!%p289_p6) target bundleno = 189 (0xbd), region = 36 }
  0xb9   : > { %458 = vst [vmem:[#allocation2] sm:$0xff] %v457_v26 }
  0xbb   : > { %v442_v27 = vpop.f32.mrf.mxu0 }
  0xbc   : > { %v455_v28 = vpop.f32.mrf.mxu1 }
  0xbd PF: > { %p703_p8 = scmp.ne.s32.totalorder %s766_s15, 6 }
  0xbf   : > { %469 = sbr.rel (%p703_p8) target bundleno = 214 (0xd6), region = 40 }
  0xc4   : > { %v470_v30 = vld [vmem:[#allocation2] sm:$0xff] }
  0xc5   : > { %v471_v31 = vpack.c.bf16 %v470_v30, %v470_v30  ;;  %v474_v32 = vrot.slane %v470_v30, 4  ;;  %v483_v33 = vmul.f32 %v470_v30, %v470_v30  ;;  %v473_v42 = vld [vmem:[%s890_s3] sm:$0x1] }
  0xc6   : > { %v482_v45 = vld [vmem:[%s891_s4] sm:$0x1] }
  0xc7   : > { %472 = vst [vmem:[%s889_s2] sm:$0xf] %v471_v31  ;;  %v475_v34 = vadd.f32 %v474_v32, %v470_v30  ;;  %v484_v35 = vrot.slane %v483_v33, 4 }
  0xc9   : > { %v476_v36 = vrot.slane %v475_v34, 2  ;;  %v485_v37 = vadd.f32 %v484_v35, %v483_v33 }
  0xcb   : > { %v477_v38 = vadd.f32 %v476_v36, %v475_v34  ;;  %v486_v39 = vrot.slane %v485_v37, 2 }
  0xcd   : > { %v478_v40 = vrot.slane %v477_v38, 1  ;;  %v487_v41 = vadd.f32 %v486_v39, %v485_v37 }
  0xcf   : > { %v479_v43 = vadd.f32 %v478_v40, %v477_v38  ;;  %v488_v44 = vrot.slane %v487_v41, 1 }
  0xd1   : > { %v480_v46 = vadd.f32 %v479_v43, %v473_v42  ;;  %v489_v47 = vadd.f32 %v488_v44, %v487_v41 }
  0xd3   : > { %481 = vst [vmem:[%s890_s3] sm:$0x1] %v480_v46  ;;  %v490_v48 = vadd.f32 %v489_v47, %v482_v45 }
  0xd5   : > { %491 = vst [vmem:[%s891_s4] sm:$0x1] %v490_v48 }
  0xd6 PF: > { %s15_s17 = sadd.s32 1, %s774_s17   ;;  %s892_s15 = smov %s770_s16 }
  0xd7   : > { %p12_p9 = scmp.ge.s32.totalorder %s15_s17, 9   ;;  %s893_s16 = smov %s895_s18 }
  0xd9   :  { %14 = sbr.rel (!%p12_p9) target bundleno = 2 (0x2), region = 97 }

// kernel: forward.53
= control target key start
LH: loop header
LB: loop body
LE: loop exit
PB: predicated region body
PF: predicated region fallthrough
CT: control target
= control target key end

     0   :  { %s81_s0 = inlined_call_operand.vmem [shape: bf16[8,128], index: 0, kind: input, shape index: {}]   ;;  %s82_s1 = inlined_call_operand.vmem [shape: bf16[8,128], index: 1, kind: input, shape index: {}]   ;;  %s83_s2 = inlined_call_operand.vmem [shape: f32[1,128], index: 2, kind: input, shape index: {}]   ;;  %s84_s3 = inlined_call_operand.vmem [shape: f32[1,128], index: 3, kind: input, shape index: {}]   ;;  %s85_s4 = inlined_call_operand.vmem [shape: bf16[8,128], index: 4, kind: output, shape index: {}]  }
   0x1   :  { %v17_v0 = vld [vmem:[%s81_s0] sm:$0xf] }
   0x2   :  { %v39_v1 = vld [vmem:[%s83_s2] ss:$0 sm:$0xff]  ;;  %v18_v2 = vunpack.c.l.bf16 %v17_v0 }
   0x3   :  { %v40_v3 = vld [vmem:[%s84_s3] ss:$0 sm:$0xff] }
   0x4   :  { %v29_v4 = vld [vmem:[%s82_s1] sm:$0xf]  ;;  %v23_v5 = vmul.f32 %v39_v1, %v18_v2 }
   0x5   :  { %v30_v6 = vunpack.c.l.bf16 %v29_v4 }
   0x6   :  { %v28_v7 = vadd.f32 %v40_v3, %v23_v5 }
   0x8   :  { %v31_v8 = vadd.f32 %v30_v6, %v28_v7 }
   0xa   :  { %v32_v9 = vmax.f32 %v31_v8, 0.0 }
   0xc   :  { %v33_v10 = vpack.c.bf16 %v32_v9, %v32_v9 }
   0xe   :  { %34 = vst [vmem:[%s85_s4] sm:$0xf] %v33_v10 }

// kernel: forward.52
= control target key start
LH: loop header
LB: loop body
LE: loop exit
PB: predicated region body
PF: predicated region fallthrough
CT: control target
= control target key end

     0   :  { %s923_s15 = smov 0   ;;  %s925_s16 = smov 0   ;;  %s1016_s0 = inlined_call_operand.vmem [shape: bf16[8,3456], index: 0, kind: input, shape index: {}]   ;;  %s1017_s1 = inlined_call_operand.vmem [shape: bf16[3456,128], index: 1, kind: input, shape index: {}]   ;;  %s1018_s2 = inlined_call_operand.vmem [shape: bf16[8,128], index: 2, kind: output, shape index: {0}]   ;;  %s1019_s3 = inlined_call_operand.vmem [shape: f32[1,128], index: 3, kind: output, shape index: {1}]   ;;  %s1020_s4 = inlined_call_operand.vmem [shape: f32[1,128], index: 4, kind: output, shape index: {2}]  }
   0x1   :  { %s927_s17 = smov 0  }
   0x2 LB: > { %s27_s18 = sadd.s32 1, %s890_s16  ;;  %p714_p0 = scmp.ge.s32.totalorder %s894_s17, 1  ;;  %s894_s17 = sphi %s927_s17, %s15_s17   ;;  %s890_s16 = sphi %s925_s16, %s1022_s16   ;;  %s886_s15 = sphi %s923_s15, %s1021_s15  }
   0x3   : > { %p28_p1 = scmp.ge.s32.totalorder %s27_s18, 9  ;;  %p211_p2 = scmp.lt.s32.totalorder %s894_s17, 10 }
   0x5   : > { %s1024_s18 = smov (%p28_p1, %s27_s18), 0  ;;  %p212_p3 = pnand %p714_p0, %p211_p2 }
   0x6   : > { %s257_s19 = smul.u32 (!%p212_p3), 3, %s886_s15  ;;  %p289_p4 = scmp.eq.s32.totalorder (!%p212_p3), %s886_s15, 0 }
   0x7   : > { %215 = sbr.rel (%p212_p3) target bundleno = 221 (0xdd), region = 28  ;;  %p717_p7 = scmp.ne.s32.totalorder (!%p212_p3), %s886_s15, 0 }
   0x8   : > { %s267_s20 = smul.u32 (!%p212_p3), 48, %s886_s15  ;;  %p260_p5 = scmp.lt.s32.totalorder (!%p212_p3), %s257_s19, 26 }
   0xa   : > { %p268_p6 = scmp.lt.s32.totalorder (!%p212_p3), %s267_s20, 431 }
   0xc   : > { %s1026_s19 = smov (!%p260_p5, %s257_s19), 26  ;;  %s1028_s20 = smov (!%p268_p6, %s267_s20), 431 }
   0xd   : > { %s715_s21 = sshll.u32 %s1026_s19, 2  ;;  %s716_s25 = sshll.u32 %s1028_s20, 2 }
   0xe   : > { %s949_s24 = scalar_lea.vmem %s1016_s0, %s715_s21  ;;  %s954_s28 = scalar_lea.vmem %s1017_s1, %s716_s25 }
   0xf   : > { %292 = sbr.rel (%p717_p7) target bundleno = 22 (0x16), region = 32 }
  0x14   : > { %v896_v0 = vmov 0.0  }
  0x15   : > { %293 = vst [vmem:[#allocation2] sm:$0xff] %v896_v0 }
  0x16 PF: > { %v828_v1 = vld [vmem:[%s954_s28 + $0x38] sm:$0xff]  ;;  %v827_v4 = vld [vmem:[%s954_s28 + $0x30] sm:$0xff]  ;;  %v826_v7 = vld [vmem:[%s954_s28 + $0x28] sm:$0xff]  ;;  %v897_v43 = vmov (%p289_p4), 0.0  }
  0x17   : > { %v836_v2 = vld [vmem:[%s954_s28 + $0x78] sm:$0xff]  ;;  %500 = vmatpush.bf16.msra.mxu0 %v828_v1  ;;  %v835_v5 = vld [vmem:[%s954_s28 + $0x70] sm:$0xff]  ;;  %v834_v8 = vld [vmem:[%s954_s28 + $0x68] sm:$0xff]  ;;  %546 = vst [vmem:[%s1019_s3] sm:$0x1] (%p289_p4), %v897_v43 }
  0x18   : > { %v844_v3 = vld [vmem:[%s954_s28 + $0xb8] sm:$0xff]  ;;  %513 = vmatpush.bf16.msra.mxu1 %v836_v2  ;;  %v843_v6 = vld [vmem:[%s954_s28 + $0xb0] sm:$0xff]  ;;  %v842_v9 = vld [vmem:[%s954_s28 + $0xa8] sm:$0xff]  ;;  %547 = vst [vmem:[%s1020_s4] sm:$0x1] (%p289_p4), %v897_v43 }
  0x19   : > { %526 = vmatpush.bf16.msra.mxu2 %v844_v3  ;;  %v825_v10 = vld [vmem:[%s954_s28 + $0x20] sm:$0xff]  ;;  %v824_v13 = vld [vmem:[%s954_s28 + $0x18] sm:$0xff]  ;;  %v823_v16 = vld [vmem:[%s954_s28 + $0x10] sm:$0xff] }
  0x1a   : > { %v833_v11 = vld [vmem:[%s954_s28 + $0x60] sm:$0xff]  ;;  %v832_v14 = vld [vmem:[%s954_s28 + $0x58] sm:$0xff]  ;;  %v831_v17 = vld [vmem:[%s954_s28 + $0x50] sm:$0xff] }
  0x1b   : > { %501 = vmatpush.bf16.msra.mxu0 %v827_v4  ;;  %v841_v12 = vld [vmem:[%s954_s28 + $0xa0] sm:$0xff]  ;;  %v840_v15 = vld [vmem:[%s954_s28 + $0x98] sm:$0xff]  ;;  %v839_v18 = vld [vmem:[%s954_s28 + $0x90] sm:$0xff] }
  0x1c   : > { %514 = vmatpush.bf16.msra.mxu1 %v835_v5  ;;  %v822_v19 = vld [vmem:[%s954_s28 + $0x8] sm:$0xff]  ;;  %v295_v21 = vld [vmem:[%s949_s24] sm:$0xff] }
  0x1d   : > { %527 = vmatpush.bf16.msra.mxu2 %v843_v6  ;;  %v830_v20 = vld [vmem:[%s954_s28 + $0x48] sm:$0xff]  ;;  %v347_v24 = vunpack.c.l.b16 %v295_v21  ;;  %v348_v25 = vunpack.c.h.b16 %v295_v21  ;;  %v821_v26 = vld [vmem:[%s954_s28] sm:$0xff] }
  0x1e   : > { %v838_v22 = vld [vmem:[%s954_s28 + $0x88] sm:$0xff]  ;;  %v829_v27 = vld [vmem:[%s954_s28 + $0x40] sm:$0xff] }
  0x1f   : > { %502 = vmatpush.bf16.msra.mxu0 %v826_v7  ;;  %v296_v23 = vld [vmem:[%s949_s24 + $0x8] sm:$0xf]  ;;  %v837_v29 = vld [vmem:[%s954_s28 + $0x80] sm:$0xff]  ;;  %v350_v30 = vpack.c.b16 %v347_v24, %v347_v24  ;;  %v351_v31 = vpack.c.b16 %v348_v25, %v348_v25 }
  0x20   : > { %515 = vmatpush.bf16.msra.mxu1 %v834_v8  ;;  %v349_v28 = vunpack.c.l.b16 %v296_v23  ;;  %v294_v36 = vld [vmem:[#allocation2] sm:$0xff] }
  0x21   : > { %528 = vmatpush.bf16.msra.mxu2 %v842_v9 }
  0x22   : > { %v352_v32 = vpack.c.b16 %v349_v28, %v349_v28 }
  0x23   : > { %503 = vmatpush.bf16.msra.mxu0 %v825_v10 }
  0x24   : > { %516 = vmatpush.bf16.msra.mxu1 %v833_v11 }
  0x25   : > { %529 = vmatpush.bf16.msra.mxu2 %v841_v12 }
  0x27   : > { %504 = vmatpush.bf16.msra.mxu0 %v824_v13 }
  0x28   : > { %517 = vmatpush.bf16.msra.mxu1 %v832_v14 }
  0x29   : > { %530 = vmatpush.bf16.msra.mxu2 %v840_v15 }
  0x2b   : > { %505 = vmatpush.bf16.msra.mxu0 %v823_v16 }
  0x2c   : > { %518 = vmatpush.bf16.msra.mxu1 %v831_v17 }
  0x2d   : > { %531 = vmatpush.bf16.msra.mxu2 %v839_v18 }
  0x2f   : > { %506 = vmatpush.bf16.msra.mxu0 %v822_v19 }
  0x30   : > { %519 = vmatpush.bf16.msra.mxu1 %v830_v20 }
  0x31   : > { %532 = vmatpush.bf16.msra.mxu2 %v838_v22 }
  0x33   : > { %507 = vmatpush.bf16.msra.mxu0 %v821_v26 }
  0x34   : > { %520 = vmatpush.bf16.msra.mxu1 %v829_v27 }
  0x35   : > { %533 = vmatpush.bf16.msra.mxu2 %v837_v29 }
  0x36   : > { %508 = vmatmul.bf16.vlgmr.msra.gmra.mxu0 %v350_v30 }
  0x37   : > { %521 = vmatmul.bf16.vlgmr.msra.gmra.mxu1 %v351_v31 }
  0x38   : > { %534 = vmatmul.bf16.vlgmr.msra.gmra.mxu2 %v352_v32 }
  0xb3   : > { %v509_v33 = vpop.f32.mrf.mxu0 }
  0xb4   : > { %v522_v34 = vpop.f32.mrf.mxu1 }
  0xb5   : > { %v523_v35 = vadd.f32 %v522_v34, %v509_v33 }
  0xbb   : > { %v535_v37 = vpop.f32.mrf.mxu2  ;;  %v511_v39 = vpop.f32.mrf.mxu0 }
  0xbc   : > { %v536_v38 = vadd.f32 %v535_v37, %v523_v35  ;;  %v524_v40 = vpop.f32.mrf.mxu1 }
  0xbe   : > { %v539_v41 = vadd.f32 %v536_v38, %v294_v36 }
  0xbf   : > { %545 = sbr.rel (!%p289_p4) target bundleno = 196 (0xc4), region = 36 }
  0xc0   : > { %540 = vst [vmem:[#allocation2] sm:$0xff] %v539_v41 }
  0xc3   : > { %v537_v42 = vpop.f32.mrf.mxu2 }
  0xc4 PF: > { %p815_p8 = scmp.ne.s32.totalorder %s886_s15, 8 }
  0xc6   : > { %551 = sbr.rel (%p815_p8) target bundleno = 221 (0xdd), region = 40 }
  0xcb   : > { %v552_v44 = vld [vmem:[#allocation2] sm:$0xff] }
  0xcc   : > { %v553_v45 = vpack.c.bf16 %v552_v44, %v552_v44  ;;  %v556_v46 = vrot.slane %v552_v44, 4  ;;  %v565_v47 = vmul.f32 %v552_v44, %v552_v44  ;;  %v555_v56 = vld [vmem:[%s1019_s3] sm:$0x1] }
  0xcd   : > { %v564_v59 = vld [vmem:[%s1020_s4] sm:$0x1] }
  0xce   : > { %554 = vst [vmem:[%s1018_s2] sm:$0xf] %v553_v45  ;;  %v557_v48 = vadd.f32 %v556_v46, %v552_v44  ;;  %v566_v49 = vrot.slane %v565_v47, 4 }
  0xd0   : > { %v558_v50 = vrot.slane %v557_v48, 2  ;;  %v567_v51 = vadd.f32 %v566_v49, %v565_v47 }
  0xd2   : > { %v559_v52 = vadd.f32 %v558_v50, %v557_v48  ;;  %v568_v53 = vrot.slane %v567_v51, 2 }
  0xd4   : > { %v560_v54 = vrot.slane %v559_v52, 1  ;;  %v569_v55 = vadd.f32 %v568_v53, %v567_v51 }
  0xd6   : > { %v561_v57 = vadd.f32 %v560_v54, %v559_v52  ;;  %v570_v58 = vrot.slane %v569_v55, 1 }
  0xd8   : > { %v562_v60 = vadd.f32 %v561_v57, %v555_v56  ;;  %v571_v61 = vadd.f32 %v570_v58, %v569_v55 }
  0xda   : > { %563 = vst [vmem:[%s1019_s3] sm:$0x1] %v562_v60  ;;  %v572_v62 = vadd.f32 %v571_v61, %v564_v59 }
  0xdc   : > { %573 = vst [vmem:[%s1020_s4] sm:$0x1] %v572_v62 }
  0xdd PF: > { %s15_s17 = sadd.s32 1, %s894_s17   ;;  %s1021_s15 = smov %s890_s16 }
  0xde   : > { %p12_p9 = scmp.ge.s32.totalorder %s15_s17, 11   ;;  %s1022_s16 = smov %s1024_s18 }
  0xe0   :  { %14 = sbr.rel (!%p12_p9) target bundleno = 2 (0x2), region = 97 }

// kernel: forward.55
= control target key start
LH: loop header
LB: loop body
LE: loop exit
PB: predicated region body
PF: predicated region fallthrough
CT: control target
= control target key end

     0   :  { %s209_s1 = inlined_call_operand.vmem [shape: bf16[128,128], index: 1, kind: input, shape index: {}]   ;;  %s210_s2 = inlined_call_operand.vmem [shape: f32[1,128], index: 2, kind: input, shape index: {}]   ;;  %s211_s0 = inlined_call_operand.vmem [shape: bf16[8,128], index: 0, kind: input, shape index: {}]   ;;  %s212_s3 = inlined_call_operand.vmem [shape: bf16[8,128], index: 3, kind: output, shape index: {}]  }
   0x1   :  { %v154_v0 = vld [vmem:[%s209_s1 + $0x38] sm:$0xff]  ;;  %v153_v1 = vld [vmem:[%s209_s1 + $0x30] sm:$0xff]  ;;  %v152_v2 = vld [vmem:[%s209_s1 + $0x28] sm:$0xff] }
   0x2   :  { %85 = vmatpush.bf16.msra.mxu0 %v154_v0  ;;  %v151_v3 = vld [vmem:[%s209_s1 + $0x20] sm:$0xff]  ;;  %v150_v4 = vld [vmem:[%s209_s1 + $0x18] sm:$0xff]  ;;  %v149_v5 = vld [vmem:[%s209_s1 + $0x10] sm:$0xff] }
   0x3   :  { %v148_v6 = vld [vmem:[%s209_s1 + $0x8] sm:$0xff]  ;;  %v147_v7 = vld [vmem:[%s209_s1] sm:$0xff] }
   0x4   :  { %v20_v8 = vld [vmem:[%s211_s0] sm:$0xf] }
   0x5   :  { %v155_v9 = vld [vmem:[%s210_s2] ss:$0 sm:$0xff] }
   0x6   :  { %86 = vmatpush.bf16.msra.mxu0 %v153_v1 }
   0xa   :  { %87 = vmatpush.bf16.msra.mxu0 %v152_v2 }
   0xe   :  { %88 = vmatpush.bf16.msra.mxu0 %v151_v3 }
  0x12   :  { %89 = vmatpush.bf16.msra.mxu0 %v150_v4 }
  0x16   :  { %90 = vmatpush.bf16.msra.mxu0 %v149_v5 }
  0x1a   :  { %91 = vmatpush.bf16.msra.mxu0 %v148_v6 }
  0x1e   :  { %92 = vmatpush.bf16.msra.mxu0 %v147_v7 }
  0x21   :  { %93 = vmatmul.bf16.vlgmr.msra.gmra.mxu0 %v20_v8 }
  0x9e   :  { %v94_v10 = vpop.f32.mrf.mxu0 }
  0x9f   :  { %v108_v11 = vadd.f32 %v155_v9, %v94_v10 }
  0xa1   :  { %v109_v12 = vpack.c.bf16 %v108_v11, %v108_v11 }
  0xa3   :  { %110 = vst [vmem:[%s212_s3] sm:$0xf] %v109_v12 }
  0xa6   :  { %v96_v13 = vpop.f32.mrf.mxu0 }

// kernel: forward.57
= control target key start
LH: loop header
LB: loop body
LE: loop exit
PB: predicated region body
PF: predicated region fallthrough
CT: control target
= control target key end

     0   :  { %s569_s12 = smov 0   ;;  %s571_s13 = smov 0   ;;  %s622_s0 = inlined_call_operand.vmem [shape: bf16[2,4,64], index: 0, kind: input, shape index: {}]   ;;  %s623_s1 = inlined_call_operand.vmem [shape: bf16[2,4,64], index: 1, kind: input, shape index: {}]   ;;  %s624_s2 = inlined_call_operand.vmem [shape: bf16[2,4,64], index: 2, kind: input, shape index: {}]   ;;  %s625_s3 = inlined_call_operand.vmem [shape: bf16[2,4,64], index: 3, kind: output, shape index: {}]  }
   0x1   :  { %s573_s14 = smov 0  }
   0x2 LB: > { %s32_s15 = sadd.s32 1, %s540_s13  ;;  %p477_p0 = scmp.ge.s32.totalorder %s544_s14, 1  ;;  %s544_s14 = sphi %s573_s14, %s13_s14   ;;  %s540_s13 = sphi %s571_s13, %s627_s13   ;;  %s536_s12 = sphi %s569_s12, %s626_s12  }
   0x3   : > { %p34_p1 = scmp.ge.s32.totalorder %s32_s15, 2  ;;  %p190_p2 = scmp.lt.s32.totalorder %s544_s14, 3 }
   0x5   : > { %s629_s15 = smov (%p34_p1, %s32_s15), 0  ;;  %p191_p3 = pnand %p477_p0, %p190_p2 }
   0x6   : > { %p232_p4 = scmp.lt.s32.totalorder (!%p191_p3), %s536_s12, 1 }
   0x7   : > { %194 = sbr.rel (%p191_p3) target bundleno = 625 (0x271), region = 32 }
   0xc   : > { %s631_s12 = smov (!%p232_p4, %s536_s12), 1  ;;  %vm272_vm0 = vcmask 523264   ;;  %vm265_vm1 = vcmask 3072   ;;  %v546_v3 = vmov -inf   ;;  %vm293_vm2 = vcmask 27648  }
   0xd   : > { %s587_s16 = sshll.u32 %s631_s12, 1  ;;  %266 = vst.msk [vmem:[#allocation2] sm:$0xf] %vm265_vm1, %v546_v3  ;;  %v547_v7 = vmov 0   ;;  %v548_v8 = vmov 0.0   ;;  %vm330_vm3 = vcmask 1041408  }
   0xe   : > { %s245_s19 = scalar_lea.vmem %s623_s1, %s587_s16  ;;  %s238_s22 = scalar_lea.vmem %s622_s0, %s587_s16  ;;  %513 = vset.pattern.permute.xlu0 %v547_v7  ;;  %514 = vset.pattern.permute.xlu1 %v547_v7  ;;  %267 = vst.msk [vmem:[#allocation3] sm:$0xf] %vm265_vm1, %v548_v8  ;;  %vm326_vm4 = vcmask 31744   ;;  %vm268_vm5 = vcmask 519168   ;;  %vm364_vm6 = vcmask 517120  }
   0xf   : > { %v271_v0 = vld [vmem:[%s245_s19] sm:$0x3]  ;;  %515 = vset.pattern.permute.xlu2 %v547_v7  ;;  %s252_s25 = scalar_lea.vmem %s624_s2, %s587_s16  ;;  %269 = vst.msk [vmem:[#allocation4] sm:$0xf] %vm268_vm5, %v548_v8  ;;  %s259_s28 = scalar_lea.vmem %s625_s3, %s587_s16 }
  0x10   : > { %v277_v1 = vsel %vm272_vm0, %v271_v0, 0  ;;  %v270_v2 = vld [vmem:[%s238_s22] sm:$0x3] }
  0x11   : > { %286 = vmatpush.bf16.xpose.msra.mxu0 %v277_v1  ;;  %v325_v13 = vld [vmem:[%s252_s25] sm:$0x3] }
  0x12   : > { %v332_v14 = vsel %vm330_vm3, %v325_v13, 0 }
  0x13   : > { %341 = vmatpush.bf16.msra.mxu1 %v332_v14 }
  0x14   : > { %v292_v9 = vld [vmem:[#allocation2] sm:$0xf] }
  0x15   : > { %v309_v23 = vld [vmem:[#allocation3] sm:$0xf] }
  0x16   : > { %v317_v31 = vld [vmem:[#allocation4] sm:$0xf] }
  0x18   : > { %482 = vmatmul.msk.bf16.vlgmr.msra.gmra.mxu0 %vm272_vm0, %v270_v2 }
  0x95   : > { %v288_v4 = vpop.f32.mrf.mxu0 }
  0x96   : > { %v294_v5 = vsel %vm293_vm2, %v288_v4, -inf }
  0x97   : > { %295 = vmax.xlane.f32.xlu0 %v294_v5 }
  0x9d   : > { %v290_v6 = vpop.f32.mrf.mxu0 }
 0x10a   : > { %v296_v10 = vpop.xlane.xlu0 %295 }
 0x10b   : > { %v297_v11 = vmax.f32 %v292_v9, %v296_v10 }
 0x10d   : > { %v298_v12 = vsub.f32 %v292_v9, %v297_v11  ;;  %350 = vst.msk [vmem:[#allocation2] sm:$0xf] %vm265_vm1, %v297_v11  ;;  %303 = vperm.xlu0 %513, %v297_v11  }
 0x10f   : > { %v299_v21 = vmul.f32 1.442695, %v298_v12 }
 0x17f   : > { %v304_v15 = vpop.permute.xlu0 %303 }
 0x180   : > { %v306_v16 = vsub.f32 %v288_v4, %v304_v15 }
 0x182   : > { %v307_v17 = vmul.f32 1.442695, %v306_v16 }
 0x184   : > { %516 = vpow2.f32 %v307_v17 }
 0x185   : > { %518 = vpow2.f32 %v299_v21 }
 0x18a   : > { %v517_v18 = vpop.eup %516 }
 0x18b   : > { %v311_v19 = vsel %vm293_vm2, %v517_v18, 0.0  ;;  %v324_v20 = vpack.c.bf16 %v517_v18, %v517_v18  ;;  %v519_v22 = vpop.eup %518 }
 0x18c   : > { %312 = vadd.xlane.f32.xlu1 %v311_v19  ;;  %v310_v24 = vmul.f32 %v519_v22, %v309_v23 }
 0x18d   : > { %483 = vmatmul.msk.bf16.vlgmr.msra.gmra.mxu1 %vm326_vm4, %v324_v20 }
 0x1a5   : > { %320 = vperm.xlu1 %514, %v519_v22  }
 0x1ff   : > { %v313_v25 = vpop.xlane.xlu1 %312 }
 0x200   : > { %v314_v26 = vadd.f32 %v313_v25, %v310_v24 }
 0x202   : > { %316 = vst.msk [vmem:[#allocation3] sm:$0xf] %vm265_vm1, %v314_v26 }
 0x209   : > { %v355_v27 = vld [vmem:[#allocation3] sm:$0xf] }
 0x20a   : > { %v343_v28 = vpop.f32.mrf.mxu1  ;;  %520 = vrcp.f32 %v355_v27 }
 0x210   : > { %v521_v29 = vpop.eup %520 }
 0x211   : > { %359 = vperm.xlu2 %515, %v521_v29  }
 0x212   : > { %v345_v30 = vpop.f32.mrf.mxu1 }
 0x217   : > { %v321_v32 = vpop.permute.xlu1 %320 }
 0x218   : > { %v323_v33 = vmul.f32 %v321_v32, %v317_v31 }
 0x21a   : > { %v347_v34 = vadd.f32 %v343_v28, %v323_v33 }
 0x21c   : > { %349 = vst.msk [vmem:[#allocation4] sm:$0xf] %vm268_vm5, %v347_v34 }
 0x223   : > { %v354_v35 = vld [vmem:[#allocation4] sm:$0xf] }
 0x26b   : > { %v360_v36 = vpop.permute.xlu2 %359 }
 0x26c   : > { %v362_v37 = vmul.f32 %v360_v36, %v354_v35 }
 0x26e   : > { %v363_v38 = vpack.c.bf16 %v362_v37, %v362_v37 }
 0x270   : > { %365 = vst.msk [vmem:[%s259_s28] sm:$0x3] %vm364_vm6, %v363_v38 }
 0x271 PF: > { %s13_s14 = sadd.s32 1, %s544_s14   ;;  %s626_s12 = smov %s540_s13 }
 0x272   : > { %p10_p5 = scmp.ge.s32.totalorder %s13_s14, 4   ;;  %s627_s13 = smov %s629_s15 }
 0x274   :  { %12 = sbr.rel (!%p10_p5) target bundleno = 2 (0x2), region = 76 }

// kernel: forward.58
= control target key start
LH: loop header
LB: loop body
LE: loop exit
PB: predicated region body
PF: predicated region fallthrough
CT: control target
= control target key end

     0   :  { %v194_v9 = vmov 0.0   ;;  %s276_s1 = inlined_call_operand.vmem [shape: bf16[128,128], index: 1, kind: input, shape index: {}]   ;;  %s277_s2 = inlined_call_operand.vmem [shape: f32[1,128], index: 2, kind: input, shape index: {}]   ;;  %s278_s0 = inlined_call_operand.vmem [shape: bf16[8,128], index: 0, kind: input, shape index: {}]   ;;  %s279_s4 = inlined_call_operand.vmem [shape: f32[1,128], index: 4, kind: output, shape index: {1}]   ;;  %s280_s5 = inlined_call_operand.vmem [shape: f32[1,128], index: 5, kind: output, shape index: {2}]   ;;  %s281_s3 = inlined_call_operand.vmem [shape: bf16[8,128], index: 3, kind: output, shape index: {0}]  }
   0x1   :  { %v191_v0 = vld [vmem:[%s276_s1 + $0x38] sm:$0xff]  ;;  %v190_v1 = vld [vmem:[%s276_s1 + $0x30] sm:$0xff]  ;;  %v189_v2 = vld [vmem:[%s276_s1 + $0x28] sm:$0xff]  ;;  %108 = vst [vmem:[%s279_s4] sm:$0x1] %v194_v9 }
   0x2   :  { %88 = vmatpush.bf16.msra.mxu0 %v191_v0  ;;  %v188_v3 = vld [vmem:[%s276_s1 + $0x20] sm:$0xff]  ;;  %v187_v4 = vld [vmem:[%s276_s1 + $0x18] sm:$0xff]  ;;  %v186_v5 = vld [vmem:[%s276_s1 + $0x10] sm:$0xff]  ;;  %109 = vst [vmem:[%s280_s5] sm:$0x1] %v194_v9 }
   0x3   :  { %v185_v6 = vld [vmem:[%s276_s1 + $0x8] sm:$0xff]  ;;  %v184_v7 = vld [vmem:[%s276_s1] sm:$0xff] }
   0x4   :  { %v23_v8 = vld [vmem:[%s278_s0] sm:$0xf] }
   0x5   :  { %v193_v10 = vld [vmem:[%s277_s2] ss:$0 sm:$0xff] }
   0x6   :  { %89 = vmatpush.bf16.msra.mxu0 %v190_v1 }
   0x8   :  { %v121_v25 = vld [vmem:[%s279_s4] sm:$0x1] }
   0x9   :  { %v130_v28 = vld [vmem:[%s280_s5] sm:$0x1] }
   0xa   :  { %90 = vmatpush.bf16.msra.mxu0 %v189_v2 }
   0xe   :  { %91 = vmatpush.bf16.msra.mxu0 %v188_v3 }
  0x12   :  { %92 = vmatpush.bf16.msra.mxu0 %v187_v4 }
  0x16   :  { %93 = vmatpush.bf16.msra.mxu0 %v186_v5 }
  0x1a   :  { %94 = vmatpush.bf16.msra.mxu0 %v185_v6 }
  0x1e   :  { %95 = vmatpush.bf16.msra.mxu0 %v184_v7 }
  0x21   :  { %96 = vmatmul.bf16.vlgmr.msra.gmra.mxu0 %v23_v8 }
  0x9e   :  { %v97_v11 = vpop.f32.mrf.mxu0 }
  0x9f   :  { %v118_v12 = vadd.f32 %v193_v10, %v97_v11 }
  0xa1   :  { %v119_v13 = vpack.c.bf16 %v118_v12, %v118_v12  ;;  %v122_v14 = vrot.slane %v118_v12, 4  ;;  %v131_v15 = vmul.f32 %v118_v12, %v118_v12 }
  0xa3   :  { %120 = vst [vmem:[%s281_s3] sm:$0xf] %v119_v13  ;;  %v123_v16 = vadd.f32 %v122_v14, %v118_v12  ;;  %v132_v17 = vrot.slane %v131_v15, 4 }
  0xa5   :  { %v124_v18 = vrot.slane %v123_v16, 2  ;;  %v133_v19 = vadd.f32 %v132_v17, %v131_v15 }
  0xa6   :  { %v99_v20 = vpop.f32.mrf.mxu0 }
  0xa7   :  { %v125_v21 = vadd.f32 %v124_v18, %v123_v16  ;;  %v134_v22 = vrot.slane %v133_v19, 2 }
  0xa9   :  { %v126_v23 = vrot.slane %v125_v21, 1  ;;  %v135_v24 = vadd.f32 %v134_v22, %v133_v19 }
  0xab   :  { %v127_v26 = vadd.f32 %v126_v23, %v125_v21  ;;  %v136_v27 = vrot.slane %v135_v24, 1 }
  0xad   :  { %v128_v29 = vadd.f32 %v127_v26, %v121_v25  ;;  %v137_v30 = vadd.f32 %v136_v27, %v135_v24 }
  0xaf   :  { %129 = vst [vmem:[%s279_s4] sm:$0x1] %v128_v29  ;;  %v138_v31 = vadd.f32 %v137_v30, %v130_v28 }
  0xb1   :  { %139 = vst [vmem:[%s280_s5] sm:$0x1] %v138_v31 }

// kernel: forward.59
= control target key start
LH: loop header
LB: loop body
LE: loop exit
PB: predicated region body
PF: predicated region fallthrough
CT: control target
= control target key end

     0   :  { %s80_s0 = inlined_call_operand.vmem [shape: bf16[8,128], index: 0, kind: input, shape index: {}]   ;;  %s81_s1 = inlined_call_operand.vmem [shape: bf16[8,128], index: 1, kind: input, shape index: {}]   ;;  %s82_s2 = inlined_call_operand.vmem [shape: f32[1,128], index: 2, kind: input, shape index: {}]   ;;  %s83_s3 = inlined_call_operand.vmem [shape: f32[1,128], index: 3, kind: input, shape index: {}]   ;;  %s84_s4 = inlined_call_operand.vmem [shape: bf16[8,128], index: 4, kind: output, shape index: {}]  }
   0x1   :  { %v17_v0 = vld [vmem:[%s80_s0] sm:$0xf] }
   0x2   :  { %v38_v1 = vld [vmem:[%s82_s2] ss:$0 sm:$0xff]  ;;  %v18_v2 = vunpack.c.l.bf16 %v17_v0 }
   0x3   :  { %v39_v3 = vld [vmem:[%s83_s3] ss:$0 sm:$0xff] }
   0x4   :  { %v29_v4 = vld [vmem:[%s81_s1] sm:$0xf]  ;;  %v23_v5 = vmul.f32 %v38_v1, %v18_v2 }
   0x5   :  { %v30_v6 = vunpack.c.l.bf16 %v29_v4 }
   0x6   :  { %v28_v7 = vadd.f32 %v39_v3, %v23_v5 }
   0x8   :  { %v31_v8 = vadd.f32 %v30_v6, %v28_v7 }
   0xa   :  { %v32_v9 = vpack.c.bf16 %v31_v8, %v31_v8 }
   0xc   :  { %33 = vst [vmem:[%s84_s4] sm:$0xf] %v32_v9 }

// kernel: forward.61
= control target key start
LH: loop header
LB: loop body
LE: loop exit
PB: predicated region body
PF: predicated region fallthrough
CT: control target
= control target key end

     0   :  { %s73_s0 = inlined_call_operand.vmem [shape: bf16[8,256], index: 0, kind: input, shape index: {}]   ;;  %s74_s1 = inlined_call_operand.vmem [shape: f32[1,256], index: 1, kind: input, shape index: {}]   ;;  %s75_s2 = inlined_call_operand.vmem [shape: f32[1,256], index: 2, kind: input, shape index: {}]   ;;  %s76_s3 = inlined_call_operand.vmem [shape: bf16[8,256], index: 3, kind: output, shape index: {}]  }
   0x1   :  { %v14_v0 = vld [vmem:[%s73_s0] sm:$0xff] }
   0x2   :  { %v17_v1 = vld [vmem:[%s74_s1] sm:$0x3]  ;;  %v15_v3 = vunpack.c.l.bf16 %v14_v0  ;;  %v16_v4 = vunpack.c.h.bf16 %v14_v0 }
   0x3   :  { %v25_v2 = vld [vmem:[%s75_s2] sm:$0x3]  ;;  %v19_v5 = vperm.slane %v17_v1, 0  ;;  %v20_v6 = vperm.slane %v17_v1, 1 }
   0x4   :  { %v27_v7 = vperm.slane %v25_v2, 0  ;;  %v28_v8 = vperm.slane %v25_v2, 1 }
   0x5   :  { %v23_v9 = vmul.f32 %v19_v5, %v15_v3  ;;  %v24_v10 = vmul.f32 %v20_v6, %v16_v4 }
   0x7   :  { %v31_v11 = vadd.f32 %v27_v7, %v23_v9  ;;  %v32_v12 = vadd.f32 %v28_v8, %v24_v10 }
   0x9   :  { %v33_v13 = vmax.f32 %v31_v11, 0.0  ;;  %v34_v14 = vmax.f32 %v32_v12, 0.0 }
   0xb   :  { %v35_v15 = vpack.c.bf16 %v34_v14, %v33_v13 }
   0xd   :  { %36 = vst [vmem:[%s76_s3] sm:$0xff] %v35_v15 }

// kernel: forward.60
= control target key start
LH: loop header
LB: loop body
LE: loop exit
PB: predicated region body
PF: predicated region fallthrough
CT: control target
= control target key end

     0   :  { %s1257_s15 = smov 0   ;;  %s1259_s16 = smov 0   ;;  %s1426_s0 = inlined_call_operand.vmem [shape: bf16[8,3456], index: 0, kind: input, shape index: {}]   ;;  %s1427_s1 = inlined_call_operand.vmem [shape: bf16[3456,256], index: 1, kind: input, shape index: {}]   ;;  %s1428_s2 = inlined_call_operand.vmem [shape: bf16[8,256], index: 2, kind: output, shape index: {0}]   ;;  %s1429_s3 = inlined_call_operand.vmem [shape: f32[1,256], index: 3, kind: output, shape index: {1}]   ;;  %s1430_s4 = inlined_call_operand.vmem [shape: f32[1,256], index: 4, kind: output, shape index: {2}]  }
   0x1   :  { %s1261_s17 = smov 0  }
   0x2 LB: > { %s27_s18 = sadd.s32 1, %s1224_s16  ;;  %p923_p0 = scmp.ge.s32.totalorder %s1228_s17, 1  ;;  %s1228_s17 = sphi %s1261_s17, %s15_s17   ;;  %s1224_s16 = sphi %s1259_s16, %s1432_s16   ;;  %s1220_s15 = sphi %s1257_s15, %s1431_s15  }
   0x3   : > { %p28_p1 = scmp.ge.s32.totalorder %s27_s18, 9  ;;  %p214_p2 = scmp.lt.s32.totalorder %s1228_s17, 10 }
   0x5   : > { %s1434_s18 = smov (%p28_p1, %s27_s18), 0  ;;  %p215_p3 = pnand %p923_p0, %p214_p2 }
   0x6   : > { %s266_s19 = smul.u32 (!%p215_p3), 3, %s1220_s15  ;;  %p308_p4 = scmp.eq.s32.totalorder (!%p215_p3), %s1220_s15, 0 }
   0x7   : > { %218 = sbr.rel (%p215_p3) target bundleno = 253 (0xfd), region = 28  ;;  %p927_p7 = scmp.ne.s32.totalorder (!%p215_p3), %s1220_s15, 0 }
   0x8   : > { %s276_s20 = smul.u32 (!%p215_p3), 48, %s1220_s15  ;;  %p269_p5 = scmp.lt.s32.totalorder (!%p215_p3), %s266_s19, 26 }
   0xa   : > { %p278_p6 = scmp.lt.s32.totalorder (!%p215_p3), %s276_s20, 431 }
   0xc   : > { %s1436_s19 = smov (!%p269_p5, %s266_s19), 26  ;;  %s1438_s20 = smov (!%p278_p6, %s276_s20), 431 }
   0xd   : > { %s924_s21 = sshll.u32 %s1436_s19, 2  ;;  %s1130_s25 = sshll.u32 %s1438_s20, 3 }
   0xe   : > { %s1283_s24 = scalar_lea.vmem %s1426_s0, %s924_s21  ;;  %s1288_s28 = scalar_lea.vmem %s1427_s1, %s1130_s25 }
   0xf   : > { %311 = sbr.rel (%p927_p7) target bundleno = 23 (0x17), region = 32 }
  0x14   : > { %v1230_v0 = vmov 0.0  }
  0x15   : > { %312 = vst [vmem:[#allocation2] sm:$0xff] %v1230_v0 }
  0x16   : > { %313 = vst [vmem:[#allocation2 + $0x8] sm:$0xff] %v1230_v0 }
  0x17 PF: > { %v986_v1 = vld [vmem:[%s1288_s28 + $0x70] sm:$0xf]  ;;  %v1146_v2 = vld [vmem:[%s1288_s28 + $0x74] sm:$0xf0]  ;;  %v978_v6 = vld [vmem:[%s1288_s28 + $0x60] sm:$0xf] }
  0x18   : > { %v1050_v3 = vld [vmem:[%s1288_s28 + $0xf0] sm:$0xf]  ;;  %v987_v4 = vor.u32 %v1146_v2, %v986_v1  ;;  %v1162_v5 = vld [vmem:[%s1288_s28 + $0xf4] sm:$0xf0]  ;;  %v1144_v7 = vld [vmem:[%s1288_s28 + $0x64] sm:$0xf0] }
  0x19   : > { %v1051_v8 = vor.u32 %v1162_v5, %v1050_v3  ;;  %v1042_v9 = vld [vmem:[%s1288_s28 + $0xe0] sm:$0xf]  ;;  %v1160_v10 = vld [vmem:[%s1288_s28 + $0xe4] sm:$0xf0]  ;;  %v979_v11 = vor.u32 %v1144_v7, %v978_v6  ;;  %v970_v12 = vld [vmem:[%s1288_s28 + $0x50] sm:$0xf] }
  0x1a   : > { %617 = vmatpush.bf16.msra.mxu0 %v987_v4  ;;  %v1043_v13 = vor.u32 %v1160_v10, %v1042_v9  ;;  %v1142_v14 = vld [vmem:[%s1288_s28 + $0x54] sm:$0xf0]  ;;  %v1114_v15 = vld [vmem:[%s1288_s28 + $0x170] sm:$0xf]  ;;  %v1106_v20 = vld [vmem:[%s1288_s28 + $0x160] sm:$0xf] }
  0x1b   : > { %630 = vmatpush.bf16.msra.mxu1 %v1051_v8  ;;  %v1178_v16 = vld [vmem:[%s1288_s28 + $0x174] sm:$0xf0]  ;;  %v1034_v17 = vld [vmem:[%s1288_s28 + $0xd0] sm:$0xf]  ;;  %v1176_v21 = vld [vmem:[%s1288_s28 + $0x164] sm:$0xf0]  ;;  %v971_v23 = vor.u32 %v1142_v14, %v970_v12 }
  0x1c   : > { %v1158_v18 = vld [vmem:[%s1288_s28 + $0xd4] sm:$0xf0]  ;;  %v1115_v19 = vor.u32 %v1178_v16, %v1114_v15  ;;  %v1145_v22 = vld [vmem:[%s1288_s28 + $0x74] sm:$0xf]  ;;  %v962_v24 = vld [vmem:[%s1288_s28 + $0x40] sm:$0xf]  ;;  %v1107_v26 = vor.u32 %v1176_v21, %v1106_v20 }
  0x1d   : > { %v1140_v25 = vld [vmem:[%s1288_s28 + $0x44] sm:$0xf0]  ;;  %v988_v27 = vld [vmem:[%s1288_s28 + $0x78] sm:$0xf0]  ;;  %v1035_v28 = vor.u32 %v1158_v18, %v1034_v17  ;;  %v1026_v29 = vld [vmem:[%s1288_s28 + $0xc0] sm:$0xf] }
  0x1e   : > { %618 = vmatpush.bf16.msra.mxu0 %v979_v11  ;;  %643 = vmatpush.bf16.msra.mxu2 %v1115_v19  ;;  %v1156_v30 = vld [vmem:[%s1288_s28 + $0xc4] sm:$0xf0]  ;;  %v991_v31 = vor.u32 %v1145_v22, %v988_v27  ;;  %v1098_v32 = vld [vmem:[%s1288_s28 + $0x150] sm:$0xf]  ;;  %v1174_v33 = vld [vmem:[%s1288_s28 + $0x154] sm:$0xf0]  ;;  %v963_v37 = vor.u32 %v1140_v25, %v962_v24 }
  0x1f   : > { %631 = vmatpush.bf16.msra.mxu1 %v1043_v13  ;;  %v1143_v34 = vld [vmem:[%s1288_s28 + $0x64] sm:$0xf]  ;;  %v980_v35 = vld [vmem:[%s1288_s28 + $0x68] sm:$0xf0]  ;;  %v954_v38 = vld [vmem:[%s1288_s28 + $0x30] sm:$0xf]  ;;  %v1099_v40 = vor.u32 %v1174_v33, %v1098_v32  ;;  %v1027_v42 = vor.u32 %v1156_v30, %v1026_v29 }
  0x20   : > { %656 = vmatpush.bf16.msra.mxu3 %v991_v31  ;;  %v983_v36 = vor.u32 %v1143_v34, %v980_v35  ;;  %v1138_v39 = vld [vmem:[%s1288_s28 + $0x34] sm:$0xf0]  ;;  %v1090_v41 = vld [vmem:[%s1288_s28 + $0x140] sm:$0xf]  ;;  %v1172_v43 = vld [vmem:[%s1288_s28 + $0x144] sm:$0xf0] }
  0x21   : > { %v1141_v44 = vld [vmem:[%s1288_s28 + $0x54] sm:$0xf]  ;;  %v972_v45 = vld [vmem:[%s1288_s28 + $0x58] sm:$0xf0]  ;;  %v1018_v46 = vld [vmem:[%s1288_s28 + $0xb0] sm:$0xf]  ;;  %v955_v49 = vor.u32 %v1138_v39, %v954_v38  ;;  %v1091_v51 = vor.u32 %v1172_v43, %v1090_v41 }
  0x22   : > { %619 = vmatpush.bf16.msra.mxu0 %v971_v23  ;;  %644 = vmatpush.bf16.msra.mxu2 %v1107_v26  ;;  %v1154_v47 = vld [vmem:[%s1288_s28 + $0xb4] sm:$0xf0]  ;;  %v975_v48 = vor.u32 %v1141_v44, %v972_v45  ;;  %v946_v50 = vld [vmem:[%s1288_s28 + $0x20] sm:$0xf]  ;;  %v1139_v52 = vld [vmem:[%s1288_s28 + $0x44] sm:$0xf] }
  0x23   : > { %632 = vmatpush.bf16.msra.mxu1 %v1035_v28  ;;  %v964_v53 = vld [vmem:[%s1288_s28 + $0x48] sm:$0xf0]  ;;  %v1019_v54 = vor.u32 %v1154_v47, %v1018_v46  ;;  %v1136_v55 = vld [vmem:[%s1288_s28 + $0x24] sm:$0xf0]  ;;  %v1082_v56 = vld [vmem:[%s1288_s28 + $0x130] sm:$0xf] }
  0x24   : > { %657 = vmatpush.bf16.msra.mxu3 %v983_v36  ;;  %v1170_v57 = vld [vmem:[%s1288_s28 + $0x134] sm:$0xf0]  ;;  %v1010_v58 = vld [vmem:[%s1288_s28 + $0xa0] sm:$0xf]  ;;  %v1152_v59 = vld [vmem:[%s1288_s28 + $0xa4] sm:$0xf0]  ;;  %v967_v60 = vor.u32 %v1139_v52, %v964_v53  ;;  %v947_v61 = vor.u32 %v1136_v55, %v946_v50 }
  0x25   : > { %v938_v62 = vld [vmem:[%s1288_s28 + $0x10] sm:$0xf]  ;;  %v1083_v63 = vor.u32 %v1170_v57, %v1082_v56  ;;  %v1137_v0 = vld [vmem:[%s1288_s28 + $0x34] sm:$0xf]  ;;  %v956_v1 = vld [vmem:[%s1288_s28 + $0x38] sm:$0xf0]  ;;  %v1011_v2 = vor.u32 %v1152_v59, %v1010_v58 }
  0x26   : > { %620 = vmatpush.bf16.msra.mxu0 %v963_v37  ;;  %645 = vmatpush.bf16.msra.mxu2 %v1099_v40  ;;  %v1134_v3 = vld [vmem:[%s1288_s28 + $0x14] sm:$0xf0]  ;;  %v1074_v4 = vld [vmem:[%s1288_s28 + $0x120] sm:$0xf]  ;;  %v1168_v5 = vld [vmem:[%s1288_s28 + $0x124] sm:$0xf0]  ;;  %v959_v10 = vor.u32 %v1137_v0, %v956_v1 }
  0x27   : > { %633 = vmatpush.bf16.msra.mxu1 %v1027_v42  ;;  %v1002_v6 = vld [vmem:[%s1288_s28 + $0x90] sm:$0xf]  ;;  %v1150_v7 = vld [vmem:[%s1288_s28 + $0x94] sm:$0xf0]  ;;  %v930_v8 = vld [vmem:[%s1288_s28] sm:$0xf]  ;;  %v939_v11 = vor.u32 %v1134_v3, %v938_v62  ;;  %v1075_v12 = vor.u32 %v1168_v5, %v1074_v4 }
  0x28   : > { %658 = vmatpush.bf16.msra.mxu3 %v975_v48  ;;  %v1132_v9 = vld [vmem:[%s1288_s28 + $0x4] sm:$0xf0]  ;;  %v1135_v13 = vld [vmem:[%s1288_s28 + $0x24] sm:$0xf]  ;;  %v948_v14 = vld [vmem:[%s1288_s28 + $0x28] sm:$0xf0]  ;;  %v1003_v16 = vor.u32 %v1150_v7, %v1002_v6 }
  0x29   : > { %v316_v15 = vld [vmem:[%s1283_s24] sm:$0xff]  ;;  %v1066_v18 = vld [vmem:[%s1288_s28 + $0x110] sm:$0xf]  ;;  %v1166_v19 = vld [vmem:[%s1288_s28 + $0x114] sm:$0xf0]  ;;  %v951_v25 = vor.u32 %v1135_v13, %v948_v14  ;;  %v931_v27 = vor.u32 %v1132_v9, %v930_v8 }
  0x2a   : > { %621 = vmatpush.bf16.msra.mxu0 %v955_v49  ;;  %646 = vmatpush.bf16.msra.mxu2 %v1091_v51  ;;  %v994_v17 = vld [vmem:[%s1288_s28 + $0x80] sm:$0xf]  ;;  %v1148_v20 = vld [vmem:[%s1288_s28 + $0x84] sm:$0xf0]  ;;  %v1161_v21 = vld [vmem:[%s1288_s28 + $0xf4] sm:$0xf]  ;;  %v368_v26 = vunpack.c.l.b16 %v316_v15  ;;  %v1067_v28 = vor.u32 %v1166_v19, %v1066_v18  ;;  %v369_v29 = vunpack.c.h.b16 %v316_v15 }
  0x2b   : > { %634 = vmatpush.bf16.msra.mxu1 %v1019_v54  ;;  %v1052_v22 = vld [vmem:[%s1288_s28 + $0xf8] sm:$0xf0]  ;;  %v1177_v23 = vld [vmem:[%s1288_s28 + $0x174] sm:$0xf]  ;;  %v317_v32 = vld [vmem:[%s1283_s24 + $0x8] sm:$0xf]  ;;  %v995_v33 = vor.u32 %v1148_v20, %v994_v17 }
  0x2c   : > { %659 = vmatpush.bf16.msra.mxu3 %v967_v60  ;;  %v1116_v24 = vld [vmem:[%s1288_s28 + $0x178] sm:$0xf0]  ;;  %v1133_v30 = vld [vmem:[%s1288_s28 + $0x14] sm:$0xf]  ;;  %v1055_v34 = vor.u32 %v1161_v21, %v1052_v22  ;;  %v1058_v35 = vld [vmem:[%s1288_s28 + $0x100] sm:$0xf]  ;;  %v371_v42 = vpack.c.b16 %v368_v26, %v368_v26  ;;  %v370_v44 = vunpack.c.l.b16 %v317_v32  ;;  %v1363_v45 = vpack.c.b16 %v369_v29, %v369_v29 }
  0x2d   : > { %v940_v31 = vld [vmem:[%s1288_s28 + $0x18] sm:$0xf0]  ;;  %v1164_v36 = vld [vmem:[%s1288_s28 + $0x104] sm:$0xf0]  ;;  %v1119_v37 = vor.u32 %v1177_v23, %v1116_v24  ;;  %v1159_v38 = vld [vmem:[%s1288_s28 + $0xe4] sm:$0xf] }
  0x2e   : > { %622 = vmatpush.bf16.msra.mxu0 %v947_v61  ;;  %647 = vmatpush.bf16.msra.mxu2 %v1083_v63  ;;  %v1044_v39 = vld [vmem:[%s1288_s28 + $0xe8] sm:$0xf0]  ;;  %v1175_v40 = vld [vmem:[%s1288_s28 + $0x164] sm:$0xf]  ;;  %v943_v43 = vor.u32 %v1133_v30, %v940_v31  ;;  %v1059_v46 = vor.u32 %v1164_v36, %v1058_v35  ;;  %v1157_v51 = vld [vmem:[%s1288_s28 + $0xd4] sm:$0xf]  ;;  %v373_v55 = vpack.c.b16 %v370_v44, %v370_v44 }
  0x2f   : > { %635 = vmatpush.bf16.msra.mxu1 %v1011_v2  ;;  %v1108_v41 = vld [vmem:[%s1288_s28 + $0x168] sm:$0xf0]  ;;  %v1131_v47 = vld [vmem:[%s1288_s28 + $0x4] sm:$0xf]  ;;  %v1047_v49 = vor.u32 %v1159_v38, %v1044_v39  ;;  %v1036_v52 = vld [vmem:[%s1288_s28 + $0xd8] sm:$0xf0] }
  0x30   : > { %660 = vmatpush.bf16.msra.mxu3 %v959_v10  ;;  %v932_v48 = vld [vmem:[%s1288_s28 + $0x8] sm:$0xf0]  ;;  %v1111_v50 = vor.u32 %v1175_v40, %v1108_v41  ;;  %v1173_v53 = vld [vmem:[%s1288_s28 + $0x154] sm:$0xf]  ;;  %v1100_v54 = vld [vmem:[%s1288_s28 + $0x158] sm:$0xf0]  ;;  %v1039_v57 = vor.u32 %v1157_v51, %v1036_v52 }
  0x31   : > { %v935_v56 = vor.u32 %v1131_v47, %v932_v48  ;;  %v1103_v58 = vor.u32 %v1173_v53, %v1100_v54  ;;  %v1155_v59 = vld [vmem:[%s1288_s28 + $0xc4] sm:$0xf]  ;;  %v1028_v60 = vld [vmem:[%s1288_s28 + $0xc8] sm:$0xf0]  ;;  %v1153_v1 = vld [vmem:[%s1288_s28 + $0xb4] sm:$0xf] }
  0x32   : > { %623 = vmatpush.bf16.msra.mxu0 %v939_v11  ;;  %648 = vmatpush.bf16.msra.mxu2 %v1075_v12  ;;  %v1171_v61 = vld [vmem:[%s1288_s28 + $0x144] sm:$0xf]  ;;  %v1092_v62 = vld [vmem:[%s1288_s28 + $0x148] sm:$0xf0]  ;;  %v1031_v63 = vor.u32 %v1155_v59, %v1028_v60  ;;  %v1020_v2 = vld [vmem:[%s1288_s28 + $0xb8] sm:$0xf0] }
  0x33   : > { %636 = vmatpush.bf16.msra.mxu1 %v1003_v16  ;;  %v1095_v0 = vor.u32 %v1171_v61, %v1092_v62  ;;  %v1169_v3 = vld [vmem:[%s1288_s28 + $0x134] sm:$0xf]  ;;  %v1084_v4 = vld [vmem:[%s1288_s28 + $0x138] sm:$0xf0]  ;;  %v1023_v5 = vor.u32 %v1153_v1, %v1020_v2  ;;  %v1151_v7 = vld [vmem:[%s1288_s28 + $0xa4] sm:$0xf] }
  0x34   : > { %661 = vmatpush.bf16.msra.mxu3 %v951_v25  ;;  %v1087_v6 = vor.u32 %v1169_v3, %v1084_v4  ;;  %v1012_v8 = vld [vmem:[%s1288_s28 + $0xa8] sm:$0xf0]  ;;  %v1167_v9 = vld [vmem:[%s1288_s28 + $0x124] sm:$0xf]  ;;  %v1149_v13 = vld [vmem:[%s1288_s28 + $0x94] sm:$0xf] }
  0x35   : > { %v1076_v10 = vld [vmem:[%s1288_s28 + $0x128] sm:$0xf0]  ;;  %v1015_v11 = vor.u32 %v1151_v7, %v1012_v8  ;;  %v1004_v14 = vld [vmem:[%s1288_s28 + $0x98] sm:$0xf0]  ;;  %v1165_v15 = vld [vmem:[%s1288_s28 + $0x114] sm:$0xf] }
  0x36   : > { %624 = vmatpush.bf16.msra.mxu0 %v931_v27  ;;  %649 = vmatpush.bf16.msra.mxu2 %v1067_v28  ;;  %v1079_v12 = vor.u32 %v1167_v9, %v1076_v10  ;;  %v1068_v16 = vld [vmem:[%s1288_s28 + $0x118] sm:$0xf0]  ;;  %v1007_v17 = vor.u32 %v1149_v13, %v1004_v14  ;;  %v1147_v19 = vld [vmem:[%s1288_s28 + $0x84] sm:$0xf]  ;;  %v996_v20 = vld [vmem:[%s1288_s28 + $0x88] sm:$0xf0] }
  0x37   : > { %637 = vmatpush.bf16.msra.mxu1 %v995_v33  ;;  %v1071_v18 = vor.u32 %v1165_v15, %v1068_v16  ;;  %v1163_v21 = vld [vmem:[%s1288_s28 + $0x104] sm:$0xf]  ;;  %v1060_v22 = vld [vmem:[%s1288_s28 + $0x108] sm:$0xf0]  ;;  %v999_v23 = vor.u32 %v1147_v19, %v996_v20 }
  0x38   : > { %662 = vmatpush.bf16.msra.mxu3 %v943_v43  ;;  %v1063_v24 = vor.u32 %v1163_v21, %v1060_v22  ;;  %v314_v30 = vld [vmem:[#allocation2] sm:$0xff]  ;;  %v315_v40 = vld [vmem:[#allocation2 + $0x8] sm:$0xff] }
  0x39   : > { %625 = vmatmul.bf16.vlgmr.msra.gmra.mxu0 %v371_v42 }
  0x3a   : > { %669 = vmatpush.bf16.msrb.mxu0 %v1055_v34  ;;  %638 = vmatmul.bf16.vlgmr.msra.gmra.mxu1 %v1363_v45 }
  0x3b   : > { %682 = vmatpush.bf16.msrb.mxu1 %v1119_v37  ;;  %650 = vmatpush.bf16.msra.mxu2 %v1059_v46  ;;  %v1231_v46 = vmov (%p308_p4), 0.0  }
  0x3c   : > { %663 = vmatpush.bf16.msra.mxu3 %v935_v56 }
  0x3e   : > { %670 = vmatpush.bf16.msrb.mxu0 %v1047_v49  ;;  %651 = vmatmul.bf16.vlgmr.msra.gmra.mxu2 %v373_v55 }
  0x3f   : > { %683 = vmatpush.bf16.msrb.mxu1 %v1111_v50  ;;  %664 = vmatmul.bf16.vlgmr.msra.gmra.mxu3 %v371_v42 }
  0x42   : > { %671 = vmatpush.bf16.msrb.mxu0 %v1039_v57 }
  0x43   : > { %684 = vmatpush.bf16.msrb.mxu1 %v1103_v58 }
  0x46   : > { %672 = vmatpush.bf16.msrb.mxu0 %v1031_v63 }
  0x47   : > { %685 = vmatpush.bf16.msrb.mxu1 %v1095_v0 }
  0x4a   : > { %673 = vmatpush.bf16.msrb.mxu0 %v1023_v5 }
  0x4b   : > { %686 = vmatpush.bf16.msrb.mxu1 %v1087_v6 }
  0x4e   : > { %674 = vmatpush.bf16.msrb.mxu0 %v1015_v11 }
  0x4f   : > { %687 = vmatpush.bf16.msrb.mxu1 %v1079_v12 }
  0x52   : > { %675 = vmatpush.bf16.msrb.mxu0 %v1007_v17 }
  0x53   : > { %688 = vmatpush.bf16.msrb.mxu1 %v1071_v18 }
  0x56   : > { %676 = vmatpush.bf16.msrb.mxu0 %v999_v23 }
  0x57   : > { %689 = vmatpush.bf16.msrb.mxu1 %v1063_v24 }
  0x59   : > { %677 = vmatmul.bf16.vlgmr.msrb.gmra.mxu0 %v1363_v45  ;;  %v704_v45 = vlaneseq (%p308_p4) }
  0x5a   : > { %690 = vmatmul.bf16.vlgmr.msrb.gmra.mxu1 %v373_v55 }
  0x5b   : > { %vm706_vm0 = vcmp.lt.s32.totalorder (%p308_p4), %v704_v45, 256 }
  0x5c   : > { %708 = vst.msk [vmem:[%s1429_s3] sm:$0x3] (%p308_p4), %vm706_vm0, %v1231_v46 }
  0x5d   : > { %709 = vst.msk [vmem:[%s1430_s4] sm:$0x3] (%p308_p4), %vm706_vm0, %v1231_v46 }
  0xb6   : > { %v626_v25 = vpop.f32.mrf.mxu0 }
  0xb7   : > { %v639_v26 = vpop.f32.mrf.mxu1 }
  0xb8   : > { %v640_v27 = vadd.f32 %v639_v26, %v626_v25 }
  0xbe   : > { %v628_v28 = vpop.f32.mrf.mxu0 }
  0xbf   : > { %v641_v29 = vpop.f32.mrf.mxu1 }
  0xc1   : > { %v652_v31 = vpop.f32.mrf.mxu2 }
  0xc2   : > { %v653_v32 = vadd.f32 %v652_v31, %v640_v27  ;;  %v665_v34 = vpop.f32.mrf.mxu3 }
  0xc4   : > { %v695_v33 = vadd.f32 %v653_v32, %v314_v30 }
  0xc6   : > { %697 = vst [vmem:[#allocation2] sm:$0xff] %v695_v33 }
  0xc9   : > { %v654_v35 = vpop.f32.mrf.mxu2 }
  0xca   : > { %v667_v36 = vpop.f32.mrf.mxu3 }
  0xd6   : > { %v678_v37 = vpop.f32.mrf.mxu0 }
  0xd7   : > { %v679_v38 = vadd.f32 %v678_v37, %v665_v34  ;;  %v691_v39 = vpop.f32.mrf.mxu1 }
  0xd9   : > { %v692_v41 = vadd.f32 %v691_v39, %v679_v38 }
  0xdb   : > { %v696_v42 = vadd.f32 %v692_v41, %v315_v40  ;;  %703 = sbr.rel (!%p308_p4) target bundleno = 224 (0xe0), region = 36 }
  0xdd   : > { %698 = vst [vmem:[#allocation2 + $0x8] sm:$0xff] %v696_v42 }
  0xde   : > { %v680_v43 = vpop.f32.mrf.mxu0 }
  0xdf   : > { %v693_v44 = vpop.f32.mrf.mxu1 }
  0xe0 PF: > { %p1121_p8 = scmp.ne.s32.totalorder %s1220_s15, 8 }
  0xe2   : > { %713 = sbr.rel (%p1121_p8) target bundleno = 253 (0xfd), region = 40 }
  0xe7   : > { %v714_v47 = vld [vmem:[#allocation2] sm:$0xff]  ;;  %v715_v48 = vld [vmem:[#allocation2 + $0x8] sm:$0xff]  ;;  %v738_v8 = vlaneseq  ;;  %vm734_vm1 = vcmask 1040384  }
  0xe8   : > { %v716_v49 = vpack.c.bf16 %v715_v48, %v714_v47  ;;  %v719_v50 = vrot.slane %v714_v47, 4  ;;  %v725_v51 = vrot.slane %v715_v48, 4  ;;  %v744_v52 = vmul.f32 %v714_v47, %v714_v47  ;;  %v718_v11 = vld [vmem:[%s1429_s3] sm:$0x3] }
  0xe9   : > { %v745_v53 = vmul.f32 %v715_v48, %v715_v48  ;;  %vm740_vm2 = vcmp.lt.s32.totalorder %v738_v8, 256  ;;  %v743_v17 = vld [vmem:[%s1430_s4] sm:$0x3] }
  0xea   : > { %717 = vst [vmem:[%s1428_s2] sm:$0xff] %v716_v49  ;;  %v720_v54 = vadd.f32 %v719_v50, %v714_v47  ;;  %v726_v55 = vadd.f32 %v725_v51, %v715_v48  ;;  %v746_v56 = vrot.slane %v744_v52, 4 }
  0xeb   : > { %v752_v57 = vrot.slane %v745_v53, 4 }
  0xec   : > { %v721_v58 = vrot.slane %v720_v54, 2  ;;  %v727_v59 = vrot.slane %v726_v55, 2  ;;  %v747_v60 = vadd.f32 %v746_v56, %v744_v52 }
  0xed   : > { %v753_v61 = vadd.f32 %v752_v57, %v745_v53 }
  0xee   : > { %v722_v62 = vadd.f32 %v721_v58, %v720_v54  ;;  %v728_v63 = vadd.f32 %v727_v59, %v726_v55  ;;  %v748_v0 = vrot.slane %v747_v60, 2 }
  0xef   : > { %v754_v1 = vrot.slane %v753_v61, 2 }
  0xf0   : > { %v723_v2 = vrot.slane %v722_v62, 1  ;;  %v729_v3 = vrot.slane %v728_v63, 1  ;;  %v749_v4 = vadd.f32 %v748_v0, %v747_v60 }
  0xf1   : > { %v755_v5 = vadd.f32 %v754_v1, %v753_v61 }
  0xf2   : > { %v724_v6 = vadd.f32 %v723_v2, %v722_v62  ;;  %v730_v7 = vadd.f32 %v729_v3, %v728_v63  ;;  %v750_v9 = vrot.slane %v749_v4, 1 }
  0xf3   : > { %v756_v10 = vrot.slane %v755_v5, 1 }
  0xf4   : > { %v733_v12 = vrot.slane %v730_v7, 7  ;;  %v751_v13 = vadd.f32 %v750_v9, %v749_v4 }
  0xf5   : > { %v757_v14 = vadd.f32 %v756_v10, %v755_v5 }
  0xf6   : > { %v735_v15 = vsel %vm734_vm1, %v724_v6, %v733_v12 }
  0xf7   : > { %v737_v16 = vadd.f32 %v735_v15, %v718_v11  ;;  %v760_v18 = vrot.slane %v757_v14, 7 }
  0xf9   : > { %742 = vst.msk [vmem:[%s1429_s3] sm:$0x3] %vm740_vm2, %v737_v16  ;;  %v761_v19 = vsel %vm734_vm1, %v751_v13, %v760_v18 }
  0xfa   : > { %v763_v20 = vadd.f32 %v761_v19, %v743_v17 }
  0xfc   : > { %764 = vst.msk [vmem:[%s1430_s4] sm:$0x3] %vm740_vm2, %v763_v20 }
  0xfd PF: > { %s15_s17 = sadd.s32 1, %s1228_s17   ;;  %s1431_s15 = smov %s1224_s16 }
  0xfe   : > { %p12_p9 = scmp.ge.s32.totalorder %s15_s17, 11   ;;  %s1432_s16 = smov %s1434_s18 }
 0x100   :  { %14 = sbr.rel (!%p12_p9) target bundleno = 2 (0x2), region = 97 }

// kernel: forward.62
= control target key start
LH: loop header
LB: loop body
LE: loop exit
PB: predicated region body
PF: predicated region fallthrough
CT: control target
= control target key end

     0   :  { %s1257_s15 = smov 0   ;;  %s1259_s16 = smov 0   ;;  %s1426_s0 = inlined_call_operand.vmem [shape: bf16[8,6912], index: 0, kind: input, shape index: {}]   ;;  %s1427_s1 = inlined_call_operand.vmem [shape: bf16[6912,256], index: 1, kind: input, shape index: {}]   ;;  %s1428_s2 = inlined_call_operand.vmem [shape: bf16[8,256], index: 2, kind: output, shape index: {0}]   ;;  %s1429_s3 = inlined_call_operand.vmem [shape: f32[1,256], index: 3, kind: output, shape index: {1}]   ;;  %s1430_s4 = inlined_call_operand.vmem [shape: f32[1,256], index: 4, kind: output, shape index: {2}]  }
   0x1   :  { %s1261_s17 = smov 0  }
   0x2 LB: > { %s27_s18 = sadd.s32 1, %s1224_s16  ;;  %p923_p0 = scmp.ge.s32.totalorder %s1228_s17, 1  ;;  %s1228_s17 = sphi %s1261_s17, %s15_s17   ;;  %s1224_s16 = sphi %s1259_s16, %s1432_s16   ;;  %s1220_s15 = sphi %s1257_s15, %s1431_s15  }
   0x3   : > { %p28_p1 = scmp.ge.s32.totalorder %s27_s18, 18  ;;  %p214_p2 = scmp.lt.s32.totalorder %s1228_s17, 19 }
   0x5   : > { %s1434_s18 = smov (%p28_p1, %s27_s18), 0  ;;  %p215_p3 = pnand %p923_p0, %p214_p2 }
   0x6   : > { %s266_s19 = smul.u32 (!%p215_p3), 3, %s1220_s15  ;;  %p308_p4 = scmp.eq.s32.totalorder (!%p215_p3), %s1220_s15, 0 }
   0x7   : > { %218 = sbr.rel (%p215_p3) target bundleno = 253 (0xfd), region = 28  ;;  %p927_p7 = scmp.ne.s32.totalorder (!%p215_p3), %s1220_s15, 0 }
   0x8   : > { %s276_s20 = smul.u32 (!%p215_p3), 48, %s1220_s15  ;;  %p269_p5 = scmp.lt.s32.totalorder (!%p215_p3), %s266_s19, 53 }
   0xa   : > { %p278_p6 = scmp.lt.s32.totalorder (!%p215_p3), %s276_s20, 863 }
   0xc   : > { %s1436_s19 = smov (!%p269_p5, %s266_s19), 53  ;;  %s1438_s20 = smov (!%p278_p6, %s276_s20), 863 }
   0xd   : > { %s924_s21 = sshll.u32 %s1436_s19, 2  ;;  %s1130_s25 = sshll.u32 %s1438_s20, 3 }
   0xe   : > { %s1283_s24 = scalar_lea.vmem %s1426_s0, %s924_s21  ;;  %s1288_s28 = scalar_lea.vmem %s1427_s1, %s1130_s25 }
   0xf   : > { %311 = sbr.rel (%p927_p7) target bundleno = 23 (0x17), region = 32 }
  0x14   : > { %v1230_v0 = vmov 0.0  }
  0x15   : > { %312 = vst [vmem:[#allocation2] sm:$0xff] %v1230_v0 }
  0x16   : > { %313 = vst [vmem:[#allocation2 + $0x8] sm:$0xff] %v1230_v0 }
  0x17 PF: > { %v986_v1 = vld [vmem:[%s1288_s28 + $0x70] sm:$0xf]  ;;  %v1146_v2 = vld [vmem:[%s1288_s28 + $0x74] sm:$0xf0]  ;;  %v978_v6 = vld [vmem:[%s1288_s28 + $0x60] sm:$0xf] }
  0x18   : > { %v1050_v3 = vld [vmem:[%s1288_s28 + $0xf0] sm:$0xf]  ;;  %v987_v4 = vor.u32 %v1146_v2, %v986_v1  ;;  %v1162_v5 = vld [vmem:[%s1288_s28 + $0xf4] sm:$0xf0]  ;;  %v1144_v7 = vld [vmem:[%s1288_s28 + $0x64] sm:$0xf0] }
  0x19   : > { %v1051_v8 = vor.u32 %v1162_v5, %v1050_v3  ;;  %v1042_v9 = vld [vmem:[%s1288_s28 + $0xe0] sm:$0xf]  ;;  %v1160_v10 = vld [vmem:[%s1288_s28 + $0xe4] sm:$0xf0]  ;;  %v979_v11 = vor.u32 %v1144_v7, %v978_v6  ;;  %v970_v12 = vld [vmem:[%s1288_s28 + $0x50] sm:$0xf] }
  0x1a   : > { %617 = vmatpush.bf16.msra.mxu0 %v987_v4  ;;  %v1043_v13 = vor.u32 %v1160_v10, %v1042_v9  ;;  %v1142_v14 = vld [vmem:[%s1288_s28 + $0x54] sm:$0xf0]  ;;  %v1114_v15 = vld [vmem:[%s1288_s28 + $0x170] sm:$0xf]  ;;  %v1106_v20 = vld [vmem:[%s1288_s28 + $0x160] sm:$0xf] }
  0x1b   : > { %630 = vmatpush.bf16.msra.mxu1 %v1051_v8  ;;  %v1178_v16 = vld [vmem:[%s1288_s28 + $0x174] sm:$0xf0]  ;;  %v1034_v17 = vld [vmem:[%s1288_s28 + $0xd0] sm:$0xf]  ;;  %v1176_v21 = vld [vmem:[%s1288_s28 + $0x164] sm:$0xf0]  ;;  %v971_v23 = vor.u32 %v1142_v14, %v970_v12 }
  0x1c   : > { %v1158_v18 = vld [vmem:[%s1288_s28 + $0xd4] sm:$0xf0]  ;;  %v1115_v19 = vor.u32 %v1178_v16, %v1114_v15  ;;  %v1145_v22 = vld [vmem:[%s1288_s28 + $0x74] sm:$0xf]  ;;  %v962_v24 = vld [vmem:[%s1288_s28 + $0x40] sm:$0xf]  ;;  %v1107_v26 = vor.u32 %v1176_v21, %v1106_v20 }
  0x1d   : > { %v1140_v25 = vld [vmem:[%s1288_s28 + $0x44] sm:$0xf0]  ;;  %v988_v27 = vld [vmem:[%s1288_s28 + $0x78] sm:$0xf0]  ;;  %v1035_v28 = vor.u32 %v1158_v18, %v1034_v17  ;;  %v1026_v29 = vld [vmem:[%s1288_s28 + $0xc0] sm:$0xf] }
  0x1e   : > { %618 = vmatpush.bf16.msra.mxu0 %v979_v11  ;;  %643 = vmatpush.bf16.msra.mxu2 %v1115_v19  ;;  %v1156_v30 = vld [vmem:[%s1288_s28 + $0xc4] sm:$0xf0]  ;;  %v991_v31 = vor.u32 %v1145_v22, %v988_v27  ;;  %v1098_v32 = vld [vmem:[%s1288_s28 + $0x150] sm:$0xf]  ;;  %v1174_v33 = vld [vmem:[%s1288_s28 + $0x154] sm:$0xf0]  ;;  %v963_v37 = vor.u32 %v1140_v25, %v962_v24 }
  0x1f   : > { %631 = vmatpush.bf16.msra.mxu1 %v1043_v13  ;;  %v1143_v34 = vld [vmem:[%s1288_s28 + $0x64] sm:$0xf]  ;;  %v980_v35 = vld [vmem:[%s1288_s28 + $0x68] sm:$0xf0]  ;;  %v954_v38 = vld [vmem:[%s1288_s28 + $0x30] sm:$0xf]  ;;  %v1099_v40 = vor.u32 %v1174_v33, %v1098_v32  ;;  %v1027_v42 = vor.u32 %v1156_v30, %v1026_v29 }
  0x20   : > { %656 = vmatpush.bf16.msra.mxu3 %v991_v31  ;;  %v983_v36 = vor.u32 %v1143_v34, %v980_v35  ;;  %v1138_v39 = vld [vmem:[%s1288_s28 + $0x34] sm:$0xf0]  ;;  %v1090_v41 = vld [vmem:[%s1288_s28 + $0x140] sm:$0xf]  ;;  %v1172_v43 = vld [vmem:[%s1288_s28 + $0x144] sm:$0xf0] }
  0x21   : > { %v1141_v44 = vld [vmem:[%s1288_s28 + $0x54] sm:$0xf]  ;;  %v972_v45 = vld [vmem:[%s1288_s28 + $0x58] sm:$0xf0]  ;;  %v1018_v46 = vld [vmem:[%s1288_s28 + $0xb0] sm:$0xf]  ;;  %v955_v49 = vor.u32 %v1138_v39, %v954_v38  ;;  %v1091_v51 = vor.u32 %v1172_v43, %v1090_v41 }
  0x22   : > { %619 = vmatpush.bf16.msra.mxu0 %v971_v23  ;;  %644 = vmatpush.bf16.msra.mxu2 %v1107_v26  ;;  %v1154_v47 = vld [vmem:[%s1288_s28 + $0xb4] sm:$0xf0]  ;;  %v975_v48 = vor.u32 %v1141_v44, %v972_v45  ;;  %v946_v50 = vld [vmem:[%s1288_s28 + $0x20] sm:$0xf]  ;;  %v1139_v52 = vld [vmem:[%s1288_s28 + $0x44] sm:$0xf] }
  0x23   : > { %632 = vmatpush.bf16.msra.mxu1 %v1035_v28  ;;  %v964_v53 = vld [vmem:[%s1288_s28 + $0x48] sm:$0xf0]  ;;  %v1019_v54 = vor.u32 %v1154_v47, %v1018_v46  ;;  %v1136_v55 = vld [vmem:[%s1288_s28 + $0x24] sm:$0xf0]  ;;  %v1082_v56 = vld [vmem:[%s1288_s28 + $0x130] sm:$0xf] }
  0x24   : > { %657 = vmatpush.bf16.msra.mxu3 %v983_v36  ;;  %v1170_v57 = vld [vmem:[%s1288_s28 + $0x134] sm:$0xf0]  ;;  %v1010_v58 = vld [vmem:[%s1288_s28 + $0xa0] sm:$0xf]  ;;  %v1152_v59 = vld [vmem:[%s1288_s28 + $0xa4] sm:$0xf0]  ;;  %v967_v60 = vor.u32 %v1139_v52, %v964_v53  ;;  %v947_v61 = vor.u32 %v1136_v55, %v946_v50 }
  0x25   : > { %v938_v62 = vld [vmem:[%s1288_s28 + $0x10] sm:$0xf]  ;;  %v1083_v63 = vor.u32 %v1170_v57, %v1082_v56  ;;  %v1137_v0 = vld [vmem:[%s1288_s28 + $0x34] sm:$0xf]  ;;  %v956_v1 = vld [vmem:[%s1288_s28 + $0x38] sm:$0xf0]  ;;  %v1011_v2 = vor.u32 %v1152_v59, %v1010_v58 }
  0x26   : > { %620 = vmatpush.bf16.msra.mxu0 %v963_v37  ;;  %645 = vmatpush.bf16.msra.mxu2 %v1099_v40  ;;  %v1134_v3 = vld [vmem:[%s1288_s28 + $0x14] sm:$0xf0]  ;;  %v1074_v4 = vld [vmem:[%s1288_s28 + $0x120] sm:$0xf]  ;;  %v1168_v5 = vld [vmem:[%s1288_s28 + $0x124] sm:$0xf0]  ;;  %v959_v10 = vor.u32 %v1137_v0, %v956_v1 }
  0x27   : > { %633 = vmatpush.bf16.msra.mxu1 %v1027_v42  ;;  %v1002_v6 = vld [vmem:[%s1288_s28 + $0x90] sm:$0xf]  ;;  %v1150_v7 = vld [vmem:[%s1288_s28 + $0x94] sm:$0xf0]  ;;  %v930_v8 = vld [vmem:[%s1288_s28] sm:$0xf]  ;;  %v939_v11 = vor.u32 %v1134_v3, %v938_v62  ;;  %v1075_v12 = vor.u32 %v1168_v5, %v1074_v4 }
  0x28   : > { %658 = vmatpush.bf16.msra.mxu3 %v975_v48  ;;  %v1132_v9 = vld [vmem:[%s1288_s28 + $0x4] sm:$0xf0]  ;;  %v1135_v13 = vld [vmem:[%s1288_s28 + $0x24] sm:$0xf]  ;;  %v948_v14 = vld [vmem:[%s1288_s28 + $0x28] sm:$0xf0]  ;;  %v1003_v16 = vor.u32 %v1150_v7, %v1002_v6 }
  0x29   : > { %v316_v15 = vld [vmem:[%s1283_s24] sm:$0xff]  ;;  %v1066_v18 = vld [vmem:[%s1288_s28 + $0x110] sm:$0xf]  ;;  %v1166_v19 = vld [vmem:[%s1288_s28 + $0x114] sm:$0xf0]  ;;  %v951_v25 = vor.u32 %v1135_v13, %v948_v14  ;;  %v931_v27 = vor.u32 %v1132_v9, %v930_v8 }
  0x2a   : > { %621 = vmatpush.bf16.msra.mxu0 %v955_v49  ;;  %646 = vmatpush.bf16.msra.mxu2 %v1091_v51  ;;  %v994_v17 = vld [vmem:[%s1288_s28 + $0x80] sm:$0xf]  ;;  %v1148_v20 = vld [vmem:[%s1288_s28 + $0x84] sm:$0xf0]  ;;  %v1161_v21 = vld [vmem:[%s1288_s28 + $0xf4] sm:$0xf]  ;;  %v368_v26 = vunpack.c.l.b16 %v316_v15  ;;  %v1067_v28 = vor.u32 %v1166_v19, %v1066_v18  ;;  %v369_v29 = vunpack.c.h.b16 %v316_v15 }
  0x2b   : > { %634 = vmatpush.bf16.msra.mxu1 %v1019_v54  ;;  %v1052_v22 = vld [vmem:[%s1288_s28 + $0xf8] sm:$0xf0]  ;;  %v1177_v23 = vld [vmem:[%s1288_s28 + $0x174] sm:$0xf]  ;;  %v317_v32 = vld [vmem:[%s1283_s24 + $0x8] sm:$0xf]  ;;  %v995_v33 = vor.u32 %v1148_v20, %v994_v17 }
  0x2c   : > { %659 = vmatpush.bf16.msra.mxu3 %v967_v60  ;;  %v1116_v24 = vld [vmem:[%s1288_s28 + $0x178] sm:$0xf0]  ;;  %v1133_v30 = vld [vmem:[%s1288_s28 + $0x14] sm:$0xf]  ;;  %v1055_v34 = vor.u32 %v1161_v21, %v1052_v22  ;;  %v1058_v35 = vld [vmem:[%s1288_s28 + $0x100] sm:$0xf]  ;;  %v371_v42 = vpack.c.b16 %v368_v26, %v368_v26  ;;  %v370_v44 = vunpack.c.l.b16 %v317_v32  ;;  %v1363_v45 = vpack.c.b16 %v369_v29, %v369_v29 }
  0x2d   : > { %v940_v31 = vld [vmem:[%s1288_s28 + $0x18] sm:$0xf0]  ;;  %v1164_v36 = vld [vmem:[%s1288_s28 + $0x104] sm:$0xf0]  ;;  %v1119_v37 = vor.u32 %v1177_v23, %v1116_v24  ;;  %v1159_v38 = vld [vmem:[%s1288_s28 + $0xe4] sm:$0xf] }
  0x2e   : > { %622 = vmatpush.bf16.msra.mxu0 %v947_v61  ;;  %647 = vmatpush.bf16.msra.mxu2 %v1083_v63  ;;  %v1044_v39 = vld [vmem:[%s1288_s28 + $0xe8] sm:$0xf0]  ;;  %v1175_v40 = vld [vmem:[%s1288_s28 + $0x164] sm:$0xf]  ;;  %v943_v43 = vor.u32 %v1133_v30, %v940_v31  ;;  %v1059_v46 = vor.u32 %v1164_v36, %v1058_v35  ;;  %v1157_v51 = vld [vmem:[%s1288_s28 + $0xd4] sm:$0xf]  ;;  %v373_v55 = vpack.c.b16 %v370_v44, %v370_v44 }
  0x2f   : > { %635 = vmatpush.bf16.msra.mxu1 %v1011_v2  ;;  %v1108_v41 = vld [vmem:[%s1288_s28 + $0x168] sm:$0xf0]  ;;  %v1131_v47 = vld [vmem:[%s1288_s28 + $0x4] sm:$0xf]  ;;  %v1047_v49 = vor.u32 %v1159_v38, %v1044_v39  ;;  %v1036_v52 = vld [vmem:[%s1288_s28 + $0xd8] sm:$0xf0] }
  0x30   : > { %660 = vmatpush.bf16.msra.mxu3 %v959_v10  ;;  %v932_v48 = vld [vmem:[%s1288_s28 + $0x8] sm:$0xf0]  ;;  %v1111_v50 = vor.u32 %v1175_v40, %v1108_v41  ;;  %v1173_v53 = vld [vmem:[%s1288_s28 + $0x154] sm:$0xf]  ;;  %v1100_v54 = vld [vmem:[%s1288_s28 + $0x158] sm:$0xf0]  ;;  %v1039_v57 = vor.u32 %v1157_v51, %v1036_v52 }
  0x31   : > { %v935_v56 = vor.u32 %v1131_v47, %v932_v48  ;;  %v1103_v58 = vor.u32 %v1173_v53, %v1100_v54  ;;  %v1155_v59 = vld [vmem:[%s1288_s28 + $0xc4] sm:$0xf]  ;;  %v1028_v60 = vld [vmem:[%s1288_s28 + $0xc8] sm:$0xf0]  ;;  %v1153_v1 = vld [vmem:[%s1288_s28 + $0xb4] sm:$0xf] }
  0x32   : > { %623 = vmatpush.bf16.msra.mxu0 %v939_v11  ;;  %648 = vmatpush.bf16.msra.mxu2 %v1075_v12  ;;  %v1171_v61 = vld [vmem:[%s1288_s28 + $0x144] sm:$0xf]  ;;  %v1092_v62 = vld [vmem:[%s1288_s28 + $0x148] sm:$0xf0]  ;;  %v1031_v63 = vor.u32 %v1155_v59, %v1028_v60  ;;  %v1020_v2 = vld [vmem:[%s1288_s28 + $0xb8] sm:$0xf0] }
  0x33   : > { %636 = vmatpush.bf16.msra.mxu1 %v1003_v16  ;;  %v1095_v0 = vor.u32 %v1171_v61, %v1092_v62  ;;  %v1169_v3 = vld [vmem:[%s1288_s28 + $0x134] sm:$0xf]  ;;  %v1084_v4 = vld [vmem:[%s1288_s28 + $0x138] sm:$0xf0]  ;;  %v1023_v5 = vor.u32 %v1153_v1, %v1020_v2  ;;  %v1151_v7 = vld [vmem:[%s1288_s28 + $0xa4] sm:$0xf] }
  0x34   : > { %661 = vmatpush.bf16.msra.mxu3 %v951_v25  ;;  %v1087_v6 = vor.u32 %v1169_v3, %v1084_v4  ;;  %v1012_v8 = vld [vmem:[%s1288_s28 + $0xa8] sm:$0xf0]  ;;  %v1167_v9 = vld [vmem:[%s1288_s28 + $0x124] sm:$0xf]  ;;  %v1149_v13 = vld [vmem:[%s1288_s28 + $0x94] sm:$0xf] }
  0x35   : > { %v1076_v10 = vld [vmem:[%s1288_s28 + $0x128] sm:$0xf0]  ;;  %v1015_v11 = vor.u32 %v1151_v7, %v1012_v8  ;;  %v1004_v14 = vld [vmem:[%s1288_s28 + $0x98] sm:$0xf0]  ;;  %v1165_v15 = vld [vmem:[%s1288_s28 + $0x114] sm:$0xf] }
  0x36   : > { %624 = vmatpush.bf16.msra.mxu0 %v931_v27  ;;  %649 = vmatpush.bf16.msra.mxu2 %v1067_v28  ;;  %v1079_v12 = vor.u32 %v1167_v9, %v1076_v10  ;;  %v1068_v16 = vld [vmem:[%s1288_s28 + $0x118] sm:$0xf0]  ;;  %v1007_v17 = vor.u32 %v1149_v13, %v1004_v14  ;;  %v1147_v19 = vld [vmem:[%s1288_s28 + $0x84] sm:$0xf]  ;;  %v996_v20 = vld [vmem:[%s1288_s28 + $0x88] sm:$0xf0] }
  0x37   : > { %637 = vmatpush.bf16.msra.mxu1 %v995_v33  ;;  %v1071_v18 = vor.u32 %v1165_v15, %v1068_v16  ;;  %v1163_v21 = vld [vmem:[%s1288_s28 + $0x104] sm:$0xf]  ;;  %v1060_v22 = vld [vmem:[%s1288_s28 + $0x108] sm:$0xf0]  ;;  %v999_v23 = vor.u32 %v1147_v19, %v996_v20 }
  0x38   : > { %662 = vmatpush.bf16.msra.mxu3 %v943_v43  ;;  %v1063_v24 = vor.u32 %v1163_v21, %v1060_v22  ;;  %v314_v30 = vld [vmem:[#allocation2] sm:$0xff]  ;;  %v315_v40 = vld [vmem:[#allocation2 + $0x8] sm:$0xff] }
  0x39   : > { %625 = vmatmul.bf16.vlgmr.msra.gmra.mxu0 %v371_v42 }
  0x3a   : > { %669 = vmatpush.bf16.msrb.mxu0 %v1055_v34  ;;  %638 = vmatmul.bf16.vlgmr.msra.gmra.mxu1 %v1363_v45 }
  0x3b   : > { %682 = vmatpush.bf16.msrb.mxu1 %v1119_v37  ;;  %650 = vmatpush.bf16.msra.mxu2 %v1059_v46  ;;  %v1231_v46 = vmov (%p308_p4), 0.0  }
  0x3c   : > { %663 = vmatpush.bf16.msra.mxu3 %v935_v56 }
  0x3e   : > { %670 = vmatpush.bf16.msrb.mxu0 %v1047_v49  ;;  %651 = vmatmul.bf16.vlgmr.msra.gmra.mxu2 %v373_v55 }
  0x3f   : > { %683 = vmatpush.bf16.msrb.mxu1 %v1111_v50  ;;  %664 = vmatmul.bf16.vlgmr.msra.gmra.mxu3 %v371_v42 }
  0x42   : > { %671 = vmatpush.bf16.msrb.mxu0 %v1039_v57 }
  0x43   : > { %684 = vmatpush.bf16.msrb.mxu1 %v1103_v58 }
  0x46   : > { %672 = vmatpush.bf16.msrb.mxu0 %v1031_v63 }
  0x47   : > { %685 = vmatpush.bf16.msrb.mxu1 %v1095_v0 }
  0x4a   : > { %673 = vmatpush.bf16.msrb.mxu0 %v1023_v5 }
  0x4b   : > { %686 = vmatpush.bf16.msrb.mxu1 %v1087_v6 }
  0x4e   : > { %674 = vmatpush.bf16.msrb.mxu0 %v1015_v11 }
  0x4f   : > { %687 = vmatpush.bf16.msrb.mxu1 %v1079_v12 }
  0x52   : > { %675 = vmatpush.bf16.msrb.mxu0 %v1007_v17 }
  0x53   : > { %688 = vmatpush.bf16.msrb.mxu1 %v1071_v18 }
  0x56   : > { %676 = vmatpush.bf16.msrb.mxu0 %v999_v23 }
  0x57   : > { %689 = vmatpush.bf16.msrb.mxu1 %v1063_v24 }
  0x59   : > { %677 = vmatmul.bf16.vlgmr.msrb.gmra.mxu0 %v1363_v45  ;;  %v704_v45 = vlaneseq (%p308_p4) }
  0x5a   : > { %690 = vmatmul.bf16.vlgmr.msrb.gmra.mxu1 %v373_v55 }
  0x5b   : > { %vm706_vm0 = vcmp.lt.s32.totalorder (%p308_p4), %v704_v45, 256 }
  0x5c   : > { %708 = vst.msk [vmem:[%s1429_s3] sm:$0x3] (%p308_p4), %vm706_vm0, %v1231_v46 }
  0x5d   : > { %709 = vst.msk [vmem:[%s1430_s4] sm:$0x3] (%p308_p4), %vm706_vm0, %v1231_v46 }
  0xb6   : > { %v626_v25 = vpop.f32.mrf.mxu0 }
  0xb7   : > { %v639_v26 = vpop.f32.mrf.mxu1 }
  0xb8   : > { %v640_v27 = vadd.f32 %v639_v26, %v626_v25 }
  0xbe   : > { %v628_v28 = vpop.f32.mrf.mxu0 }
  0xbf   : > { %v641_v29 = vpop.f32.mrf.mxu1 }
  0xc1   : > { %v652_v31 = vpop.f32.mrf.mxu2 }
  0xc2   : > { %v653_v32 = vadd.f32 %v652_v31, %v640_v27  ;;  %v665_v34 = vpop.f32.mrf.mxu3 }
  0xc4   : > { %v695_v33 = vadd.f32 %v653_v32, %v314_v30 }
  0xc6   : > { %697 = vst [vmem:[#allocation2] sm:$0xff] %v695_v33 }
  0xc9   : > { %v654_v35 = vpop.f32.mrf.mxu2 }
  0xca   : > { %v667_v36 = vpop.f32.mrf.mxu3 }
  0xd6   : > { %v678_v37 = vpop.f32.mrf.mxu0 }
  0xd7   : > { %v679_v38 = vadd.f32 %v678_v37, %v665_v34  ;;  %v691_v39 = vpop.f32.mrf.mxu1 }
  0xd9   : > { %v692_v41 = vadd.f32 %v691_v39, %v679_v38 }
  0xdb   : > { %v696_v42 = vadd.f32 %v692_v41, %v315_v40  ;;  %703 = sbr.rel (!%p308_p4) target bundleno = 224 (0xe0), region = 36 }
  0xdd   : > { %698 = vst [vmem:[#allocation2 + $0x8] sm:$0xff] %v696_v42 }
  0xde   : > { %v680_v43 = vpop.f32.mrf.mxu0 }
  0xdf   : > { %v693_v44 = vpop.f32.mrf.mxu1 }
  0xe0 PF: > { %p1121_p8 = scmp.ne.s32.totalorder %s1220_s15, 17 }
  0xe2   : > { %713 = sbr.rel (%p1121_p8) target bundleno = 253 (0xfd), region = 40 }
  0xe7   : > { %v714_v47 = vld [vmem:[#allocation2] sm:$0xff]  ;;  %v715_v48 = vld [vmem:[#allocation2 + $0x8] sm:$0xff]  ;;  %v738_v8 = vlaneseq  ;;  %vm734_vm1 = vcmask 1040384  }
  0xe8   : > { %v716_v49 = vpack.c.bf16 %v715_v48, %v714_v47  ;;  %v719_v50 = vrot.slane %v714_v47, 4  ;;  %v725_v51 = vrot.slane %v715_v48, 4  ;;  %v744_v52 = vmul.f32 %v714_v47, %v714_v47  ;;  %v718_v11 = vld [vmem:[%s1429_s3] sm:$0x3] }
  0xe9   : > { %v745_v53 = vmul.f32 %v715_v48, %v715_v48  ;;  %vm740_vm2 = vcmp.lt.s32.totalorder %v738_v8, 256  ;;  %v743_v17 = vld [vmem:[%s1430_s4] sm:$0x3] }
  0xea   : > { %717 = vst [vmem:[%s1428_s2] sm:$0xff] %v716_v49  ;;  %v720_v54 = vadd.f32 %v719_v50, %v714_v47  ;;  %v726_v55 = vadd.f32 %v725_v51, %v715_v48  ;;  %v746_v56 = vrot.slane %v744_v52, 4 }
  0xeb   : > { %v752_v57 = vrot.slane %v745_v53, 4 }
  0xec   : > { %v721_v58 = vrot.slane %v720_v54, 2  ;;  %v727_v59 = vrot.slane %v726_v55, 2  ;;  %v747_v60 = vadd.f32 %v746_v56, %v744_v52 }
  0xed   : > { %v753_v61 = vadd.f32 %v752_v57, %v745_v53 }
  0xee   : > { %v722_v62 = vadd.f32 %v721_v58, %v720_v54  ;;  %v728_v63 = vadd.f32 %v727_v59, %v726_v55  ;;  %v748_v0 = vrot.slane %v747_v60, 2 }
  0xef   : > { %v754_v1 = vrot.slane %v753_v61, 2 }
  0xf0   : > { %v723_v2 = vrot.slane %v722_v62, 1  ;;  %v729_v3 = vrot.slane %v728_v63, 1  ;;  %v749_v4 = vadd.f32 %v748_v0, %v747_v60 }
  0xf1   : > { %v755_v5 = vadd.f32 %v754_v1, %v753_v61 }
  0xf2   : > { %v724_v6 = vadd.f32 %v723_v2, %v722_v62  ;;  %v730_v7 = vadd.f32 %v729_v3, %v728_v63  ;;  %v750_v9 = vrot.slane %v749_v4, 1 }
  0xf3   : > { %v756_v10 = vrot.slane %v755_v5, 1 }
  0xf4   : > { %v733_v12 = vrot.slane %v730_v7, 7  ;;  %v751_v13 = vadd.f32 %v750_v9, %v749_v4 }
  0xf5   : > { %v757_v14 = vadd.f32 %v756_v10, %v755_v5 }
  0xf6   : > { %v735_v15 = vsel %vm734_vm1, %v724_v6, %v733_v12 }
  0xf7   : > { %v737_v16 = vadd.f32 %v735_v15, %v718_v11  ;;  %v760_v18 = vrot.slane %v757_v14, 7 }
  0xf9   : > { %742 = vst.msk [vmem:[%s1429_s3] sm:$0x3] %vm740_vm2, %v737_v16  ;;  %v761_v19 = vsel %vm734_vm1, %v751_v13, %v760_v18 }
  0xfa   : > { %v763_v20 = vadd.f32 %v761_v19, %v743_v17 }
  0xfc   : > { %764 = vst.msk [vmem:[%s1430_s4] sm:$0x3] %vm740_vm2, %v763_v20 }
  0xfd PF: > { %s15_s17 = sadd.s32 1, %s1228_s17   ;;  %s1431_s15 = smov %s1224_s16 }
  0xfe   : > { %p12_p9 = scmp.ge.s32.totalorder %s15_s17, 20   ;;  %s1432_s16 = smov %s1434_s18 }
 0x100   :  { %14 = sbr.rel (!%p12_p9) target bundleno = 2 (0x2), region = 97 }

// kernel: forward.63
= control target key start
LH: loop header
LB: loop body
LE: loop exit
PB: predicated region body
PF: predicated region fallthrough
CT: control target
= control target key end

     0   :  { %s89_s0 = inlined_call_operand.vmem [shape: bf16[8,256], index: 0, kind: input, shape index: {}]   ;;  %s90_s1 = inlined_call_operand.vmem [shape: bf16[8,256], index: 1, kind: input, shape index: {}]   ;;  %s91_s2 = inlined_call_operand.vmem [shape: f32[1,256], index: 2, kind: input, shape index: {}]   ;;  %s92_s3 = inlined_call_operand.vmem [shape: f32[1,256], index: 3, kind: input, shape index: {}]   ;;  %s93_s4 = inlined_call_operand.vmem [shape: bf16[8,256], index: 4, kind: output, shape index: {}]  }
   0x1   :  { %v17_v0 = vld [vmem:[%s89_s0] sm:$0xff] }
   0x2   :  { %v20_v1 = vld [vmem:[%s91_s2] sm:$0x3]  ;;  %v18_v3 = vunpack.c.l.bf16 %v17_v0  ;;  %v19_v4 = vunpack.c.h.bf16 %v17_v0 }
   0x3   :  { %v28_v2 = vld [vmem:[%s92_s3] sm:$0x3]  ;;  %v22_v5 = vperm.slane %v20_v1, 0  ;;  %v23_v6 = vperm.slane %v20_v1, 1 }
   0x4   :  { %v36_v7 = vld [vmem:[%s90_s1] sm:$0xff]  ;;  %v30_v8 = vperm.slane %v28_v2, 0  ;;  %v31_v9 = vperm.slane %v28_v2, 1 }
   0x5   :  { %v26_v10 = vmul.f32 %v22_v5, %v18_v3  ;;  %v27_v11 = vmul.f32 %v23_v6, %v19_v4  ;;  %v37_v12 = vunpack.c.l.bf16 %v36_v7  ;;  %v38_v13 = vunpack.c.h.bf16 %v36_v7 }
   0x7   :  { %v34_v14 = vadd.f32 %v30_v8, %v26_v10  ;;  %v35_v15 = vadd.f32 %v31_v9, %v27_v11 }
   0x9   :  { %v39_v16 = vadd.f32 %v37_v12, %v34_v14  ;;  %v40_v17 = vadd.f32 %v38_v13, %v35_v15 }
   0xb   :  { %v41_v18 = vmax.f32 %v39_v16, 0.0  ;;  %v42_v19 = vmax.f32 %v40_v17, 0.0 }
   0xd   :  { %v43_v20 = vpack.c.bf16 %v42_v19, %v41_v18 }
   0xf   :  { %44 = vst [vmem:[%s93_s4] sm:$0xff] %v43_v20 }

// kernel: forward.65
= control target key start
LH: loop header
LB: loop body
LE: loop exit
PB: predicated region body
PF: predicated region fallthrough
CT: control target
= control target key end

     0   :  { %s98_s0 = inlined_call_operand.vmem [shape: bf16[8,512], index: 0, kind: input, shape index: {}]   ;;  %s99_s1 = inlined_call_operand.vmem [shape: f32[1,512], index: 1, kind: input, shape index: {}]   ;;  %s100_s2 = inlined_call_operand.vmem [shape: f32[1,512], index: 2, kind: input, shape index: {}]   ;;  %s101_s3 = inlined_call_operand.vmem [shape: bf16[8,512], index: 3, kind: output, shape index: {}]  }
   0x1   :  { %v14_v0 = vld [vmem:[%s98_s0] sm:$0xff]  ;;  %v15_v7 = vld [vmem:[%s98_s0 + $0x8] sm:$0xff] }
   0x2   :  { %v20_v1 = vld [vmem:[%s99_s1] sm:$0xf]  ;;  %v16_v3 = vunpack.c.l.bf16 %v14_v0  ;;  %v17_v4 = vunpack.c.h.bf16 %v14_v0  ;;  %v18_v10 = vunpack.c.l.bf16 %v15_v7  ;;  %v19_v11 = vunpack.c.h.bf16 %v15_v7 }
   0x3   :  { %v34_v2 = vld [vmem:[%s100_s2] sm:$0xf]  ;;  %v22_v5 = vperm.slane %v20_v1, 0  ;;  %v23_v6 = vperm.slane %v20_v1, 1  ;;  %v24_v14 = vperm.slane %v20_v1, 2  ;;  %v25_v15 = vperm.slane %v20_v1, 3 }
   0x4   :  { %v36_v8 = vperm.slane %v34_v2, 0  ;;  %v37_v9 = vperm.slane %v34_v2, 1  ;;  %v38_v16 = vperm.slane %v34_v2, 2  ;;  %v39_v17 = vperm.slane %v34_v2, 3 }
   0x5   :  { %v30_v12 = vmul.f32 %v22_v5, %v16_v3  ;;  %v31_v13 = vmul.f32 %v23_v6, %v17_v4  ;;  %v32_v20 = vmul.f32 %v24_v14, %v18_v10  ;;  %v33_v21 = vmul.f32 %v25_v15, %v19_v11 }
   0x7   :  { %v44_v18 = vadd.f32 %v36_v8, %v30_v12  ;;  %v45_v19 = vadd.f32 %v37_v9, %v31_v13  ;;  %v46_v24 = vadd.f32 %v38_v16, %v32_v20  ;;  %v47_v25 = vadd.f32 %v39_v17, %v33_v21 }
   0x9   :  { %v48_v22 = vmax.f32 %v44_v18, 0.0  ;;  %v49_v23 = vmax.f32 %v45_v19, 0.0  ;;  %v50_v27 = vmax.f32 %v46_v24, 0.0  ;;  %v51_v28 = vmax.f32 %v47_v25, 0.0 }
   0xb   :  { %v52_v26 = vpack.c.bf16 %v49_v23, %v48_v22  ;;  %v53_v29 = vpack.c.bf16 %v51_v28, %v50_v27 }
   0xd   :  { %54 = vst [vmem:[%s101_s3] sm:$0xff] %v52_v26 }
   0xe   :  { %55 = vst [vmem:[%s101_s3 + $0x8] sm:$0xff] %v53_v29 }

// kernel: forward.64
= control target key start
LH: loop header
LB: loop body
LE: loop exit
PB: predicated region body
PF: predicated region fallthrough
CT: control target
= control target key end

     0   :  { %s1548_s15 = smov 0   ;;  %s1550_s16 = smov 0   ;;  %s1870_s0 = inlined_call_operand.vmem [shape: bf16[8,6912], index: 0, kind: input, shape index: {}]   ;;  %s1871_s1 = inlined_call_operand.vmem [shape: bf16[6912,512], index: 1, kind: input, shape index: {}]   ;;  %s1872_s2 = inlined_call_operand.vmem [shape: bf16[8,512], index: 2, kind: output, shape index: {0}]   ;;  %s1873_s3 = inlined_call_operand.vmem [shape: f32[1,512], index: 3, kind: output, shape index: {1}]   ;;  %s1874_s4 = inlined_call_operand.vmem [shape: f32[1,512], index: 4, kind: output, shape index: {2}]  }
   0x1   :  { %s1552_s17 = smov 0   ;;  %s1554_s18 = smov 0  }
   0x2   :  { %s1556_s19 = smov 0   ;;  %s1558_s20 = smov 0  }
   0x3   :  { %s1560_s21 = smov 0  }
   0x4 LB: > { %s27_s22 = sadd.s32 1, %s1511_s19  ;;  %s34_s23 = sadd.s32 1, %s1515_s20  ;;  %s1519_s21 = sphi %s1560_s21, %s15_s21   ;;  %s1515_s20 = sphi %s1558_s20, %s1880_s20   ;;  %s1511_s19 = sphi %s1556_s19, %s1879_s19   ;;  %s1507_s18 = sphi %s1554_s18, %s1878_s18   ;;  %s1503_s17 = sphi %s1552_s17, %s1877_s17   ;;  %s1499_s16 = sphi %s1550_s16, %s1876_s16   ;;  %s1495_s15 = sphi %s1548_s15, %s1875_s15  }
   0x5   : > { %p28_p0 = scmp.ge.s32.totalorder %s27_s22, 18  ;;  %p78_p1 = scmp.ne.s32.totalorder %s1499_s16, %s1495_s15 }
   0x6   : > { %p79_p2 = scmp.eq.s32.totalorder %s1519_s21, 0  ;;  %s71_s27 = sadd.s32 1, %s1499_s16 }
   0x7   : > { %s1882_s22 = smov (%p28_p0, %s27_s22), 0  ;;  %s1884_s23 = smov (!%p28_p0, %s34_s23), %s1515_s20 }
   0x8   : > { %p80_p3 = por %p79_p2, %p78_p1  ;;  %p36_p4 = scmp.ge.s32.totalorder %s1884_s23, 2 }
   0x9   : > { %s66_s24 = ssub.s32 %s1511_s19, %s1882_s22  ;;  %p1148_p6 = scmp.ge.s32.totalorder %s1519_s21, 36 }
   0xa   : > { %s1886_s23 = smov (%p36_p4, %s1884_s23), 0 }
   0xb   : > { %s67_s25 = ssub.s32 %s1515_s20, %s1886_s23  ;;  %184 = sbr.rel (%p1148_p6) target bundleno = 72 (0x48), region = 16 }
   0xc   : > { %s68_s26 = sor.u32 %s67_s25, %s66_s24 }
   0xd   : > { %p69_p5 = scmp.eq.s32.totalorder %s68_s26, 0 }
   0xf   : > { %s1599_s28 = scalar_select %p69_p5, %s1499_s16, %s71_s27  }
  0x10   : > { %200 = sbr.rel (!%p80_p3) target bundleno = 72 (0x48), region = 24  ;;  %s202_s29 = sand.u32 (%p80_p3), 1, %s1499_s16  }
  0x11   : > { %s1405_s30 = smul.u32 (%p80_p3), 384, %s202_s29  ;;  %s1149_s5 = sshll.u32 (%p80_p3), %s1515_s20, 1 }
  0x12   : > { %s1355_s6 = smul.u32 (%p80_p3), 192, %s1511_s19 }
  0x13   : > { %s1613_s12 = scalar_lea.vmem (%p80_p3), [#allocation3], %s1405_s30 }
  0x14   : > { %s208_s7 = sadd.s32 (%p80_p3), %s1355_s6, %s1149_s5 }
  0x15   : > { %s1151_s8 = sshll.u32 %s208_s7, 2 }
  0x16   : > { %s1608_s11 = scalar_lea.vmem %s1871_s1, %s1151_s8 }
  0x17   : > { %v333_v0 = vld [vmem:[%s1608_s11] sm:$0xff]  ;;  %v335_v1 = vld [vmem:[%s1608_s11 + $0x10] sm:$0xff] }
  0x18   : > { %v337_v2 = vld [vmem:[%s1608_s11 + $0x20] sm:$0xff]  ;;  %334 = vst [vmem:[%s1613_s12] sm:$0xff] %v333_v0  ;;  %v339_v3 = vld [vmem:[%s1608_s11 + $0x30] sm:$0xff] }
  0x19   : > { %336 = vst [vmem:[%s1613_s12 + $0x8] sm:$0xff] %v335_v1  ;;  %v341_v4 = vld [vmem:[%s1608_s11 + $0x40] sm:$0xff]  ;;  %v343_v5 = vld [vmem:[%s1608_s11 + $0x50] sm:$0xff] }
  0x1a   : > { %338 = vst [vmem:[%s1613_s12 + $0x10] sm:$0xff] %v337_v2  ;;  %v345_v6 = vld [vmem:[%s1608_s11 + $0x60] sm:$0xff]  ;;  %v347_v7 = vld [vmem:[%s1608_s11 + $0x70] sm:$0xff] }
  0x1b   : > { %340 = vst [vmem:[%s1613_s12 + $0x18] sm:$0xff] %v339_v3  ;;  %v349_v8 = vld [vmem:[%s1608_s11 + $0x80] sm:$0xff]  ;;  %v351_v9 = vld [vmem:[%s1608_s11 + $0x90] sm:$0xff] }
  0x1c   : > { %342 = vst [vmem:[%s1613_s12 + $0x20] sm:$0xff] %v341_v4  ;;  %v353_v10 = vld [vmem:[%s1608_s11 + $0xa0] sm:$0xff]  ;;  %v355_v11 = vld [vmem:[%s1608_s11 + $0xb0] sm:$0xff] }
  0x1d   : > { %344 = vst [vmem:[%s1613_s12 + $0x28] sm:$0xff] %v343_v5  ;;  %v357_v12 = vld [vmem:[%s1608_s11 + $0xc0] sm:$0xff]  ;;  %v359_v13 = vld [vmem:[%s1608_s11 + $0xd0] sm:$0xff] }
  0x1e   : > { %346 = vst [vmem:[%s1613_s12 + $0x30] sm:$0xff] %v345_v6  ;;  %v361_v14 = vld [vmem:[%s1608_s11 + $0xe0] sm:$0xff]  ;;  %v363_v15 = vld [vmem:[%s1608_s11 + $0xf0] sm:$0xff] }
  0x1f   : > { %348 = vst [vmem:[%s1613_s12 + $0x38] sm:$0xff] %v347_v7  ;;  %v365_v16 = vld [vmem:[%s1608_s11 + $0x100] sm:$0xff]  ;;  %v367_v17 = vld [vmem:[%s1608_s11 + $0x110] sm:$0xff] }
  0x20   : > { %350 = vst [vmem:[%s1613_s12 + $0x40] sm:$0xff] %v349_v8  ;;  %v369_v18 = vld [vmem:[%s1608_s11 + $0x120] sm:$0xff]  ;;  %v371_v19 = vld [vmem:[%s1608_s11 + $0x130] sm:$0xff] }
  0x21   : > { %352 = vst [vmem:[%s1613_s12 + $0x48] sm:$0xff] %v351_v9  ;;  %v373_v20 = vld [vmem:[%s1608_s11 + $0x140] sm:$0xff]  ;;  %v375_v21 = vld [vmem:[%s1608_s11 + $0x150] sm:$0xff] }
  0x22   : > { %354 = vst [vmem:[%s1613_s12 + $0x50] sm:$0xff] %v353_v10  ;;  %v377_v22 = vld [vmem:[%s1608_s11 + $0x160] sm:$0xff]  ;;  %v379_v23 = vld [vmem:[%s1608_s11 + $0x170] sm:$0xff] }
  0x23   : > { %356 = vst [vmem:[%s1613_s12 + $0x58] sm:$0xff] %v355_v11  ;;  %v381_v24 = vld [vmem:[%s1608_s11 + $0x180] sm:$0xff]  ;;  %v383_v25 = vld [vmem:[%s1608_s11 + $0x190] sm:$0xff] }
  0x24   : > { %358 = vst [vmem:[%s1613_s12 + $0x60] sm:$0xff] %v357_v12  ;;  %v385_v26 = vld [vmem:[%s1608_s11 + $0x1a0] sm:$0xff]  ;;  %v387_v27 = vld [vmem:[%s1608_s11 + $0x1b0] sm:$0xff] }
  0x25   : > { %360 = vst [vmem:[%s1613_s12 + $0x68] sm:$0xff] %v359_v13  ;;  %v389_v28 = vld [vmem:[%s1608_s11 + $0x1c0] sm:$0xff]  ;;  %v391_v29 = vld [vmem:[%s1608_s11 + $0x1d0] sm:$0xff] }
  0x26   : > { %362 = vst [vmem:[%s1613_s12 + $0x70] sm:$0xff] %v361_v14  ;;  %v393_v30 = vld [vmem:[%s1608_s11 + $0x1e0] sm:$0xff]  ;;  %v395_v31 = vld [vmem:[%s1608_s11 + $0x1f0] sm:$0xff] }
  0x27   : > { %364 = vst [vmem:[%s1613_s12 + $0x78] sm:$0xff] %v363_v15  ;;  %v397_v32 = vld [vmem:[%s1608_s11 + $0x200] sm:$0xff]  ;;  %v399_v33 = vld [vmem:[%s1608_s11 + $0x210] sm:$0xff] }
  0x28   : > { %366 = vst [vmem:[%s1613_s12 + $0x80] sm:$0xff] %v365_v16  ;;  %v401_v34 = vld [vmem:[%s1608_s11 + $0x220] sm:$0xff]  ;;  %v403_v35 = vld [vmem:[%s1608_s11 + $0x230] sm:$0xff] }
  0x29   : > { %368 = vst [vmem:[%s1613_s12 + $0x88] sm:$0xff] %v367_v17  ;;  %v405_v36 = vld [vmem:[%s1608_s11 + $0x240] sm:$0xff]  ;;  %v407_v37 = vld [vmem:[%s1608_s11 + $0x250] sm:$0xff] }
  0x2a   : > { %370 = vst [vmem:[%s1613_s12 + $0x90] sm:$0xff] %v369_v18  ;;  %v409_v38 = vld [vmem:[%s1608_s11 + $0x260] sm:$0xff]  ;;  %v411_v39 = vld [vmem:[%s1608_s11 + $0x270] sm:$0xff] }
  0x2b   : > { %372 = vst [vmem:[%s1613_s12 + $0x98] sm:$0xff] %v371_v19  ;;  %v413_v40 = vld [vmem:[%s1608_s11 + $0x280] sm:$0xff]  ;;  %v415_v41 = vld [vmem:[%s1608_s11 + $0x290] sm:$0xff] }
  0x2c   : > { %374 = vst [vmem:[%s1613_s12 + $0xa0] sm:$0xff] %v373_v20  ;;  %v417_v42 = vld [vmem:[%s1608_s11 + $0x2a0] sm:$0xff]  ;;  %v419_v43 = vld [vmem:[%s1608_s11 + $0x2b0] sm:$0xff] }
  0x2d   : > { %376 = vst [vmem:[%s1613_s12 + $0xa8] sm:$0xff] %v375_v21  ;;  %v421_v44 = vld [vmem:[%s1608_s11 + $0x2c0] sm:$0xff]  ;;  %v423_v45 = vld [vmem:[%s1608_s11 + $0x2d0] sm:$0xff] }
  0x2e   : > { %378 = vst [vmem:[%s1613_s12 + $0xb0] sm:$0xff] %v377_v22  ;;  %v425_v46 = vld [vmem:[%s1608_s11 + $0x2e0] sm:$0xff]  ;;  %v427_v47 = vld [vmem:[%s1608_s11 + $0x2f0] sm:$0xff] }
  0x2f   : > { %380 = vst [vmem:[%s1613_s12 + $0xb8] sm:$0xff] %v379_v23 }
  0x30   : > { %382 = vst [vmem:[%s1613_s12 + $0xc0] sm:$0xff] %v381_v24 }
  0x31   : > { %384 = vst [vmem:[%s1613_s12 + $0xc8] sm:$0xff] %v383_v25 }
  0x32   : > { %386 = vst [vmem:[%s1613_s12 + $0xd0] sm:$0xff] %v385_v26 }
  0x33   : > { %388 = vst [vmem:[%s1613_s12 + $0xd8] sm:$0xff] %v387_v27 }
  0x34   : > { %390 = vst [vmem:[%s1613_s12 + $0xe0] sm:$0xff] %v389_v28 }
  0x35   : > { %392 = vst [vmem:[%s1613_s12 + $0xe8] sm:$0xff] %v391_v29 }
  0x36   : > { %394 = vst [vmem:[%s1613_s12 + $0xf0] sm:$0xff] %v393_v30 }
  0x37   : > { %396 = vst [vmem:[%s1613_s12 + $0xf8] sm:$0xff] %v395_v31 }
  0x38   : > { %398 = vst [vmem:[%s1613_s12 + $0x100] sm:$0xff] %v397_v32 }
  0x39   : > { %400 = vst [vmem:[%s1613_s12 + $0x108] sm:$0xff] %v399_v33 }
  0x3a   : > { %402 = vst [vmem:[%s1613_s12 + $0x110] sm:$0xff] %v401_v34 }
  0x3b   : > { %404 = vst [vmem:[%s1613_s12 + $0x118] sm:$0xff] %v403_v35 }
  0x3c   : > { %406 = vst [vmem:[%s1613_s12 + $0x120] sm:$0xff] %v405_v36 }
  0x3d   : > { %408 = vst [vmem:[%s1613_s12 + $0x128] sm:$0xff] %v407_v37 }
  0x3e   : > { %410 = vst [vmem:[%s1613_s12 + $0x130] sm:$0xff] %v409_v38 }
  0x3f   : > { %412 = vst [vmem:[%s1613_s12 + $0x138] sm:$0xff] %v411_v39 }
  0x40   : > { %414 = vst [vmem:[%s1613_s12 + $0x140] sm:$0xff] %v413_v40 }
  0x41   : > { %416 = vst [vmem:[%s1613_s12 + $0x148] sm:$0xff] %v415_v41 }
  0x42   : > { %418 = vst [vmem:[%s1613_s12 + $0x150] sm:$0xff] %v417_v42 }
  0x43   : > { %420 = vst [vmem:[%s1613_s12 + $0x158] sm:$0xff] %v419_v43 }
  0x44   : > { %422 = vst [vmem:[%s1613_s12 + $0x160] sm:$0xff] %v421_v44 }
  0x45   : > { %424 = vst [vmem:[%s1613_s12 + $0x168] sm:$0xff] %v423_v45 }
  0x46   : > { %426 = vst [vmem:[%s1613_s12 + $0x170] sm:$0xff] %v425_v46 }
  0x47   : > { %428 = vst [vmem:[%s1613_s12 + $0x178] sm:$0xff] %v427_v47 }
  0x48 PF: > { %p1152_p7 = scmp.ge.s32.totalorder %s1519_s21, 1  ;;  %p433_p8 = scmp.lt.s32.totalorder %s1519_s21, 37 }
  0x4a   : > { %p434_p9 = pnand %p1152_p7, %p433_p8 }
  0x4b   : > { %s440_s13 = sand.u32 (!%p434_p9), 1, %s1495_s15   ;;  %s486_s14 = smul.u32 (!%p434_p9), 3, %s1503_s17 }
  0x4c   : > { %437 = sbr.rel (%p434_p9) target bundleno = 323 (0x143), region = 62  ;;  %s1154_s25 = sshll.u32 (!%p434_p9), %s1507_s18, 1 }
  0x4d   : > { %s1406_s24 = smul.u32 (!%p434_p9), 384, %s440_s13  ;;  %p489_p10 = scmp.lt.s32.totalorder (!%p434_p9), %s486_s14, 53 }
  0x4e   : > { %p501_p11 = scmp.lt.s32.totalorder (!%p434_p9), %s1154_s25, 3  ;;  %p518_p12 = scmp.eq.s32.totalorder (!%p434_p9), %s1503_s17, 0 }
  0x4f   : > { %s1734_s13 = scalar_lea.vmem (!%p434_p9), [#allocation3], %s1406_s24  ;;  %p1158_p13 = scmp.ne.s32.totalorder (!%p434_p9), %s1503_s17, 0 }
  0x51   : > { %s1888_s14 = smov (!%p489_p10, %s486_s14), 53  ;;  %s1890_s25 = smov (!%p501_p11, %s1154_s25), 3 }
  0x52   : > { %s1153_s26 = sshll.u32 %s1888_s14, 2  ;;  %s1155_s5 = sshll.u32 %s1890_s25, 2 }
  0x53   : > { %s1717_s30 = scalar_lea.vmem %s1870_s0, %s1153_s26  ;;  %s1722_s8 = scalar_lea.vmem %s1872_s2, %s1155_s5 }
  0x54   : > { %s1727_s18 = scalar_lea.vmem %s1873_s3, %s1890_s25  ;;  %s1732_s12 = scalar_lea.vmem %s1874_s4, %s1890_s25 }
  0x55   : > { %521 = sbr.rel (%p1158_p13) target bundleno = 93 (0x5d), region = 70 }
  0x5a   : > { %v1521_v48 = vmov 0.0  }
  0x5b   : > { %522 = vst [vmem:[#allocation2] sm:$0xff] %v1521_v48 }
  0x5c   : > { %523 = vst [vmem:[#allocation2 + $0x8] sm:$0xff] %v1521_v48 }
  0x5d PF: > { %v1217_v49 = vld [vmem:[%s1734_s13 + $0x70] sm:$0xf]  ;;  %v1371_v50 = vld [vmem:[%s1734_s13 + $0x74] sm:$0xf0]  ;;  %v1209_v54 = vld [vmem:[%s1734_s13 + $0x60] sm:$0xf] }
  0x5e   : > { %v1281_v51 = vld [vmem:[%s1734_s13 + $0xf0] sm:$0xf]  ;;  %v1218_v52 = vor.u32 %v1371_v50, %v1217_v49  ;;  %v1387_v53 = vld [vmem:[%s1734_s13 + $0xf4] sm:$0xf0]  ;;  %v1369_v55 = vld [vmem:[%s1734_s13 + $0x64] sm:$0xf0] }
  0x5f   : > { %v1282_v56 = vor.u32 %v1387_v53, %v1281_v51  ;;  %v1273_v57 = vld [vmem:[%s1734_s13 + $0xe0] sm:$0xf]  ;;  %v1385_v58 = vld [vmem:[%s1734_s13 + $0xe4] sm:$0xf0]  ;;  %v1210_v59 = vor.u32 %v1369_v55, %v1209_v54  ;;  %v1201_v60 = vld [vmem:[%s1734_s13 + $0x50] sm:$0xf] }
  0x60   : > { %827 = vmatpush.bf16.msra.mxu0 %v1218_v52  ;;  %v1274_v61 = vor.u32 %v1385_v58, %v1273_v57  ;;  %v1367_v62 = vld [vmem:[%s1734_s13 + $0x54] sm:$0xf0]  ;;  %v1345_v63 = vld [vmem:[%s1734_s13 + $0x170] sm:$0xf]  ;;  %v1337_v4 = vld [vmem:[%s1734_s13 + $0x160] sm:$0xf] }
  0x61   : > { %840 = vmatpush.bf16.msra.mxu1 %v1282_v56  ;;  %v1403_v0 = vld [vmem:[%s1734_s13 + $0x174] sm:$0xf0]  ;;  %v1265_v1 = vld [vmem:[%s1734_s13 + $0xd0] sm:$0xf]  ;;  %v1401_v5 = vld [vmem:[%s1734_s13 + $0x164] sm:$0xf0]  ;;  %v1202_v7 = vor.u32 %v1367_v62, %v1201_v60 }
  0x62   : > { %v1383_v2 = vld [vmem:[%s1734_s13 + $0xd4] sm:$0xf0]  ;;  %v1346_v3 = vor.u32 %v1403_v0, %v1345_v63  ;;  %v1370_v6 = vld [vmem:[%s1734_s13 + $0x74] sm:$0xf]  ;;  %v1193_v8 = vld [vmem:[%s1734_s13 + $0x40] sm:$0xf]  ;;  %v1338_v10 = vor.u32 %v1401_v5, %v1337_v4 }
  0x63   : > { %v1365_v9 = vld [vmem:[%s1734_s13 + $0x44] sm:$0xf0]  ;;  %v1219_v11 = vld [vmem:[%s1734_s13 + $0x78] sm:$0xf0]  ;;  %v1266_v12 = vor.u32 %v1383_v2, %v1265_v1  ;;  %v1257_v13 = vld [vmem:[%s1734_s13 + $0xc0] sm:$0xf] }
  0x64   : > { %828 = vmatpush.bf16.msra.mxu0 %v1210_v59  ;;  %853 = vmatpush.bf16.msra.mxu2 %v1346_v3  ;;  %v1381_v14 = vld [vmem:[%s1734_s13 + $0xc4] sm:$0xf0]  ;;  %v1222_v15 = vor.u32 %v1370_v6, %v1219_v11  ;;  %v1329_v16 = vld [vmem:[%s1734_s13 + $0x150] sm:$0xf]  ;;  %v1399_v17 = vld [vmem:[%s1734_s13 + $0x154] sm:$0xf0]  ;;  %v1194_v21 = vor.u32 %v1365_v9, %v1193_v8 }
  0x65   : > { %841 = vmatpush.bf16.msra.mxu1 %v1274_v61  ;;  %v1368_v18 = vld [vmem:[%s1734_s13 + $0x64] sm:$0xf]  ;;  %v1211_v19 = vld [vmem:[%s1734_s13 + $0x68] sm:$0xf0]  ;;  %v1185_v22 = vld [vmem:[%s1734_s13 + $0x30] sm:$0xf]  ;;  %v1330_v24 = vor.u32 %v1399_v17, %v1329_v16  ;;  %v1258_v26 = vor.u32 %v1381_v14, %v1257_v13 }
  0x66   : > { %866 = vmatpush.bf16.msra.mxu3 %v1222_v15  ;;  %v1214_v20 = vor.u32 %v1368_v18, %v1211_v19  ;;  %v1363_v23 = vld [vmem:[%s1734_s13 + $0x34] sm:$0xf0]  ;;  %v1321_v25 = vld [vmem:[%s1734_s13 + $0x140] sm:$0xf]  ;;  %v1397_v27 = vld [vmem:[%s1734_s13 + $0x144] sm:$0xf0] }
  0x67   : > { %v1366_v28 = vld [vmem:[%s1734_s13 + $0x54] sm:$0xf]  ;;  %v1203_v29 = vld [vmem:[%s1734_s13 + $0x58] sm:$0xf0]  ;;  %v1249_v30 = vld [vmem:[%s1734_s13 + $0xb0] sm:$0xf]  ;;  %v1186_v33 = vor.u32 %v1363_v23, %v1185_v22  ;;  %v1322_v35 = vor.u32 %v1397_v27, %v1321_v25 }
  0x68   : > { %829 = vmatpush.bf16.msra.mxu0 %v1202_v7  ;;  %854 = vmatpush.bf16.msra.mxu2 %v1338_v10  ;;  %v1379_v31 = vld [vmem:[%s1734_s13 + $0xb4] sm:$0xf0]  ;;  %v1206_v32 = vor.u32 %v1366_v28, %v1203_v29  ;;  %v1177_v34 = vld [vmem:[%s1734_s13 + $0x20] sm:$0xf]  ;;  %v1364_v36 = vld [vmem:[%s1734_s13 + $0x44] sm:$0xf] }
  0x69   : > { %842 = vmatpush.bf16.msra.mxu1 %v1266_v12  ;;  %v1195_v37 = vld [vmem:[%s1734_s13 + $0x48] sm:$0xf0]  ;;  %v1250_v38 = vor.u32 %v1379_v31, %v1249_v30  ;;  %v1361_v39 = vld [vmem:[%s1734_s13 + $0x24] sm:$0xf0]  ;;  %v1313_v40 = vld [vmem:[%s1734_s13 + $0x130] sm:$0xf] }
  0x6a   : > { %867 = vmatpush.bf16.msra.mxu3 %v1214_v20  ;;  %v1395_v41 = vld [vmem:[%s1734_s13 + $0x134] sm:$0xf0]  ;;  %v1241_v42 = vld [vmem:[%s1734_s13 + $0xa0] sm:$0xf]  ;;  %v1377_v43 = vld [vmem:[%s1734_s13 + $0xa4] sm:$0xf0]  ;;  %v1198_v44 = vor.u32 %v1364_v36, %v1195_v37  ;;  %v1178_v45 = vor.u32 %v1361_v39, %v1177_v34 }
  0x6b   : > { %v1169_v46 = vld [vmem:[%s1734_s13 + $0x10] sm:$0xf]  ;;  %v1314_v47 = vor.u32 %v1395_v41, %v1313_v40  ;;  %v1362_v48 = vld [vmem:[%s1734_s13 + $0x34] sm:$0xf]  ;;  %v1187_v49 = vld [vmem:[%s1734_s13 + $0x38] sm:$0xf0]  ;;  %v1242_v50 = vor.u32 %v1377_v43, %v1241_v42 }
  0x6c   : > { %830 = vmatpush.bf16.msra.mxu0 %v1194_v21  ;;  %855 = vmatpush.bf16.msra.mxu2 %v1330_v24  ;;  %v1359_v51 = vld [vmem:[%s1734_s13 + $0x14] sm:$0xf0]  ;;  %v1305_v52 = vld [vmem:[%s1734_s13 + $0x120] sm:$0xf]  ;;  %v1393_v53 = vld [vmem:[%s1734_s13 + $0x124] sm:$0xf0]  ;;  %v1190_v58 = vor.u32 %v1362_v48, %v1187_v49 }
  0x6d   : > { %843 = vmatpush.bf16.msra.mxu1 %v1258_v26  ;;  %v1233_v54 = vld [vmem:[%s1734_s13 + $0x90] sm:$0xf]  ;;  %v1375_v55 = vld [vmem:[%s1734_s13 + $0x94] sm:$0xf0]  ;;  %v1161_v56 = vld [vmem:[%s1734_s13] sm:$0xf]  ;;  %v1170_v59 = vor.u32 %v1359_v51, %v1169_v46  ;;  %v1306_v60 = vor.u32 %v1393_v53, %v1305_v52 }
  0x6e   : > { %868 = vmatpush.bf16.msra.mxu3 %v1206_v32  ;;  %v1357_v57 = vld [vmem:[%s1734_s13 + $0x4] sm:$0xf0]  ;;  %v1360_v61 = vld [vmem:[%s1734_s13 + $0x24] sm:$0xf]  ;;  %v1179_v62 = vld [vmem:[%s1734_s13 + $0x28] sm:$0xf0]  ;;  %v1234_v0 = vor.u32 %v1375_v55, %v1233_v54 }
  0x6f   : > { %v526_v63 = vld [vmem:[%s1717_s30] sm:$0xff]  ;;  %v1225_v1 = vld [vmem:[%s1734_s13 + $0x80] sm:$0xf]  ;;  %v1391_v3 = vld [vmem:[%s1734_s13 + $0x114] sm:$0xf0]  ;;  %v1182_v9 = vor.u32 %v1360_v61, %v1179_v62  ;;  %v1162_v11 = vor.u32 %v1357_v57, %v1161_v56 }
  0x70   : > { %831 = vmatpush.bf16.msra.mxu0 %v1186_v33  ;;  %856 = vmatpush.bf16.msra.mxu2 %v1322_v35  ;;  %v1297_v2 = vld [vmem:[%s1734_s13 + $0x110] sm:$0xf]  ;;  %v1373_v4 = vld [vmem:[%s1734_s13 + $0x84] sm:$0xf0]  ;;  %v1386_v5 = vld [vmem:[%s1734_s13 + $0xf4] sm:$0xf]  ;;  %v578_v10 = vunpack.c.l.b16 %v526_v63  ;;  %v579_v13 = vunpack.c.h.b16 %v526_v63 }
  0x71   : > { %844 = vmatpush.bf16.msra.mxu1 %v1250_v38  ;;  %v1283_v6 = vld [vmem:[%s1734_s13 + $0xf8] sm:$0xf0]  ;;  %v1402_v7 = vld [vmem:[%s1734_s13 + $0x174] sm:$0xf]  ;;  %v1298_v12 = vor.u32 %v1391_v3, %v1297_v2  ;;  %v527_v16 = vld [vmem:[%s1717_s30 + $0x8] sm:$0xf]  ;;  %v1226_v17 = vor.u32 %v1373_v4, %v1225_v1 }
  0x72   : > { %869 = vmatpush.bf16.msra.mxu3 %v1198_v44  ;;  %v1347_v8 = vld [vmem:[%s1734_s13 + $0x178] sm:$0xf0]  ;;  %v1358_v14 = vld [vmem:[%s1734_s13 + $0x14] sm:$0xf]  ;;  %v1286_v18 = vor.u32 %v1386_v5, %v1283_v6  ;;  %v1289_v19 = vld [vmem:[%s1734_s13 + $0x100] sm:$0xf]  ;;  %v581_v26 = vpack.c.b16 %v578_v10, %v578_v10  ;;  %v580_v28 = vunpack.c.l.b16 %v527_v16  ;;  %v1809_v29 = vpack.c.b16 %v579_v13, %v579_v13 }
  0x73   : > { %v1171_v15 = vld [vmem:[%s1734_s13 + $0x18] sm:$0xf0]  ;;  %v1389_v20 = vld [vmem:[%s1734_s13 + $0x104] sm:$0xf0]  ;;  %v1350_v21 = vor.u32 %v1402_v7, %v1347_v8  ;;  %v1384_v22 = vld [vmem:[%s1734_s13 + $0xe4] sm:$0xf] }
  0x74   : > { %832 = vmatpush.bf16.msra.mxu0 %v1178_v45  ;;  %857 = vmatpush.bf16.msra.mxu2 %v1314_v47  ;;  %v1275_v23 = vld [vmem:[%s1734_s13 + $0xe8] sm:$0xf0]  ;;  %v1400_v24 = vld [vmem:[%s1734_s13 + $0x164] sm:$0xf]  ;;  %v1174_v27 = vor.u32 %v1358_v14, %v1171_v15  ;;  %v1290_v30 = vor.u32 %v1389_v20, %v1289_v19  ;;  %v1382_v35 = vld [vmem:[%s1734_s13 + $0xd4] sm:$0xf]  ;;  %v583_v39 = vpack.c.b16 %v580_v28, %v580_v28 }
  0x75   : > { %845 = vmatpush.bf16.msra.mxu1 %v1242_v50  ;;  %v1339_v25 = vld [vmem:[%s1734_s13 + $0x168] sm:$0xf0]  ;;  %v1356_v31 = vld [vmem:[%s1734_s13 + $0x4] sm:$0xf]  ;;  %v1278_v33 = vor.u32 %v1384_v22, %v1275_v23  ;;  %v1267_v36 = vld [vmem:[%s1734_s13 + $0xd8] sm:$0xf0] }
  0x76   : > { %870 = vmatpush.bf16.msra.mxu3 %v1190_v58  ;;  %v1163_v32 = vld [vmem:[%s1734_s13 + $0x8] sm:$0xf0]  ;;  %v1342_v34 = vor.u32 %v1400_v24, %v1339_v25  ;;  %v1398_v37 = vld [vmem:[%s1734_s13 + $0x154] sm:$0xf]  ;;  %v1331_v38 = vld [vmem:[%s1734_s13 + $0x158] sm:$0xf0]  ;;  %v1270_v41 = vor.u32 %v1382_v35, %v1267_v36 }
  0x77   : > { %v1166_v40 = vor.u32 %v1356_v31, %v1163_v32  ;;  %v1334_v42 = vor.u32 %v1398_v37, %v1331_v38  ;;  %v1380_v43 = vld [vmem:[%s1734_s13 + $0xc4] sm:$0xf]  ;;  %v1259_v44 = vld [vmem:[%s1734_s13 + $0xc8] sm:$0xf0]  ;;  %v1378_v49 = vld [vmem:[%s1734_s13 + $0xb4] sm:$0xf] }
  0x78   : > { %833 = vmatpush.bf16.msra.mxu0 %v1170_v59  ;;  %858 = vmatpush.bf16.msra.mxu2 %v1306_v60  ;;  %v1396_v45 = vld [vmem:[%s1734_s13 + $0x144] sm:$0xf]  ;;  %v1323_v46 = vld [vmem:[%s1734_s13 + $0x148] sm:$0xf0]  ;;  %v1262_v47 = vor.u32 %v1380_v43, %v1259_v44  ;;  %v1251_v50 = vld [vmem:[%s1734_s13 + $0xb8] sm:$0xf0] }
  0x79   : > { %846 = vmatpush.bf16.msra.mxu1 %v1234_v0  ;;  %v1326_v48 = vor.u32 %v1396_v45, %v1323_v46  ;;  %v1394_v51 = vld [vmem:[%s1734_s13 + $0x134] sm:$0xf]  ;;  %v1315_v52 = vld [vmem:[%s1734_s13 + $0x138] sm:$0xf0]  ;;  %v1254_v53 = vor.u32 %v1378_v49, %v1251_v50  ;;  %v1376_v55 = vld [vmem:[%s1734_s13 + $0xa4] sm:$0xf] }
  0x7a   : > { %871 = vmatpush.bf16.msra.mxu3 %v1182_v9  ;;  %v1318_v54 = vor.u32 %v1394_v51, %v1315_v52  ;;  %v1243_v56 = vld [vmem:[%s1734_s13 + $0xa8] sm:$0xf0]  ;;  %v1392_v57 = vld [vmem:[%s1734_s13 + $0x124] sm:$0xf]  ;;  %v1374_v61 = vld [vmem:[%s1734_s13 + $0x94] sm:$0xf] }
  0x7b   : > { %v1307_v58 = vld [vmem:[%s1734_s13 + $0x128] sm:$0xf0]  ;;  %v1246_v59 = vor.u32 %v1376_v55, %v1243_v56  ;;  %v1235_v62 = vld [vmem:[%s1734_s13 + $0x98] sm:$0xf0]  ;;  %v1390_v63 = vld [vmem:[%s1734_s13 + $0x114] sm:$0xf] }
  0x7c   : > { %834 = vmatpush.bf16.msra.mxu0 %v1162_v11  ;;  %859 = vmatpush.bf16.msra.mxu2 %v1298_v12  ;;  %v1310_v60 = vor.u32 %v1392_v57, %v1307_v58  ;;  %v1299_v0 = vld [vmem:[%s1734_s13 + $0x118] sm:$0xf0]  ;;  %v1238_v1 = vor.u32 %v1374_v61, %v1235_v62  ;;  %v1372_v3 = vld [vmem:[%s1734_s13 + $0x84] sm:$0xf]  ;;  %v1227_v4 = vld [vmem:[%s1734_s13 + $0x88] sm:$0xf0] }
  0x7d   : > { %847 = vmatpush.bf16.msra.mxu1 %v1226_v17  ;;  %v1302_v2 = vor.u32 %v1390_v63, %v1299_v0  ;;  %v1388_v5 = vld [vmem:[%s1734_s13 + $0x104] sm:$0xf]  ;;  %v1291_v6 = vld [vmem:[%s1734_s13 + $0x108] sm:$0xf0]  ;;  %v1230_v7 = vor.u32 %v1372_v3, %v1227_v4  ;;  %v524_v14 = vld [vmem:[#allocation2] sm:$0xff] }
  0x7e   : > { %872 = vmatpush.bf16.msra.mxu3 %v1174_v27  ;;  %v1294_v8 = vor.u32 %v1388_v5, %v1291_v6  ;;  %v525_v24 = vld [vmem:[#allocation2 + $0x8] sm:$0xff] }
  0x7f   : > { %835 = vmatmul.bf16.vlgmr.msra.gmra.mxu0 %v581_v26 }
  0x80   : > { %879 = vmatpush.bf16.msrb.mxu0 %v1286_v18  ;;  %848 = vmatmul.bf16.vlgmr.msra.gmra.mxu1 %v1809_v29 }
  0x81   : > { %892 = vmatpush.bf16.msrb.mxu1 %v1350_v21  ;;  %860 = vmatpush.bf16.msra.mxu2 %v1290_v30  ;;  %v1522_v30 = vmov (%p518_p12), 0.0  }
  0x82   : > { %873 = vmatpush.bf16.msra.mxu3 %v1166_v40 }
  0x84   : > { %880 = vmatpush.bf16.msrb.mxu0 %v1278_v33  ;;  %861 = vmatmul.bf16.vlgmr.msra.gmra.mxu2 %v583_v39 }
  0x85   : > { %893 = vmatpush.bf16.msrb.mxu1 %v1342_v34  ;;  %874 = vmatmul.bf16.vlgmr.msra.gmra.mxu3 %v581_v26 }
  0x88   : > { %881 = vmatpush.bf16.msrb.mxu0 %v1270_v41 }
  0x89   : > { %894 = vmatpush.bf16.msrb.mxu1 %v1334_v42 }
  0x8c   : > { %882 = vmatpush.bf16.msrb.mxu0 %v1262_v47 }
  0x8d   : > { %895 = vmatpush.bf16.msrb.mxu1 %v1326_v48 }
  0x90   : > { %883 = vmatpush.bf16.msrb.mxu0 %v1254_v53 }
  0x91   : > { %896 = vmatpush.bf16.msrb.mxu1 %v1318_v54 }
  0x94   : > { %884 = vmatpush.bf16.msrb.mxu0 %v1246_v59 }
  0x95   : > { %897 = vmatpush.bf16.msrb.mxu1 %v1310_v60 }
  0x98   : > { %885 = vmatpush.bf16.msrb.mxu0 %v1238_v1 }
  0x99   : > { %898 = vmatpush.bf16.msrb.mxu1 %v1302_v2 }
  0x9c   : > { %886 = vmatpush.bf16.msrb.mxu0 %v1230_v7 }
  0x9d   : > { %899 = vmatpush.bf16.msrb.mxu1 %v1294_v8 }
  0x9f   : > { %887 = vmatmul.bf16.vlgmr.msrb.gmra.mxu0 %v1809_v29  ;;  %v914_v29 = vlaneseq (%p518_p12) }
  0xa0   : > { %900 = vmatmul.bf16.vlgmr.msrb.gmra.mxu1 %v583_v39 }
  0xa1   : > { %vm916_vm0 = vcmp.lt.s32.totalorder (%p518_p12), %v914_v29, 256 }
  0xa2   : > { %918 = vst.msk [vmem:[%s1727_s18] sm:$0x3] (%p518_p12), %vm916_vm0, %v1522_v30 }
  0xa3   : > { %919 = vst.msk [vmem:[%s1732_s12] sm:$0x3] (%p518_p12), %vm916_vm0, %v1522_v30 }
  0xfc   : > { %v836_v9 = vpop.f32.mrf.mxu0 }
  0xfd   : > { %v849_v10 = vpop.f32.mrf.mxu1 }
  0xfe   : > { %v850_v11 = vadd.f32 %v849_v10, %v836_v9 }
 0x104   : > { %v838_v12 = vpop.f32.mrf.mxu0 }
 0x105   : > { %v851_v13 = vpop.f32.mrf.mxu1 }
 0x107   : > { %v862_v15 = vpop.f32.mrf.mxu2 }
 0x108   : > { %v863_v16 = vadd.f32 %v862_v15, %v850_v11  ;;  %v875_v18 = vpop.f32.mrf.mxu3 }
 0x10a   : > { %v905_v17 = vadd.f32 %v863_v16, %v524_v14 }
 0x10c   : > { %907 = vst [vmem:[#allocation2] sm:$0xff] %v905_v17 }
 0x10f   : > { %v864_v19 = vpop.f32.mrf.mxu2 }
 0x110   : > { %v877_v20 = vpop.f32.mrf.mxu3 }
 0x11c   : > { %v888_v21 = vpop.f32.mrf.mxu0 }
 0x11d   : > { %v889_v22 = vadd.f32 %v888_v21, %v875_v18  ;;  %v901_v23 = vpop.f32.mrf.mxu1 }
 0x11f   : > { %v902_v25 = vadd.f32 %v901_v23, %v889_v22 }
 0x121   : > { %v906_v26 = vadd.f32 %v902_v25, %v525_v24  ;;  %913 = sbr.rel (!%p518_p12) target bundleno = 294 (0x126), region = 74 }
 0x123   : > { %908 = vst [vmem:[#allocation2 + $0x8] sm:$0xff] %v906_v26 }
 0x124   : > { %v890_v27 = vpop.f32.mrf.mxu0 }
 0x125   : > { %v903_v28 = vpop.f32.mrf.mxu1 }
 0x126 PF: > { %p1352_p0 = scmp.ne.s32.totalorder %s1503_s17, 17 }
 0x128   : > { %923 = sbr.rel (%p1352_p0) target bundleno = 323 (0x143), region = 78 }
 0x12d   : > { %v924_v31 = vld [vmem:[#allocation2] sm:$0xff]  ;;  %v925_v32 = vld [vmem:[#allocation2 + $0x8] sm:$0xff]  ;;  %v948_v56 = vlaneseq  ;;  %vm944_vm1 = vcmask 1040384  }
 0x12e   : > { %v926_v33 = vpack.c.bf16 %v925_v32, %v924_v31  ;;  %v929_v34 = vrot.slane %v924_v31, 4  ;;  %v935_v35 = vrot.slane %v925_v32, 4  ;;  %v954_v36 = vmul.f32 %v924_v31, %v924_v31  ;;  %v928_v59 = vld [vmem:[%s1727_s18] sm:$0x3] }
 0x12f   : > { %v955_v37 = vmul.f32 %v925_v32, %v925_v32  ;;  %vm950_vm2 = vcmp.lt.s32.totalorder %v948_v56, 256  ;;  %v953_v1 = vld [vmem:[%s1732_s12] sm:$0x3] }
 0x130   : > { %927 = vst [vmem:[%s1722_s8] sm:$0xff] %v926_v33  ;;  %v930_v38 = vadd.f32 %v929_v34, %v924_v31  ;;  %v936_v39 = vadd.f32 %v935_v35, %v925_v32  ;;  %v956_v40 = vrot.slane %v954_v36, 4 }
 0x131   : > { %v962_v41 = vrot.slane %v955_v37, 4 }
 0x132   : > { %v931_v42 = vrot.slane %v930_v38, 2  ;;  %v937_v43 = vrot.slane %v936_v39, 2  ;;  %v957_v44 = vadd.f32 %v956_v40, %v954_v36 }
 0x133   : > { %v963_v45 = vadd.f32 %v962_v41, %v955_v37 }
 0x134   : > { %v932_v46 = vadd.f32 %v931_v42, %v930_v38  ;;  %v938_v47 = vadd.f32 %v937_v43, %v936_v39  ;;  %v958_v48 = vrot.slane %v957_v44, 2 }
 0x135   : > { %v964_v49 = vrot.slane %v963_v45, 2 }
 0x136   : > { %v933_v50 = vrot.slane %v932_v46, 1  ;;  %v939_v51 = vrot.slane %v938_v47, 1  ;;  %v959_v52 = vadd.f32 %v958_v48, %v957_v44 }
 0x137   : > { %v965_v53 = vadd.f32 %v964_v49, %v963_v45 }
 0x138   : > { %v934_v54 = vadd.f32 %v933_v50, %v932_v46  ;;  %v940_v55 = vadd.f32 %v939_v51, %v938_v47  ;;  %v960_v57 = vrot.slane %v959_v52, 1 }
 0x139   : > { %v966_v58 = vrot.slane %v965_v53, 1 }
 0x13a   : > { %v943_v60 = vrot.slane %v940_v55, 7  ;;  %v961_v61 = vadd.f32 %v960_v57, %v959_v52 }
 0x13b   : > { %v967_v62 = vadd.f32 %v966_v58, %v965_v53 }
 0x13c   : > { %v945_v63 = vsel %vm944_vm1, %v934_v54, %v943_v60 }
 0x13d   : > { %v947_v0 = vadd.f32 %v945_v63, %v928_v59  ;;  %v970_v2 = vrot.slane %v967_v62, 7 }
 0x13f   : > { %952 = vst.msk [vmem:[%s1727_s18] sm:$0x3] %vm950_vm2, %v947_v0  ;;  %v971_v3 = vsel %vm944_vm1, %v961_v61, %v970_v2 }
 0x140   : > { %v973_v4 = vadd.f32 %v971_v3, %v953_v1 }
 0x142   : > { %974 = vst.msk [vmem:[%s1732_s12] sm:$0x3] %vm950_vm2, %v973_v4 }
 0x143 PF: > { %s15_s21 = sadd.s32 1, %s1519_s21   ;;  %s1875_s15 = smov %s1499_s16 }
 0x144   : > { %p12_p1 = scmp.ge.s32.totalorder %s15_s21, 38   ;;  %s1876_s16 = smov %s1599_s28 }
 0x145   : > { %s1877_s17 = smov %s1511_s19  ;;  %s1878_s18 = smov %s1515_s20 }
 0x146   : > { %s1879_s19 = smov %s1882_s22  ;;  %s1880_s20 = smov %s1886_s23 }
 0x147   :  { %14 = sbr.rel (!%p12_p1) target bundleno = 4 (0x4), region = 140 }

// kernel: forward.67
= control target key start
LH: loop header
LB: loop body
LE: loop exit
PB: predicated region body
PF: predicated region fallthrough
CT: control target
= control target key end

     0   :  { %s122_s0 = inlined_call_operand.vmem [shape: bf16[8,512], index: 0, kind: input, shape index: {}]   ;;  %s123_s1 = inlined_call_operand.vmem [shape: bf16[8,512], index: 1, kind: input, shape index: {}]   ;;  %s124_s2 = inlined_call_operand.vmem [shape: f32[1,512], index: 2, kind: input, shape index: {}]   ;;  %s125_s3 = inlined_call_operand.vmem [shape: f32[1,512], index: 3, kind: input, shape index: {}]   ;;  %s126_s4 = inlined_call_operand.vmem [shape: bf16[8,512], index: 4, kind: output, shape index: {}]  }
   0x1   :  { %v17_v0 = vld [vmem:[%s122_s0] sm:$0xff]  ;;  %v18_v8 = vld [vmem:[%s122_s0 + $0x8] sm:$0xff] }
   0x2   :  { %v23_v1 = vld [vmem:[%s124_s2] sm:$0xf]  ;;  %v19_v3 = vunpack.c.l.bf16 %v17_v0  ;;  %v20_v4 = vunpack.c.h.bf16 %v17_v0  ;;  %v21_v15 = vunpack.c.l.bf16 %v18_v8  ;;  %v22_v16 = vunpack.c.h.bf16 %v18_v8  ;;  %v52_v17 = vld [vmem:[%s123_s1 + $0x8] sm:$0xff] }
   0x3   :  { %v37_v2 = vld [vmem:[%s125_s3] sm:$0xf]  ;;  %v25_v5 = vperm.slane %v23_v1, 0  ;;  %v26_v6 = vperm.slane %v23_v1, 1  ;;  %v27_v18 = vperm.slane %v23_v1, 2  ;;  %v28_v19 = vperm.slane %v23_v1, 3 }
   0x4   :  { %v51_v7 = vld [vmem:[%s123_s1] sm:$0xff]  ;;  %v39_v9 = vperm.slane %v37_v2, 0  ;;  %v40_v10 = vperm.slane %v37_v2, 1  ;;  %v41_v20 = vperm.slane %v37_v2, 2  ;;  %v42_v21 = vperm.slane %v37_v2, 3 }
   0x5   :  { %v53_v11 = vunpack.c.l.bf16 %v51_v7  ;;  %v54_v12 = vunpack.c.h.bf16 %v51_v7  ;;  %v33_v13 = vmul.f32 %v25_v5, %v19_v3  ;;  %v34_v14 = vmul.f32 %v26_v6, %v20_v4 }
   0x6   :  { %v35_v24 = vmul.f32 %v27_v18, %v21_v15  ;;  %v36_v25 = vmul.f32 %v28_v19, %v22_v16  ;;  %v55_v26 = vunpack.c.l.bf16 %v52_v17  ;;  %v56_v27 = vunpack.c.h.bf16 %v52_v17 }
   0x7   :  { %v47_v22 = vadd.f32 %v39_v9, %v33_v13  ;;  %v48_v23 = vadd.f32 %v40_v10, %v34_v14 }
   0x8   :  { %v49_v30 = vadd.f32 %v41_v20, %v35_v24  ;;  %v50_v31 = vadd.f32 %v42_v21, %v36_v25 }
   0x9   :  { %v57_v28 = vadd.f32 %v53_v11, %v47_v22  ;;  %v58_v29 = vadd.f32 %v54_v12, %v48_v23 }
   0xa   :  { %v59_v34 = vadd.f32 %v55_v26, %v49_v30  ;;  %v60_v35 = vadd.f32 %v56_v27, %v50_v31 }
   0xb   :  { %v61_v32 = vmax.f32 %v57_v28, 0.0  ;;  %v62_v33 = vmax.f32 %v58_v29, 0.0 }
   0xc   :  { %v63_v37 = vmax.f32 %v59_v34, 0.0  ;;  %v64_v38 = vmax.f32 %v60_v35, 0.0 }
   0xd   :  { %v65_v36 = vpack.c.bf16 %v62_v33, %v61_v32 }
   0xe   :  { %v66_v39 = vpack.c.bf16 %v64_v38, %v63_v37 }
   0xf   :  { %67 = vst [vmem:[%s126_s4] sm:$0xff] %v65_v36 }
  0x10   :  { %68 = vst [vmem:[%s126_s4 + $0x8] sm:$0xff] %v66_v39 }

// kernel: forward.66
= control target key start
LH: loop header
LB: loop body
LE: loop exit
PB: predicated region body
PF: predicated region fallthrough
CT: control target
= control target key end

     0   :  { %s1819_s15 = smov 0   ;;  %s1821_s16 = smov 0   ;;  %s2217_s0 = inlined_call_operand.vmem [shape: bf16[8,13824], index: 0, kind: input, shape index: {}]   ;;  %s2218_s1 = inlined_call_operand.vmem [shape: bf16[13824,512], index: 1, kind: input, shape index: {}]   ;;  %s2219_s2 = inlined_call_operand.vmem [shape: bf16[8,512], index: 2, kind: output, shape index: {0}]   ;;  %s2220_s3 = inlined_call_operand.vmem [shape: f32[1,512], index: 3, kind: output, shape index: {1}]   ;;  %s2221_s4 = inlined_call_operand.vmem [shape: f32[1,512], index: 4, kind: output, shape index: {2}]  }
   0x1   :  { %s1823_s17 = smov 0   ;;  %s1825_s18 = smov 0  }
   0x2   :  { %s1827_s19 = smov 0   ;;  %s1829_s20 = smov 0  }
   0x3   :  { %s1831_s21 = smov 0  }
   0x4 LB: > { %s27_s22 = sadd.s32 1, %s1782_s19  ;;  %s34_s23 = sadd.s32 1, %s1786_s20  ;;  %s1790_s21 = sphi %s1831_s21, %s15_s21   ;;  %s1786_s20 = sphi %s1829_s20, %s2227_s20   ;;  %s1782_s19 = sphi %s1827_s19, %s2226_s19   ;;  %s1778_s18 = sphi %s1825_s18, %s2225_s18   ;;  %s1774_s17 = sphi %s1823_s17, %s2224_s17   ;;  %s1770_s16 = sphi %s1821_s16, %s2223_s16   ;;  %s1766_s15 = sphi %s1819_s15, %s2222_s15  }
   0x5   : > { %p28_p0 = scmp.ge.s32.totalorder %s27_s22, 27  ;;  %p78_p1 = scmp.ne.s32.totalorder %s1770_s16, %s1766_s15 }
   0x6   : > { %p79_p2 = scmp.eq.s32.totalorder %s1790_s21, 0  ;;  %s71_s27 = sadd.s32 1, %s1770_s16 }
   0x7   : > { %s2229_s22 = smov (%p28_p0, %s27_s22), 0  ;;  %s2231_s23 = smov (!%p28_p0, %s34_s23), %s1786_s20 }
   0x8   : > { %p80_p3 = por %p79_p2, %p78_p1  ;;  %p36_p4 = scmp.ge.s32.totalorder %s2231_s23, 2 }
   0x9   : > { %s66_s24 = ssub.s32 %s1782_s19, %s2229_s22  ;;  %p1337_p6 = scmp.ge.s32.totalorder %s1790_s21, 54 }
   0xa   : > { %s2233_s23 = smov (%p36_p4, %s2231_s23), 0 }
   0xb   : > { %s67_s25 = ssub.s32 %s1786_s20, %s2233_s23  ;;  %184 = sbr.rel (%p1337_p6) target bundleno = 87 (0x57), region = 16 }
   0xc   : > { %s68_s26 = sor.u32 %s67_s25, %s66_s24 }
   0xd   : > { %p69_p5 = scmp.eq.s32.totalorder %s68_s26, 0 }
   0xf   : > { %s1870_s28 = scalar_select %p69_p5, %s1770_s16, %s71_s27  }
  0x10   : > { %200 = sbr.rel (!%p80_p3) target bundleno = 87 (0x57), region = 24  ;;  %s202_s29 = sand.u32 (%p80_p3), 1, %s1770_s16  }
  0x11   : > { %s1340_s30 = sshll.u32 (%p80_p3), %s1786_s20, 1  ;;  %s1338_s5 = sshll.u32 (%p80_p3), %s202_s29, 9 }
  0x12   : > { %s1612_s6 = sshll.u32 (%p80_p3), %s1782_s19, 8  ;;  %s1884_s12 = scalar_lea.vmem (%p80_p3), [#allocation3], %s1338_s5 }
  0x13   : > { %s208_s7 = sadd.s32 (%p80_p3), %s1612_s6, %s1340_s30 }
  0x14   : > { %s1342_s8 = sshll.u32 (%p80_p3), %s208_s7, 2 }
  0x15   : > { %s1879_s11 = scalar_lea.vmem %s2218_s1, %s1342_s8 }
  0x16   : > { %v365_v0 = vld [vmem:[%s1879_s11] sm:$0xff]  ;;  %v367_v1 = vld [vmem:[%s1879_s11 + $0x10] sm:$0xff] }
  0x17   : > { %v369_v2 = vld [vmem:[%s1879_s11 + $0x20] sm:$0xff]  ;;  %366 = vst [vmem:[%s1884_s12] sm:$0xff] %v365_v0  ;;  %v371_v3 = vld [vmem:[%s1879_s11 + $0x30] sm:$0xff] }
  0x18   : > { %368 = vst [vmem:[%s1884_s12 + $0x8] sm:$0xff] %v367_v1  ;;  %v373_v4 = vld [vmem:[%s1879_s11 + $0x40] sm:$0xff]  ;;  %v375_v5 = vld [vmem:[%s1879_s11 + $0x50] sm:$0xff] }
  0x19   : > { %370 = vst [vmem:[%s1884_s12 + $0x10] sm:$0xff] %v369_v2  ;;  %v377_v6 = vld [vmem:[%s1879_s11 + $0x60] sm:$0xff]  ;;  %v379_v7 = vld [vmem:[%s1879_s11 + $0x70] sm:$0xff] }
  0x1a   : > { %372 = vst [vmem:[%s1884_s12 + $0x18] sm:$0xff] %v371_v3  ;;  %v381_v8 = vld [vmem:[%s1879_s11 + $0x80] sm:$0xff]  ;;  %v383_v9 = vld [vmem:[%s1879_s11 + $0x90] sm:$0xff] }
  0x1b   : > { %374 = vst [vmem:[%s1884_s12 + $0x20] sm:$0xff] %v373_v4  ;;  %v385_v10 = vld [vmem:[%s1879_s11 + $0xa0] sm:$0xff]  ;;  %v387_v11 = vld [vmem:[%s1879_s11 + $0xb0] sm:$0xff] }
  0x1c   : > { %376 = vst [vmem:[%s1884_s12 + $0x28] sm:$0xff] %v375_v5  ;;  %v389_v12 = vld [vmem:[%s1879_s11 + $0xc0] sm:$0xff]  ;;  %v391_v13 = vld [vmem:[%s1879_s11 + $0xd0] sm:$0xff] }
  0x1d   : > { %378 = vst [vmem:[%s1884_s12 + $0x30] sm:$0xff] %v377_v6  ;;  %v393_v14 = vld [vmem:[%s1879_s11 + $0xe0] sm:$0xff]  ;;  %v395_v15 = vld [vmem:[%s1879_s11 + $0xf0] sm:$0xff] }
  0x1e   : > { %380 = vst [vmem:[%s1884_s12 + $0x38] sm:$0xff] %v379_v7  ;;  %v397_v16 = vld [vmem:[%s1879_s11 + $0x100] sm:$0xff]  ;;  %v399_v17 = vld [vmem:[%s1879_s11 + $0x110] sm:$0xff] }
  0x1f   : > { %382 = vst [vmem:[%s1884_s12 + $0x40] sm:$0xff] %v381_v8  ;;  %v401_v18 = vld [vmem:[%s1879_s11 + $0x120] sm:$0xff]  ;;  %v403_v19 = vld [vmem:[%s1879_s11 + $0x130] sm:$0xff] }
  0x20   : > { %384 = vst [vmem:[%s1884_s12 + $0x48] sm:$0xff] %v383_v9  ;;  %v405_v20 = vld [vmem:[%s1879_s11 + $0x140] sm:$0xff]  ;;  %v407_v21 = vld [vmem:[%s1879_s11 + $0x150] sm:$0xff] }
  0x21   : > { %386 = vst [vmem:[%s1884_s12 + $0x50] sm:$0xff] %v385_v10  ;;  %v409_v22 = vld [vmem:[%s1879_s11 + $0x160] sm:$0xff]  ;;  %v411_v23 = vld [vmem:[%s1879_s11 + $0x170] sm:$0xff] }
  0x22   : > { %388 = vst [vmem:[%s1884_s12 + $0x58] sm:$0xff] %v387_v11  ;;  %v413_v24 = vld [vmem:[%s1879_s11 + $0x180] sm:$0xff]  ;;  %v415_v25 = vld [vmem:[%s1879_s11 + $0x190] sm:$0xff] }
  0x23   : > { %390 = vst [vmem:[%s1884_s12 + $0x60] sm:$0xff] %v389_v12  ;;  %v417_v26 = vld [vmem:[%s1879_s11 + $0x1a0] sm:$0xff]  ;;  %v419_v27 = vld [vmem:[%s1879_s11 + $0x1b0] sm:$0xff] }
  0x24   : > { %392 = vst [vmem:[%s1884_s12 + $0x68] sm:$0xff] %v391_v13  ;;  %v421_v28 = vld [vmem:[%s1879_s11 + $0x1c0] sm:$0xff]  ;;  %v423_v29 = vld [vmem:[%s1879_s11 + $0x1d0] sm:$0xff] }
  0x25   : > { %394 = vst [vmem:[%s1884_s12 + $0x70] sm:$0xff] %v393_v14  ;;  %v425_v30 = vld [vmem:[%s1879_s11 + $0x1e0] sm:$0xff]  ;;  %v427_v31 = vld [vmem:[%s1879_s11 + $0x1f0] sm:$0xff] }
  0x26   : > { %396 = vst [vmem:[%s1884_s12 + $0x78] sm:$0xff] %v395_v15  ;;  %v429_v32 = vld [vmem:[%s1879_s11 + $0x200] sm:$0xff]  ;;  %v431_v33 = vld [vmem:[%s1879_s11 + $0x210] sm:$0xff] }
  0x27   : > { %398 = vst [vmem:[%s1884_s12 + $0x80] sm:$0xff] %v397_v16  ;;  %v433_v34 = vld [vmem:[%s1879_s11 + $0x220] sm:$0xff]  ;;  %v435_v35 = vld [vmem:[%s1879_s11 + $0x230] sm:$0xff] }
  0x28   : > { %400 = vst [vmem:[%s1884_s12 + $0x88] sm:$0xff] %v399_v17  ;;  %v437_v36 = vld [vmem:[%s1879_s11 + $0x240] sm:$0xff]  ;;  %v439_v37 = vld [vmem:[%s1879_s11 + $0x250] sm:$0xff] }
  0x29   : > { %402 = vst [vmem:[%s1884_s12 + $0x90] sm:$0xff] %v401_v18  ;;  %v441_v38 = vld [vmem:[%s1879_s11 + $0x260] sm:$0xff]  ;;  %v443_v39 = vld [vmem:[%s1879_s11 + $0x270] sm:$0xff] }
  0x2a   : > { %404 = vst [vmem:[%s1884_s12 + $0x98] sm:$0xff] %v403_v19  ;;  %v445_v40 = vld [vmem:[%s1879_s11 + $0x280] sm:$0xff]  ;;  %v447_v41 = vld [vmem:[%s1879_s11 + $0x290] sm:$0xff] }
  0x2b   : > { %406 = vst [vmem:[%s1884_s12 + $0xa0] sm:$0xff] %v405_v20  ;;  %v449_v42 = vld [vmem:[%s1879_s11 + $0x2a0] sm:$0xff]  ;;  %v451_v43 = vld [vmem:[%s1879_s11 + $0x2b0] sm:$0xff] }
  0x2c   : > { %408 = vst [vmem:[%s1884_s12 + $0xa8] sm:$0xff] %v407_v21  ;;  %v453_v44 = vld [vmem:[%s1879_s11 + $0x2c0] sm:$0xff]  ;;  %v455_v45 = vld [vmem:[%s1879_s11 + $0x2d0] sm:$0xff] }
  0x2d   : > { %410 = vst [vmem:[%s1884_s12 + $0xb0] sm:$0xff] %v409_v22  ;;  %v457_v46 = vld [vmem:[%s1879_s11 + $0x2e0] sm:$0xff]  ;;  %v459_v47 = vld [vmem:[%s1879_s11 + $0x2f0] sm:$0xff] }
  0x2e   : > { %412 = vst [vmem:[%s1884_s12 + $0xb8] sm:$0xff] %v411_v23  ;;  %v461_v48 = vld [vmem:[%s1879_s11 + $0x300] sm:$0xff]  ;;  %v463_v49 = vld [vmem:[%s1879_s11 + $0x310] sm:$0xff] }
  0x2f   : > { %414 = vst [vmem:[%s1884_s12 + $0xc0] sm:$0xff] %v413_v24  ;;  %v465_v50 = vld [vmem:[%s1879_s11 + $0x320] sm:$0xff]  ;;  %v467_v51 = vld [vmem:[%s1879_s11 + $0x330] sm:$0xff] }
  0x30   : > { %416 = vst [vmem:[%s1884_s12 + $0xc8] sm:$0xff] %v415_v25  ;;  %v469_v52 = vld [vmem:[%s1879_s11 + $0x340] sm:$0xff]  ;;  %v471_v53 = vld [vmem:[%s1879_s11 + $0x350] sm:$0xff] }
  0x31   : > { %418 = vst [vmem:[%s1884_s12 + $0xd0] sm:$0xff] %v417_v26  ;;  %v473_v54 = vld [vmem:[%s1879_s11 + $0x360] sm:$0xff]  ;;  %v475_v55 = vld [vmem:[%s1879_s11 + $0x370] sm:$0xff] }
  0x32   : > { %420 = vst [vmem:[%s1884_s12 + $0xd8] sm:$0xff] %v419_v27  ;;  %v477_v56 = vld [vmem:[%s1879_s11 + $0x380] sm:$0xff]  ;;  %v479_v57 = vld [vmem:[%s1879_s11 + $0x390] sm:$0xff] }
  0x33   : > { %422 = vst [vmem:[%s1884_s12 + $0xe0] sm:$0xff] %v421_v28  ;;  %v481_v58 = vld [vmem:[%s1879_s11 + $0x3a0] sm:$0xff]  ;;  %v483_v59 = vld [vmem:[%s1879_s11 + $0x3b0] sm:$0xff] }
  0x34   : > { %424 = vst [vmem:[%s1884_s12 + $0xe8] sm:$0xff] %v423_v29  ;;  %v485_v60 = vld [vmem:[%s1879_s11 + $0x3c0] sm:$0xff]  ;;  %v487_v61 = vld [vmem:[%s1879_s11 + $0x3d0] sm:$0xff] }
  0x35   : > { %426 = vst [vmem:[%s1884_s12 + $0xf0] sm:$0xff] %v425_v30  ;;  %v489_v62 = vld [vmem:[%s1879_s11 + $0x3e0] sm:$0xff]  ;;  %v491_v63 = vld [vmem:[%s1879_s11 + $0x3f0] sm:$0xff] }
  0x36   : > { %428 = vst [vmem:[%s1884_s12 + $0xf8] sm:$0xff] %v427_v31 }
  0x37   : > { %430 = vst [vmem:[%s1884_s12 + $0x100] sm:$0xff] %v429_v32 }
  0x38   : > { %432 = vst [vmem:[%s1884_s12 + $0x108] sm:$0xff] %v431_v33 }
  0x39   : > { %434 = vst [vmem:[%s1884_s12 + $0x110] sm:$0xff] %v433_v34 }
  0x3a   : > { %436 = vst [vmem:[%s1884_s12 + $0x118] sm:$0xff] %v435_v35 }
  0x3b   : > { %438 = vst [vmem:[%s1884_s12 + $0x120] sm:$0xff] %v437_v36 }
  0x3c   : > { %440 = vst [vmem:[%s1884_s12 + $0x128] sm:$0xff] %v439_v37 }
  0x3d   : > { %442 = vst [vmem:[%s1884_s12 + $0x130] sm:$0xff] %v441_v38 }
  0x3e   : > { %444 = vst [vmem:[%s1884_s12 + $0x138] sm:$0xff] %v443_v39 }
  0x3f   : > { %446 = vst [vmem:[%s1884_s12 + $0x140] sm:$0xff] %v445_v40 }
  0x40   : > { %448 = vst [vmem:[%s1884_s12 + $0x148] sm:$0xff] %v447_v41 }
  0x41   : > { %450 = vst [vmem:[%s1884_s12 + $0x150] sm:$0xff] %v449_v42 }
  0x42   : > { %452 = vst [vmem:[%s1884_s12 + $0x158] sm:$0xff] %v451_v43 }
  0x43   : > { %454 = vst [vmem:[%s1884_s12 + $0x160] sm:$0xff] %v453_v44 }
  0x44   : > { %456 = vst [vmem:[%s1884_s12 + $0x168] sm:$0xff] %v455_v45 }
  0x45   : > { %458 = vst [vmem:[%s1884_s12 + $0x170] sm:$0xff] %v457_v46 }
  0x46   : > { %460 = vst [vmem:[%s1884_s12 + $0x178] sm:$0xff] %v459_v47 }
  0x47   : > { %462 = vst [vmem:[%s1884_s12 + $0x180] sm:$0xff] %v461_v48 }
  0x48   : > { %464 = vst [vmem:[%s1884_s12 + $0x188] sm:$0xff] %v463_v49 }
  0x49   : > { %466 = vst [vmem:[%s1884_s12 + $0x190] sm:$0xff] %v465_v50 }
  0x4a   : > { %468 = vst [vmem:[%s1884_s12 + $0x198] sm:$0xff] %v467_v51 }
  0x4b   : > { %470 = vst [vmem:[%s1884_s12 + $0x1a0] sm:$0xff] %v469_v52 }
  0x4c   : > { %472 = vst [vmem:[%s1884_s12 + $0x1a8] sm:$0xff] %v471_v53 }
  0x4d   : > { %474 = vst [vmem:[%s1884_s12 + $0x1b0] sm:$0xff] %v473_v54 }
  0x4e   : > { %476 = vst [vmem:[%s1884_s12 + $0x1b8] sm:$0xff] %v475_v55 }
  0x4f   : > { %478 = vst [vmem:[%s1884_s12 + $0x1c0] sm:$0xff] %v477_v56 }
  0x50   : > { %480 = vst [vmem:[%s1884_s12 + $0x1c8] sm:$0xff] %v479_v57 }
  0x51   : > { %482 = vst [vmem:[%s1884_s12 + $0x1d0] sm:$0xff] %v481_v58 }
  0x52   : > { %484 = vst [vmem:[%s1884_s12 + $0x1d8] sm:$0xff] %v483_v59 }
  0x53   : > { %486 = vst [vmem:[%s1884_s12 + $0x1e0] sm:$0xff] %v485_v60 }
  0x54   : > { %488 = vst [vmem:[%s1884_s12 + $0x1e8] sm:$0xff] %v487_v61 }
  0x55   : > { %490 = vst [vmem:[%s1884_s12 + $0x1f0] sm:$0xff] %v489_v62 }
  0x56   : > { %492 = vst [vmem:[%s1884_s12 + $0x1f8] sm:$0xff] %v491_v63 }
  0x57 PF: > { %p1343_p7 = scmp.ge.s32.totalorder %s1790_s21, 1  ;;  %p497_p8 = scmp.lt.s32.totalorder %s1790_s21, 55 }
  0x59   : > { %p498_p9 = pnand %p1343_p7, %p497_p8 }
  0x5a   : > { %s504_s13 = sand.u32 (!%p498_p9), 1, %s1766_s15   ;;  %s1345_s14 = sshll.u32 (!%p498_p9), %s1774_s17, 2 }
  0x5b   : > { %501 = sbr.rel (%p498_p9) target bundleno = 346 (0x15a), region = 62  ;;  %s1344_s24 = sshll.u32 (!%p498_p9), %s504_s13, 9 }
  0x5c   : > { %p553_p10 = scmp.lt.s32.totalorder (!%p498_p9), %s1345_s14, 107  ;;  %s1347_s25 = sshll.u32 (!%p498_p9), %s1778_s18, 1 }
  0x5d   : > { %p565_p11 = scmp.lt.s32.totalorder (!%p498_p9), %s1347_s25, 3  ;;  %p582_p12 = scmp.eq.s32.totalorder (!%p498_p9), %s1774_s17, 0 }
  0x5e   : > { %s2037_s13 = scalar_lea.vmem (!%p498_p9), [#allocation3], %s1344_s24  ;;  %p1351_p13 = scmp.ne.s32.totalorder (!%p498_p9), %s1774_s17, 0 }
  0x60   : > { %s2235_s14 = smov (!%p553_p10, %s1345_s14), 107  ;;  %s2237_s25 = smov (!%p565_p11, %s1347_s25), 3 }
  0x61   : > { %s1346_s26 = sshll.u32 %s2235_s14, 2  ;;  %s1348_s5 = sshll.u32 %s2237_s25, 2 }
  0x62   : > { %s2020_s30 = scalar_lea.vmem %s2217_s0, %s1346_s26  ;;  %s2025_s8 = scalar_lea.vmem %s2220_s3, %s2237_s25 }
  0x63   : > { %s2030_s18 = scalar_lea.vmem %s2219_s2, %s1348_s5  ;;  %s2035_s12 = scalar_lea.vmem %s2221_s4, %s2237_s25 }
  0x64   : > { %585 = sbr.rel (%p1351_p13) target bundleno = 108 (0x6c), region = 70 }
  0x69   : > { %v1792_v0 = vmov 0.0  }
  0x6a   : > { %586 = vst [vmem:[#allocation2] sm:$0xff] %v1792_v0 }
  0x6b   : > { %587 = vst [vmem:[#allocation2 + $0x8] sm:$0xff] %v1792_v0 }
  0x6c PF: > { %v1410_v1 = vld [vmem:[%s2037_s13 + $0x70] sm:$0xf]  ;;  %v1628_v2 = vld [vmem:[%s2037_s13 + $0x74] sm:$0xf0]  ;;  %v1402_v12 = vld [vmem:[%s2037_s13 + $0x60] sm:$0xf] }
  0x6d   : > { %v1474_v3 = vld [vmem:[%s2037_s13 + $0xf0] sm:$0xf]  ;;  %v1411_v4 = vor.u32 %v1628_v2, %v1410_v1  ;;  %v1644_v5 = vld [vmem:[%s2037_s13 + $0xf4] sm:$0xf0]  ;;  %v1626_v14 = vld [vmem:[%s2037_s13 + $0x64] sm:$0xf0] }
  0x6e   : > { %v1538_v6 = vld [vmem:[%s2037_s13 + $0x170] sm:$0xf]  ;;  %v1660_v7 = vld [vmem:[%s2037_s13 + $0x174] sm:$0xf0]  ;;  %v1475_v8 = vor.u32 %v1644_v5, %v1474_v3  ;;  %v1466_v15 = vld [vmem:[%s2037_s13 + $0xe0] sm:$0xf]  ;;  %v1403_v17 = vor.u32 %v1626_v14, %v1402_v12 }
  0x6f   : > { %v1539_v9 = vor.u32 %v1660_v7, %v1538_v6  ;;  %v1602_v10 = vld [vmem:[%s2037_s13 + $0x1f0] sm:$0xf]  ;;  %v1676_v11 = vld [vmem:[%s2037_s13 + $0x1f4] sm:$0xf0]  ;;  %990 = vmatpush.bf16.msra.mxu0 %v1411_v4  ;;  %v1642_v16 = vld [vmem:[%s2037_s13 + $0xe4] sm:$0xf0] }
  0x70   : > { %v1603_v13 = vor.u32 %v1676_v11, %v1602_v10  ;;  %1003 = vmatpush.bf16.msra.mxu1 %v1475_v8  ;;  %v1467_v18 = vor.u32 %v1642_v16, %v1466_v15  ;;  %v1530_v19 = vld [vmem:[%s2037_s13 + $0x160] sm:$0xf]  ;;  %v1658_v20 = vld [vmem:[%s2037_s13 + $0x164] sm:$0xf0]  ;;  %v1394_v24 = vld [vmem:[%s2037_s13 + $0x50] sm:$0xf] }
  0x71   : > { %1016 = vmatpush.bf16.msra.mxu2 %v1539_v9  ;;  %v1594_v21 = vld [vmem:[%s2037_s13 + $0x1e0] sm:$0xf]  ;;  %v1531_v22 = vor.u32 %v1658_v20, %v1530_v19  ;;  %v1674_v23 = vld [vmem:[%s2037_s13 + $0x1e4] sm:$0xf0]  ;;  %v1624_v25 = vld [vmem:[%s2037_s13 + $0x54] sm:$0xf0] }
  0x72   : > { %1029 = vmatpush.bf16.msra.mxu3 %v1603_v13  ;;  %v1595_v26 = vor.u32 %v1674_v23, %v1594_v21  ;;  %v1458_v27 = vld [vmem:[%s2037_s13 + $0xd0] sm:$0xf]  ;;  %v1640_v28 = vld [vmem:[%s2037_s13 + $0xd4] sm:$0xf0]  ;;  %v1395_v30 = vor.u32 %v1624_v25, %v1394_v24  ;;  %v1386_v36 = vld [vmem:[%s2037_s13 + $0x40] sm:$0xf] }
  0x73   : > { %v1522_v29 = vld [vmem:[%s2037_s13 + $0x150] sm:$0xf]  ;;  %991 = vmatpush.bf16.msra.mxu0 %v1403_v17  ;;  %v1656_v31 = vld [vmem:[%s2037_s13 + $0x154] sm:$0xf0]  ;;  %v1459_v34 = vor.u32 %v1640_v28, %v1458_v27  ;;  %v1622_v37 = vld [vmem:[%s2037_s13 + $0x44] sm:$0xf0] }
  0x74   : > { %v1586_v32 = vld [vmem:[%s2037_s13 + $0x1d0] sm:$0xf]  ;;  %v1672_v33 = vld [vmem:[%s2037_s13 + $0x1d4] sm:$0xf0]  ;;  %1004 = vmatpush.bf16.msra.mxu1 %v1467_v18  ;;  %v1523_v35 = vor.u32 %v1656_v31, %v1522_v29  ;;  %v1450_v38 = vld [vmem:[%s2037_s13 + $0xc0] sm:$0xf]  ;;  %v1387_v45 = vor.u32 %v1622_v37, %v1386_v36 }
  0x75   : > { %1017 = vmatpush.bf16.msra.mxu2 %v1531_v22  ;;  %v1587_v39 = vor.u32 %v1672_v33, %v1586_v32  ;;  %v1638_v40 = vld [vmem:[%s2037_s13 + $0xc4] sm:$0xf0]  ;;  %v1514_v41 = vld [vmem:[%s2037_s13 + $0x140] sm:$0xf]  ;;  %v1378_v48 = vld [vmem:[%s2037_s13 + $0x30] sm:$0xf] }
  0x76   : > { %1030 = vmatpush.bf16.msra.mxu3 %v1595_v26  ;;  %v1654_v42 = vld [vmem:[%s2037_s13 + $0x144] sm:$0xf0]  ;;  %v1578_v43 = vld [vmem:[%s2037_s13 + $0x1c0] sm:$0xf]  ;;  %v1451_v46 = vor.u32 %v1638_v40, %v1450_v38  ;;  %v1620_v49 = vld [vmem:[%s2037_s13 + $0x34] sm:$0xf0] }
  0x77   : > { %v1670_v44 = vld [vmem:[%s2037_s13 + $0x1c4] sm:$0xf0]  ;;  %992 = vmatpush.bf16.msra.mxu0 %v1395_v30  ;;  %v1515_v47 = vor.u32 %v1654_v42, %v1514_v41  ;;  %v1442_v50 = vld [vmem:[%s2037_s13 + $0xb0] sm:$0xf]  ;;  %v1636_v52 = vld [vmem:[%s2037_s13 + $0xb4] sm:$0xf0]  ;;  %v1379_v57 = vor.u32 %v1620_v49, %v1378_v48 }
  0x78   : > { %1005 = vmatpush.bf16.msra.mxu1 %v1459_v34  ;;  %v1579_v51 = vor.u32 %v1670_v44, %v1578_v43  ;;  %v1506_v53 = vld [vmem:[%s2037_s13 + $0x130] sm:$0xf]  ;;  %v1652_v54 = vld [vmem:[%s2037_s13 + $0x134] sm:$0xf0]  ;;  %v1443_v58 = vor.u32 %v1636_v52, %v1442_v50  ;;  %v1370_v60 = vld [vmem:[%s2037_s13 + $0x20] sm:$0xf] }
  0x79   : > { %1018 = vmatpush.bf16.msra.mxu2 %v1523_v35  ;;  %v1570_v55 = vld [vmem:[%s2037_s13 + $0x1b0] sm:$0xf]  ;;  %v1668_v56 = vld [vmem:[%s2037_s13 + $0x1b4] sm:$0xf0]  ;;  %v1507_v59 = vor.u32 %v1652_v54, %v1506_v53  ;;  %v1618_v61 = vld [vmem:[%s2037_s13 + $0x24] sm:$0xf0] }
  0x7a   : > { %1031 = vmatpush.bf16.msra.mxu3 %v1587_v39  ;;  %v1434_v62 = vld [vmem:[%s2037_s13 + $0xa0] sm:$0xf]  ;;  %v1571_v63 = vor.u32 %v1668_v56, %v1570_v55  ;;  %v1634_v0 = vld [vmem:[%s2037_s13 + $0xa4] sm:$0xf0]  ;;  %v1371_v5 = vor.u32 %v1618_v61, %v1370_v60  ;;  %v1362_v8 = vld [vmem:[%s2037_s13 + $0x10] sm:$0xf] }
  0x7b   : > { %993 = vmatpush.bf16.msra.mxu0 %v1387_v45  ;;  %v1498_v1 = vld [vmem:[%s2037_s13 + $0x120] sm:$0xf]  ;;  %v1650_v2 = vld [vmem:[%s2037_s13 + $0x124] sm:$0xf0]  ;;  %v1435_v6 = vor.u32 %v1634_v0, %v1434_v62  ;;  %v1616_v9 = vld [vmem:[%s2037_s13 + $0x14] sm:$0xf0] }
  0x7c   : > { %1006 = vmatpush.bf16.msra.mxu1 %v1451_v46  ;;  %v1562_v3 = vld [vmem:[%s2037_s13 + $0x1a0] sm:$0xf]  ;;  %v1666_v4 = vld [vmem:[%s2037_s13 + $0x1a4] sm:$0xf0]  ;;  %v1499_v7 = vor.u32 %v1650_v2, %v1498_v1  ;;  %v1426_v10 = vld [vmem:[%s2037_s13 + $0x90] sm:$0xf]  ;;  %v1363_v17 = vor.u32 %v1616_v9, %v1362_v8 }
  0x7d   : > { %1019 = vmatpush.bf16.msra.mxu2 %v1515_v47  ;;  %v1563_v11 = vor.u32 %v1666_v4, %v1562_v3  ;;  %v1632_v12 = vld [vmem:[%s2037_s13 + $0x94] sm:$0xf0]  ;;  %v1490_v13 = vld [vmem:[%s2037_s13 + $0x110] sm:$0xf]  ;;  %v1354_v18 = vld [vmem:[%s2037_s13] sm:$0xf] }
  0x7e   : > { %1032 = vmatpush.bf16.msra.mxu3 %v1579_v51  ;;  %v1648_v14 = vld [vmem:[%s2037_s13 + $0x114] sm:$0xf0]  ;;  %v1554_v15 = vld [vmem:[%s2037_s13 + $0x190] sm:$0xf]  ;;  %v1614_v19 = vld [vmem:[%s2037_s13 + $0x4] sm:$0xf0]  ;;  %v1427_v21 = vor.u32 %v1632_v12, %v1426_v10 }
  0x7f   : > { %994 = vmatpush.bf16.msra.mxu0 %v1379_v57  ;;  %v1664_v16 = vld [vmem:[%s2037_s13 + $0x194] sm:$0xf0]  ;;  %v1418_v20 = vld [vmem:[%s2037_s13 + $0x80] sm:$0xf]  ;;  %v1491_v22 = vor.u32 %v1648_v14, %v1490_v13  ;;  %v1630_v23 = vld [vmem:[%s2037_s13 + $0x84] sm:$0xf0]  ;;  %v1355_v33 = vor.u32 %v1614_v19, %v1354_v18 }
  0x80   : > { %1007 = vmatpush.bf16.msra.mxu1 %v1443_v58  ;;  %v1482_v24 = vld [vmem:[%s2037_s13 + $0x100] sm:$0xf]  ;;  %v1646_v25 = vld [vmem:[%s2037_s13 + $0x104] sm:$0xf0]  ;;  %v1555_v26 = vor.u32 %v1664_v16, %v1554_v15  ;;  %v1627_v29 = vld [vmem:[%s2037_s13 + $0x74] sm:$0xf]  ;;  %v1419_v38 = vor.u32 %v1630_v23, %v1418_v20 }
  0x81   : > { %1020 = vmatpush.bf16.msra.mxu2 %v1507_v59  ;;  %v1546_v27 = vld [vmem:[%s2037_s13 + $0x180] sm:$0xf]  ;;  %v1662_v28 = vld [vmem:[%s2037_s13 + $0x184] sm:$0xf0]  ;;  %v1412_v30 = vld [vmem:[%s2037_s13 + $0x78] sm:$0xf0]  ;;  %v1483_v39 = vor.u32 %v1646_v25, %v1482_v24 }
  0x82   : > { %1033 = vmatpush.bf16.msra.mxu3 %v1571_v63  ;;  %v1643_v31 = vld [vmem:[%s2037_s13 + $0xf4] sm:$0xf]  ;;  %v591_v32 = vld [vmem:[%s2020_s30 + $0x8] sm:$0xff]  ;;  %v1547_v43 = vor.u32 %v1662_v28, %v1546_v27  ;;  %v1415_v44 = vor.u32 %v1627_v29, %v1412_v30  ;;  %v1625_v48 = vld [vmem:[%s2037_s13 + $0x64] sm:$0xf] }
  0x83   : > { %995 = vmatpush.bf16.msra.mxu0 %v1371_v5  ;;  %v1476_v34 = vld [vmem:[%s2037_s13 + $0xf8] sm:$0xf0]  ;;  %v1659_v35 = vld [vmem:[%s2037_s13 + $0x174] sm:$0xf]  ;;  %v660_v37 = vunpack.c.l.b16 %v591_v32  ;;  %v661_v42 = vunpack.c.h.b16 %v591_v32  ;;  %v1404_v49 = vld [vmem:[%s2037_s13 + $0x68] sm:$0xf0] }
  0x84   : > { %1008 = vmatpush.bf16.msra.mxu1 %v1435_v6  ;;  %v1540_v36 = vld [vmem:[%s2037_s13 + $0x178] sm:$0xf0]  ;;  %v1675_v40 = vld [vmem:[%s2037_s13 + $0x1f4] sm:$0xf]  ;;  %v1479_v46 = vor.u32 %v1643_v31, %v1476_v34  ;;  %v1641_v50 = vld [vmem:[%s2037_s13 + $0xe4] sm:$0xf]  ;;  %v1407_v62 = vor.u32 %v1625_v48, %v1404_v49 }
  0x85   : > { %1021 = vmatpush.bf16.msra.mxu2 %v1499_v7  ;;  %v1604_v41 = vld [vmem:[%s2037_s13 + $0x1f8] sm:$0xf0]  ;;  %v590_v45 = vld [vmem:[%s2020_s30] sm:$0xff]  ;;  %v1543_v47 = vor.u32 %v1659_v35, %v1540_v36  ;;  %v1468_v54 = vld [vmem:[%s2037_s13 + $0xe8] sm:$0xf0]  ;;  %v2120_v57 = vpack.c.b16 %v660_v37, %v660_v37  ;;  %v2124_v60 = vpack.c.b16 %v661_v42, %v661_v42 }
  0x86   : > { %1034 = vmatpush.bf16.msra.mxu3 %v1563_v11  ;;  %v658_v51 = vunpack.c.l.b16 %v590_v45  ;;  %v659_v52 = vunpack.c.h.b16 %v590_v45  ;;  %v1607_v53 = vor.u32 %v1675_v40, %v1604_v41  ;;  %v1657_v55 = vld [vmem:[%s2037_s13 + $0x164] sm:$0xf]  ;;  %v1532_v56 = vld [vmem:[%s2037_s13 + $0x168] sm:$0xf0]  ;;  %v1471_v0 = vor.u32 %v1641_v50, %v1468_v54  ;;  %v1623_v2 = vld [vmem:[%s2037_s13 + $0x54] sm:$0xf] }
  0x87   : > { %996 = vmatpush.bf16.msra.mxu0 %v1363_v17  ;;  %v1673_v58 = vld [vmem:[%s2037_s13 + $0x1e4] sm:$0xf]  ;;  %v1596_v59 = vld [vmem:[%s2037_s13 + $0x1e8] sm:$0xf0]  ;;  %v1535_v1 = vor.u32 %v1657_v55, %v1532_v56  ;;  %v1396_v3 = vld [vmem:[%s2037_s13 + $0x58] sm:$0xf0] }
  0x88   : > { %1009 = vmatpush.bf16.msra.mxu1 %v1427_v21  ;;  %v2126_v61 = vpack.c.b16 %v658_v51, %v658_v51  ;;  %v2128_v63 = vpack.c.b16 %v659_v52, %v659_v52  ;;  %v1639_v4 = vld [vmem:[%s2037_s13 + $0xd4] sm:$0xf]  ;;  %v1599_v5 = vor.u32 %v1673_v58, %v1596_v59  ;;  %v1460_v6 = vld [vmem:[%s2037_s13 + $0xd8] sm:$0xf0]  ;;  %v1399_v11 = vor.u32 %v1623_v2, %v1396_v3  ;;  %v1621_v14 = vld [vmem:[%s2037_s13 + $0x44] sm:$0xf] }
  0x89   : > { %1022 = vmatpush.bf16.msra.mxu2 %v1491_v22  ;;  %v1655_v7 = vld [vmem:[%s2037_s13 + $0x154] sm:$0xf]  ;;  %v1524_v8 = vld [vmem:[%s2037_s13 + $0x158] sm:$0xf0]  ;;  %v1463_v12 = vor.u32 %v1639_v4, %v1460_v6  ;;  %v1388_v15 = vld [vmem:[%s2037_s13 + $0x48] sm:$0xf0] }
  0x8a   : > { %1035 = vmatpush.bf16.msra.mxu3 %v1555_v26  ;;  %v1671_v9 = vld [vmem:[%s2037_s13 + $0x1d4] sm:$0xf]  ;;  %v1588_v10 = vld [vmem:[%s2037_s13 + $0x1d8] sm:$0xf0]  ;;  %v1527_v13 = vor.u32 %v1655_v7, %v1524_v8  ;;  %v1637_v16 = vld [vmem:[%s2037_s13 + $0xc4] sm:$0xf]  ;;  %v1391_v23 = vor.u32 %v1621_v14, %v1388_v15 }
  0x8b   : > { %997 = vmatpush.bf16.msra.mxu0 %v1355_v33  ;;  %v1591_v17 = vor.u32 %v1671_v9, %v1588_v10  ;;  %v1452_v18 = vld [vmem:[%s2037_s13 + $0xc8] sm:$0xf0]  ;;  %v1653_v19 = vld [vmem:[%s2037_s13 + $0x144] sm:$0xf]  ;;  %v1619_v26 = vld [vmem:[%s2037_s13 + $0x34] sm:$0xf] }
  0x8c   : > { %1010 = vmatpush.bf16.msra.mxu1 %v1419_v38  ;;  %v1516_v20 = vld [vmem:[%s2037_s13 + $0x148] sm:$0xf0]  ;;  %v1669_v21 = vld [vmem:[%s2037_s13 + $0x1c4] sm:$0xf]  ;;  %v1455_v24 = vor.u32 %v1637_v16, %v1452_v18  ;;  %v1380_v27 = vld [vmem:[%s2037_s13 + $0x38] sm:$0xf0] }
  0x8d   : > { %1023 = vmatpush.bf16.msra.mxu2 %v1483_v39  ;;  %v1580_v22 = vld [vmem:[%s2037_s13 + $0x1c8] sm:$0xf0]  ;;  %v1519_v25 = vor.u32 %v1653_v19, %v1516_v20  ;;  %v1635_v28 = vld [vmem:[%s2037_s13 + $0xb4] sm:$0xf]  ;;  %v1444_v30 = vld [vmem:[%s2037_s13 + $0xb8] sm:$0xf0]  ;;  %v1383_v35 = vor.u32 %v1619_v26, %v1380_v27 }
  0x8e   : > { %1036 = vmatpush.bf16.msra.mxu3 %v1547_v43  ;;  %998 = vmatmul.bf16.vlgmr.msra.gmra.mxu0 %v2126_v61  ;;  %v1583_v29 = vor.u32 %v1669_v21, %v1580_v22  ;;  %v1651_v31 = vld [vmem:[%s2037_s13 + $0x134] sm:$0xf]  ;;  %v1508_v32 = vld [vmem:[%s2037_s13 + $0x138] sm:$0xf0]  ;;  %v1447_v36 = vor.u32 %v1635_v28, %v1444_v30  ;;  %v1617_v38 = vld [vmem:[%s2037_s13 + $0x24] sm:$0xf] }
  0x8f   : > { %1042 = vmatpush.bf16.msrb.mxu0 %v1415_v44  ;;  %1011 = vmatmul.bf16.vlgmr.msra.gmra.mxu1 %v2128_v63  ;;  %v1667_v33 = vld [vmem:[%s2037_s13 + $0x1b4] sm:$0xf]  ;;  %v1572_v34 = vld [vmem:[%s2037_s13 + $0x1b8] sm:$0xf0]  ;;  %v1511_v37 = vor.u32 %v1651_v31, %v1508_v32  ;;  %v1372_v39 = vld [vmem:[%s2037_s13 + $0x28] sm:$0xf0] }
  0x90   : > { %1055 = vmatpush.bf16.msrb.mxu1 %v1479_v46  ;;  %1024 = vmatmul.bf16.vlgmr.msra.gmra.mxu2 %v2120_v57  ;;  %v1633_v40 = vld [vmem:[%s2037_s13 + $0xa4] sm:$0xf]  ;;  %v1575_v41 = vor.u32 %v1667_v33, %v1572_v34  ;;  %v1436_v42 = vld [vmem:[%s2037_s13 + $0xa8] sm:$0xf0]  ;;  %v1615_v50 = vld [vmem:[%s2037_s13 + $0x14] sm:$0xf] }
  0x91   : > { %1068 = vmatpush.bf16.msrb.mxu2 %v1543_v47  ;;  %1037 = vmatmul.bf16.vlgmr.msra.gmra.mxu3 %v2124_v60  ;;  %v1649_v43 = vld [vmem:[%s2037_s13 + $0x124] sm:$0xf]  ;;  %v1500_v44 = vld [vmem:[%s2037_s13 + $0x128] sm:$0xf0]  ;;  %v1375_v47 = vor.u32 %v1617_v38, %v1372_v39  ;;  %v1439_v48 = vor.u32 %v1633_v40, %v1436_v42  ;;  %v1364_v51 = vld [vmem:[%s2037_s13 + $0x18] sm:$0xf0] }
  0x92   : > { %1081 = vmatpush.bf16.msrb.mxu3 %v1607_v53  ;;  %v1665_v45 = vld [vmem:[%s2037_s13 + $0x1a4] sm:$0xf]  ;;  %v1564_v46 = vld [vmem:[%s2037_s13 + $0x1a8] sm:$0xf0]  ;;  %v1503_v49 = vor.u32 %v1649_v43, %v1500_v44  ;;  %v1631_v52 = vld [vmem:[%s2037_s13 + $0x94] sm:$0xf] }
  0x93   : > { %1043 = vmatpush.bf16.msrb.mxu0 %v1407_v62  ;;  %v1567_v53 = vor.u32 %v1665_v45, %v1564_v46  ;;  %v1428_v54 = vld [vmem:[%s2037_s13 + $0x98] sm:$0xf0]  ;;  %v1647_v55 = vld [vmem:[%s2037_s13 + $0x114] sm:$0xf]  ;;  %v1367_v62 = vor.u32 %v1615_v50, %v1364_v51  ;;  %v1613_v2 = vld [vmem:[%s2037_s13 + $0x4] sm:$0xf] }
  0x94   : > { %1056 = vmatpush.bf16.msrb.mxu1 %v1471_v0  ;;  %v1492_v56 = vld [vmem:[%s2037_s13 + $0x118] sm:$0xf0]  ;;  %v1663_v58 = vld [vmem:[%s2037_s13 + $0x194] sm:$0xf]  ;;  %v1431_v0 = vor.u32 %v1631_v52, %v1428_v54  ;;  %v1356_v3 = vld [vmem:[%s2037_s13 + $0x8] sm:$0xf0] }
  0x95   : > { %1069 = vmatpush.bf16.msrb.mxu2 %v1535_v1  ;;  %v1556_v59 = vld [vmem:[%s2037_s13 + $0x198] sm:$0xf0]  ;;  %v1495_v1 = vor.u32 %v1647_v55, %v1492_v56  ;;  %v1629_v4 = vld [vmem:[%s2037_s13 + $0x84] sm:$0xf]  ;;  %v1420_v6 = vld [vmem:[%s2037_s13 + $0x88] sm:$0xf0] }
  0x96   : > { %1082 = vmatpush.bf16.msrb.mxu3 %v1599_v5  ;;  %v1559_v5 = vor.u32 %v1663_v58, %v1556_v59  ;;  %v1645_v7 = vld [vmem:[%s2037_s13 + $0x104] sm:$0xf]  ;;  %v1484_v8 = vld [vmem:[%s2037_s13 + $0x108] sm:$0xf0]  ;;  %v588_v21 = vld [vmem:[#allocation2] sm:$0xff]  ;;  %v1793_v38 = vmov (%p582_p12), 0.0  }
  0x97   : > { %1044 = vmatpush.bf16.msrb.mxu0 %v1399_v11  ;;  %v1661_v9 = vld [vmem:[%s2037_s13 + $0x184] sm:$0xf]  ;;  %v1548_v10 = vld [vmem:[%s2037_s13 + $0x188] sm:$0xf0]  ;;  %v1359_v11 = vor.u32 %v1613_v2, %v1356_v3  ;;  %v589_v31 = vld [vmem:[#allocation2 + $0x8] sm:$0xff] }
  0x98   : > { %1057 = vmatpush.bf16.msrb.mxu1 %v1463_v12  ;;  %v1423_v12 = vor.u32 %v1629_v4, %v1420_v6  ;;  %v1551_v14 = vor.u32 %v1661_v9, %v1548_v10 }
  0x99   : > { %1070 = vmatpush.bf16.msrb.mxu2 %v1527_v13  ;;  %v1487_v13 = vor.u32 %v1645_v7, %v1484_v8 }
  0x9a   : > { %1083 = vmatpush.bf16.msrb.mxu3 %v1591_v17 }
  0x9b   : > { %1045 = vmatpush.bf16.msrb.mxu0 %v1391_v23 }
  0x9c   : > { %1058 = vmatpush.bf16.msrb.mxu1 %v1455_v24 }
  0x9d   : > { %1071 = vmatpush.bf16.msrb.mxu2 %v1519_v25 }
  0x9e   : > { %1084 = vmatpush.bf16.msrb.mxu3 %v1583_v29 }
  0x9f   : > { %1046 = vmatpush.bf16.msrb.mxu0 %v1383_v35 }
  0xa0   : > { %1059 = vmatpush.bf16.msrb.mxu1 %v1447_v36 }
  0xa1   : > { %1072 = vmatpush.bf16.msrb.mxu2 %v1511_v37  ;;  %v1103_v37 = vlaneseq (%p582_p12) }
  0xa2   : > { %1085 = vmatpush.bf16.msrb.mxu3 %v1575_v41 }
  0xa3   : > { %1047 = vmatpush.bf16.msrb.mxu0 %v1375_v47  ;;  %vm1105_vm0 = vcmp.lt.s32.totalorder (%p582_p12), %v1103_v37, 256 }
  0xa4   : > { %1060 = vmatpush.bf16.msrb.mxu1 %v1439_v48  ;;  %1107 = vst.msk [vmem:[%s2025_s8] sm:$0x3] (%p582_p12), %vm1105_vm0, %v1793_v38 }
  0xa5   : > { %1073 = vmatpush.bf16.msrb.mxu2 %v1503_v49  ;;  %1108 = vst.msk [vmem:[%s2035_s12] sm:$0x3] (%p582_p12), %vm1105_vm0, %v1793_v38 }
  0xa6   : > { %1086 = vmatpush.bf16.msrb.mxu3 %v1567_v53 }
  0xa7   : > { %1048 = vmatpush.bf16.msrb.mxu0 %v1367_v62 }
  0xa8   : > { %1061 = vmatpush.bf16.msrb.mxu1 %v1431_v0 }
  0xa9   : > { %1074 = vmatpush.bf16.msrb.mxu2 %v1495_v1 }
  0xaa   : > { %1087 = vmatpush.bf16.msrb.mxu3 %v1559_v5 }
  0xab   : > { %1049 = vmatpush.bf16.msrb.mxu0 %v1359_v11 }
  0xac   : > { %1062 = vmatpush.bf16.msrb.mxu1 %v1423_v12 }
  0xad   : > { %1075 = vmatpush.bf16.msrb.mxu2 %v1487_v13 }
  0xae   : > { %1088 = vmatpush.bf16.msrb.mxu3 %v1551_v14  ;;  %1050 = vmatmul.bf16.vlgmr.msrb.gmra.mxu0 %v2126_v61 }
  0xaf   : > { %1063 = vmatmul.bf16.vlgmr.msrb.gmra.mxu1 %v2128_v63 }
  0xb0   : > { %1076 = vmatmul.bf16.vlgmr.msrb.gmra.mxu2 %v2120_v57 }
  0xb1   : > { %1089 = vmatmul.bf16.vlgmr.msrb.gmra.mxu3 %v2124_v60 }
 0x10b   : > { %v999_v15 = vpop.f32.mrf.mxu0 }
 0x10c   : > { %v1012_v16 = vpop.f32.mrf.mxu1 }
 0x10d   : > { %v1013_v17 = vadd.f32 %v1012_v16, %v999_v15 }
 0x113   : > { %v1025_v18 = vpop.f32.mrf.mxu2  ;;  %v1001_v23 = vpop.f32.mrf.mxu0 }
 0x114   : > { %v1026_v19 = vadd.f32 %v1025_v18, %v1013_v17  ;;  %v1038_v20 = vpop.f32.mrf.mxu3  ;;  %v1014_v24 = vpop.f32.mrf.mxu1 }
 0x116   : > { %v1039_v22 = vadd.f32 %v1038_v20, %v1026_v19 }
 0x118   : > { %v1094_v25 = vadd.f32 %v1039_v22, %v588_v21 }
 0x11a   : > { %1096 = vst [vmem:[#allocation2] sm:$0xff] %v1094_v25 }
 0x11b   : > { %v1027_v26 = vpop.f32.mrf.mxu2 }
 0x11c   : > { %v1040_v61 = vpop.f32.mrf.mxu3 }
 0x12b   : > { %v1051_v27 = vpop.f32.mrf.mxu0 }
 0x12c   : > { %v1064_v63 = vpop.f32.mrf.mxu1 }
 0x12d   : > { %v1065_v28 = vadd.f32 %v1064_v63, %v1051_v27 }
 0x133   : > { %v1077_v57 = vpop.f32.mrf.mxu2  ;;  %v1053_v30 = vpop.f32.mrf.mxu0 }
 0x134   : > { %v1078_v29 = vadd.f32 %v1077_v57, %v1065_v28  ;;  %v1090_v60 = vpop.f32.mrf.mxu3  ;;  %v1066_v32 = vpop.f32.mrf.mxu1 }
 0x136   : > { %v1091_v33 = vadd.f32 %v1090_v60, %v1078_v29 }
 0x138   : > { %v1095_v34 = vadd.f32 %v1091_v33, %v589_v31  ;;  %1102 = sbr.rel (!%p582_p12) target bundleno = 317 (0x13d), region = 74 }
 0x13a   : > { %1097 = vst [vmem:[#allocation2 + $0x8] sm:$0xff] %v1095_v34 }
 0x13b   : > { %v1079_v35 = vpop.f32.mrf.mxu2 }
 0x13c   : > { %v1092_v36 = vpop.f32.mrf.mxu3 }
 0x13d PF: > { %p1609_p0 = scmp.ne.s32.totalorder %s1774_s17, 26 }
 0x13f   : > { %1112 = sbr.rel (%p1609_p0) target bundleno = 346 (0x15a), region = 78 }
 0x144   : > { %v1113_v39 = vld [vmem:[#allocation2] sm:$0xff]  ;;  %v1114_v40 = vld [vmem:[#allocation2 + $0x8] sm:$0xff]  ;;  %v1137_v4 = vlaneseq  ;;  %vm1133_vm1 = vcmask 1040384  }
 0x145   : > { %v1115_v41 = vpack.c.bf16 %v1114_v40, %v1113_v39  ;;  %v1118_v42 = vrot.slane %v1113_v39, 4  ;;  %v1124_v43 = vrot.slane %v1114_v40, 4  ;;  %v1143_v44 = vmul.f32 %v1113_v39, %v1113_v39  ;;  %v1117_v7 = vld [vmem:[%s2025_s8] sm:$0x3] }
 0x146   : > { %v1144_v45 = vmul.f32 %v1114_v40, %v1114_v40  ;;  %vm1139_vm2 = vcmp.lt.s32.totalorder %v1137_v4, 256  ;;  %v1142_v13 = vld [vmem:[%s2035_s12] sm:$0x3] }
 0x147   : > { %1116 = vst [vmem:[%s2030_s18] sm:$0xff] %v1115_v41  ;;  %v1119_v46 = vadd.f32 %v1118_v42, %v1113_v39  ;;  %v1125_v47 = vadd.f32 %v1124_v43, %v1114_v40  ;;  %v1145_v48 = vrot.slane %v1143_v44, 4 }
 0x148   : > { %v1151_v49 = vrot.slane %v1144_v45, 4 }
 0x149   : > { %v1120_v50 = vrot.slane %v1119_v46, 2  ;;  %v1126_v51 = vrot.slane %v1125_v47, 2  ;;  %v1146_v52 = vadd.f32 %v1145_v48, %v1143_v44 }
 0x14a   : > { %v1152_v53 = vadd.f32 %v1151_v49, %v1144_v45 }
 0x14b   : > { %v1121_v54 = vadd.f32 %v1120_v50, %v1119_v46  ;;  %v1127_v55 = vadd.f32 %v1126_v51, %v1125_v47  ;;  %v1147_v56 = vrot.slane %v1146_v52, 2 }
 0x14c   : > { %v1153_v58 = vrot.slane %v1152_v53, 2 }
 0x14d   : > { %v1122_v59 = vrot.slane %v1121_v54, 1  ;;  %v1128_v62 = vrot.slane %v1127_v55, 1  ;;  %v1148_v0 = vadd.f32 %v1147_v56, %v1146_v52 }
 0x14e   : > { %v1154_v1 = vadd.f32 %v1153_v58, %v1152_v53 }
 0x14f   : > { %v1123_v2 = vadd.f32 %v1122_v59, %v1121_v54  ;;  %v1129_v3 = vadd.f32 %v1128_v62, %v1127_v55  ;;  %v1149_v5 = vrot.slane %v1148_v0, 1 }
 0x150   : > { %v1155_v6 = vrot.slane %v1154_v1, 1 }
 0x151   : > { %v1132_v8 = vrot.slane %v1129_v3, 7  ;;  %v1150_v9 = vadd.f32 %v1149_v5, %v1148_v0 }
 0x152   : > { %v1156_v10 = vadd.f32 %v1155_v6, %v1154_v1 }
 0x153   : > { %v1134_v11 = vsel %vm1133_vm1, %v1123_v2, %v1132_v8 }
 0x154   : > { %v1136_v12 = vadd.f32 %v1134_v11, %v1117_v7  ;;  %v1159_v14 = vrot.slane %v1156_v10, 7 }
 0x156   : > { %1141 = vst.msk [vmem:[%s2025_s8] sm:$0x3] %vm1139_vm2, %v1136_v12  ;;  %v1160_v15 = vsel %vm1133_vm1, %v1150_v9, %v1159_v14 }
 0x157   : > { %v1162_v16 = vadd.f32 %v1160_v15, %v1142_v13 }
 0x159   : > { %1163 = vst.msk [vmem:[%s2035_s12] sm:$0x3] %vm1139_vm2, %v1162_v16 }
 0x15a PF: > { %s15_s21 = sadd.s32 1, %s1790_s21   ;;  %s2222_s15 = smov %s1770_s16 }
 0x15b   : > { %p12_p1 = scmp.ge.s32.totalorder %s15_s21, 56   ;;  %s2223_s16 = smov %s1870_s28 }
 0x15c   : > { %s2224_s17 = smov %s1782_s19  ;;  %s2225_s18 = smov %s1786_s20 }
 0x15d   : > { %s2226_s19 = smov %s2229_s22  ;;  %s2227_s20 = smov %s2233_s23 }
 0x15e   :  { %14 = sbr.rel (!%p12_p1) target bundleno = 4 (0x4), region = 140 }

// kernel: forward.68
= control target key start
LH: loop header
LB: loop body
LE: loop exit
PB: predicated region body
PF: predicated region fallthrough
CT: control target
= control target key end

     0   :  { %s219_s6 = smov 0   ;;  %s230_s0 = inlined_call_operand.vmem [shape: bf16[2,1,512], index: 0, kind: input, shape index: {}]   ;;  %s231_s1 = inlined_call_operand.vmem [shape: f32[2,1,512], index: 1, kind: output, shape index: {}]  }
   0x1 LB: > { %s184_s7 = sadd.s32 4294967295, %s207_s6   ;;  %p188_p0 = scmp.ge.s32.totalorder %s207_s6, 1  ;;  %s207_s6 = sphi %s219_s6, %s11_s6  }
   0x2   : > { %p86_p1 = scmp.lt.s32.totalorder %s207_s6, 3 }
   0x4   : > { %p87_p2 = pnand %p188_p0, %p86_p1 }
   0x5   : > { %p104_p3 = scmp.lt.s32.totalorder (!%p87_p2), %s184_s7, 1 }
   0x6   : > { %90 = sbr.rel (%p87_p2) target bundleno = 22 (0x16), region = 24 }
   0xb   : > { %s233_s7 = smov (!%p104_p3, %s184_s7), 1  ;;  %v126_v1 = vlaneseq  ;;  %vm119_vm0 = vcmask 1040384   ;;  %vm121_vm1 = vcmask 1042434   ;;  %vm123_vm2 = vcmask 1041408  }
   0xc   : > { %s189_s8 = sshll.u32 %s233_s7, 2 }
   0xd   : > { %s107_s11 = scalar_lea.vmem %s230_s0, %s189_s8  ;;  %s111_s14 = scalar_lea.vmem %s231_s1, %s189_s8  ;;  %vm128_vm3 = vcmp.lt.s32.totalorder %v126_v1, 512 }
   0xe   : > { %v112_v0 = vld [vmem:[%s107_s11] sm:$0xf] }
   0xf   : > { %v113_v2 = vunpack.c.l.bf16 %v112_v0 }
  0x11   : > { %v116_v3 = vrot.slane %v113_v2, 1  ;;  %v117_v4 = vrot.slane %v113_v2, 2  ;;  %v118_v5 = vrot.slane %v113_v2, 3 }
  0x13   : > { %v120_v6 = vsel %vm119_vm0, %v113_v2, %v116_v3  ;;  %v122_v7 = vsel %vm121_vm1, %v117_v4, %v118_v5 }
  0x14   : > { %v124_v8 = vsel %vm123_vm2, %v120_v6, %v122_v7 }
  0x15   : > { %130 = vst.msk [vmem:[%s111_s14] sm:$0xf] %vm128_vm3, %v124_v8 }
  0x16 PF: > { %s11_s6 = sadd.s32 1, %s207_s6  }
  0x17   : > { %p8_p4 = scmp.ge.s32.totalorder %s11_s6, 4  }
  0x19   :  { %10 = sbr.rel (!%p8_p4) target bundleno = 1 (0x1), region = 54 }

// kernel: forward.69
= control target key start
LH: loop header
LB: loop body
LE: loop exit
PB: predicated region body
PF: predicated region fallthrough
CT: control target
= control target key end

     0   :  { %s649_s1 = inlined_call_operand.vmem [shape: bf16[512,128], index: 1, kind: input, shape index: {}]   ;;  %s650_s0 = inlined_call_operand.vmem [shape: bf16[8,512], index: 0, kind: input, shape index: {}]   ;;  %s651_s2 = inlined_call_operand.vmem [shape: f32[1,128], index: 2, kind: input, shape index: {}]   ;;  %s652_s3 = inlined_call_operand.vmem [shape: f32[8,128], index: 3, kind: output, shape index: {}]  }
   0x1   :  { %v495_v0 = vld [vmem:[%s649_s1 + $0x38] sm:$0xff]  ;;  %v494_v4 = vld [vmem:[%s649_s1 + $0x30] sm:$0xff]  ;;  %v493_v8 = vld [vmem:[%s649_s1 + $0x28] sm:$0xff] }
   0x2   :  { %v503_v1 = vld [vmem:[%s649_s1 + $0x78] sm:$0xff]  ;;  %292 = vmatpush.bf16.msra.mxu0 %v495_v0  ;;  %v502_v5 = vld [vmem:[%s649_s1 + $0x70] sm:$0xff]  ;;  %v501_v9 = vld [vmem:[%s649_s1 + $0x68] sm:$0xff] }
   0x3   :  { %v511_v2 = vld [vmem:[%s649_s1 + $0xb8] sm:$0xff]  ;;  %305 = vmatpush.bf16.msra.mxu1 %v503_v1  ;;  %v510_v6 = vld [vmem:[%s649_s1 + $0xb0] sm:$0xff]  ;;  %v509_v10 = vld [vmem:[%s649_s1 + $0xa8] sm:$0xff] }
   0x4   :  { %v519_v3 = vld [vmem:[%s649_s1 + $0xf8] sm:$0xff]  ;;  %318 = vmatpush.bf16.msra.mxu2 %v511_v2  ;;  %v518_v7 = vld [vmem:[%s649_s1 + $0xf0] sm:$0xff]  ;;  %v517_v11 = vld [vmem:[%s649_s1 + $0xe8] sm:$0xff] }
   0x5   :  { %331 = vmatpush.bf16.msra.mxu3 %v519_v3  ;;  %v492_v12 = vld [vmem:[%s649_s1 + $0x20] sm:$0xff]  ;;  %v491_v16 = vld [vmem:[%s649_s1 + $0x18] sm:$0xff]  ;;  %v490_v20 = vld [vmem:[%s649_s1 + $0x10] sm:$0xff] }
   0x6   :  { %293 = vmatpush.bf16.msra.mxu0 %v494_v4  ;;  %v500_v13 = vld [vmem:[%s649_s1 + $0x60] sm:$0xff]  ;;  %v499_v17 = vld [vmem:[%s649_s1 + $0x58] sm:$0xff]  ;;  %v498_v21 = vld [vmem:[%s649_s1 + $0x50] sm:$0xff] }
   0x7   :  { %306 = vmatpush.bf16.msra.mxu1 %v502_v5  ;;  %v508_v14 = vld [vmem:[%s649_s1 + $0xa0] sm:$0xff]  ;;  %v507_v18 = vld [vmem:[%s649_s1 + $0x98] sm:$0xff]  ;;  %v506_v22 = vld [vmem:[%s649_s1 + $0x90] sm:$0xff] }
   0x8   :  { %319 = vmatpush.bf16.msra.mxu2 %v510_v6  ;;  %v516_v15 = vld [vmem:[%s649_s1 + $0xe0] sm:$0xff]  ;;  %v515_v19 = vld [vmem:[%s649_s1 + $0xd8] sm:$0xff]  ;;  %v514_v23 = vld [vmem:[%s649_s1 + $0xd0] sm:$0xff] }
   0x9   :  { %332 = vmatpush.bf16.msra.mxu3 %v518_v7  ;;  %v489_v24 = vld [vmem:[%s649_s1 + $0x8] sm:$0xff]  ;;  %v20_v26 = vld [vmem:[%s650_s0] sm:$0xff] }
   0xa   :  { %294 = vmatpush.bf16.msra.mxu0 %v493_v8  ;;  %v497_v25 = vld [vmem:[%s649_s1 + $0x48] sm:$0xff]  ;;  %v88_v30 = vunpack.c.l.b16 %v20_v26  ;;  %v89_v31 = vunpack.c.h.b16 %v20_v26  ;;  %v488_v32 = vld [vmem:[%s649_s1] sm:$0xff] }
   0xb   :  { %307 = vmatpush.bf16.msra.mxu1 %v501_v9  ;;  %v505_v27 = vld [vmem:[%s649_s1 + $0x88] sm:$0xff]  ;;  %v496_v33 = vld [vmem:[%s649_s1 + $0x40] sm:$0xff] }
   0xc   :  { %320 = vmatpush.bf16.msra.mxu2 %v509_v10  ;;  %v513_v28 = vld [vmem:[%s649_s1 + $0xc8] sm:$0xff]  ;;  %v504_v36 = vld [vmem:[%s649_s1 + $0x80] sm:$0xff]  ;;  %v92_v38 = vpack.c.b16 %v88_v30, %v88_v30  ;;  %v93_v39 = vpack.c.b16 %v89_v31, %v89_v31 }
   0xd   :  { %333 = vmatpush.bf16.msra.mxu3 %v517_v11  ;;  %v21_v29 = vld [vmem:[%s650_s0 + $0x8] sm:$0xff]  ;;  %v512_v37 = vld [vmem:[%s649_s1 + $0xc0] sm:$0xff] }
   0xe   :  { %295 = vmatpush.bf16.msra.mxu0 %v492_v12  ;;  %v90_v34 = vunpack.c.l.b16 %v21_v29  ;;  %v91_v35 = vunpack.c.h.b16 %v21_v29  ;;  %v520_v48 = vld [vmem:[%s651_s2] ss:$0 sm:$0xff] }
   0xf   :  { %308 = vmatpush.bf16.msra.mxu1 %v500_v13 }
  0x10   :  { %321 = vmatpush.bf16.msra.mxu2 %v508_v14  ;;  %v94_v40 = vpack.c.b16 %v90_v34, %v90_v34  ;;  %v95_v41 = vpack.c.b16 %v91_v35, %v91_v35 }
  0x11   :  { %334 = vmatpush.bf16.msra.mxu3 %v516_v15 }
  0x12   :  { %296 = vmatpush.bf16.msra.mxu0 %v491_v16 }
  0x13   :  { %309 = vmatpush.bf16.msra.mxu1 %v499_v17 }
  0x14   :  { %322 = vmatpush.bf16.msra.mxu2 %v507_v18 }
  0x15   :  { %335 = vmatpush.bf16.msra.mxu3 %v515_v19 }
  0x16   :  { %297 = vmatpush.bf16.msra.mxu0 %v490_v20 }
  0x17   :  { %310 = vmatpush.bf16.msra.mxu1 %v498_v21 }
  0x18   :  { %323 = vmatpush.bf16.msra.mxu2 %v506_v22 }
  0x19   :  { %336 = vmatpush.bf16.msra.mxu3 %v514_v23 }
  0x1a   :  { %298 = vmatpush.bf16.msra.mxu0 %v489_v24 }
  0x1b   :  { %311 = vmatpush.bf16.msra.mxu1 %v497_v25 }
  0x1c   :  { %324 = vmatpush.bf16.msra.mxu2 %v505_v27 }
  0x1d   :  { %337 = vmatpush.bf16.msra.mxu3 %v513_v28 }
  0x1e   :  { %299 = vmatpush.bf16.msra.mxu0 %v488_v32 }
  0x1f   :  { %312 = vmatpush.bf16.msra.mxu1 %v496_v33 }
  0x20   :  { %325 = vmatpush.bf16.msra.mxu2 %v504_v36 }
  0x21   :  { %338 = vmatpush.bf16.msra.mxu3 %v512_v37  ;;  %300 = vmatmul.bf16.vlgmr.msra.gmra.mxu0 %v92_v38 }
  0x22   :  { %313 = vmatmul.bf16.vlgmr.msra.gmra.mxu1 %v93_v39 }
  0x23   :  { %326 = vmatmul.bf16.vlgmr.msra.gmra.mxu2 %v94_v40 }
  0x24   :  { %339 = vmatmul.bf16.vlgmr.msra.gmra.mxu3 %v95_v41 }
  0x9e   :  { %v301_v42 = vpop.f32.mrf.mxu0 }
  0x9f   :  { %v314_v43 = vpop.f32.mrf.mxu1 }
  0xa0   :  { %v315_v44 = vadd.f32 %v314_v43, %v301_v42 }
  0xa6   :  { %v327_v45 = vpop.f32.mrf.mxu2  ;;  %v303_v49 = vpop.f32.mrf.mxu0 }
  0xa7   :  { %v340_v46 = vpop.f32.mrf.mxu3  ;;  %v328_v47 = vadd.f32 %v327_v45, %v315_v44  ;;  %v316_v50 = vpop.f32.mrf.mxu1 }
  0xa9   :  { %v341_v51 = vadd.f32 %v340_v46, %v328_v47 }
  0xab   :  { %v354_v52 = vadd.f32 %v520_v48, %v341_v51 }
  0xad   :  { %355 = vst [vmem:[%s652_s3] sm:$0xff] %v354_v52 }
  0xae   :  { %v329_v53 = vpop.f32.mrf.mxu2 }
  0xaf   :  { %v342_v54 = vpop.f32.mrf.mxu3 }

</bundles_post_ra>
